<compile_context>
chip_gen: v6e
topology: v6e:2x2x1
jax: 0.10.0
libtpu: 0.0.40
codegen_flags: <defaults>
</compile_context>

<pallas_src>
import functools

import jax
import jax.numpy as jnp
from jax.experimental import pallas as pl
from jax.experimental.pallas import tpu as pltpu

N_MFCC = 40
CONV_CH = 64          # conv channel width (MFCC channels zero-padded 40 -> 64)
HIDDEN = 256
N_CLASSES = 11
CLS_PAD = 128         # classifier output padded to a full lane width
HALO = 16             # conv halo offset in the VMEM scratch (bf16-tile aligned)


def _sigmoid(x):
    # sigmoid via tanh identity: transcendental goes to the EUP slot, no VPU divide.
    return 0.5 * jnp.tanh(0.5 * x) + 0.5


# --------------------------------------------------------------------------
# Kernel 1: fused (x + 1e-6) -> InstanceNorm1d -> 4 x [Conv1d(3,p=1) + BN + ReLU]
# One grid step per batch element; all intermediates stay in VMEM.
# The conv halo is handled with a zeroed VMEM scratch buffer (no HBM padding).
# --------------------------------------------------------------------------
def convstack_kernel(*refs, n_layers):
    x_ref = refs[0]                       # (T, 64) f32 (channels 40..63 are zero)
    o_ref = refs[1 + 3 * n_layers]        # (T, 64) f32
    hp_ref = refs[2 + 3 * n_layers]       # (T + 2*HALO, 64) bf16 scratch
    T, C = x_ref.shape

    # +1e-6 then InstanceNorm over time per channel (biased var, eps=1e-5).
    # Zero-padded channels are constant -> stay exactly 0 after normalization.
    x = x_ref[...].astype(jnp.float32) + 1e-6
    mean = jnp.mean(x, axis=0, keepdims=True)
    var = jnp.mean((x - mean) ** 2, axis=0, keepdims=True)
    h = (x - mean) * jax.lax.rsqrt(var + 1e-5)

    hp_ref[...] = jnp.zeros_like(hp_ref)  # zero halo rows once
    for l in range(n_layers):
        w_ref = refs[1 + 3 * l]           # (3, 64, 64) bf16
        s_ref = refs[2 + 3 * l]           # (1, 64) f32  (folded BN scale)
        b_ref = refs[3 + 3 * l]           # (1, 64) f32  (folded BN bias)
        hp_ref[pl.ds(HALO, T), :] = h.astype(hp_ref.dtype)
        acc = jnp.zeros((T, C), jnp.float32)
        for k in range(3):                # conv as 3 shifted MXU matmuls
            acc = acc + jnp.dot(hp_ref[pl.ds(HALO - 1 + k, T), :], w_ref[k],
                                preferred_element_type=jnp.float32)
        h = jnp.maximum(acc * s_ref[...] + b_ref[...], 0.0)

    o_ref[...] = h.astype(o_ref.dtype)


def conv_stack(x, convs):
    # x: [B, T, 64] channels-last -> [B, T, 64]
    B, T, C = x.shape
    args = [x]
    in_specs = [pl.BlockSpec((None, T, C), lambda b: (b, 0, 0))]
    for layer in convs:
        args += [layer["w"], layer["scale"], layer["bias"]]
        in_specs += [
            pl.BlockSpec((3, C, C), lambda b: (0, 0, 0)),
            pl.BlockSpec((1, C), lambda b: (0, 0)),
            pl.BlockSpec((1, C), lambda b: (0, 0)),
        ]
    return pl.pallas_call(
        functools.partial(convstack_kernel, n_layers=len(convs)),
        out_shape=jax.ShapeDtypeStruct((B, T, C), jnp.float32),
        grid=(B,),
        in_specs=in_specs,
        out_specs=pl.BlockSpec((None, T, C), lambda b: (b, 0, 0)),
        scratch_shapes=[pltpu.VMEM((T + 2 * HALO, C), jnp.bfloat16)],
        compiler_params=pltpu.CompilerParams(dimension_semantics=("parallel",)),
    )(*args)


# --------------------------------------------------------------------------
# Kernel 2: generic row-tiled  X @ W + b  (bf16 MXU, f32 accumulate).
# Used for the hoisted LSTM input projections and for the classifier.
# --------------------------------------------------------------------------
def matmul_bias_kernel(x_ref, w_ref, b_ref, o_ref):
    acc = jnp.dot(x_ref[...].astype(jnp.bfloat16), w_ref[...],
                  preferred_element_type=jnp.float32)
    o_ref[...] = (acc + b_ref[...]).astype(o_ref.dtype)


def matmul_bias(x, w, b, tm=256):
    rows, din = x.shape
    dout = w.shape[-1]
    tm = min(tm, rows)
    return pl.pallas_call(
        matmul_bias_kernel,
        out_shape=jax.ShapeDtypeStruct((rows, dout), jnp.float32),
        grid=(pl.cdiv(rows, tm),),
        in_specs=[
            pl.BlockSpec((tm, din), lambda r: (r, 0)),
            pl.BlockSpec((din, dout), lambda r: (0, 0)),
            pl.BlockSpec((1, dout), lambda r: (0, 0)),
        ],
        out_specs=pl.BlockSpec((tm, dout), lambda r: (r, 0)),
        compiler_params=pltpu.CompilerParams(dimension_semantics=("parallel",)),
    )(x, w, b)


# --------------------------------------------------------------------------
# Kernel 3: bidirectional LSTM recurrence.
#   grid = (direction, time-chunks); direction is "parallel" (v7x: 2 cores),
#   time is "arbitrary".  Only h @ W_hh is computed per step; the precomputed
#   gate inputs (x @ W_ih + b) are streamed in per chunk.  Backward-direction
#   time reversal happens in the index_map + in-chunk row index.
# --------------------------------------------------------------------------
def lstm_recurrent_kernel(g_ref, whh_ref, o_ref, h_scr, c_scr, *, t_chunk):
    d = pl.program_id(0)       # direction: 0 = forward, 1 = backward
    tc = pl.program_id(1)      # time chunk (increasing recurrence step order)

    @pl.when(tc == 0)
    def _():
        h_scr[...] = jnp.zeros_like(h_scr)
        c_scr[...] = jnp.zeros_like(c_scr)

    H = h_scr.shape[-1]

    def step(i, carry):
        # forward: row i of the chunk; backward: row t_chunk-1-i (reversed).
        row = i + d * (t_chunk - 1 - 2 * i)
        g_in = g_ref[row]                                     # (B, 4H) f32
        gates = g_in + jnp.dot(h_scr[...].astype(jnp.bfloat16), whh_ref[...],
                               preferred_element_type=jnp.float32)
        i_g = _sigmoid(gates[:, 0 * H:1 * H])                 # PyTorch gate order
        f_g = _sigmoid(gates[:, 1 * H:2 * H])
        g_g = jnp.tanh(gates[:, 2 * H:3 * H])
        o_g = _sigmoid(gates[:, 3 * H:4 * H])
        c = f_g * c_scr[...] + i_g * g_g
        h_new = o_g * jnp.tanh(c)
        c_scr[...] = c
        h_scr[...] = h_new
        o_ref[row] = h_new.astype(o_ref.dtype)
        return carry

    jax.lax.fori_loop(0, t_chunk, step, 0)


def lstm_bidir_layer(x_rows, wih, b, whh, T, Bsz, t_chunk):
    # x_rows: [T*B, Din] time-major rows -> [T*B, 2H]
    H = HIDDEN
    # Hoisted input projection for both directions in one big MXU matmul.
    gates = matmul_bias(x_rows, wih, b)              # [T*B, 8H] f32
    gates = gates.reshape(T, Bsz, 8 * H)             # free reshape (row-major)
    nchunks = T // t_chunk

    out = pl.pallas_call(
        functools.partial(lstm_recurrent_kernel, t_chunk=t_chunk),
        out_shape=jax.ShapeDtypeStruct((T, Bsz, 2 * H), jnp.float32),
        grid=(2, nchunks),
        in_specs=[
            # fwd reads chunks in order; bwd reads them reversed (and its 4H slice).
            pl.BlockSpec((t_chunk, Bsz, 4 * H),
                         lambda d, tc: (tc + d * (nchunks - 1 - 2 * tc), 0, d)),
            pl.BlockSpec((None, H, 4 * H), lambda d, tc: (d, 0, 0)),
        ],
        out_specs=pl.BlockSpec((t_chunk, Bsz, H),
                               lambda d, tc: (tc + d * (nchunks - 1 - 2 * tc), 0, d)),
        scratch_shapes=[pltpu.VMEM((Bsz, H), jnp.float32),   # h state
                        pltpu.VMEM((Bsz, H), jnp.float32)],  # c state
        compiler_params=pltpu.CompilerParams(
            dimension_semantics=("parallel", "arbitrary")),
    )(gates, whh)
    return out.reshape(T * Bsz, 2 * H)


def _pick_chunk(T, cap=64):
    best = 1
    for c in range(1, min(T, cap) + 1):
        if T % c == 0:
            best = c
    return best


# --------------------------------------------------------------------------
# Parameters (deterministic synthetic init; shapes follow the nn.Module,
# stored in the layouts the kernels consume: bf16 matmul weights, folded BN).
# --------------------------------------------------------------------------
def init_params(key):
    params = {}

    convs = []
    for cin, cout in [(N_MFCC, 64), (64, 64), (64, 64), (64, 64)]:
        key, k1, k2, k3, k4, k5 = jax.random.split(key, 6)
        w = jax.random.normal(k1, (3, cin, cout), jnp.float32) / jnp.sqrt(3.0 * cin)
        if cin < CONV_CH:
            w = jnp.pad(w, ((0, 0), (0, CONV_CH - cin), (0, 0)))  # pad Cin 40 -> 64
        gamma = 1.0 + 0.1 * jax.random.normal(k2, (1, cout), jnp.float32)
        beta = 0.1 * jax.random.normal(k3, (1, cout), jnp.float32)
        rmean = 0.1 * jax.random.normal(k4, (1, cout), jnp.float32)
        rvar = 1.0 + 0.1 * jax.random.uniform(k5, (1, cout), jnp.float32)
        scale = gamma / jnp.sqrt(rvar + 1e-5)
        bias = beta - rmean * scale
        convs.append({"w": w.astype(jnp.bfloat16), "scale": scale, "bias": bias})
    params["convs"] = convs

    lstm = []
    din = CONV_CH
    s = 1.0 / jnp.sqrt(float(HIDDEN))
    for _ in range(3):
        wih_dirs, whh_dirs, b_dirs = [], [], []
        for _ in range(2):  # forward, backward
            key, k1, k2, k3, k4 = jax.random.split(key, 5)
            wih = jax.random.uniform(k1, (din, 4 * HIDDEN), jnp.float32, -s, s)
            whh = jax.random.uniform(k2, (HIDDEN, 4 * HIDDEN), jnp.float32, -s, s)
            bb = (jax.random.uniform(k3, (4 * HIDDEN,), jnp.float32, -s, s)
                  + jax.random.uniform(k4, (4 * HIDDEN,), jnp.float32, -s, s))
            wih_dirs.append(wih); whh_dirs.append(whh); b_dirs.append(bb)
        lstm.append({
            "wih": jnp.concatenate(wih_dirs, axis=1).astype(jnp.bfloat16),  # [Din, 8H]
            "whh": jnp.stack(whh_dirs, axis=0).astype(jnp.bfloat16),        # [2, H, 4H]
            "b": jnp.concatenate(b_dirs, axis=0)[None, :],                  # [1, 8H]
        })
        din = 2 * HIDDEN
    params["lstm"] = lstm

    key, k1, k2 = jax.random.split(key, 3)
    sc = 1.0 / jnp.sqrt(2.0 * HIDDEN)
    cls_w = jax.random.uniform(k1, (2 * HIDDEN, N_CLASSES), jnp.float32, -sc, sc)
    cls_b = jax.random.uniform(k2, (N_CLASSES,), jnp.float32, -sc, sc)
    params["cls_w"] = jnp.pad(cls_w, ((0, 0), (0, CLS_PAD - N_CLASSES))).astype(jnp.bfloat16)
    params["cls_b"] = jnp.pad(cls_b, (0, CLS_PAD - N_CLASSES))[None, :]
    return params


# --------------------------------------------------------------------------
# Full forward pass
# --------------------------------------------------------------------------
def speech_model_forward(x_mfcc, params):
    # TODO(synk): torchaudio.transforms.MFCC(sample_rate=8000, n_mfcc=40) front-end
    # is not translated; the kernel consumes MFCC features [B, 40, T] directly.
    B, C, T = x_mfcc.shape

    # channels-last + zero-pad channels 40 -> 64 (exact no-op through instnorm/conv)
    x = jnp.transpose(x_mfcc, (0, 2, 1))                       # [B, T, 40]  (tiny)
    x = jnp.pad(x, ((0, 0), (0, 0), (0, CONV_CH - C)))         # [B, T, 64]

    y = conv_stack(x, params["convs"])                         # [B, T, 64]

    # time-major rows for the LSTM stack (single cheap transpose; reshape is free)
    y = jnp.transpose(y, (1, 0, 2)).reshape(T * B, CONV_CH)    # [T*B, 64]

    t_chunk = _pick_chunk(T)
    for layer in params["lstm"]:                               # 3 bi-LSTM layers
        y = lstm_bidir_layer(y, layer["wih"], layer["b"], layer["whh"],
                             T, B, t_chunk)                    # [T*B, 512]

    logits = matmul_bias(y, params["cls_w"], params["cls_b"])  # [T*B, 128] lane-dense
    logits = logits[:, :N_CLASSES].reshape(T, B, N_CLASSES)
    return jnp.transpose(logits, (1, 0, 2))                    # [B, T, n_classes]


if __name__ == "__main__":
    key = jax.random.PRNGKey(0)
    k_in, k_par = jax.random.split(key)

    B, T = 2, 16
    x = jax.random.normal(k_in, (B, N_MFCC, T), jnp.float32)   # MFCC features [B, 40, T]
    params = init_params(k_par)

    fwd = jax.jit(speech_model_forward)
    out = jax.block_until_ready(fwd(x, params))
    assert out.shape == (B, T, N_CLASSES), out.shape
    assert bool(jnp.all(jnp.isfinite(out)))
    print("KERNEL_OK")
</pallas_src>

<mosaic_0001>
module attributes {stable_mosaic.version = 11 : i64} {
  func.func @matmul_bias_kernel(%arg0: i32, %arg1: memref<32x64xf32, #tpu.memory_space<vmem>>, %arg2: memref<64x2048xbf16, #tpu.memory_space<vmem>>, %arg3: memref<1x2048xf32, #tpu.memory_space<vmem>>, %arg4: memref<32x2048xf32, #tpu.memory_space<vmem>>) attributes {dimension_semantics = [#tpu.dimension_semantics<parallel>], iteration_bounds = array<i64: 1>, scalar_prefetch = 0 : i64, scratch_operands = 0 : i64, tpu.core_type = #tpu.core_type<tc>, window_params = [{transform_indices = @transform_0, window_bounds = array<i64: 32, 64>}, {pipeline_mode = #tpu.pipeline_mode<synchronous>, transform_indices = @transform_1, window_bounds = array<i64: 64, 2048>}, {pipeline_mode = #tpu.pipeline_mode<synchronous>, transform_indices = @transform_2, window_bounds = array<i64: 1, 2048>}, {transform_indices = @transform_3, window_bounds = array<i64: 32, 2048>}]} {
    %c0 = arith.constant 0 : index
    %c0_0 = arith.constant 0 : index
    %0 = vector.load %arg1[%c0, %c0_0] : memref<32x64xf32, #tpu.memory_space<vmem>>, vector<32x64xf32>
    %1 = arith.truncf %0 : vector<32x64xf32> to vector<32x64xbf16>
    %c0_1 = arith.constant 0 : index
    %c0_2 = arith.constant 0 : index
    %2 = vector.load %arg2[%c0_1, %c0_2] : memref<64x2048xbf16, #tpu.memory_space<vmem>>, vector<64x2048xbf16>
    %cst = arith.constant dense<0.000000e+00> : vector<32x2048xf32>
    %3 = tpu.matmul %1, %2, %cst {dimension_numbers = #tpu.dot_dimension_numbers<[1], [0], [0], [1], [0, 0, 1, 1], [], []>} : vector<32x64xbf16>, vector<64x2048xbf16>, vector<32x2048xf32> -> vector<32x2048xf32>
    %c0_3 = arith.constant 0 : index
    %c0_4 = arith.constant 0 : index
    %4 = vector.load %arg3[%c0_3, %c0_4] : memref<1x2048xf32, #tpu.memory_space<vmem>>, vector<1x2048xf32>
    %5 = vector.broadcast %4 : vector<1x2048xf32> to vector<32x2048xf32>
    %6 = arith.addf %3, %5 : vector<32x2048xf32>
    %c0_5 = arith.constant 0 : index
    %c0_6 = arith.constant 0 : index
    %7 = vector.load %arg4[%c0_5, %c0_6] : memref<32x2048xf32, #tpu.memory_space<vmem>>, vector<32x2048xf32>
    tpu.vector_store %arg4[%c0_5, %c0_6], %6 {strides = array<i32>} : memref<32x2048xf32, #tpu.memory_space<vmem>>, vector<32x2048xf32>,
    return
  }
  func.func @transform_0(%arg0: i32) -> (i32, i32) {
    %c0_i32 = arith.constant 0 : i32
    %c0_i32_0 = arith.constant 0 : i32
    return %arg0, %c0_i32 : i32, i32
  }
  func.func @transform_1(%arg0: i32) -> (i32, i32) {
    %c0_i32 = arith.constant 0 : i32
    %c0_i32_0 = arith.constant 0 : i32
    %c0_i32_1 = arith.constant 0 : i32
    return %c0_i32, %c0_i32_0 : i32, i32
  }
  func.func @transform_2(%arg0: i32) -> (i32, i32) {
    %c0_i32 = arith.constant 0 : i32
    %c0_i32_0 = arith.constant 0 : i32
    %c0_i32_1 = arith.constant 0 : i32
    return %c0_i32, %c0_i32_0 : i32, i32
  }
  func.func @transform_3(%arg0: i32) -> (i32, i32) {
    %c0_i32 = arith.constant 0 : i32
    %c0_i32_0 = arith.constant 0 : i32
    return %arg0, %c0_i32 : i32, i32
  }
}

module attributes {stable_mosaic.version = 11 : i64} {
  func.func @lstm_recurrent_kernel(%arg0: i32, %arg1: i32, %arg2: memref<16x2x1024xf32, #tpu.memory_space<vmem>>, %arg3: memref<1x256x1024xbf16, #tpu.memory_space<vmem>>, %arg4: memref<16x2x256xf32, #tpu.memory_space<vmem>>, %arg5: memref<2x256xf32, #tpu.memory_space<vmem>>, %arg6: memref<2x256xf32, #tpu.memory_space<vmem>>) attributes {dimension_semantics = [#tpu.dimension_semantics<parallel>, #tpu.dimension_semantics<arbitrary>], iteration_bounds = array<i64: 2, 1>, scalar_prefetch = 0 : i64, scratch_operands = 2 : i64, tpu.core_type = #tpu.core_type<tc>, window_params = [{transform_indices = @transform_0, window_bounds = array<i64: 16, 2, 1024>}, {transform_indices = @transform_1, window_bounds = array<i64: 1, 256, 1024>}, {transform_indices = @transform_2, window_bounds = array<i64: 16, 2, 256>}]} {
    %c0_i32 = arith.constant 0 : i32
    %0 = arith.cmpi eq, %arg1, %c0_i32 : i32
    %1 = arith.extui %0 : i1 to i32
    %c0_i32_0 = arith.constant 0 : i32
    %2 = arith.cmpi ne, %1, %c0_i32_0 : i32
    scf.if %2 {
      %cst = arith.constant 0.000000e+00 : f32
      %4 = vector.broadcast %cst : f32 to vector<2x256xf32>
      %c0 = arith.constant 0 : index
      %c0_3 = arith.constant 0 : index
      %5 = vector.load %arg5[%c0, %c0_3] : memref<2x256xf32, #tpu.memory_space<vmem>>, vector<2x256xf32>
      tpu.vector_store %arg5[%c0, %c0_3], %4 {strides = array<i32>} : memref<2x256xf32, #tpu.memory_space<vmem>>, vector<2x256xf32>,
      %cst_4 = arith.constant 0.000000e+00 : f32
      %6 = vector.broadcast %cst_4 : f32 to vector<2x256xf32>
      %c0_5 = arith.constant 0 : index
      %c0_6 = arith.constant 0 : index
      %7 = vector.load %arg6[%c0_5, %c0_6] : memref<2x256xf32, #tpu.memory_space<vmem>>, vector<2x256xf32>
      tpu.vector_store %arg6[%c0_5, %c0_6], %6 {strides = array<i32>} : memref<2x256xf32, #tpu.memory_space<vmem>>, vector<2x256xf32>,
    } else {
    }
    %c0_i32_1 = arith.constant 0 : i32
    %c16_i32 = arith.constant 16 : i32
    %3 = arith.addi %c0_i32_1, %c16_i32 : i32
    %c1_i32 = arith.constant 1 : i32
    scf.for %arg7 = %c0_i32_1 to %3 step %c1_i32  : i32 {
      %c2_i32 = arith.constant 2 : i32
      %4 = arith.muli %c2_i32, %arg7 : i32
      %c15_i32 = arith.constant 15 : i32
      %5 = arith.subi %c15_i32, %4 : i32
      %6 = arith.muli %arg0, %5 : i32
      %7 = arith.addi %arg7, %6 : i32
      %8 = arith.index_cast %7 : i32 to index
      %c0 = arith.constant 0 : index
      %c0_3 = arith.constant 0 : index
      %9 = vector.load %arg2[%8, %c0, %c0_3] : memref<16x2x1024xf32, #tpu.memory_space<vmem>>, vector<1x2x1024xf32>
      %10 = vector.shape_cast %9 : vector<1x2x1024xf32> to vector<2x1024xf32>
      %c0_4 = arith.constant 0 : index
      %c0_5 = arith.constant 0 : index
      %11 = vector.load %arg5[%c0_4, %c0_5] : memref<2x256xf32, #tpu.memory_space<vmem>>, vector<2x256xf32>
      %12 = arith.truncf %11 : vector<2x256xf32> to vector<2x256xbf16>
      %c0_6 = arith.constant 0 : index
      %c0_7 = arith.constant 0 : index
      %c0_8 = arith.constant 0 : index
      %13 = vector.load %arg3[%c0_6, %c0_7, %c0_8] : memref<1x256x1024xbf16, #tpu.memory_space<vmem>>, vector<1x256x1024xbf16>
      %14 = vector.shape_cast %13 : vector<1x256x1024xbf16> to vector<256x1024xbf16>
      %cst = arith.constant dense<0.000000e+00> : vector<2x1024xf32>
      %15 = tpu.matmul %12, %14, %cst {dimension_numbers = #tpu.dot_dimension_numbers<[1], [0], [0], [1], [0, 0, 1, 1], [], []>} : vector<2x256xbf16>, vector<256x1024xbf16>, vector<2x1024xf32> -> vector<2x1024xf32>
      %16 = arith.addf %10, %15 : vector<2x1024xf32>
      %17 = vector.extract_strided_slice %16 {offsets = [0, 0], sizes = [2, 256], strides = [1, 1]} : vector<2x1024xf32> to vector<2x256xf32>
      %cst_9 = arith.constant 5.000000e-01 : f32
      %18 = vector.broadcast %cst_9 : f32 to vector<2x256xf32>
      %19 = arith.mulf %18, %17 : vector<2x256xf32>
      %20 = math.tanh %19 : vector<2x256xf32>
      %cst_10 = arith.constant 5.000000e-01 : f32
      %21 = vector.broadcast %cst_10 : f32 to vector<2x256xf32>
      %22 = arith.mulf %21, %20 : vector<2x256xf32>
      %cst_11 = arith.constant 5.000000e-01 : f32
      %23 = vector.broadcast %cst_11 : f32 to vector<2x256xf32>
      %24 = arith.addf %22, %23 : vector<2x256xf32>
      %25 = vector.extract_strided_slice %16 {offsets = [0, 256], sizes = [2, 256], strides = [1, 1]} : vector<2x1024xf32> to vector<2x256xf32>
      %cst_12 = arith.constant 5.000000e-01 : f32
      %26 = vector.broadcast %cst_12 : f32 to vector<2x256xf32>
      %27 = arith.mulf %26, %25 : vector<2x256xf32>
      %28 = math.tanh %27 : vector<2x256xf32>
      %cst_13 = arith.constant 5.000000e-01 : f32
      %29 = vector.broadcast %cst_13 : f32 to vector<2x256xf32>
      %30 = arith.mulf %29, %28 : vector<2x256xf32>
      %cst_14 = arith.constant 5.000000e-01 : f32
      %31 = vector.broadcast %cst_14 : f32 to vector<2x256xf32>
      %32 = arith.addf %30, %31 : vector<2x256xf32>
      %33 = vector.extract_strided_slice %16 {offsets = [0, 512], sizes = [2, 256], strides = [1, 1]} : vector<2x1024xf32> to vector<2x256xf32>
      %34 = math.tanh %33 : vector<2x256xf32>
      %35 = vector.extract_strided_slice %16 {offsets = [0, 768], sizes = [2, 256], strides = [1, 1]} : vector<2x1024xf32> to vector<2x256xf32>
      %cst_15 = arith.constant 5.000000e-01 : f32
      %36 = vector.broadcast %cst_15 : f32 to vector<2x256xf32>
      %37 = arith.mulf %36, %35 : vector<2x256xf32>
      %38 = math.tanh %37 : vector<2x256xf32>
      %cst_16 = arith.constant 5.000000e-01 : f32
      %39 = vector.broadcast %cst_16 : f32 to vector<2x256xf32>
      %40 = arith.mulf %39, %38 : vector<2x256xf32>
      %cst_17 = arith.constant 5.000000e-01 : f32
      %41 = vector.broadcast %cst_17 : f32 to vector<2x256xf32>
      %42 = arith.addf %40, %41 : vector<2x256xf32>
      %c0_18 = arith.constant 0 : index
      %c0_19 = arith.constant 0 : index
      %43 = vector.load %arg6[%c0_18, %c0_19] : memref<2x256xf32, #tpu.memory_space<vmem>>, vector<2x256xf32>
      %44 = arith.mulf %32, %43 : vector<2x256xf32>
      %45 = arith.mulf %24, %34 : vector<2x256xf32>
      %46 = arith.addf %44, %45 : vector<2x256xf32>
      %47 = math.tanh %46 : vector<2x256xf32>
      %48 = arith.mulf %42, %47 : vector<2x256xf32>
      %c0_20 = arith.constant 0 : index
      %c0_21 = arith.constant 0 : index
      %49 = vector.load %arg6[%c0_20, %c0_21] : memref<2x256xf32, #tpu.memory_space<vmem>>, vector<2x256xf32>
      tpu.vector_store %arg6[%c0_20, %c0_21], %46 {strides = array<i32>} : memref<2x256xf32, #tpu.memory_space<vmem>>, vector<2x256xf32>,
      %c0_22 = arith.constant 0 : index
      %c0_23 = arith.constant 0 : index
      %50 = vector.load %arg5[%c0_22, %c0_23] : memref<2x256xf32, #tpu.memory_space<vmem>>, vector<2x256xf32>
      tpu.vector_store %arg5[%c0_22, %c0_23], %48 {strides = array<i32>} : memref<2x256xf32, #tpu.memory_space<vmem>>, vector<2x256xf32>,
      %51 = arith.index_cast %7 : i32 to index
      %c0_24 = arith.constant 0 : index
      %c0_25 = arith.constant 0 : index
      %52 = vector.load %arg4[%51, %c0_24, %c0_25] : memref<16x2x256xf32, #tpu.memory_space<vmem>>, vector<1x2x256xf32>
      %53 = vector.shape_cast %52 : vector<1x2x256xf32> to vector<2x256xf32>
      %54 = vector.shape_cast %48 : vector<2x256xf32> to vector<1x2x256xf32>
      tpu.vector_store %arg4[%51, %c0_24, %c0_25], %54 {strides = array<i32>} : memref<16x2x256xf32, #tpu.memory_space<vmem>>, vector<1x2x256xf32>,
    }
    %c16_i32_2 = arith.constant 16 : i32
    return
  }
  func.func @transform_0(%arg0: i32, %arg1: i32) -> (i32, i32, i32) {
    %c2_i32 = arith.constant 2 : i32
    %0 = arith.muli %c2_i32, %arg1 : i32
    %c0_i32 = arith.constant 0 : i32
    %1 = arith.subi %c0_i32, %0 : i32
    %2 = arith.muli %arg0, %1 : i32
    %3 = arith.addi %arg1, %2 : i32
    %c0_i32_0 = arith.constant 0 : i32
    %c0_i32_1 = arith.constant 0 : i32
    return %3, %c0_i32_0, %arg0 : i32, i32, i32
  }
  func.func @transform_1(%arg0: i32, %arg1: i32) -> (i32, i32, i32) {
    %c0_i32 = arith.constant 0 : i32
    %c0_i32_0 = arith.constant 0 : i32
    %c0_i32_1 = arith.constant 0 : i32
    return %arg0, %c0_i32, %c0_i32_0 : i32, i32, i32
  }
  func.func @transform_2(%arg0: i32, %arg1: i32) -> (i32, i32, i32) {
    %c2_i32 = arith.constant 2 : i32
    %0 = arith.muli %c2_i32, %arg1 : i32
    %c0_i32 = arith.constant 0 : i32
    %1 = arith.subi %c0_i32, %0 : i32
    %2 = arith.muli %arg0, %1 : i32
    %3 = arith.addi %arg1, %2 : i32
    %c0_i32_0 = arith.constant 0 : i32
    %c0_i32_1 = arith.constant 0 : i32
    return %3, %c0_i32_0, %arg0 : i32, i32, i32
  }
}

module attributes {stable_mosaic.version = 11 : i64} {
  func.func @convstack_kernel(%arg0: i32, %arg1: memref<1x16x64xf32, #tpu.memory_space<vmem>>, %arg2: memref<3x64x64xbf16, #tpu.memory_space<vmem>>, %arg3: memref<1x64xf32, #tpu.memory_space<vmem>>, %arg4: memref<1x64xf32, #tpu.memory_space<vmem>>, %arg5: memref<3x64x64xbf16, #tpu.memory_space<vmem>>, %arg6: memref<1x64xf32, #tpu.memory_space<vmem>>, %arg7: memref<1x64xf32, #tpu.memory_space<vmem>>, %arg8: memref<3x64x64xbf16, #tpu.memory_space<vmem>>, %arg9: memref<1x64xf32, #tpu.memory_space<vmem>>, %arg10: memref<1x64xf32, #tpu.memory_space<vmem>>, %arg11: memref<3x64x64xbf16, #tpu.memory_space<vmem>>, %arg12: memref<1x64xf32, #tpu.memory_space<vmem>>, %arg13: memref<1x64xf32, #tpu.memory_space<vmem>>, %arg14: memref<1x16x64xf32, #tpu.memory_space<vmem>>, %arg15: memref<48x64xbf16, #tpu.memory_space<vmem>>) attributes {dimension_semantics = [#tpu.dimension_semantics<parallel>], iteration_bounds = array<i64: 2>, scalar_prefetch = 0 : i64, scratch_operands = 1 : i64, tpu.core_type = #tpu.core_type<tc>, window_params = [{transform_indices = @transform_0, window_bounds = array<i64: 1, 16, 64>}, {pipeline_mode = #tpu.pipeline_mode<synchronous>, transform_indices = @transform_1, window_bounds = array<i64: 3, 64, 64>}, {pipeline_mode = #tpu.pipeline_mode<synchronous>, transform_indices = @transform_2, window_bounds = array<i64: 1, 64>}, {pipeline_mode = #tpu.pipeline_mode<synchronous>, transform_indices = @transform_3, window_bounds = array<i64: 1, 64>}, {pipeline_mode = #tpu.pipeline_mode<synchronous>, transform_indices = @transform_4, window_bounds = array<i64: 3, 64, 64>}, {pipeline_mode = #tpu.pipeline_mode<synchronous>, transform_indices = @transform_5, window_bounds = array<i64: 1, 64>}, {pipeline_mode = #tpu.pipeline_mode<synchronous>, transform_indices = @transform_6, window_bounds = array<i64: 1, 64>}, {pipeline_mode = #tpu.pipeline_mode<synchronous>, transform_indices = @transform_7, window_bounds = array<i64: 3, 64, 64>}, {pipeline_mode = #tpu.pipeline_mode<synchronous>, transform_indices = @transform_8, window_bounds = array<i64: 1, 64>}, {pipeline_mode = #tpu.pipeline_mode<synchronous>, transform_indices = @transform_9, window_bounds = array<i64: 1, 64>}, {pipeline_mode = #tpu.pipeline_mode<synchronous>, transform_indices = @transform_10, window_bounds = array<i64: 3, 64, 64>}, {pipeline_mode = #tpu.pipeline_mode<synchronous>, transform_indices = @transform_11, window_bounds = array<i64: 1, 64>}, {pipeline_mode = #tpu.pipeline_mode<synchronous>, transform_indices = @transform_12, window_bounds = array<i64: 1, 64>}, {transform_indices = @transform_13, window_bounds = array<i64: 1, 16, 64>}]} {
    %c0 = arith.constant 0 : index
    %c0_0 = arith.constant 0 : index
    %c0_1 = arith.constant 0 : index
    %0 = vector.load %arg1[%c0, %c0_0, %c0_1] : memref<1x16x64xf32, #tpu.memory_space<vmem>>, vector<1x16x64xf32>
    %1 = vector.shape_cast %0 : vector<1x16x64xf32> to vector<16x64xf32>
    %cst = arith.constant 9.99999997E-7 : f32
    %2 = vector.broadcast %cst : f32 to vector<16x64xf32>
    %3 = arith.addf %1, %2 : vector<16x64xf32>
    %cst_2 = arith.constant dense<0.000000e+00> : vector<64xf32>
    %4 = vector.multi_reduction <add>, %3, %cst_2 [0] : vector<16x64xf32> to vector<64xf32>
    %5 = vector.shape_cast %4 : vector<64xf32> to vector<1x64xf32>
    %cst_3 = arith.constant 1.600000e+01 : f32
    %6 = vector.broadcast %cst_3 : f32 to vector<1x64xf32>
    %7 = arith.divf %5, %6 : vector<1x64xf32>
    %8 = vector.broadcast %7 : vector<1x64xf32> to vector<16x64xf32>
    %9 = arith.subf %3, %8 : vector<16x64xf32>
    %10 = arith.mulf %9, %9 : vector<16x64xf32>
    %cst_4 = arith.constant dense<0.000000e+00> : vector<64xf32>
    %11 = vector.multi_reduction <add>, %10, %cst_4 [0] : vector<16x64xf32> to vector<64xf32>
    %12 = vector.shape_cast %11 : vector<64xf32> to vector<1x64xf32>
    %cst_5 = arith.constant 1.600000e+01 : f32
    %13 = vector.broadcast %cst_5 : f32 to vector<1x64xf32>
    %14 = arith.divf %12, %13 : vector<1x64xf32>
    %15 = vector.broadcast %7 : vector<1x64xf32> to vector<16x64xf32>
    %16 = arith.subf %3, %15 : vector<16x64xf32>
    %cst_6 = arith.constant 9.99999974E-6 : f32
    %17 = vector.broadcast %cst_6 : f32 to vector<1x64xf32>
    %18 = arith.addf %14, %17 : vector<1x64xf32>
    %19 = math.rsqrt %18 : vector<1x64xf32>
    %20 = vector.broadcast %19 : vector<1x64xf32> to vector<16x64xf32>
    %21 = arith.mulf %16, %20 : vector<16x64xf32>
    %cst_7 = arith.constant 0.000000e+00 : bf16
    %22 = vector.broadcast %cst_7 : bf16 to vector<48x64xbf16>
    %c0_8 = arith.constant 0 : index
    %c0_9 = arith.constant 0 : index
    %23 = vector.load %arg15[%c0_8, %c0_9] : memref<48x64xbf16, #tpu.memory_space<vmem>>, vector<48x64xbf16>
    tpu.vector_store %arg15[%c0_8, %c0_9], %22 {strides = array<i32>} : memref<48x64xbf16, #tpu.memory_space<vmem>>, vector<48x64xbf16>,
    %24 = arith.truncf %21 : vector<16x64xf32> to vector<16x64xbf16>
    %c16 = arith.constant 16 : index
    %c0_10 = arith.constant 0 : index
    %25 = vector.load %arg15[%c16, %c0_10] : memref<48x64xbf16, #tpu.memory_space<vmem>>, vector<16x64xbf16>
    tpu.vector_store %arg15[%c16, %c0_10], %24 {strides = array<i32>} : memref<48x64xbf16, #tpu.memory_space<vmem>>, vector<16x64xbf16>,
    %cst_11 = arith.constant 0.000000e+00 : f32
    %26 = vector.broadcast %cst_11 : f32 to vector<16x64xf32>
    %c15 = arith.constant 15 : index
    %c0_12 = arith.constant 0 : index
    %27 = vector.load %arg15[%c15, %c0_12] : memref<48x64xbf16, #tpu.memory_space<vmem>>, vector<16x64xbf16>
    %c0_13 = arith.constant 0 : index
    %c0_14 = arith.constant 0 : index
    %c0_15 = arith.constant 0 : index
    %28 = vector.load %arg2[%c0_13, %c0_14, %c0_15] : memref<3x64x64xbf16, #tpu.memory_space<vmem>>, vector<1x64x64xbf16>
    %29 = vector.shape_cast %28 : vector<1x64x64xbf16> to vector<64x64xbf16>
    %cst_16 = arith.constant dense<0.000000e+00> : vector<16x64xf32>
    %30 = tpu.matmul %27, %29, %cst_16 {dimension_numbers = #tpu.dot_dimension_numbers<[1], [0], [0], [1], [0, 0, 1, 1], [], []>} : vector<16x64xbf16>, vector<64x64xbf16>, vector<16x64xf32> -> vector<16x64xf32>
    %31 = arith.addf %26, %30 : vector<16x64xf32>
    %c16_17 = arith.constant 16 : index
    %c0_18 = arith.constant 0 : index
    %32 = vector.load %arg15[%c16_17, %c0_18] : memref<48x64xbf16, #tpu.memory_space<vmem>>, vector<16x64xbf16>
    %c1 = arith.constant 1 : index
    %c0_19 = arith.constant 0 : index
    %c0_20 = arith.constant 0 : index
    %33 = vector.load %arg2[%c1, %c0_19, %c0_20] : memref<3x64x64xbf16, #tpu.memory_space<vmem>>, vector<1x64x64xbf16>
    %34 = vector.shape_cast %33 : vector<1x64x64xbf16> to vector<64x64xbf16>
    %cst_21 = arith.constant dense<0.000000e+00> : vector<16x64xf32>
    %35 = tpu.matmul %32, %34, %cst_21 {dimension_numbers = #tpu.dot_dimension_numbers<[1], [0], [0], [1], [0, 0, 1, 1], [], []>} : vector<16x64xbf16>, vector<64x64xbf16>, vector<16x64xf32> -> vector<16x64xf32>
    %36 = arith.addf %31, %35 : vector<16x64xf32>
    %c17 = arith.constant 17 : index
    %c0_22 = arith.constant 0 : index
    %37 = vector.load %arg15[%c17, %c0_22] : memref<48x64xbf16, #tpu.memory_space<vmem>>, vector<16x64xbf16>
    %c2 = arith.constant 2 : index
    %c0_23 = arith.constant 0 : index
    %c0_24 = arith.constant 0 : index
    %38 = vector.load %arg2[%c2, %c0_23, %c0_24] : memref<3x64x64xbf16, #tpu.memory_space<vmem>>, vector<1x64x64xbf16>
    %39 = vector.shape_cast %38 : vector<1x64x64xbf16> to vector<64x64xbf16>
    %cst_25 = arith.constant dense<0.000000e+00> : vector<16x64xf32>
    %40 = tpu.matmul %37, %39, %cst_25 {dimension_numbers = #tpu.dot_dimension_numbers<[1], [0], [0], [1], [0, 0, 1, 1], [], []>} : vector<16x64xbf16>, vector<64x64xbf16>, vector<16x64xf32> -> vector<16x64xf32>
    %41 = arith.addf %36, %40 : vector<16x64xf32>
    %c0_26 = arith.constant 0 : index
    %c0_27 = arith.constant 0 : index
    %42 = vector.load %arg3[%c0_26, %c0_27] : memref<1x64xf32, #tpu.memory_space<vmem>>, vector<1x64xf32>
    %43 = vector.broadcast %42 : vector<1x64xf32> to vector<16x64xf32>
    %44 = arith.mulf %41, %43 : vector<16x64xf32>
    %c0_28 = arith.constant 0 : index
    %c0_29 = arith.constant 0 : index
    %45 = vector.load %arg4[%c0_28, %c0_29] : memref<1x64xf32, #tpu.memory_space<vmem>>, vector<1x64xf32>
    %46 = vector.broadcast %45 : vector<1x64xf32> to vector<16x64xf32>
    %47 = arith.addf %44, %46 : vector<16x64xf32>
    %cst_30 = arith.constant 0.000000e+00 : f32
    %48 = vector.broadcast %cst_30 : f32 to vector<16x64xf32>
    %49 = arith.maximumf %47, %48 : vector<16x64xf32>
    %50 = arith.truncf %49 : vector<16x64xf32> to vector<16x64xbf16>
    %c16_31 = arith.constant 16 : index
    %c0_32 = arith.constant 0 : index
    %51 = vector.load %arg15[%c16_31, %c0_32] : memref<48x64xbf16, #tpu.memory_space<vmem>>, vector<16x64xbf16>
    tpu.vector_store %arg15[%c16_31, %c0_32], %50 {strides = array<i32>} : memref<48x64xbf16, #tpu.memory_space<vmem>>, vector<16x64xbf16>,
    %cst_33 = arith.constant 0.000000e+00 : f32
    %52 = vector.broadcast %cst_33 : f32 to vector<16x64xf32>
    %c15_34 = arith.constant 15 : index
    %c0_35 = arith.constant 0 : index
    %53 = vector.load %arg15[%c15_34, %c0_35] : memref<48x64xbf16, #tpu.memory_space<vmem>>, vector<16x64xbf16>
    %c0_36 = arith.constant 0 : index
    %c0_37 = arith.constant 0 : index
    %c0_38 = arith.constant 0 : index
    %54 = vector.load %arg5[%c0_36, %c0_37, %c0_38] : memref<3x64x64xbf16, #tpu.memory_space<vmem>>, vector<1x64x64xbf16>
    %55 = vector.shape_cast %54 : vector<1x64x64xbf16> to vector<64x64xbf16>
    %cst_39 = arith.constant dense<0.000000e+00> : vector<16x64xf32>
    %56 = tpu.matmul %53, %55, %cst_39 {dimension_numbers = #tpu.dot_dimension_numbers<[1], [0], [0], [1], [0, 0, 1, 1], [], []>} : vector<16x64xbf16>, vector<64x64xbf16>, vector<16x64xf32> -> vector<16x64xf32>
    %57 = arith.addf %52, %56 : vector<16x64xf32>
    %c16_40 = arith.constant 16 : index
    %c0_41 = arith.constant 0 : index
    %58 = vector.load %arg15[%c16_40, %c0_41] : memref<48x64xbf16, #tpu.memory_space<vmem>>, vector<16x64xbf16>
    %c1_42 = arith.constant 1 : index
    %c0_43 = arith.constant 0 : index
    %c0_44 = arith.constant 0 : index
    %59 = vector.load %arg5[%c1_42, %c0_43, %c0_44] : memref<3x64x64xbf16, #tpu.memory_space<vmem>>, vector<1x64x64xbf16>
    %60 = vector.shape_cast %59 : vector<1x64x64xbf16> to vector<64x64xbf16>
    %cst_45 = arith.constant dense<0.000000e+00> : vector<16x64xf32>
    %61 = tpu.matmul %58, %60, %cst_45 {dimension_numbers = #tpu.dot_dimension_numbers<[1], [0], [0], [1], [0, 0, 1, 1], [], []>} : vector<16x64xbf16>, vector<64x64xbf16>, vector<16x64xf32> -> vector<16x64xf32>
    %62 = arith.addf %57, %61 : vector<16x64xf32>
    %c17_46 = arith.constant 17 : index
    %c0_47 = arith.constant 0 : index
    %63 = vector.load %arg15[%c17_46, %c0_47] : memref<48x64xbf16, #tpu.memory_space<vmem>>, vector<16x64xbf16>
    %c2_48 = arith.constant 2 : index
    %c0_49 = arith.constant 0 : index
    %c0_50 = arith.constant 0 : index
    %64 = vector.load %arg5[%c2_48, %c0_49, %c0_50] : memref<3x64x64xbf16, #tpu.memory_space<vmem>>, vector<1x64x64xbf16>
    %65 = vector.shape_cast %64 : vector<1x64x64xbf16> to vector<64x64xbf16>
    %cst_51 = arith.constant dense<0.000000e+00> : vector<16x64xf32>
    %66 = tpu.matmul %63, %65, %cst_51 {dimension_numbers = #tpu.dot_dimension_numbers<[1], [0], [0], [1], [0, 0, 1, 1], [], []>} : vector<16x64xbf16>, vector<64x64xbf16>, vector<16x64xf32> -> vector<16x64xf32>
    %67 = arith.addf %62, %66 : vector<16x64xf32>
    %c0_52 = arith.constant 0 : index
    %c0_53 = arith.constant 0 : index
    %68 = vector.load %arg6[%c0_52, %c0_53] : memref<1x64xf32, #tpu.memory_space<vmem>>, vector<1x64xf32>
    %69 = vector.broadcast %68 : vector<1x64xf32> to vector<16x64xf32>
    %70 = arith.mulf %67, %69 : vector<16x64xf32>
    %c0_54 = arith.constant 0 : index
    %c0_55 = arith.constant 0 : index
    %71 = vector.load %arg7[%c0_54, %c0_55] : memref<1x64xf32, #tpu.memory_space<vmem>>, vector<1x64xf32>
    %72 = vector.broadcast %71 : vector<1x64xf32> to vector<16x64xf32>
    %73 = arith.addf %70, %72 : vector<16x64xf32>
    %cst_56 = arith.constant 0.000000e+00 : f32
    %74 = vector.broadcast %cst_56 : f32 to vector<16x64xf32>
    %75 = arith.maximumf %73, %74 : vector<16x64xf32>
    %76 = arith.truncf %75 : vector<16x64xf32> to vector<16x64xbf16>
    %c16_57 = arith.constant 16 : index
    %c0_58 = arith.constant 0 : index
    %77 = vector.load %arg15[%c16_57, %c0_58] : memref<48x64xbf16, #tpu.memory_space<vmem>>, vector<16x64xbf16>
    tpu.vector_store %arg15[%c16_57, %c0_58], %76 {strides = array<i32>} : memref<48x64xbf16, #tpu.memory_space<vmem>>, vector<16x64xbf16>,
    %cst_59 = arith.constant 0.000000e+00 : f32
    %78 = vector.broadcast %cst_59 : f32 to vector<16x64xf32>
    %c15_60 = arith.constant 15 : index
    %c0_61 = arith.constant 0 : index
    %79 = vector.load %arg15[%c15_60, %c0_61] : memref<48x64xbf16, #tpu.memory_space<vmem>>, vector<16x64xbf16>
    %c0_62 = arith.constant 0 : index
    %c0_63 = arith.constant 0 : index
    %c0_64 = arith.constant 0 : index
    %80 = vector.load %arg8[%c0_62, %c0_63, %c0_64] : memref<3x64x64xbf16, #tpu.memory_space<vmem>>, vector<1x64x64xbf16>
    %81 = vector.shape_cast %80 : vector<1x64x64xbf16> to vector<64x64xbf16>
    %cst_65 = arith.constant dense<0.000000e+00> : vector<16x64xf32>
    %82 = tpu.matmul %79, %81, %cst_65 {dimension_numbers = #tpu.dot_dimension_numbers<[1], [0], [0], [1], [0, 0, 1, 1], [], []>} : vector<16x64xbf16>, vector<64x64xbf16>, vector<16x64xf32> -> vector<16x64xf32>
    %83 = arith.addf %78, %82 : vector<16x64xf32>
    %c16_66 = arith.constant 16 : index
    %c0_67 = arith.constant 0 : index
    %84 = vector.load %arg15[%c16_66, %c0_67] : memref<48x64xbf16, #tpu.memory_space<vmem>>, vector<16x64xbf16>
    %c1_68 = arith.constant 1 : index
    %c0_69 = arith.constant 0 : index
    %c0_70 = arith.constant 0 : index
    %85 = vector.load %arg8[%c1_68, %c0_69, %c0_70] : memref<3x64x64xbf16, #tpu.memory_space<vmem>>, vector<1x64x64xbf16>
    %86 = vector.shape_cast %85 : vector<1x64x64xbf16> to vector<64x64xbf16>
    %cst_71 = arith.constant dense<0.000000e+00> : vector<16x64xf32>
    %87 = tpu.matmul %84, %86, %cst_71 {dimension_numbers = #tpu.dot_dimension_numbers<[1], [0], [0], [1], [0, 0, 1, 1], [], []>} : vector<16x64xbf16>, vector<64x64xbf16>, vector<16x64xf32> -> vector<16x64xf32>
    %88 = arith.addf %83, %87 : vector<16x64xf32>
    %c17_72 = arith.constant 17 : index
    %c0_73 = arith.constant 0 : index
    %89 = vector.load %arg15[%c17_72, %c0_73] : memref<48x64xbf16, #tpu.memory_space<vmem>>, vector<16x64xbf16>
    %c2_74 = arith.constant 2 : index
    %c0_75 = arith.constant 0 : index
    %c0_76 = arith.constant 0 : index
    %90 = vector.load %arg8[%c2_74, %c0_75, %c0_76] : memref<3x64x64xbf16, #tpu.memory_space<vmem>>, vector<1x64x64xbf16>
    %91 = vector.shape_cast %90 : vector<1x64x64xbf16> to vector<64x64xbf16>
    %cst_77 = arith.constant dense<0.000000e+00> : vector<16x64xf32>
    %92 = tpu.matmul %89, %91, %cst_77 {dimension_numbers = #tpu.dot_dimension_numbers<[1], [0], [0], [1], [0, 0, 1, 1], [], []>} : vector<16x64xbf16>, vector<64x64xbf16>, vector<16x64xf32> -> vector<16x64xf32>
    %93 = arith.addf %88, %92 : vector<16x64xf32>
    %c0_78 = arith.constant 0 : index
    %c0_79 = arith.constant 0 : index
    %94 = vector.load %arg9[%c0_78, %c0_79] : memref<1x64xf32, #tpu.memory_space<vmem>>, vector<1x64xf32>
    %95 = vector.broadcast %94 : vector<1x64xf32> to vector<16x64xf32>
    %96 = arith.mulf %93, %95 : vector<16x64xf32>
    %c0_80 = arith.constant 0 : index
    %c0_81 = arith.constant 0 : index
    %97 = vector.load %arg10[%c0_80, %c0_81] : memref<1x64xf32, #tpu.memory_space<vmem>>, vector<1x64xf32>
    %98 = vector.broadcast %97 : vector<1x64xf32> to vector<16x64xf32>
    %99 = arith.addf %96, %98 : vector<16x64xf32>
    %cst_82 = arith.constant 0.000000e+00 : f32
    %100 = vector.broadcast %cst_82 : f32 to vector<16x64xf32>
    %101 = arith.maximumf %99, %100 : vector<16x64xf32>
    %102 = arith.truncf %101 : vector<16x64xf32> to vector<16x64xbf16>
    %c16_83 = arith.constant 16 : index
    %c0_84 = arith.constant 0 : index
    %103 = vector.load %arg15[%c16_83, %c0_84] : memref<48x64xbf16, #tpu.memory_space<vmem>>, vector<16x64xbf16>
    tpu.vector_store %arg15[%c16_83, %c0_84], %102 {strides = array<i32>} : memref<48x64xbf16, #tpu.memory_space<vmem>>, vector<16x64xbf16>,
    %cst_85 = arith.constant 0.000000e+00 : f32
    %104 = vector.broadcast %cst_85 : f32 to vector<16x64xf32>
    %c15_86 = arith.constant 15 : index
    %c0_87 = arith.constant 0 : index
    %105 = vector.load %arg15[%c15_86, %c0_87] : memref<48x64xbf16, #tpu.memory_space<vmem>>, vector<16x64xbf16>
    %c0_88 = arith.constant 0 : index
    %c0_89 = arith.constant 0 : index
    %c0_90 = arith.constant 0 : index
    %106 = vector.load %arg11[%c0_88, %c0_89, %c0_90] : memref<3x64x64xbf16, #tpu.memory_space<vmem>>, vector<1x64x64xbf16>
    %107 = vector.shape_cast %106 : vector<1x64x64xbf16> to vector<64x64xbf16>
    %cst_91 = arith.constant dense<0.000000e+00> : vector<16x64xf32>
    %108 = tpu.matmul %105, %107, %cst_91 {dimension_numbers = #tpu.dot_dimension_numbers<[1], [0], [0], [1], [0, 0, 1, 1], [], []>} : vector<16x64xbf16>, vector<64x64xbf16>, vector<16x64xf32> -> vector<16x64xf32>
    %109 = arith.addf %104, %108 : vector<16x64xf32>
    %c16_92 = arith.constant 16 : index
    %c0_93 = arith.constant 0 : index
    %110 = vector.load %arg15[%c16_92, %c0_93] : memref<48x64xbf16, #tpu.memory_space<vmem>>, vector<16x64xbf16>
    %c1_94 = arith.constant 1 : index
    %c0_95 = arith.constant 0 : index
    %c0_96 = arith.constant 0 : index
    %111 = vector.load %arg11[%c1_94, %c0_95, %c0_96] : memref<3x64x64xbf16, #tpu.memory_space<vmem>>, vector<1x64x64xbf16>
    %112 = vector.shape_cast %111 : vector<1x64x64xbf16> to vector<64x64xbf16>
    %cst_97 = arith.constant dense<0.000000e+00> : vector<16x64xf32>
    %113 = tpu.matmul %110, %112, %cst_97 {dimension_numbers = #tpu.dot_dimension_numbers<[1], [0], [0], [1], [0, 0, 1, 1], [], []>} : vector<16x64xbf16>, vector<64x64xbf16>, vector<16x64xf32> -> vector<16x64xf32>
    %114 = arith.addf %109, %113 : vector<16x64xf32>
    %c17_98 = arith.constant 17 : index
    %c0_99 = arith.constant 0 : index
    %115 = vector.load %arg15[%c17_98, %c0_99] : memref<48x64xbf16, #tpu.memory_space<vmem>>, vector<16x64xbf16>
    %c2_100 = arith.constant 2 : index
    %c0_101 = arith.constant 0 : index
    %c0_102 = arith.constant 0 : index
    %116 = vector.load %arg11[%c2_100, %c0_101, %c0_102] : memref<3x64x64xbf16, #tpu.memory_space<vmem>>, vector<1x64x64xbf16>
    %117 = vector.shape_cast %116 : vector<1x64x64xbf16> to vector<64x64xbf16>
    %cst_103 = arith.constant dense<0.000000e+00> : vector<16x64xf32>
    %118 = tpu.matmul %115, %117, %cst_103 {dimension_numbers = #tpu.dot_dimension_numbers<[1], [0], [0], [1], [0, 0, 1, 1], [], []>} : vector<16x64xbf16>, vector<64x64xbf16>, vector<16x64xf32> -> vector<16x64xf32>
    %119 = arith.addf %114, %118 : vector<16x64xf32>
    %c0_104 = arith.constant 0 : index
    %c0_105 = arith.constant 0 : index
    %120 = vector.load %arg12[%c0_104, %c0_105] : memref<1x64xf32, #tpu.memory_space<vmem>>, vector<1x64xf32>
    %121 = vector.broadcast %120 : vector<1x64xf32> to vector<16x64xf32>
    %122 = arith.mulf %119, %121 : vector<16x64xf32>
    %c0_106 = arith.constant 0 : index
    %c0_107 = arith.constant 0 : index
    %123 = vector.load %arg13[%c0_106, %c0_107] : memref<1x64xf32, #tpu.memory_space<vmem>>, vector<1x64xf32>
    %124 = vector.broadcast %123 : vector<1x64xf32> to vector<16x64xf32>
    %125 = arith.addf %122, %124 : vector<16x64xf32>
    %cst_108 = arith.constant 0.000000e+00 : f32
    %126 = vector.broadcast %cst_108 : f32 to vector<16x64xf32>
    %127 = arith.maximumf %125, %126 : vector<16x64xf32>
    %c0_109 = arith.constant 0 : index
    %c0_110 = arith.constant 0 : index
    %c0_111 = arith.constant 0 : index
    %128 = vector.load %arg14[%c0_109, %c0_110, %c0_111] : memref<1x16x64xf32, #tpu.memory_space<vmem>>, vector<1x16x64xf32>
    %129 = vector.shape_cast %128 : vector<1x16x64xf32> to vector<16x64xf32>
    %130 = vector.shape_cast %127 : vector<16x64xf32> to vector<1x16x64xf32>
    tpu.vector_store %arg14[%c0_109, %c0_110, %c0_111], %130 {strides = array<i32>} : memref<1x16x64xf32, #tpu.memory_space<vmem>>, vector<1x16x64xf32>,
    return
  }
  func.func @transform_0(%arg0: i32) -> (i32, i32, i32) {
    %c0_i32 = arith.constant 0 : i32
    %c0_i32_0 = arith.constant 0 : i32
    %c0_i32_1 = arith.constant 0 : i32
    return %arg0, %c0_i32, %c0_i32_0 : i32, i32, i32
  }
  func.func @transform_1(%arg0: i32) -> (i32, i32, i32) {
    %c0_i32 = arith.constant 0 : i32
    %c0_i32_0 = arith.constant 0 : i32
    %c0_i32_1 = arith.constant 0 : i32
    %c0_i32_2 = arith.constant 0 : i32
    return %c0_i32, %c0_i32_0, %c0_i32_1 : i32, i32, i32
  }
  func.func @transform_2(%arg0: i32) -> (i32, i32) {
    %c0_i32 = arith.constant 0 : i32
    %c0_i32_0 = arith.constant 0 : i32
    %c0_i32_1 = arith.constant 0 : i32
    return %c0_i32, %c0_i32_0 : i32, i32
  }
  func.func @transform_3(%arg0: i32) -> (i32, i32) {
    %c0_i32 = arith.constant 0 : i32
    %c0_i32_0 = arith.constant 0 : i32
    %c0_i32_1 = arith.constant 0 : i32
    return %c0_i32, %c0_i32_0 : i32, i32
  }
  func.func @transform_4(%arg0: i32) -> (i32, i32, i32) {
    %c0_i32 = arith.constant 0 : i32
    %c0_i32_0 = arith.constant 0 : i32
    %c0_i32_1 = arith.constant 0 : i32
    %c0_i32_2 = arith.constant 0 : i32
    return %c0_i32, %c0_i32_0, %c0_i32_1 : i32, i32, i32
  }
  func.func @transform_5(%arg0: i32) -> (i32, i32) {
    %c0_i32 = arith.constant 0 : i32
    %c0_i32_0 = arith.constant 0 : i32
    %c0_i32_1 = arith.constant 0 : i32
    return %c0_i32, %c0_i32_0 : i32, i32
  }
  func.func @transform_6(%arg0: i32) -> (i32, i32) {
    %c0_i32 = arith.constant 0 : i32
    %c0_i32_0 = arith.constant 0 : i32
    %c0_i32_1 = arith.constant 0 : i32
    return %c0_i32, %c0_i32_0 : i32, i32
  }
  func.func @transform_7(%arg0: i32) -> (i32, i32, i32) {
    %c0_i32 = arith.constant 0 : i32
    %c0_i32_0 = arith.constant 0 : i32
    %c0_i32_1 = arith.constant 0 : i32
    %c0_i32_2 = arith.constant 0 : i32
    return %c0_i32, %c0_i32_0, %c0_i32_1 : i32, i32, i32
  }
  func.func @transform_8(%arg0: i32) -> (i32, i32) {
    %c0_i32 = arith.constant 0 : i32
    %c0_i32_0 = arith.constant 0 : i32
    %c0_i32_1 = arith.constant 0 : i32
    return %c0_i32, %c0_i32_0 : i32, i32
  }
  func.func @transform_9(%arg0: i32) -> (i32, i32) {
    %c0_i32 = arith.constant 0 : i32
    %c0_i32_0 = arith.constant 0 : i32
    %c0_i32_1 = arith.constant 0 : i32
    return %c0_i32, %c0_i32_0 : i32, i32
  }
  func.func @transform_10(%arg0: i32) -> (i32, i32, i32) {
    %c0_i32 = arith.constant 0 : i32
    %c0_i32_0 = arith.constant 0 : i32
    %c0_i32_1 = arith.constant 0 : i32
    %c0_i32_2 = arith.constant 0 : i32
    return %c0_i32, %c0_i32_0, %c0_i32_1 : i32, i32, i32
  }
  func.func @transform_11(%arg0: i32) -> (i32, i32) {
    %c0_i32 = arith.constant 0 : i32
    %c0_i32_0 = arith.constant 0 : i32
    %c0_i32_1 = arith.constant 0 : i32
    return %c0_i32, %c0_i32_0 : i32, i32
  }
  func.func @transform_12(%arg0: i32) -> (i32, i32) {
    %c0_i32 = arith.constant 0 : i32
    %c0_i32_0 = arith.constant 0 : i32
    %c0_i32_1 = arith.constant 0 : i32
    return %c0_i32, %c0_i32_0 : i32, i32
  }
  func.func @transform_13(%arg0: i32) -> (i32, i32, i32) {
    %c0_i32 = arith.constant 0 : i32
    %c0_i32_0 = arith.constant 0 : i32
    %c0_i32_1 = arith.constant 0 : i32
    return %arg0, %c0_i32, %c0_i32_0 : i32, i32, i32
  }
}

module attributes {stable_mosaic.version = 11 : i64} {
  func.func @matmul_bias_kernel(%arg0: i32, %arg1: memref<32x512xf32, #tpu.memory_space<vmem>>, %arg2: memref<512x2048xbf16, #tpu.memory_space<vmem>>, %arg3: memref<1x2048xf32, #tpu.memory_space<vmem>>, %arg4: memref<32x2048xf32, #tpu.memory_space<vmem>>) attributes {dimension_semantics = [#tpu.dimension_semantics<parallel>], iteration_bounds = array<i64: 1>, scalar_prefetch = 0 : i64, scratch_operands = 0 : i64, tpu.core_type = #tpu.core_type<tc>, window_params = [{transform_indices = @transform_0, window_bounds = array<i64: 32, 512>}, {pipeline_mode = #tpu.pipeline_mode<synchronous>, transform_indices = @transform_1, window_bounds = array<i64: 512, 2048>}, {pipeline_mode = #tpu.pipeline_mode<synchronous>, transform_indices = @transform_2, window_bounds = array<i64: 1, 2048>}, {transform_indices = @transform_3, window_bounds = array<i64: 32, 2048>}]} {
    %c0 = arith.constant 0 : index
    %c0_0 = arith.constant 0 : index
    %0 = vector.load %arg1[%c0, %c0_0] : memref<32x512xf32, #tpu.memory_space<vmem>>, vector<32x512xf32>
    %1 = arith.truncf %0 : vector<32x512xf32> to vector<32x512xbf16>
    %c0_1 = arith.constant 0 : index
    %c0_2 = arith.constant 0 : index
    %2 = vector.load %arg2[%c0_1, %c0_2] : memref<512x2048xbf16, #tpu.memory_space<vmem>>, vector<512x2048xbf16>
    %cst = arith.constant dense<0.000000e+00> : vector<32x2048xf32>
    %3 = tpu.matmul %1, %2, %cst {dimension_numbers = #tpu.dot_dimension_numbers<[1], [0], [0], [1], [0, 0, 1, 1], [], []>} : vector<32x512xbf16>, vector<512x2048xbf16>, vector<32x2048xf32> -> vector<32x2048xf32>
    %c0_3 = arith.constant 0 : index
    %c0_4 = arith.constant 0 : index
    %4 = vector.load %arg3[%c0_3, %c0_4] : memref<1x2048xf32, #tpu.memory_space<vmem>>, vector<1x2048xf32>
    %5 = vector.broadcast %4 : vector<1x2048xf32> to vector<32x2048xf32>
    %6 = arith.addf %3, %5 : vector<32x2048xf32>
    %c0_5 = arith.constant 0 : index
    %c0_6 = arith.constant 0 : index
    %7 = vector.load %arg4[%c0_5, %c0_6] : memref<32x2048xf32, #tpu.memory_space<vmem>>, vector<32x2048xf32>
    tpu.vector_store %arg4[%c0_5, %c0_6], %6 {strides = array<i32>} : memref<32x2048xf32, #tpu.memory_space<vmem>>, vector<32x2048xf32>,
    return
  }
  func.func @transform_0(%arg0: i32) -> (i32, i32) {
    %c0_i32 = arith.constant 0 : i32
    %c0_i32_0 = arith.constant 0 : i32
    return %arg0, %c0_i32 : i32, i32
  }
  func.func @transform_1(%arg0: i32) -> (i32, i32) {
    %c0_i32 = arith.constant 0 : i32
    %c0_i32_0 = arith.constant 0 : i32
    %c0_i32_1 = arith.constant 0 : i32
    return %c0_i32, %c0_i32_0 : i32, i32
  }
  func.func @transform_2(%arg0: i32) -> (i32, i32) {
    %c0_i32 = arith.constant 0 : i32
    %c0_i32_0 = arith.constant 0 : i32
    %c0_i32_1 = arith.constant 0 : i32
    return %c0_i32, %c0_i32_0 : i32, i32
  }
  func.func @transform_3(%arg0: i32) -> (i32, i32) {
    %c0_i32 = arith.constant 0 : i32
    %c0_i32_0 = arith.constant 0 : i32
    return %arg0, %c0_i32 : i32, i32
  }
}

module attributes {stable_mosaic.version = 11 : i64} {
  func.func @matmul_bias_kernel(%arg0: i32, %arg1: memref<32x512xf32, #tpu.memory_space<vmem>>, %arg2: memref<512x128xbf16, #tpu.memory_space<vmem>>, %arg3: memref<1x128xf32, #tpu.memory_space<vmem>>, %arg4: memref<32x128xf32, #tpu.memory_space<vmem>>) attributes {dimension_semantics = [#tpu.dimension_semantics<parallel>], iteration_bounds = array<i64: 1>, scalar_prefetch = 0 : i64, scratch_operands = 0 : i64, tpu.core_type = #tpu.core_type<tc>, window_params = [{transform_indices = @transform_0, window_bounds = array<i64: 32, 512>}, {pipeline_mode = #tpu.pipeline_mode<synchronous>, transform_indices = @transform_1, window_bounds = array<i64: 512, 128>}, {pipeline_mode = #tpu.pipeline_mode<synchronous>, transform_indices = @transform_2, window_bounds = array<i64: 1, 128>}, {transform_indices = @transform_3, window_bounds = array<i64: 32, 128>}]} {
    %c0 = arith.constant 0 : index
    %c0_0 = arith.constant 0 : index
    %0 = vector.load %arg1[%c0, %c0_0] : memref<32x512xf32, #tpu.memory_space<vmem>>, vector<32x512xf32>
    %1 = arith.truncf %0 : vector<32x512xf32> to vector<32x512xbf16>
    %c0_1 = arith.constant 0 : index
    %c0_2 = arith.constant 0 : index
    %2 = vector.load %arg2[%c0_1, %c0_2] : memref<512x128xbf16, #tpu.memory_space<vmem>>, vector<512x128xbf16>
    %cst = arith.constant dense<0.000000e+00> : vector<32x128xf32>
    %3 = tpu.matmul %1, %2, %cst {dimension_numbers = #tpu.dot_dimension_numbers<[1], [0], [0], [1], [0, 0, 1, 1], [], []>} : vector<32x512xbf16>, vector<512x128xbf16>, vector<32x128xf32> -> vector<32x128xf32>
    %c0_3 = arith.constant 0 : index
    %c0_4 = arith.constant 0 : index
    %4 = vector.load %arg3[%c0_3, %c0_4] : memref<1x128xf32, #tpu.memory_space<vmem>>, vector<1x128xf32>
    %5 = vector.broadcast %4 : vector<1x128xf32> to vector<32x128xf32>
    %6 = arith.addf %3, %5 : vector<32x128xf32>
    %c0_5 = arith.constant 0 : index
    %c0_6 = arith.constant 0 : index
    %7 = vector.load %arg4[%c0_5, %c0_6] : memref<32x128xf32, #tpu.memory_space<vmem>>, vector<32x128xf32>
    tpu.vector_store %arg4[%c0_5, %c0_6], %6 {strides = array<i32>} : memref<32x128xf32, #tpu.memory_space<vmem>>, vector<32x128xf32>,
    return
  }
  func.func @transform_0(%arg0: i32) -> (i32, i32) {
    %c0_i32 = arith.constant 0 : i32
    %c0_i32_0 = arith.constant 0 : i32
    return %arg0, %c0_i32 : i32, i32
  }
  func.func @transform_1(%arg0: i32) -> (i32, i32) {
    %c0_i32 = arith.constant 0 : i32
    %c0_i32_0 = arith.constant 0 : i32
    %c0_i32_1 = arith.constant 0 : i32
    return %c0_i32, %c0_i32_0 : i32, i32
  }
  func.func @transform_2(%arg0: i32) -> (i32, i32) {
    %c0_i32 = arith.constant 0 : i32
    %c0_i32_0 = arith.constant 0 : i32
    %c0_i32_1 = arith.constant 0 : i32
    return %c0_i32, %c0_i32_0 : i32, i32
  }
  func.func @transform_3(%arg0: i32) -> (i32, i32) {
    %c0_i32 = arith.constant 0 : i32
    %c0_i32_0 = arith.constant 0 : i32
    return %arg0, %c0_i32 : i32, i32
  }
}

module attributes {stable_mosaic.version = 11 : i64} {
  func.func @lstm_recurrent_kernel(%arg0: i32, %arg1: i32, %arg2: memref<16x2x1024xf32, #tpu.memory_space<vmem>>, %arg3: memref<1x256x1024xbf16, #tpu.memory_space<vmem>>, %arg4: memref<16x2x256xf32, #tpu.memory_space<vmem>>, %arg5: memref<2x256xf32, #tpu.memory_space<vmem>>, %arg6: memref<2x256xf32, #tpu.memory_space<vmem>>) attributes {dimension_semantics = [#tpu.dimension_semantics<parallel>, #tpu.dimension_semantics<arbitrary>], iteration_bounds = array<i64: 2, 1>, scalar_prefetch = 0 : i64, scratch_operands = 2 : i64, tpu.core_type = #tpu.core_type<tc>, window_params = [{transform_indices = @transform_0, window_bounds = array<i64: 16, 2, 1024>}, {transform_indices = @transform_1, window_bounds = array<i64: 1, 256, 1024>}, {transform_indices = @transform_2, window_bounds = array<i64: 16, 2, 256>}]} {
    %c0_i32 = arith.constant 0 : i32
    %0 = arith.cmpi eq, %arg1, %c0_i32 : i32
    %1 = arith.extui %0 : i1 to i32
    %c0_i32_0 = arith.constant 0 : i32
    %2 = arith.cmpi ne, %1, %c0_i32_0 : i32
    scf.if %2 {
      %cst = arith.constant 0.000000e+00 : f32
      %4 = vector.broadcast %cst : f32 to vector<2x256xf32>
      %c0 = arith.constant 0 : index
      %c0_3 = arith.constant 0 : index
      %5 = vector.load %arg5[%c0, %c0_3] : memref<2x256xf32, #tpu.memory_space<vmem>>, vector<2x256xf32>
      tpu.vector_store %arg5[%c0, %c0_3], %4 {strides = array<i32>} : memref<2x256xf32, #tpu.memory_space<vmem>>, vector<2x256xf32>,
      %cst_4 = arith.constant 0.000000e+00 : f32
      %6 = vector.broadcast %cst_4 : f32 to vector<2x256xf32>
      %c0_5 = arith.constant 0 : index
      %c0_6 = arith.constant 0 : index
      %7 = vector.load %arg6[%c0_5, %c0_6] : memref<2x256xf32, #tpu.memory_space<vmem>>, vector<2x256xf32>
      tpu.vector_store %arg6[%c0_5, %c0_6], %6 {strides = array<i32>} : memref<2x256xf32, #tpu.memory_space<vmem>>, vector<2x256xf32>,
    } else {
    }
    %c0_i32_1 = arith.constant 0 : i32
    %c16_i32 = arith.constant 16 : i32
    %3 = arith.addi %c0_i32_1, %c16_i32 : i32
    %c1_i32 = arith.constant 1 : i32
    scf.for %arg7 = %c0_i32_1 to %3 step %c1_i32  : i32 {
      %c2_i32 = arith.constant 2 : i32
      %4 = arith.muli %c2_i32, %arg7 : i32
      %c15_i32 = arith.constant 15 : i32
      %5 = arith.subi %c15_i32, %4 : i32
      %6 = arith.muli %arg0, %5 : i32
      %7 = arith.addi %arg7, %6 : i32
      %8 = arith.index_cast %7 : i32 to index
      %c0 = arith.constant 0 : index
      %c0_3 = arith.constant 0 : index
      %9 = vector.load %arg2[%8, %c0, %c0_3] : memref<16x2x1024xf32, #tpu.memory_space<vmem>>, vector<1x2x1024xf32>
      %10 = vector.shape_cast %9 : vector<1x2x1024xf32> to vector<2x1024xf32>
      %c0_4 = arith.constant 0 : index
      %c0_5 = arith.constant 0 : index
      %11 = vector.load %arg5[%c0_4, %c0_5] : memref<2x256xf32, #tpu.memory_space<vmem>>, vector<2x256xf32>
      %12 = arith.truncf %11 : vector<2x256xf32> to vector<2x256xbf16>
      %c0_6 = arith.constant 0 : index
      %c0_7 = arith.constant 0 : index
      %c0_8 = arith.constant 0 : index
      %13 = vector.load %arg3[%c0_6, %c0_7, %c0_8] : memref<1x256x1024xbf16, #tpu.memory_space<vmem>>, vector<1x256x1024xbf16>
      %14 = vector.shape_cast %13 : vector<1x256x1024xbf16> to vector<256x1024xbf16>
      %cst = arith.constant dense<0.000000e+00> : vector<2x1024xf32>
      %15 = tpu.matmul %12, %14, %cst {dimension_numbers = #tpu.dot_dimension_numbers<[1], [0], [0], [1], [0, 0, 1, 1], [], []>} : vector<2x256xbf16>, vector<256x1024xbf16>, vector<2x1024xf32> -> vector<2x1024xf32>
      %16 = arith.addf %10, %15 : vector<2x1024xf32>
      %17 = vector.extract_strided_slice %16 {offsets = [0, 0], sizes = [2, 256], strides = [1, 1]} : vector<2x1024xf32> to vector<2x256xf32>
      %cst_9 = arith.constant 5.000000e-01 : f32
      %18 = vector.broadcast %cst_9 : f32 to vector<2x256xf32>
      %19 = arith.mulf %18, %17 : vector<2x256xf32>
      %20 = math.tanh %19 : vector<2x256xf32>
      %cst_10 = arith.constant 5.000000e-01 : f32
      %21 = vector.broadcast %cst_10 : f32 to vector<2x256xf32>
      %22 = arith.mulf %21, %20 : vector<2x256xf32>
      %cst_11 = arith.constant 5.000000e-01 : f32
      %23 = vector.broadcast %cst_11 : f32 to vector<2x256xf32>
      %24 = arith.addf %22, %23 : vector<2x256xf32>
      %25 = vector.extract_strided_slice %16 {offsets = [0, 256], sizes = [2, 256], strides = [1, 1]} : vector<2x1024xf32> to vector<2x256xf32>
      %cst_12 = arith.constant 5.000000e-01 : f32
      %26 = vector.broadcast %cst_12 : f32 to vector<2x256xf32>
      %27 = arith.mulf %26, %25 : vector<2x256xf32>
      %28 = math.tanh %27 : vector<2x256xf32>
      %cst_13 = arith.constant 5.000000e-01 : f32
      %29 = vector.broadcast %cst_13 : f32 to vector<2x256xf32>
      %30 = arith.mulf %29, %28 : vector<2x256xf32>
      %cst_14 = arith.constant 5.000000e-01 : f32
      %31 = vector.broadcast %cst_14 : f32 to vector<2x256xf32>
      %32 = arith.addf %30, %31 : vector<2x256xf32>
      %33 = vector.extract_strided_slice %16 {offsets = [0, 512], sizes = [2, 256], strides = [1, 1]} : vector<2x1024xf32> to vector<2x256xf32>
      %34 = math.tanh %33 : vector<2x256xf32>
      %35 = vector.extract_strided_slice %16 {offsets = [0, 768], sizes = [2, 256], strides = [1, 1]} : vector<2x1024xf32> to vector<2x256xf32>
      %cst_15 = arith.constant 5.000000e-01 : f32
      %36 = vector.broadcast %cst_15 : f32 to vector<2x256xf32>
      %37 = arith.mulf %36, %35 : vector<2x256xf32>
      %38 = math.tanh %37 : vector<2x256xf32>
      %cst_16 = arith.constant 5.000000e-01 : f32
      %39 = vector.broadcast %cst_16 : f32 to vector<2x256xf32>
      %40 = arith.mulf %39, %38 : vector<2x256xf32>
      %cst_17 = arith.constant 5.000000e-01 : f32
      %41 = vector.broadcast %cst_17 : f32 to vector<2x256xf32>
      %42 = arith.addf %40, %41 : vector<2x256xf32>
      %c0_18 = arith.constant 0 : index
      %c0_19 = arith.constant 0 : index
      %43 = vector.load %arg6[%c0_18, %c0_19] : memref<2x256xf32, #tpu.memory_space<vmem>>, vector<2x256xf32>
      %44 = arith.mulf %32, %43 : vector<2x256xf32>
      %45 = arith.mulf %24, %34 : vector<2x256xf32>
      %46 = arith.addf %44, %45 : vector<2x256xf32>
      %47 = math.tanh %46 : vector<2x256xf32>
      %48 = arith.mulf %42, %47 : vector<2x256xf32>
      %c0_20 = arith.constant 0 : index
      %c0_21 = arith.constant 0 : index
      %49 = vector.load %arg6[%c0_20, %c0_21] : memref<2x256xf32, #tpu.memory_space<vmem>>, vector<2x256xf32>
      tpu.vector_store %arg6[%c0_20, %c0_21], %46 {strides = array<i32>} : memref<2x256xf32, #tpu.memory_space<vmem>>, vector<2x256xf32>,
      %c0_22 = arith.constant 0 : index
      %c0_23 = arith.constant 0 : index
      %50 = vector.load %arg5[%c0_22, %c0_23] : memref<2x256xf32, #tpu.memory_space<vmem>>, vector<2x256xf32>
      tpu.vector_store %arg5[%c0_22, %c0_23], %48 {strides = array<i32>} : memref<2x256xf32, #tpu.memory_space<vmem>>, vector<2x256xf32>,
      %51 = arith.index_cast %7 : i32 to index
      %c0_24 = arith.constant 0 : index
      %c0_25 = arith.constant 0 : index
      %52 = vector.load %arg4[%51, %c0_24, %c0_25] : memref<16x2x256xf32, #tpu.memory_space<vmem>>, vector<1x2x256xf32>
      %53 = vector.shape_cast %52 : vector<1x2x256xf32> to vector<2x256xf32>
      %54 = vector.shape_cast %48 : vector<2x256xf32> to vector<1x2x256xf32>
      tpu.vector_store %arg4[%51, %c0_24, %c0_25], %54 {strides = array<i32>} : memref<16x2x256xf32, #tpu.memory_space<vmem>>, vector<1x2x256xf32>,
    }
    %c16_i32_2 = arith.constant 16 : i32
    return
  }
  func.func @transform_0(%arg0: i32, %arg1: i32) -> (i32, i32, i32) {
    %c2_i32 = arith.constant 2 : i32
    %0 = arith.muli %c2_i32, %arg1 : i32
    %c0_i32 = arith.constant 0 : i32
    %1 = arith.subi %c0_i32, %0 : i32
    %2 = arith.muli %arg0, %1 : i32
    %3 = arith.addi %arg1, %2 : i32
    %c0_i32_0 = arith.constant 0 : i32
    %c0_i32_1 = arith.constant 0 : i32
    return %3, %c0_i32_0, %arg0 : i32, i32, i32
  }
  func.func @transform_1(%arg0: i32, %arg1: i32) -> (i32, i32, i32) {
    %c0_i32 = arith.constant 0 : i32
    %c0_i32_0 = arith.constant 0 : i32
    %c0_i32_1 = arith.constant 0 : i32
    return %arg0, %c0_i32, %c0_i32_0 : i32, i32, i32
  }
  func.func @transform_2(%arg0: i32, %arg1: i32) -> (i32, i32, i32) {
    %c2_i32 = arith.constant 2 : i32
    %0 = arith.muli %c2_i32, %arg1 : i32
    %c0_i32 = arith.constant 0 : i32
    %1 = arith.subi %c0_i32, %0 : i32
    %2 = arith.muli %arg0, %1 : i32
    %3 = arith.addi %arg1, %2 : i32
    %c0_i32_0 = arith.constant 0 : i32
    %c0_i32_1 = arith.constant 0 : i32
    return %3, %c0_i32_0, %arg0 : i32, i32, i32
  }
}

</mosaic_0001>

<bundles_post_ra>
// kernel: speech_model_forward.9
= control target key start
LH: loop header
LB: loop body
LE: loop exit
PB: predicated region body
PF: predicated region fallthrough
CT: control target
= control target key end

     0   :  { %8 = vsyncpa [#allocation3], 0  ;;  %s1484_s0 = inlined_call_operand.vmem [shape: f32[32,64], index: 0, kind: input, shape index: {}]   ;;  %s1485_s1 = inlined_call_operand.hbm [shape: bf16[64,2048], index: 1, kind: input, shape index: {}]   ;;  %s1486_s2 = inlined_call_operand.hbm [shape: f32[1,2048], index: 2, kind: input, shape index: {}]   ;;  %s1487_s3 = inlined_call_operand.vmem [shape: f32[32,2048], index: 3, kind: output, shape index: {}]  }
   0x1   :  { %9 = vsyncpa [#allocation5], 0  ;;  %s1145_s12 = smov [#allocation2]  }
   0x2   :  { %s17_s13 = sshll.u32 %s1145_s12, 4  ;;  %s18_s13 = int_to_ptr.vmem [resolvable:$true] %s17_s13 }
   0x3   :  { %s1109_s14 = scalar_lea.vmem %s18_s13, 8192  ;;  %p1114_p1 = scmp.lt.s32.totalorder %s18_s13, %s18_s13 }
   0x4   :  { %p1110_p0 = scmp.ne.s32.totalorder %s18_s13, %s1109_s14  ;;  %p1115_p2 = scmp.lt.s32.totalorder %s1109_s14, %s1109_s14 }
   0x6   :  { %p1116_p3 = por %p1115_p2, %p1114_p1 }
   0x8   :  { %p1117_p4 = pnand %p1116_p3, %p1110_p0 }
   0xa   :  { %1120 = shalt.err (!%p1117_p4)
}
   0xb   :  { %s1146_s15 = smov 1024   ;;  %s1147_s16 = smov 64  }
   0xc   :  { %23 = dma.hbm_to_vmem [thread:$0]  %s1485_s1, 8192, %s18_s13, [#allocation3], %s1146_s15, %s1146_s15, %s1147_s16  }
   0xd   :  { %s1148_s19 = smov [#allocation4]  }
   0xe   :  { %s30_s20 = sshll.u32 %s1148_s19, 4  ;;  %s31_s20 = int_to_ptr.vmem [resolvable:$true] %s30_s20 }
   0xf   :  { %s1129_s21 = scalar_lea.vmem %s31_s20, 256  ;;  %p1134_p6 = scmp.lt.s32.totalorder %s31_s20, %s31_s20 }
  0x10   :  { %p1130_p5 = scmp.ne.s32.totalorder %s31_s20, %s1129_s21  ;;  %p1135_p7 = scmp.lt.s32.totalorder %s1129_s21, %s1129_s21 }
  0x12   :  { %p1136_p8 = por %p1135_p7, %p1134_p6 }
  0x14   :  { %p1137_p9 = pnand %p1136_p8, %p1130_p5 }
  0x16   :  { %1140 = shalt.err (!%p1137_p9)
}
  0x17   :  { %33 = dma.hbm_to_vmem [thread:$0]  %s1486_s2, 256, %s31_s20, [#allocation5]  }
  0x18   :  { %1141 = dma.done.wait [#allocation3], 8192  }
  0x19   :  { %1142 = vsyncadd [#allocation3], 4294959104 }
  0x1a   :  { %1143 = dma.done.wait [#allocation5], 256  }
  0x1b   :  { %1144 = vsyncadd [#allocation5], 4294967040  ;;  %v1149_v0 = vmov 0   ;;  %v95_v1 = vld [vmem:[#allocation2 + $0x180] sm:$0xff]  ;;  %v96_v3 = vld [vmem:[#allocation2 + $0x188] sm:$0xff]  ;;  %vm515_vm0 = vcmask 523264  }
  0x1c   :  { %554 = vmatprep.mubr.bf16.mxu0 %v1149_v0  ;;  %607 = vmatprep.mubr.bf16.mxu1 %v1149_v0  ;;  %v103_v2 = vld [vmem:[#allocation2 + $0x1c0] sm:$0xff]  ;;  %v104_v5 = vld [vmem:[#allocation2 + $0x1c8] sm:$0xff]  ;;  %v97_v31 = vld [vmem:[#allocation2 + $0x190] sm:$0xff] }
  0x1d   :  { %v1065_v4 = vcombine.high %v95_v1, %v103_v2  ;;  %v1064_v6 = vcombine.low %v95_v1, %v103_v2  ;;  %v79_v7 = vld [vmem:[#allocation2 + $0x100] sm:$0xff]  ;;  %v1067_v9 = vcombine.high %v96_v3, %v104_v5  ;;  %v1066_v10 = vcombine.low %v96_v3, %v104_v5  ;;  %v80_v12 = vld [vmem:[#allocation2 + $0x108] sm:$0xff]  ;;  %v105_v32 = vld [vmem:[#allocation2 + $0x1d0] sm:$0xff] }
  0x1e   :  { %v87_v8 = vld [vmem:[#allocation2 + $0x140] sm:$0xff]  ;;  %v88_v13 = vld [vmem:[#allocation2 + $0x148] sm:$0xff]  ;;  %v98_v33 = vld [vmem:[#allocation2 + $0x198] sm:$0xff]  ;;  %v1069_v39 = vcombine.high %v97_v31, %v105_v32  ;;  %v1068_v46 = vcombine.low %v97_v31, %v105_v32 }
  0x1f   :  { %v1049_v11 = vcombine.high %v79_v7, %v87_v8  ;;  %v63_v14 = vld [vmem:[#allocation2 + $0x80] sm:$0xff]  ;;  %530 = vmatprep.subr.bf16.mxu0 %v1065_v4  ;;  %v1051_v15 = vcombine.high %v80_v12, %v88_v13  ;;  %v64_v17 = vld [vmem:[#allocation2 + $0x88] sm:$0xff]  ;;  %583 = vmatprep.subr.bf16.mxu1 %v1067_v9  ;;  %v1048_v19 = vcombine.low %v79_v7, %v87_v8  ;;  %v106_v34 = vld [vmem:[#allocation2 + $0x1d8] sm:$0xff] }
  0x20   :  { %v71_v16 = vld [vmem:[#allocation2 + $0xc0] sm:$0xff]  ;;  %v72_v18 = vld [vmem:[#allocation2 + $0xc8] sm:$0xff]  ;;  %531 = vmatpush1.bf16.msra.mxu0 %v1064_v6  ;;  %584 = vmatpush1.bf16.msra.mxu1 %v1066_v10  ;;  %v1050_v20 = vcombine.low %v80_v12, %v88_v13  ;;  %v1071_v40 = vcombine.high %v98_v33, %v106_v34  ;;  %v81_v41 = vld [vmem:[#allocation2 + $0x110] sm:$0xff]  ;;  %v1070_v47 = vcombine.low %v98_v33, %v106_v34 }
  0x21   :  { %532 = vmatprep.subr.bf16.mxu0 %v1049_v11  ;;  %v1033_v21 = vcombine.high %v63_v14, %v71_v16  ;;  %585 = vmatprep.subr.bf16.mxu1 %v1051_v15  ;;  %v1035_v22 = vcombine.high %v64_v17, %v72_v18  ;;  %v47_v23 = vld [vmem:[#allocation2] sm:$0xff]  ;;  %v48_v25 = vld [vmem:[#allocation2 + $0x8] sm:$0xff]  ;;  %v1032_v27 = vcombine.low %v63_v14, %v71_v16  ;;  %v89_v42 = vld [vmem:[#allocation2 + $0x150] sm:$0xff] }
  0x22   :  { %v55_v24 = vld [vmem:[#allocation2 + $0x40] sm:$0xff]  ;;  %v56_v26 = vld [vmem:[#allocation2 + $0x48] sm:$0xff]  ;;  %v1034_v28 = vcombine.low %v64_v17, %v72_v18  ;;  %v82_v44 = vld [vmem:[#allocation2 + $0x118] sm:$0xff]  ;;  %v1053_v48 = vcombine.high %v81_v41, %v89_v42  ;;  %v1052_v54 = vcombine.low %v81_v41, %v89_v42 }
  0x23   :  { %v1017_v29 = vcombine.high %v47_v23, %v55_v24  ;;  %v1019_v30 = vcombine.high %v48_v25, %v56_v26  ;;  %v1016_v35 = vcombine.low %v47_v23, %v55_v24  ;;  %v41_v36 = vld [vmem:[%s1484_s0] sm:$0xff]  ;;  %v42_v37 = vld [vmem:[%s1484_s0 + $0x8] sm:$0xff]  ;;  %v1018_v38 = vcombine.low %v48_v25, %v56_v26  ;;  %v90_v45 = vld [vmem:[#allocation2 + $0x158] sm:$0xff] }
  0x24   :  { %533 = vmatpush1.bf16.msra.mxu0 %v1048_v19  ;;  %586 = vmatpush1.bf16.msra.mxu1 %v1050_v20  ;;  %v1184_v43 = vpack.c.bf16 %v42_v37, %v41_v36  ;;  %v1055_v49 = vcombine.high %v82_v44, %v90_v45  ;;  %v65_v50 = vld [vmem:[#allocation2 + $0x90] sm:$0xff]  ;;  %v66_v52 = vld [vmem:[#allocation2 + $0x98] sm:$0xff]  ;;  %v1054_v57 = vcombine.low %v82_v44, %v90_v45  ;;  %v99_v6 = vld [vmem:[#allocation2 + $0x1a0] sm:$0xff] }
  0x25   :  { %534 = vmatprep.subr.bf16.mxu0 %v1033_v21  ;;  %587 = vmatprep.subr.bf16.mxu1 %v1035_v22  ;;  %v73_v51 = vld [vmem:[#allocation2 + $0xd0] sm:$0xff]  ;;  %v74_v53 = vld [vmem:[#allocation2 + $0xd8] sm:$0xff]  ;;  %v107_v7 = vld [vmem:[#allocation2 + $0x1e0] sm:$0xff] }
  0x26   :  { %v43_v55 = vld [vmem:[%s1484_s0 + $0x10] sm:$0xff]  ;;  %v44_v56 = vld [vmem:[%s1484_s0 + $0x18] sm:$0xff]  ;;  %v1037_v58 = vcombine.high %v65_v50, %v73_v51  ;;  %v1039_v59 = vcombine.high %v66_v52, %v74_v53  ;;  %v1036_v2 = vcombine.low %v65_v50, %v73_v51  ;;  %v1038_v3 = vcombine.low %v66_v52, %v74_v53  ;;  %v100_v8 = vld [vmem:[#allocation2 + $0x1a8] sm:$0xff] }
  0x27   :  { %v49_v60 = vld [vmem:[#allocation2 + $0x10] sm:$0xff]  ;;  %v1198_v62 = vpack.c.bf16 %v44_v56, %v43_v55  ;;  %v50_v63 = vld [vmem:[#allocation2 + $0x18] sm:$0xff]  ;;  %v108_v9 = vld [vmem:[#allocation2 + $0x1e8] sm:$0xff]  ;;  %v1073_v12 = vcombine.high %v99_v6, %v107_v7  ;;  %v1072_v18 = vcombine.low %v99_v6, %v107_v7 }
  0x28   :  { %535 = vmatpush1.bf16.msra.mxu0 %v1032_v27  ;;  %588 = vmatpush1.bf16.msra.mxu1 %v1034_v28  ;;  %v57_v61 = vld [vmem:[#allocation2 + $0x50] sm:$0xff]  ;;  %v58_v1 = vld [vmem:[#allocation2 + $0x58] sm:$0xff]  ;;  %v1075_v13 = vcombine.high %v100_v8, %v108_v9  ;;  %v83_v14 = vld [vmem:[#allocation2 + $0x120] sm:$0xff]  ;;  %v1074_v19 = vcombine.low %v100_v8, %v108_v9 }
  0x29   :  { %536 = vmatprep.subr.bf16.mxu0 %v1017_v29  ;;  %589 = vmatprep.subr.bf16.mxu1 %v1019_v30  ;;  %v1021_v4 = vcombine.high %v49_v60, %v57_v61  ;;  %v1023_v5 = vcombine.high %v50_v63, %v58_v1  ;;  %v1020_v10 = vcombine.low %v49_v60, %v57_v61  ;;  %v91_v15 = vld [vmem:[#allocation2 + $0x160] sm:$0xff]  ;;  %v84_v16 = vld [vmem:[#allocation2 + $0x128] sm:$0xff]  ;;  %v110_v41 = vld [vmem:[#allocation2 + $0x1f8] sm:$0xff] }
  0x2a   :  { %v1022_v11 = vcombine.low %v50_v63, %v58_v1  ;;  %v92_v17 = vld [vmem:[#allocation2 + $0x168] sm:$0xff]  ;;  %v1057_v20 = vcombine.high %v83_v14, %v91_v15  ;;  %v67_v22 = vld [vmem:[#allocation2 + $0xa0] sm:$0xff]  ;;  %v1056_v26 = vcombine.low %v83_v14, %v91_v15  ;;  %v94_v50 = vld [vmem:[#allocation2 + $0x178] sm:$0xff] }
  0x2b   :  { %v1059_v21 = vcombine.high %v84_v16, %v92_v17  ;;  %v75_v23 = vld [vmem:[#allocation2 + $0xe0] sm:$0xff]  ;;  %v68_v24 = vld [vmem:[#allocation2 + $0xa8] sm:$0xff]  ;;  %v1058_v27 = vcombine.low %v84_v16, %v92_v17  ;;  %v69_v55 = vld [vmem:[#allocation2 + $0xb0] sm:$0xff] }
  0x2c   :  { %537 = vmatpush1.bf16.msra.mxu0 %v1016_v35  ;;  %590 = vmatpush1.bf16.msra.mxu1 %v1018_v38  ;;  %v76_v25 = vld [vmem:[#allocation2 + $0xe8] sm:$0xff]  ;;  %v1041_v28 = vcombine.high %v67_v22, %v75_v23  ;;  %v51_v30 = vld [vmem:[#allocation2 + $0x20] sm:$0xff]  ;;  %v1040_v34 = vcombine.low %v67_v22, %v75_v23  ;;  %v101_v38 = vld [vmem:[#allocation2 + $0x1b0] sm:$0xff] }
  0x2d   :  { %636 = vmatprep.subr.bf16.mxu0 %v1069_v39  ;;  %689 = vmatprep.subr.bf16.mxu1 %v1071_v40  ;;  %v1043_v29 = vcombine.high %v68_v24, %v76_v25  ;;  %v59_v31 = vld [vmem:[#allocation2 + $0x60] sm:$0xff]  ;;  %v52_v32 = vld [vmem:[#allocation2 + $0x28] sm:$0xff]  ;;  %v1042_v35 = vcombine.low %v68_v24, %v76_v25  ;;  %v109_v39 = vld [vmem:[#allocation2 + $0x1f0] sm:$0xff] }
  0x2e   :  { %v60_v33 = vld [vmem:[#allocation2 + $0x68] sm:$0xff]  ;;  %v1025_v36 = vcombine.high %v51_v30, %v59_v31  ;;  %v102_v40 = vld [vmem:[#allocation2 + $0x1b8] sm:$0xff]  ;;  %v1024_v42 = vcombine.low %v51_v30, %v59_v31  ;;  %v1077_v45 = vcombine.high %v101_v38, %v109_v39  ;;  %v1076_v51 = vcombine.low %v101_v38, %v109_v39  ;;  %v77_v56 = vld [vmem:[#allocation2 + $0xf0] sm:$0xff] }
  0x2f   :  { %1080 = vmatmul.mubr.msk.bf16.vlgmr.msra.gmra.mxu0 %vm515_vm0, %v1184_v43  ;;  %1082 = vmatmul.mubr.msk.bf16.vlgmr.msra.gmra.mxu1 %vm515_vm0, %v1184_v43  ;;  %v1027_v37 = vcombine.high %v52_v32, %v60_v33  ;;  %v1026_v44 = vcombine.low %v52_v32, %v60_v33  ;;  %v1078_v52 = vcombine.low %v102_v40, %v110_v41  ;;  %v53_v1 = vld [vmem:[#allocation2 + $0x30] sm:$0xff]  ;;  %v111_v14 = vld [vmem:[#allocation4] sm:$0xff] }
  0x30   :  { %637 = vmatpush1.bf16.msra.mxu0 %v1068_v46  ;;  %690 = vmatpush1.bf16.msra.mxu1 %v1070_v47  ;;  %v1079_v46 = vcombine.high %v102_v40, %v110_v41  ;;  %v85_v47 = vld [vmem:[#allocation2 + $0x130] sm:$0xff]  ;;  %v1045_v61 = vcombine.high %v69_v55, %v77_v56 }
  0x31   :  { %638 = vmatprep.subr.bf16.mxu0 %v1053_v48  ;;  %691 = vmatprep.subr.bf16.mxu1 %v1055_v49  ;;  %v93_v48 = vld [vmem:[#allocation2 + $0x170] sm:$0xff]  ;;  %v86_v49 = vld [vmem:[#allocation2 + $0x138] sm:$0xff] }
  0x32   :  { %564 = vmatprep.mubr.bf16.mxu0 %v1149_v0  ;;  %617 = vmatprep.mubr.bf16.mxu1 %v1149_v0  ;;  %v1061_v53 = vcombine.high %v85_v47, %v93_v48  ;;  %v1062_v60 = vcombine.low %v86_v49, %v94_v50 }
  0x34   :  { %639 = vmatpush1.bf16.msra.mxu0 %v1052_v54  ;;  %692 = vmatpush1.bf16.msra.mxu1 %v1054_v57  ;;  %v1063_v54 = vcombine.high %v86_v49, %v94_v50  ;;  %v70_v57 = vld [vmem:[#allocation2 + $0xb8] sm:$0xff] }
  0x35   :  { %640 = vmatprep.subr.bf16.mxu0 %v1037_v58  ;;  %693 = vmatprep.subr.bf16.mxu1 %v1039_v59  ;;  %v78_v58 = vld [vmem:[#allocation2 + $0xf8] sm:$0xff]  ;;  %v1060_v59 = vcombine.low %v85_v47, %v93_v48 }
  0x36   :  { %v1047_v63 = vcombine.high %v70_v57, %v78_v58  ;;  %v1046_v6 = vcombine.low %v70_v57, %v78_v58 }
  0x37   :  { %1081 = vmatmul.mubr.msk.bf16.gmra.mxu0 %vm515_vm0, %v1198_v62  ;;  %1083 = vmatmul.mubr.msk.bf16.gmra.mxu1 %vm515_vm0, %v1198_v62 }
  0x38   :  { %641 = vmatpush1.bf16.msra.mxu0 %v1036_v2  ;;  %694 = vmatpush1.bf16.msra.mxu1 %v1038_v3  ;;  %v61_v2 = vld [vmem:[#allocation2 + $0x70] sm:$0xff]  ;;  %v54_v3 = vld [vmem:[#allocation2 + $0x38] sm:$0xff] }
  0x39   :  { %642 = vmatprep.subr.bf16.mxu0 %v1021_v4  ;;  %695 = vmatprep.subr.bf16.mxu1 %v1023_v5  ;;  %v62_v4 = vld [vmem:[#allocation2 + $0x78] sm:$0xff]  ;;  %v1044_v5 = vcombine.low %v69_v55, %v77_v56  ;;  %v1029_v7 = vcombine.high %v53_v1, %v61_v2  ;;  %v1028_v9 = vcombine.low %v53_v1, %v61_v2 }
  0x3a   :  { %660 = vmatprep.mubr.bf16.mxu0 %v1149_v0  ;;  %713 = vmatprep.mubr.bf16.mxu1 %v1149_v0  ;;  %v1031_v8 = vcombine.high %v54_v3, %v62_v4 }
  0x3c   :  { %643 = vmatpush1.bf16.msra.mxu0 %v1020_v10  ;;  %696 = vmatpush1.bf16.msra.mxu1 %v1022_v11  ;;  %v1030_v10 = vcombine.low %v54_v3, %v62_v4  ;;  %v115_v11 = vlaneseq }
  0x3d   :  { %742 = vmatprep.subr.bf16.mxu0 %v1073_v12  ;;  %795 = vmatprep.subr.bf16.mxu1 %v1075_v13 }
  0x3e   :  { %v1240_v12 = vshrl.u32 %v115_v11, 7 }
  0x3f   :  { %1084 = vmatmul.mubr.msk.bf16.vlgmr.msra.gmra.mxu0 %vm515_vm0, %v1184_v43  ;;  %1086 = vmatmul.mubr.msk.bf16.vlgmr.msra.gmra.mxu1 %vm515_vm0, %v1184_v43 }
  0x40   :  { %743 = vmatpush1.bf16.msra.mxu0 %v1072_v18  ;;  %796 = vmatpush1.bf16.msra.mxu1 %v1074_v19  ;;  %v117_v13 = vsub.s32 0, %v1240_v12  ;;  %v125_v15 = vsub.s32 2, %v1240_v12  ;;  %v129_v16 = vsub.s32 3, %v1240_v12  ;;  %v133_v38 = vsub.s32 4, %v1240_v12 }
  0x41   :  { %744 = vmatprep.subr.bf16.mxu0 %v1057_v20  ;;  %797 = vmatprep.subr.bf16.mxu1 %v1059_v21  ;;  %v141_v41 = vsub.s32 6, %v1240_v12  ;;  %v145_v48 = vsub.s32 7, %v1240_v12 }
  0x42   :  { %670 = vmatprep.mubr.bf16.mxu0 %v1149_v0  ;;  %723 = vmatprep.mubr.bf16.mxu1 %v1149_v0  ;;  %v126_v17 = vrot.slane %v111_v14, %v125_v15  ;;  %v130_v19 = vrot.slane %v111_v14, %v129_v16 }
  0x44   :  { %745 = vmatpush1.bf16.msra.mxu0 %v1056_v26  ;;  %798 = vmatpush1.bf16.msra.mxu1 %v1058_v27 }
  0x45   :  { %746 = vmatprep.subr.bf16.mxu0 %v1041_v28  ;;  %799 = vmatprep.subr.bf16.mxu1 %v1043_v29 }
  0x47   :  { %1085 = vmatmul.mubr.msk.bf16.gmra.mxu0 %vm515_vm0, %v1198_v62  ;;  %1087 = vmatmul.mubr.msk.bf16.gmra.mxu1 %vm515_vm0, %v1198_v62 }
  0x48   :  { %747 = vmatpush1.bf16.msra.mxu0 %v1040_v34  ;;  %800 = vmatpush1.bf16.msra.mxu1 %v1042_v35 }
  0x49   :  { %748 = vmatprep.subr.bf16.mxu0 %v1025_v36  ;;  %801 = vmatprep.subr.bf16.mxu1 %v1027_v37 }
  0x4a   :  { %766 = vmatprep.mubr.bf16.mxu0 %v1149_v0  ;;  %819 = vmatprep.mubr.bf16.mxu1 %v1149_v0 }
  0x4c   :  { %749 = vmatpush1.bf16.msra.mxu0 %v1024_v42  ;;  %802 = vmatpush1.bf16.msra.mxu1 %v1026_v44 }
  0x4d   :  { %848 = vmatprep.subr.bf16.mxu0 %v1077_v45  ;;  %901 = vmatprep.subr.bf16.mxu1 %v1079_v46  ;;  %v137_v45 = vsub.s32 5, %v1240_v12 }
  0x4f   :  { %1088 = vmatmul.mubr.msk.bf16.vlgmr.msra.gmra.mxu0 %vm515_vm0, %v1184_v43  ;;  %1090 = vmatmul.mubr.msk.bf16.vlgmr.msra.gmra.mxu1 %vm515_vm0, %v1184_v43  ;;  %v138_v57 = vrot.slane %v111_v14, %v137_v45 }
  0x50   :  { %849 = vmatpush1.bf16.msra.mxu0 %v1076_v51  ;;  %902 = vmatpush1.bf16.msra.mxu1 %v1078_v52  ;;  %v134_v51 = vrot.slane %v111_v14, %v133_v38 }
  0x51   :  { %850 = vmatprep.subr.bf16.mxu0 %v1061_v53  ;;  %903 = vmatprep.subr.bf16.mxu1 %v1063_v54  ;;  %v142_v54 = vrot.slane %v111_v14, %v141_v41 }
  0x52   :  { %776 = vmatprep.mubr.bf16.mxu0 %v1149_v0  ;;  %829 = vmatprep.mubr.bf16.mxu1 %v1149_v0 }
  0x54   :  { %851 = vmatpush1.bf16.msra.mxu0 %v1060_v59  ;;  %904 = vmatpush1.bf16.msra.mxu1 %v1062_v60  ;;  %v146_v60 = vrot.slane %v111_v14, %v145_v48 }
  0x55   :  { %852 = vmatprep.subr.bf16.mxu0 %v1045_v61  ;;  %905 = vmatprep.subr.bf16.mxu1 %v1047_v63 }
  0x57   :  { %1089 = vmatmul.mubr.msk.bf16.gmra.mxu0 %vm515_vm0, %v1198_v62  ;;  %1091 = vmatmul.mubr.msk.bf16.gmra.mxu1 %vm515_vm0, %v1198_v62 }
  0x58   :  { %853 = vmatpush1.bf16.msra.mxu0 %v1044_v5  ;;  %906 = vmatpush1.bf16.msra.mxu1 %v1046_v6 }
  0x59   :  { %854 = vmatprep.subr.bf16.mxu0 %v1029_v7  ;;  %907 = vmatprep.subr.bf16.mxu1 %v1031_v8 }
  0x5a   :  { %872 = vmatprep.mubr.bf16.mxu0 %v1149_v0  ;;  %925 = vmatprep.mubr.bf16.mxu1 %v1149_v0 }
  0x5c   :  { %855 = vmatpush1.bf16.msra.mxu0 %v1028_v9  ;;  %908 = vmatpush1.bf16.msra.mxu1 %v1030_v10 }
  0x5f   :  { %1092 = vmatmul.mubr.msk.bf16.vlgmr.msra.gmra.mxu0 %vm515_vm0, %v1184_v43  ;;  %1094 = vmatmul.mubr.msk.bf16.vlgmr.msra.gmra.mxu1 %vm515_vm0, %v1184_v43  ;;  %v121_v43 = vsub.s32 1, %v1240_v12 }
  0x60   :  { %882 = vmatprep.mubr.bf16.mxu0 %v1149_v0  ;;  %935 = vmatprep.mubr.bf16.mxu1 %v1149_v0  ;;  %v118_v0 = vrot.slane %v111_v14, %v117_v13 }
  0x67   :  { %1093 = vmatmul.mubr.msk.bf16.gmra.mxu0 %vm515_vm0, %v1198_v62  ;;  %1095 = vmatmul.mubr.msk.bf16.gmra.mxu1 %vm515_vm0, %v1198_v62  ;;  %v122_v62 = vrot.slane %v111_v14, %v121_v43 }
  0xef   :  { %v556_v18 = vpop.f32.mrf.mxu0  ;;  %v609_v21 = vpop.f32.mrf.mxu1 }
  0xf0   :  { %v557_v20 = vadd.f32 %v556_v18, %v118_v0  ;;  %v610_v22 = vadd.f32 %v609_v21, %v126_v17  ;;  %v1338_v21 = vld [vmem:[#allocation4 + $0x8] sm:$0xff] }
  0xf1   :  { %v558_v23 = vpop.f32.mrf.mxu0  ;;  %v611_v25 = vpop.f32.mrf.mxu1 }
  0xf2   :  { %946 = vst [vmem:[%s1487_s3] sm:$0xff] %v557_v20  ;;  %v559_v24 = vadd.f32 %v558_v23, %v122_v62  ;;  %948 = vst [vmem:[%s1487_s3 + $0x10] sm:$0xff] %v610_v22  ;;  %v612_v26 = vadd.f32 %v611_v25, %v130_v19 }
  0xf3   :  { %v560_v27 = vpop.f32.mrf.mxu0  ;;  %v613_v29 = vpop.f32.mrf.mxu1 }
  0xf4   :  { %947 = vst [vmem:[%s1487_s3 + $0x8] sm:$0xff] %v559_v24  ;;  %v561_v28 = vadd.f32 %v560_v27, %v118_v0  ;;  %949 = vst [vmem:[%s1487_s3 + $0x18] sm:$0xff] %v612_v26  ;;  %v614_v30 = vadd.f32 %v613_v29, %v126_v17 }
  0xf5   :  { %v562_v31 = vpop.f32.mrf.mxu0  ;;  %v615_v33 = vpop.f32.mrf.mxu1 }
  0xf6   :  { %962 = vst [vmem:[%s1487_s3 + $0x80] sm:$0xff] %v561_v28  ;;  %v563_v32 = vadd.f32 %v562_v31, %v122_v62  ;;  %964 = vst [vmem:[%s1487_s3 + $0x90] sm:$0xff] %v614_v30  ;;  %v616_v34 = vadd.f32 %v615_v33, %v130_v19  ;;  %v150_v28 = vrot.slane %v1338_v21, %v117_v13 }
  0xf7   :  { %v566_v35 = vpop.f32.mrf.mxu0  ;;  %v619_v37 = vpop.f32.mrf.mxu1  ;;  %v158_v31 = vrot.slane %v1338_v21, %v125_v15  ;;  %v154_v13 = vrot.slane %v1338_v21, %v121_v43  ;;  %v162_v15 = vrot.slane %v1338_v21, %v129_v16 }
  0xf8   :  { %963 = vst [vmem:[%s1487_s3 + $0x88] sm:$0xff] %v563_v32  ;;  %v567_v36 = vadd.f32 %v566_v35, %v118_v0  ;;  %965 = vst [vmem:[%s1487_s3 + $0x98] sm:$0xff] %v616_v34  ;;  %v620_v39 = vadd.f32 %v619_v37, %v126_v17 }
  0xf9   :  { %v568_v40 = vpop.f32.mrf.mxu0  ;;  %v621_v44 = vpop.f32.mrf.mxu1 }
  0xfa   :  { %978 = vst [vmem:[%s1487_s3 + $0x100] sm:$0xff] %v567_v36  ;;  %v569_v42 = vadd.f32 %v568_v40, %v122_v62  ;;  %980 = vst [vmem:[%s1487_s3 + $0x110] sm:$0xff] %v620_v39  ;;  %v622_v46 = vadd.f32 %v621_v44, %v130_v19 }
  0xfb   :  { %v570_v47 = vpop.f32.mrf.mxu0  ;;  %v623_v50 = vpop.f32.mrf.mxu1 }
  0xfc   :  { %979 = vst [vmem:[%s1487_s3 + $0x108] sm:$0xff] %v569_v42  ;;  %v571_v49 = vadd.f32 %v570_v47, %v118_v0  ;;  %981 = vst [vmem:[%s1487_s3 + $0x118] sm:$0xff] %v622_v46  ;;  %v624_v52 = vadd.f32 %v623_v50, %v126_v17 }
  0xfd   :  { %v572_v53 = vpop.f32.mrf.mxu0  ;;  %v625_v56 = vpop.f32.mrf.mxu1 }
  0xfe   :  { %994 = vst [vmem:[%s1487_s3 + $0x180] sm:$0xff] %v571_v49  ;;  %v573_v55 = vadd.f32 %v572_v53, %v122_v62  ;;  %996 = vst [vmem:[%s1487_s3 + $0x190] sm:$0xff] %v624_v52  ;;  %v626_v58 = vadd.f32 %v625_v56, %v130_v19 }
  0xff   :  { %v662_v59 = vpop.f32.mrf.mxu0  ;;  %v715_v63 = vpop.f32.mrf.mxu1 }
 0x100   :  { %995 = vst [vmem:[%s1487_s3 + $0x188] sm:$0xff] %v573_v55  ;;  %v663_v61 = vadd.f32 %v662_v59, %v134_v51  ;;  %997 = vst [vmem:[%s1487_s3 + $0x198] sm:$0xff] %v626_v58  ;;  %v716_v1 = vadd.f32 %v715_v63, %v142_v54 }
 0x101   :  { %v664_v2 = vpop.f32.mrf.mxu0  ;;  %v717_v4 = vpop.f32.mrf.mxu1 }
 0x102   :  { %950 = vst [vmem:[%s1487_s3 + $0x20] sm:$0xff] %v663_v61  ;;  %v665_v3 = vadd.f32 %v664_v2, %v138_v57  ;;  %952 = vst [vmem:[%s1487_s3 + $0x30] sm:$0xff] %v716_v1  ;;  %v718_v5 = vadd.f32 %v717_v4, %v146_v60 }
 0x103   :  { %v666_v6 = vpop.f32.mrf.mxu0  ;;  %v719_v8 = vpop.f32.mrf.mxu1 }
 0x104   :  { %951 = vst [vmem:[%s1487_s3 + $0x28] sm:$0xff] %v665_v3  ;;  %v667_v7 = vadd.f32 %v666_v6, %v134_v51  ;;  %953 = vst [vmem:[%s1487_s3 + $0x38] sm:$0xff] %v718_v5  ;;  %v720_v9 = vadd.f32 %v719_v8, %v142_v54  ;;  %v166_v3 = vrot.slane %v1338_v21, %v133_v38 }
 0x105   :  { %v668_v10 = vpop.f32.mrf.mxu0  ;;  %v721_v14 = vpop.f32.mrf.mxu1  ;;  %v174_v6 = vrot.slane %v1338_v21, %v141_v41  ;;  %v170_v38 = vrot.slane %v1338_v21, %v137_v45  ;;  %v178_v41 = vrot.slane %v1338_v21, %v145_v48 }
 0x106   :  { %966 = vst [vmem:[%s1487_s3 + $0xa0] sm:$0xff] %v667_v7  ;;  %v669_v11 = vadd.f32 %v668_v10, %v138_v57  ;;  %968 = vst [vmem:[%s1487_s3 + $0xb0] sm:$0xff] %v720_v9  ;;  %v722_v0 = vadd.f32 %v721_v14, %v146_v60 }
 0x107   :  { %v672_v17 = vpop.f32.mrf.mxu0  ;;  %v725_v18 = vpop.f32.mrf.mxu1 }
 0x108   :  { %967 = vst [vmem:[%s1487_s3 + $0xa8] sm:$0xff] %v669_v11  ;;  %v673_v62 = vadd.f32 %v672_v17, %v134_v51  ;;  %969 = vst [vmem:[%s1487_s3 + $0xb8] sm:$0xff] %v722_v0  ;;  %v726_v19 = vadd.f32 %v725_v18, %v142_v54 }
 0x109   :  { %v674_v20 = vpop.f32.mrf.mxu0  ;;  %v727_v23 = vpop.f32.mrf.mxu1 }
 0x10a   :  { %982 = vst [vmem:[%s1487_s3 + $0x120] sm:$0xff] %v673_v62  ;;  %v675_v22 = vadd.f32 %v674_v20, %v138_v57  ;;  %984 = vst [vmem:[%s1487_s3 + $0x130] sm:$0xff] %v726_v19  ;;  %v728_v24 = vadd.f32 %v727_v23, %v146_v60 }
 0x10b   :  { %v676_v25 = vpop.f32.mrf.mxu0  ;;  %v729_v27 = vpop.f32.mrf.mxu1 }
 0x10c   :  { %983 = vst [vmem:[%s1487_s3 + $0x128] sm:$0xff] %v675_v22  ;;  %v677_v26 = vadd.f32 %v676_v25, %v134_v51  ;;  %985 = vst [vmem:[%s1487_s3 + $0x138] sm:$0xff] %v728_v24  ;;  %v730_v29 = vadd.f32 %v729_v27, %v142_v54 }
 0x10d   :  { %v678_v30 = vpop.f32.mrf.mxu0  ;;  %v731_v33 = vpop.f32.mrf.mxu1 }
 0x10e   :  { %998 = vst [vmem:[%s1487_s3 + $0x1a0] sm:$0xff] %v677_v26  ;;  %v679_v32 = vadd.f32 %v678_v30, %v138_v57  ;;  %1000 = vst [vmem:[%s1487_s3 + $0x1b0] sm:$0xff] %v730_v29  ;;  %v732_v34 = vadd.f32 %v731_v33, %v146_v60 }
 0x10f   :  { %v768_v35 = vpop.f32.mrf.mxu0  ;;  %v821_v37 = vpop.f32.mrf.mxu1 }
 0x110   :  { %999 = vst [vmem:[%s1487_s3 + $0x1a8] sm:$0xff] %v679_v32  ;;  %v769_v36 = vadd.f32 %v768_v35, %v150_v28  ;;  %1001 = vst [vmem:[%s1487_s3 + $0x1b8] sm:$0xff] %v732_v34  ;;  %v822_v43 = vadd.f32 %v821_v37, %v158_v31 }
 0x111   :  { %v770_v39 = vpop.f32.mrf.mxu0  ;;  %v823_v42 = vpop.f32.mrf.mxu1 }
 0x112   :  { %954 = vst [vmem:[%s1487_s3 + $0x40] sm:$0xff] %v769_v36  ;;  %v771_v40 = vadd.f32 %v770_v39, %v154_v13  ;;  %956 = vst [vmem:[%s1487_s3 + $0x50] sm:$0xff] %v822_v43  ;;  %v824_v16 = vadd.f32 %v823_v42, %v162_v15 }
 0x113   :  { %v772_v44 = vpop.f32.mrf.mxu0  ;;  %v825_v47 = vpop.f32.mrf.mxu1 }
 0x114   :  { %955 = vst [vmem:[%s1487_s3 + $0x48] sm:$0xff] %v771_v40  ;;  %v773_v46 = vadd.f32 %v772_v44, %v150_v28  ;;  %957 = vst [vmem:[%s1487_s3 + $0x58] sm:$0xff] %v824_v16  ;;  %v826_v49 = vadd.f32 %v825_v47, %v158_v31 }
 0x115   :  { %v774_v50 = vpop.f32.mrf.mxu0  ;;  %v827_v52 = vpop.f32.mrf.mxu1 }
 0x116   :  { %970 = vst [vmem:[%s1487_s3 + $0xc0] sm:$0xff] %v773_v46  ;;  %v775_v51 = vadd.f32 %v774_v50, %v154_v13  ;;  %972 = vst [vmem:[%s1487_s3 + $0xd0] sm:$0xff] %v826_v49  ;;  %v828_v53 = vadd.f32 %v827_v52, %v162_v15 }
 0x117   :  { %v778_v54 = vpop.f32.mrf.mxu0  ;;  %v831_v56 = vpop.f32.mrf.mxu1 }
 0x118   :  { %971 = vst [vmem:[%s1487_s3 + $0xc8] sm:$0xff] %v775_v51  ;;  %v779_v55 = vadd.f32 %v778_v54, %v150_v28  ;;  %973 = vst [vmem:[%s1487_s3 + $0xd8] sm:$0xff] %v828_v53  ;;  %v832_v57 = vadd.f32 %v831_v56, %v158_v31 }
 0x119   :  { %v780_v58 = vpop.f32.mrf.mxu0  ;;  %v833_v60 = vpop.f32.mrf.mxu1 }
 0x11a   :  { %986 = vst [vmem:[%s1487_s3 + $0x140] sm:$0xff] %v779_v55  ;;  %v781_v59 = vadd.f32 %v780_v58, %v154_v13  ;;  %988 = vst [vmem:[%s1487_s3 + $0x150] sm:$0xff] %v832_v57  ;;  %v834_v61 = vadd.f32 %v833_v60, %v162_v15 }
 0x11b   :  { %v782_v63 = vpop.f32.mrf.mxu0  ;;  %v835_v2 = vpop.f32.mrf.mxu1 }
 0x11c   :  { %987 = vst [vmem:[%s1487_s3 + $0x148] sm:$0xff] %v781_v59  ;;  %v783_v1 = vadd.f32 %v782_v63, %v150_v28  ;;  %989 = vst [vmem:[%s1487_s3 + $0x158] sm:$0xff] %v834_v61  ;;  %v836_v4 = vadd.f32 %v835_v2, %v158_v31 }
 0x11d   :  { %v784_v5 = vpop.f32.mrf.mxu0  ;;  %v837_v8 = vpop.f32.mrf.mxu1 }
 0x11e   :  { %1002 = vst [vmem:[%s1487_s3 + $0x1c0] sm:$0xff] %v783_v1  ;;  %v785_v7 = vadd.f32 %v784_v5, %v154_v13  ;;  %1004 = vst [vmem:[%s1487_s3 + $0x1d0] sm:$0xff] %v836_v4  ;;  %v838_v9 = vadd.f32 %v837_v8, %v162_v15 }
 0x11f   :  { %v874_v10 = vpop.f32.mrf.mxu0  ;;  %v927_v14 = vpop.f32.mrf.mxu1 }
 0x120   :  { %1003 = vst [vmem:[%s1487_s3 + $0x1c8] sm:$0xff] %v785_v7  ;;  %v875_v11 = vadd.f32 %v874_v10, %v166_v3  ;;  %1005 = vst [vmem:[%s1487_s3 + $0x1d8] sm:$0xff] %v838_v9  ;;  %v928_v45 = vadd.f32 %v927_v14, %v174_v6 }
 0x121   :  { %v876_v0 = vpop.f32.mrf.mxu0  ;;  %v929_v12 = vpop.f32.mrf.mxu1 }
 0x122   :  { %958 = vst [vmem:[%s1487_s3 + $0x60] sm:$0xff] %v875_v11  ;;  %v877_v17 = vadd.f32 %v876_v0, %v170_v38  ;;  %960 = vst [vmem:[%s1487_s3 + $0x70] sm:$0xff] %v928_v45  ;;  %v930_v48 = vadd.f32 %v929_v12, %v178_v41 }
 0x123   :  { %v878_v62 = vpop.f32.mrf.mxu0  ;;  %v931_v19 = vpop.f32.mrf.mxu1 }
 0x124   :  { %959 = vst [vmem:[%s1487_s3 + $0x68] sm:$0xff] %v877_v17  ;;  %v879_v18 = vadd.f32 %v878_v62, %v166_v3  ;;  %961 = vst [vmem:[%s1487_s3 + $0x78] sm:$0xff] %v930_v48  ;;  %v932_v20 = vadd.f32 %v931_v19, %v174_v6 }
 0x125   :  { %v880_v21 = vpop.f32.mrf.mxu0  ;;  %v933_v23 = vpop.f32.mrf.mxu1 }
 0x126   :  { %974 = vst [vmem:[%s1487_s3 + $0xe0] sm:$0xff] %v879_v18  ;;  %v881_v22 = vadd.f32 %v880_v21, %v170_v38  ;;  %976 = vst [vmem:[%s1487_s3 + $0xf0] sm:$0xff] %v932_v20  ;;  %v934_v24 = vadd.f32 %v933_v23, %v178_v41 }
 0x127   :  { %v884_v25 = vpop.f32.mrf.mxu0  ;;  %v937_v27 = vpop.f32.mrf.mxu1 }
 0x128   :  { %975 = vst [vmem:[%s1487_s3 + $0xe8] sm:$0xff] %v881_v22  ;;  %v885_v26 = vadd.f32 %v884_v25, %v166_v3  ;;  %977 = vst [vmem:[%s1487_s3 + $0xf8] sm:$0xff] %v934_v24  ;;  %v938_v28 = vadd.f32 %v937_v27, %v174_v6 }
 0x129   :  { %v886_v29 = vpop.f32.mrf.mxu0  ;;  %v939_v31 = vpop.f32.mrf.mxu1 }
 0x12a   :  { %990 = vst [vmem:[%s1487_s3 + $0x160] sm:$0xff] %v885_v26  ;;  %v887_v30 = vadd.f32 %v886_v29, %v170_v38  ;;  %992 = vst [vmem:[%s1487_s3 + $0x170] sm:$0xff] %v938_v28  ;;  %v940_v32 = vadd.f32 %v939_v31, %v178_v41 }
 0x12b   :  { %v888_v33 = vpop.f32.mrf.mxu0  ;;  %v941_v34 = vpop.f32.mrf.mxu1 }
 0x12c   :  { %991 = vst [vmem:[%s1487_s3 + $0x168] sm:$0xff] %v887_v30  ;;  %v889_v13 = vadd.f32 %v888_v33, %v166_v3  ;;  %993 = vst [vmem:[%s1487_s3 + $0x178] sm:$0xff] %v940_v32  ;;  %v942_v35 = vadd.f32 %v941_v34, %v174_v6 }
 0x12d   :  { %v890_v15 = vpop.f32.mrf.mxu0  ;;  %v943_v37 = vpop.f32.mrf.mxu1 }
 0x12e   :  { %1006 = vst [vmem:[%s1487_s3 + $0x1e0] sm:$0xff] %v889_v13  ;;  %v891_v36 = vadd.f32 %v890_v15, %v170_v38  ;;  %1008 = vst [vmem:[%s1487_s3 + $0x1f0] sm:$0xff] %v942_v35  ;;  %v944_v43 = vadd.f32 %v943_v37, %v178_v41 }
 0x130   :  { %1007 = vst [vmem:[%s1487_s3 + $0x1e8] sm:$0xff] %v891_v36  ;;  %1009 = vst [vmem:[%s1487_s3 + $0x1f8] sm:$0xff] %v944_v43 }
 0x131   :  { %1014 = vsyncpa [#allocation3], 1 }
 0x132   :  { %1015 = vsyncpa [#allocation5], 1 }

// kernel: speech_model_forward.10
= control target key start
LH: loop header
LB: loop body
LE: loop exit
PB: predicated region body
PF: predicated region fallthrough
CT: control target
= control target key end

     0   :  { %7 = vsyncpa [#allocation6], 0  ;;  %s2271_s0 = inlined_call_operand.vmem [shape: f32[16,2,2048], index: 0, kind: input, shape index: {}]   ;;  %s2272_s1 = inlined_call_operand.hbm [shape: bf16[2,256,1024], index: 1, kind: input, shape index: {}]   ;;  %s2273_s2 = inlined_call_operand.vmem [shape: f32[16,2,512], index: 2, kind: output, shape index: {}]  }
   0x1   :  { %9 = vsyncpa [#allocation6 + $0x1], 0  ;;  %s1916_s9 = smov 0   ;;  %s1918_s10 = smov 0  }
   0x2   :  { %s1920_s11 = smov 0   ;;  %s1922_s12 = smov 0  }
   0x3   :  { %s1924_s13 = smov 0   ;;  %s1926_s14 = smov 0  }
   0x4 LB: > { %s1580_s15 = sadd.s32 4294967295, %s1890_s14   ;;  %s27_s16 = sadd.s32 1, %s1886_s13  ;;  %s1890_s14 = sphi %s1926_s14, %s15_s14   ;;  %s1886_s13 = sphi %s1924_s13, %s2281_s13   ;;  %s1882_s12 = sphi %s1922_s12, %s2280_s12   ;;  %s1878_s11 = sphi %s1920_s11, %s2279_s11   ;;  %s1874_s10 = sphi %s1918_s10, %s2278_s10   ;;  %s1870_s9 = sphi %s1916_s9, %s2277_s9  }
   0x5   : > { %p29_p0 = scmp.ge.s32.totalorder %s27_s16, 2  ;;  %s44_s17 = sadd.s32 1, %s1878_s11 }
   0x6   : > { %p51_p1 = scmp.ne.s32.totalorder %s1878_s11, %s1874_s10  ;;  %p52_p2 = scmp.eq.s32.totalorder %s1890_s14, 0 }
   0x7   : > { %s2283_s16 = smov (%p29_p0, %s27_s16), 0  ;;  %p83_p4 = scmp.ne.s32.totalorder %s1874_s10, %s1870_s9 }
   0x8   : > { %p1952_p3 = por %p52_p2, %p51_p1  ;;  %s40_s19 = ssub.s32 %s1886_s13, %s2283_s16 }
   0x9   : > { %p84_p5 = scmp.eq.s32.totalorder %s1580_s15, 0  ;;  %p42_p6 = scmp.eq.s32.totalorder %s40_s19, 0 }
   0xa   : > { %p117_p7 = scmp.eq.s32.totalorder %s1580_s15, 1  ;;  %p1583_p10 = scmp.ge.s32.totalorder %s1890_s14, 2 }
   0xb   : > { %p1959_p8 = por %p84_p5, %p83_p4 }
   0xc   : > { %s1964_s21 = scalar_select %p42_p6, %s1878_s11, %s44_s17  }
   0xd   : > { %p1966_p9 = por %p117_p7, %p51_p1  ;;  %139 = sbr.rel (%p1583_p10) target bundleno = 54 (0x36), region = 16 }
  0x12   : > { %142 = sbr.rel (!%p1952_p3) target bundleno = 38 (0x26), region = 20  ;;  %s144_s23 = sand.u32 (%p1952_p3), 1, %s1878_s11  }
  0x13   : > { %s1733_s24 = sshll.u32 (%p1952_p3), %s1886_s13, 4  ;;  %s1584_s25 = sshll.u32 (%p1952_p3), %s144_s23, 8 }
  0x14   : > { %s1978_s28 = scalar_lea.vmem (%p1952_p3), %s2271_s0, %s1733_s24  ;;  %s1983_s29 = scalar_lea.vmem (%p1952_p3), [#allocation4], %s1584_s25 }
  0x15   : > { %v169_v0 = vld [vmem:[%s1978_s28] sm:$0xff] (%p1952_p3)  ;;  %v171_v1 = vld [vmem:[%s1978_s28 + $0x8] sm:$0xff] (%p1952_p3) }
  0x16   : > { %v173_v2 = vld [vmem:[%s1978_s28 + $0x20] sm:$0xff] (%p1952_p3)  ;;  %170 = vst [vmem:[%s1983_s29] sm:$0xff] (%p1952_p3), %v169_v0  ;;  %172 = vst [vmem:[%s1983_s29 + $0x8] sm:$0xff] (%p1952_p3), %v171_v1  ;;  %v175_v3 = vld [vmem:[%s1978_s28 + $0x28] sm:$0xff] (%p1952_p3) }
  0x17   : > { %174 = vst [vmem:[%s1983_s29 + $0x10] sm:$0xff] %v173_v2  ;;  %v177_v4 = vld [vmem:[%s1978_s28 + $0x40] sm:$0xff]  ;;  %v179_v5 = vld [vmem:[%s1978_s28 + $0x48] sm:$0xff]  ;;  %176 = vst [vmem:[%s1983_s29 + $0x18] sm:$0xff] %v175_v3 }
  0x18   : > { %178 = vst [vmem:[%s1983_s29 + $0x20] sm:$0xff] %v177_v4  ;;  %180 = vst [vmem:[%s1983_s29 + $0x28] sm:$0xff] %v179_v5  ;;  %v181_v6 = vld [vmem:[%s1978_s28 + $0x60] sm:$0xff]  ;;  %v183_v7 = vld [vmem:[%s1978_s28 + $0x68] sm:$0xff] }
  0x19   : > { %v185_v8 = vld [vmem:[%s1978_s28 + $0x80] sm:$0xff]  ;;  %182 = vst [vmem:[%s1983_s29 + $0x30] sm:$0xff] %v181_v6  ;;  %184 = vst [vmem:[%s1983_s29 + $0x38] sm:$0xff] %v183_v7  ;;  %v187_v9 = vld [vmem:[%s1978_s28 + $0x88] sm:$0xff] }
  0x1a   : > { %186 = vst [vmem:[%s1983_s29 + $0x40] sm:$0xff] %v185_v8  ;;  %v189_v10 = vld [vmem:[%s1978_s28 + $0xa0] sm:$0xff]  ;;  %v191_v11 = vld [vmem:[%s1978_s28 + $0xa8] sm:$0xff]  ;;  %188 = vst [vmem:[%s1983_s29 + $0x48] sm:$0xff] %v187_v9 }
  0x1b   : > { %190 = vst [vmem:[%s1983_s29 + $0x50] sm:$0xff] %v189_v10  ;;  %192 = vst [vmem:[%s1983_s29 + $0x58] sm:$0xff] %v191_v11  ;;  %v193_v12 = vld [vmem:[%s1978_s28 + $0xc0] sm:$0xff]  ;;  %v195_v13 = vld [vmem:[%s1978_s28 + $0xc8] sm:$0xff] }
  0x1c   : > { %v197_v14 = vld [vmem:[%s1978_s28 + $0xe0] sm:$0xff]  ;;  %194 = vst [vmem:[%s1983_s29 + $0x60] sm:$0xff] %v193_v12  ;;  %196 = vst [vmem:[%s1983_s29 + $0x68] sm:$0xff] %v195_v13  ;;  %v199_v15 = vld [vmem:[%s1978_s28 + $0xe8] sm:$0xff] }
  0x1d   : > { %198 = vst [vmem:[%s1983_s29 + $0x70] sm:$0xff] %v197_v14  ;;  %v201_v16 = vld [vmem:[%s1978_s28 + $0x100] sm:$0xff]  ;;  %v203_v17 = vld [vmem:[%s1978_s28 + $0x108] sm:$0xff]  ;;  %200 = vst [vmem:[%s1983_s29 + $0x78] sm:$0xff] %v199_v15 }
  0x1e   : > { %202 = vst [vmem:[%s1983_s29 + $0x80] sm:$0xff] %v201_v16  ;;  %204 = vst [vmem:[%s1983_s29 + $0x88] sm:$0xff] %v203_v17  ;;  %v205_v18 = vld [vmem:[%s1978_s28 + $0x120] sm:$0xff]  ;;  %v207_v19 = vld [vmem:[%s1978_s28 + $0x128] sm:$0xff] }
  0x1f   : > { %v209_v20 = vld [vmem:[%s1978_s28 + $0x140] sm:$0xff]  ;;  %206 = vst [vmem:[%s1983_s29 + $0x90] sm:$0xff] %v205_v18  ;;  %208 = vst [vmem:[%s1983_s29 + $0x98] sm:$0xff] %v207_v19  ;;  %v211_v21 = vld [vmem:[%s1978_s28 + $0x148] sm:$0xff] }
  0x20   : > { %210 = vst [vmem:[%s1983_s29 + $0xa0] sm:$0xff] %v209_v20  ;;  %v213_v22 = vld [vmem:[%s1978_s28 + $0x160] sm:$0xff]  ;;  %v215_v23 = vld [vmem:[%s1978_s28 + $0x168] sm:$0xff]  ;;  %212 = vst [vmem:[%s1983_s29 + $0xa8] sm:$0xff] %v211_v21 }
  0x21   : > { %214 = vst [vmem:[%s1983_s29 + $0xb0] sm:$0xff] %v213_v22  ;;  %216 = vst [vmem:[%s1983_s29 + $0xb8] sm:$0xff] %v215_v23  ;;  %v217_v24 = vld [vmem:[%s1978_s28 + $0x180] sm:$0xff]  ;;  %v219_v25 = vld [vmem:[%s1978_s28 + $0x188] sm:$0xff] }
  0x22   : > { %v221_v26 = vld [vmem:[%s1978_s28 + $0x1a0] sm:$0xff]  ;;  %218 = vst [vmem:[%s1983_s29 + $0xc0] sm:$0xff] %v217_v24  ;;  %220 = vst [vmem:[%s1983_s29 + $0xc8] sm:$0xff] %v219_v25  ;;  %v223_v27 = vld [vmem:[%s1978_s28 + $0x1a8] sm:$0xff] }
  0x23   : > { %222 = vst [vmem:[%s1983_s29 + $0xd0] sm:$0xff] %v221_v26  ;;  %v225_v28 = vld [vmem:[%s1978_s28 + $0x1c0] sm:$0xff]  ;;  %v227_v29 = vld [vmem:[%s1978_s28 + $0x1c8] sm:$0xff]  ;;  %224 = vst [vmem:[%s1983_s29 + $0xd8] sm:$0xff] %v223_v27 }
  0x24   : > { %226 = vst [vmem:[%s1983_s29 + $0xe0] sm:$0xff] %v225_v28  ;;  %228 = vst [vmem:[%s1983_s29 + $0xe8] sm:$0xff] %v227_v29  ;;  %v229_v30 = vld [vmem:[%s1978_s28 + $0x1e0] sm:$0xff]  ;;  %v231_v31 = vld [vmem:[%s1978_s28 + $0x1e8] sm:$0xff] }
  0x25   : > { %230 = vst [vmem:[%s1983_s29 + $0xf0] sm:$0xff] %v229_v30  ;;  %232 = vst [vmem:[%s1983_s29 + $0xf8] sm:$0xff] %v231_v31 }
  0x26 PF: > { %s239_s30 = sand.u32 1, %s1878_s11   ;;  %s1734_s3 = sshll.u32 %s1886_s13, 14 }
  0x27   : > { %s1587_s4 = sshll.u32 %s239_s30, 10  ;;  %s249_s7 = scalar_lea.hbm %s2272_s1, %s1734_s3 }
  0x28   : > { %s243_s8 = scalar_lea.vmem [#allocation5], %s1587_s4  ;;  %s240_s15 = scalar_lea.sflag [#allocation6], %s239_s30 }
  0x29   : > { %s250_s9 = sshll.u32 %s243_s8, 4  ;;  %s1896_s19 = smov [#allocation5]   ;;  %s251_s9 = int_to_ptr.vmem [resolvable:$true] %s250_s9 }
  0x2a   : > { %s1822_s17 = scalar_lea.vmem %s251_s9, 16384  ;;  %s1826_s23 = sshll.u32 %s1896_s19, 4  ;;  %s1827_s23 = int_to_ptr.vmem [resolvable:$false] %s1826_s23 }
  0x2b   : > { %p1823_p11 = scmp.ne.s32.totalorder %s251_s9, %s1822_s17  ;;  %s1828_s24 = scalar_lea.vmem %s1827_s23, 32768 }
  0x2c   : > { %p1829_p0 = scmp.lt.s32.totalorder %s251_s9, %s1827_s23  ;;  %p1830_p1 = scmp.lt.s32.totalorder %s1828_s24, %s1822_s17 }
  0x2d   : > { %p1824_p12 = pnand %p1823_p11, %p1952_p3 }
  0x2e   : > { %p1831_p2 = por %p1830_p1, %p1829_p0 }
  0x2f   : > { %p1825_p13 = pneg %p1824_p12 }
  0x31   : > { %p1832_p4 = pnand %p1831_p2, %p1825_p13 }
  0x33   : > { %1835 = shalt.err (!%p1832_p4)
}
  0x34   : > { %s1897_s25 = smov 512   ;;  %s1898_s26 = smov 32  }
  0x35   : > { %1738 = dma.hbm_to_vmem [thread:$0]  (%p1952_p3), %s249_s7, 16384, %s251_s9, %s240_s15, %s1897_s25, %s1897_s25, %s1898_s26  }
  0x36 PF: > { %p1590_p5 = scmp.ge.s32.totalorder %s1890_s14, 1  ;;  %p258_p6 = scmp.lt.s32.totalorder %s1890_s14, 3 }
  0x38   : > { %p259_p7 = pnand %p1590_p5, %p258_p6 }
  0x39   : > { %s265_s27 = sand.u32 (!%p259_p7), 1, %s1874_s10  }
  0x3a   : > { %262 = sbr.rel (%p259_p7) target bundleno = 453 (0x1c5), region = 47  ;;  %s1591_s28 = sshll.u32 (!%p259_p7), %s265_s27, 8 }
  0x3b   : > { %s1592_s29 = sshll.u32 (!%p259_p7), %s265_s27, 10  ;;  %s2058_s30 = scalar_lea.vmem (!%p259_p7), [#allocation4], %s1591_s28 }
  0x3c   : > { %s272_s3 = scalar_lea.sflag (!%p259_p7), [#allocation6], %s265_s27  ;;  %s2060_s4 = scalar_lea.vmem (!%p259_p7), [#allocation5], %s1592_s29 }
  0x3f   : > { %1865 = dma.done.wait (%p1959_p8), %s272_s3, 16384  }
  0x40   : > { %1867 = vsyncadd (%p1959_p8), %s272_s3, 4294950912  ;;  %s1593_s18 = sshll.u32 %s265_s27, 6  ;;  %v1899_v32 = vmov 0.0   ;;  %s2068_s6 = smov 0  }
  0x41   : > { %315 = vst [vmem:[#allocation2] sm:$0xf] %v1899_v32  ;;  %316 = vst [vmem:[#allocation3] sm:$0xf] %v1899_v32  ;;  %s2066_s5 = scalar_lea.vmem [#allocation7], %s1593_s18 }
  0x42 LB: >> { %v402_v33 = vld [vmem:[%s2060_s4 + $0x1c0] sm:$0xff]  ;;  %v403_v35 = vld [vmem:[%s2060_s4 + $0x1c8] sm:$0xff]  ;;  %s1594_s20 = sshll.u32 %s1894_s6, 1  ;;  %s1894_s6 = sphi %s2068_s6, %s322_s6  }
  0x43   : >> { %v406_v34 = vld [vmem:[%s2060_s4 + $0x1e0] sm:$0xff]  ;;  %v407_v37 = vld [vmem:[%s2060_s4 + $0x1e8] sm:$0xff]  ;;  %s324_s7 = ssub.s32 15, %s1594_s20 }
  0x44   : >> { %v1655_v36 = vcombine.high %v402_v33, %v406_v34  ;;  %v1654_v38 = vcombine.low %v402_v33, %v406_v34  ;;  %v394_v39 = vld [vmem:[%s2060_s4 + $0x180] sm:$0xff]  ;;  %v1657_v41 = vcombine.high %v403_v35, %v407_v37  ;;  %v1656_v42 = vcombine.low %v403_v35, %v407_v37  ;;  %v395_v44 = vld [vmem:[%s2060_s4 + $0x188] sm:$0xff]  ;;  %s325_s8 = smul.u32 %s1882_s12, %s324_s7 }
  0x45   : >> { %v398_v40 = vld [vmem:[%s2060_s4 + $0x1a0] sm:$0xff]  ;;  %v399_v45 = vld [vmem:[%s2060_s4 + $0x1a8] sm:$0xff] }
  0x46   : >> { %v1647_v43 = vcombine.high %v394_v39, %v398_v40  ;;  %v386_v46 = vld [vmem:[%s2060_s4 + $0x140] sm:$0xff]  ;;  %1114 = vmatprep.subr.bf16.mxu0 %v1655_v36  ;;  %v1649_v47 = vcombine.high %v395_v44, %v399_v45  ;;  %v387_v49 = vld [vmem:[%s2060_s4 + $0x148] sm:$0xff]  ;;  %1155 = vmatprep.subr.bf16.mxu1 %v1657_v41  ;;  %v1646_v51 = vcombine.low %v394_v39, %v398_v40  ;;  %s2222_s9 = sadd.s32 %s1894_s6, %s325_s8  ;;  %s322_s6 = sadd.s32 1, %s1894_s6  }
  0x47   : >> { %v390_v48 = vld [vmem:[%s2060_s4 + $0x160] sm:$0xff]  ;;  %v391_v50 = vld [vmem:[%s2060_s4 + $0x168] sm:$0xff]  ;;  %1115 = vmatpush1.bf16.msra.mxu0 %v1654_v38  ;;  %1156 = vmatpush1.bf16.msra.mxu1 %v1656_v42  ;;  %v1648_v52 = vcombine.low %v395_v44, %v399_v45  ;;  %s1735_s15 = sshll.u32 %s2222_s9, 4  ;;  %s1736_s19 = sshll.u32 %s2222_s9, 2 }
  0x48   : >> { %1116 = vmatprep.subr.bf16.mxu0 %v1647_v43  ;;  %v1639_v53 = vcombine.high %v386_v46, %v390_v48  ;;  %1157 = vmatprep.subr.bf16.mxu1 %v1649_v47  ;;  %v1641_v54 = vcombine.high %v387_v49, %v391_v50  ;;  %v378_v55 = vld [vmem:[%s2060_s4 + $0x100] sm:$0xff]  ;;  %v379_v57 = vld [vmem:[%s2060_s4 + $0x108] sm:$0xff]  ;;  %v1638_v59 = vcombine.low %v386_v46, %v390_v48  ;;  %v2101_v22 = vld.sshfl [vmem:[#allocation2] sm:$0x33 pattern:$0x76325410]  ;;  %s329_s17 = scalar_lea.vmem %s2058_s30, %s1735_s15 [#allocation4]  ;;  %s1353_s23 = scalar_lea.vmem %s2066_s5, %s1736_s19 [#allocation7] }
  0x49   : >> { %v382_v56 = vld [vmem:[%s2060_s4 + $0x120] sm:$0xff]  ;;  %v383_v58 = vld [vmem:[%s2060_s4 + $0x128] sm:$0xff]  ;;  %v1640_v60 = vcombine.low %v387_v49, %v391_v50  ;;  %v341_v26 = vcombine.high %v2101_v22, %v2101_v22  ;;  %p319_p3 = scmp.ge.s32.totalorder %s322_s6, 16  }
  0x4a   : >> { %v1631_v61 = vcombine.high %v378_v55, %v382_v56  ;;  %v1633_v62 = vcombine.high %v379_v57, %v383_v58  ;;  %v370_v63 = vld [vmem:[%s2060_s4 + $0xc0] sm:$0xff]  ;;  %v371_v1 = vld [vmem:[%s2060_s4 + $0xc8] sm:$0xff]  ;;  %v1630_v3 = vcombine.low %v378_v55, %v382_v56  ;;  %v1632_v4 = vcombine.low %v379_v57, %v383_v58 }
  0x4b   : >> { %1117 = vmatpush1.bf16.msra.mxu0 %v1646_v51  ;;  %1158 = vmatpush1.bf16.msra.mxu1 %v1648_v52  ;;  %v374_v0 = vld [vmem:[%s2060_s4 + $0xe0] sm:$0xff]  ;;  %v375_v2 = vld [vmem:[%s2060_s4 + $0xe8] sm:$0xff]  ;;  %v2109_v30 = vpack.c.bf16 %v341_v26, %v341_v26 }
  0x4c   : >> { %1118 = vmatprep.subr.bf16.mxu0 %v1639_v53  ;;  %1159 = vmatprep.subr.bf16.mxu1 %v1641_v54  ;;  %v1623_v5 = vcombine.high %v370_v63, %v374_v0  ;;  %v1625_v6 = vcombine.high %v371_v1, %v375_v2  ;;  %v362_v7 = vld [vmem:[%s2060_s4 + $0x80] sm:$0xff]  ;;  %v363_v9 = vld [vmem:[%s2060_s4 + $0x88] sm:$0xff]  ;;  %v1622_v11 = vcombine.low %v370_v63, %v374_v0 }
  0x4d   : >> { %v366_v8 = vld [vmem:[%s2060_s4 + $0xa0] sm:$0xff]  ;;  %v367_v10 = vld [vmem:[%s2060_s4 + $0xa8] sm:$0xff]  ;;  %v1624_v12 = vcombine.low %v371_v1, %v375_v2  ;;  %1146 = vmatprep.mubr.bf16.mxu0 %v2109_v30  ;;  %1187 = vmatprep.mubr.bf16.mxu1 %v2109_v30 }
  0x4e   : >> { %v1615_v13 = vcombine.high %v362_v7, %v366_v8  ;;  %v1617_v14 = vcombine.high %v363_v9, %v367_v10  ;;  %v354_v15 = vld [vmem:[%s2060_s4 + $0x40] sm:$0xff]  ;;  %v355_v17 = vld [vmem:[%s2060_s4 + $0x48] sm:$0xff]  ;;  %v1614_v19 = vcombine.low %v362_v7, %v366_v8  ;;  %v1616_v20 = vcombine.low %v363_v9, %v367_v10 }
  0x4f   : >> { %1119 = vmatpush1.bf16.msra.mxu0 %v1638_v59  ;;  %1160 = vmatpush1.bf16.msra.mxu1 %v1640_v60  ;;  %v358_v16 = vld [vmem:[%s2060_s4 + $0x60] sm:$0xff]  ;;  %v359_v18 = vld [vmem:[%s2060_s4 + $0x68] sm:$0xff] }
  0x50   : >> { %1120 = vmatprep.subr.bf16.mxu0 %v1631_v61  ;;  %1161 = vmatprep.subr.bf16.mxu1 %v1633_v62  ;;  %v1607_v21 = vcombine.high %v354_v15, %v358_v16  ;;  %v1609_v23 = vcombine.high %v355_v17, %v359_v18  ;;  %v346_v24 = vld [vmem:[%s2060_s4] sm:$0xff]  ;;  %v347_v27 = vld [vmem:[%s2060_s4 + $0x8] sm:$0xff]  ;;  %v1606_v29 = vcombine.low %v354_v15, %v358_v16 }
  0x51   : >> { %v350_v25 = vld [vmem:[%s2060_s4 + $0x20] sm:$0xff]  ;;  %v351_v28 = vld [vmem:[%s2060_s4 + $0x28] sm:$0xff]  ;;  %v1608_v31 = vcombine.low %v355_v17, %v359_v18 }
  0x52   : >> { %v1599_v32 = vcombine.high %v346_v24, %v350_v25  ;;  %v1601_v33 = vcombine.high %v347_v27, %v351_v28  ;;  %v466_v34 = vld [vmem:[%s2060_s4 + $0x3c0] sm:$0xff]  ;;  %v467_v36 = vld [vmem:[%s2060_s4 + $0x3c8] sm:$0xff]  ;;  %v1598_v38 = vcombine.low %v346_v24, %v350_v25  ;;  %v1600_v39 = vcombine.low %v347_v27, %v351_v28 }
  0x53   : >> { %1121 = vmatpush1.bf16.msra.mxu0 %v1630_v3  ;;  %1162 = vmatpush1.bf16.msra.mxu1 %v1632_v4  ;;  %v470_v35 = vld [vmem:[%s2060_s4 + $0x3e0] sm:$0xff]  ;;  %v471_v37 = vld [vmem:[%s2060_s4 + $0x3e8] sm:$0xff] }
  0x54   : >> { %1122 = vmatprep.subr.bf16.mxu0 %v1623_v5  ;;  %1163 = vmatprep.subr.bf16.mxu1 %v1625_v6  ;;  %v1719_v40 = vcombine.high %v466_v34, %v470_v35  ;;  %v1721_v41 = vcombine.high %v467_v36, %v471_v37  ;;  %v458_v42 = vld [vmem:[%s2060_s4 + $0x380] sm:$0xff]  ;;  %v459_v44 = vld [vmem:[%s2060_s4 + $0x388] sm:$0xff]  ;;  %v1718_v46 = vcombine.low %v466_v34, %v470_v35 }
  0x55   : >> { %v462_v43 = vld [vmem:[%s2060_s4 + $0x3a0] sm:$0xff]  ;;  %v463_v45 = vld [vmem:[%s2060_s4 + $0x3a8] sm:$0xff]  ;;  %v1720_v47 = vcombine.low %v467_v36, %v471_v37  ;;  %v404_v36 = vld [vmem:[%s2060_s4 + $0x1d0] sm:$0xff] }
  0x56   : >> { %v1711_v48 = vcombine.high %v458_v42, %v462_v43  ;;  %v1713_v49 = vcombine.high %v459_v44, %v463_v45  ;;  %v450_v50 = vld [vmem:[%s2060_s4 + $0x340] sm:$0xff]  ;;  %v451_v52 = vld [vmem:[%s2060_s4 + $0x348] sm:$0xff]  ;;  %v1710_v54 = vcombine.low %v458_v42, %v462_v43  ;;  %v1712_v55 = vcombine.low %v459_v44, %v463_v45  ;;  %v408_v37 = vld [vmem:[%s2060_s4 + $0x1f0] sm:$0xff] }
  0x57   : >> { %1123 = vmatpush1.bf16.msra.mxu0 %v1622_v11  ;;  %1164 = vmatpush1.bf16.msra.mxu1 %v1624_v12  ;;  %v454_v51 = vld [vmem:[%s2060_s4 + $0x360] sm:$0xff]  ;;  %v455_v53 = vld [vmem:[%s2060_s4 + $0x368] sm:$0xff]  ;;  %v1659_v42 = vcombine.high %v404_v36, %v408_v37  ;;  %v396_v44 = vld [vmem:[%s2060_s4 + $0x190] sm:$0xff] }
  0x58   : >> { %1124 = vmatprep.subr.bf16.mxu0 %v1615_v13  ;;  %1165 = vmatprep.subr.bf16.mxu1 %v1617_v14  ;;  %v1703_v56 = vcombine.high %v450_v50, %v454_v51  ;;  %v1705_v57 = vcombine.high %v451_v52, %v455_v53  ;;  %v442_v58 = vld [vmem:[%s2060_s4 + $0x300] sm:$0xff]  ;;  %v443_v60 = vld [vmem:[%s2060_s4 + $0x308] sm:$0xff]  ;;  %v1702_v62 = vcombine.low %v450_v50, %v454_v51  ;;  %v400_v45 = vld [vmem:[%s2060_s4 + $0x1b0] sm:$0xff] }
  0x59   : >> { %v446_v59 = vld [vmem:[%s2060_s4 + $0x320] sm:$0xff]  ;;  %v447_v61 = vld [vmem:[%s2060_s4 + $0x328] sm:$0xff]  ;;  %v1704_v63 = vcombine.low %v451_v52, %v455_v53  ;;  %v1651_v51 = vcombine.high %v396_v44, %v400_v45  ;;  %v388_v53 = vld [vmem:[%s2060_s4 + $0x150] sm:$0xff] }
  0x5a   : >> { %v1695_v0 = vcombine.high %v442_v58, %v446_v59  ;;  %v1697_v1 = vcombine.high %v443_v60, %v447_v61  ;;  %v434_v2 = vld [vmem:[%s2060_s4 + $0x2c0] sm:$0xff]  ;;  %v435_v4 = vld [vmem:[%s2060_s4 + $0x2c8] sm:$0xff]  ;;  %v1694_v6 = vcombine.low %v442_v58, %v446_v59  ;;  %v1696_v7 = vcombine.low %v443_v60, %v447_v61  ;;  %v380_v60 = vld [vmem:[%s2060_s4 + $0x110] sm:$0xff] }
  0x5b   : >> { %1125 = vmatpush1.bf16.msra.mxu0 %v1614_v19  ;;  %1166 = vmatpush1.bf16.msra.mxu1 %v1616_v20  ;;  %v438_v3 = vld [vmem:[%s2060_s4 + $0x2e0] sm:$0xff]  ;;  %v439_v5 = vld [vmem:[%s2060_s4 + $0x2e8] sm:$0xff]  ;;  %v384_v61 = vld [vmem:[%s2060_s4 + $0x130] sm:$0xff] }
  0x5c   : >> { %1126 = vmatprep.subr.bf16.mxu0 %v1607_v21  ;;  %1167 = vmatprep.subr.bf16.mxu1 %v1609_v23  ;;  %v1687_v8 = vcombine.high %v434_v2, %v438_v3  ;;  %v1689_v9 = vcombine.high %v435_v4, %v439_v5  ;;  %v426_v10 = vld [vmem:[%s2060_s4 + $0x280] sm:$0xff]  ;;  %v427_v12 = vld [vmem:[%s2060_s4 + $0x288] sm:$0xff]  ;;  %v1686_v14 = vcombine.low %v434_v2, %v438_v3 }
  0x5d   : >> { %v430_v11 = vld [vmem:[%s2060_s4 + $0x2a0] sm:$0xff]  ;;  %v431_v13 = vld [vmem:[%s2060_s4 + $0x2a8] sm:$0xff]  ;;  %v1688_v15 = vcombine.low %v435_v4, %v439_v5  ;;  %v1635_v2 = vcombine.high %v380_v60, %v384_v61  ;;  %v372_v4 = vld [vmem:[%s2060_s4 + $0xd0] sm:$0xff] }
  0x5e   : >> { %v1679_v16 = vcombine.high %v426_v10, %v430_v11  ;;  %v1681_v17 = vcombine.high %v427_v12, %v431_v13  ;;  %v418_v18 = vld [vmem:[%s2060_s4 + $0x240] sm:$0xff]  ;;  %v419_v20 = vld [vmem:[%s2060_s4 + $0x248] sm:$0xff]  ;;  %v1678_v23 = vcombine.low %v426_v10, %v430_v11  ;;  %v1680_v24 = vcombine.low %v427_v12, %v431_v13  ;;  %v376_v5 = vld [vmem:[%s2060_s4 + $0xf0] sm:$0xff] }
  0x5f   : >> { %1127 = vmatpush1.bf16.msra.mxu0 %v1606_v29  ;;  %1168 = vmatpush1.bf16.msra.mxu1 %v1608_v31  ;;  %v422_v19 = vld [vmem:[%s2060_s4 + $0x260] sm:$0xff]  ;;  %v423_v21 = vld [vmem:[%s2060_s4 + $0x268] sm:$0xff]  ;;  %v364_v11 = vld [vmem:[%s2060_s4 + $0x90] sm:$0xff] }
  0x60   : >> { %1128 = vmatprep.subr.bf16.mxu0 %v1599_v32  ;;  %1169 = vmatprep.subr.bf16.mxu1 %v1601_v33  ;;  %v1671_v25 = vcombine.high %v418_v18, %v422_v19  ;;  %v1673_v26 = vcombine.high %v419_v20, %v423_v21  ;;  %v410_v27 = vld [vmem:[%s2060_s4 + $0x200] sm:$0xff]  ;;  %v411_v29 = vld [vmem:[%s2060_s4 + $0x208] sm:$0xff]  ;;  %v1670_v32 = vcombine.low %v418_v18, %v422_v19  ;;  %v368_v12 = vld [vmem:[%s2060_s4 + $0xb0] sm:$0xff] }
  0x61   : >> { %v414_v28 = vld [vmem:[%s2060_s4 + $0x220] sm:$0xff]  ;;  %v415_v31 = vld [vmem:[%s2060_s4 + $0x228] sm:$0xff]  ;;  %v1672_v33 = vcombine.low %v419_v20, %v423_v21  ;;  %v365_v13 = vld [vmem:[%s2060_s4 + $0x98] sm:$0xff] }
  0x62   : >> { %v1663_v34 = vcombine.high %v410_v27, %v414_v28  ;;  %v1665_v35 = vcombine.high %v411_v29, %v415_v31  ;;  %v356_v19 = vld [vmem:[%s2060_s4 + $0x50] sm:$0xff]  ;;  %v357_v21 = vld [vmem:[%s2060_s4 + $0x58] sm:$0xff] }
  0x63   : >> { %1129 = vmatpush1.bf16.msra.mxu0 %v1598_v38  ;;  %1170 = vmatpush1.bf16.msra.mxu1 %v1600_v39  ;;  %v405_v38 = vld [vmem:[%s2060_s4 + $0x1d8] sm:$0xff]  ;;  %v360_v20 = vld [vmem:[%s2060_s4 + $0x70] sm:$0xff] }
  0x64   : >> { %1130 = vmatprep.subr.bf16.mxu0 %v1719_v40  ;;  %1171 = vmatprep.subr.bf16.mxu1 %v1721_v41  ;;  %v409_v39 = vld [vmem:[%s2060_s4 + $0x1f8] sm:$0xff]  ;;  %v1662_v40 = vcombine.low %v410_v27, %v414_v28  ;;  %v1664_v41 = vcombine.low %v411_v29, %v415_v31  ;;  %v348_v28 = vld [vmem:[%s2060_s4 + $0x10] sm:$0xff] }
  0x65   : >> { %v1661_v43 = vcombine.high %v405_v38, %v409_v39  ;;  %v1660_v50 = vcombine.low %v405_v38, %v409_v39  ;;  %v352_v29 = vld [vmem:[%s2060_s4 + $0x30] sm:$0xff]  ;;  %v349_v31 = vld [vmem:[%s2060_s4 + $0x18] sm:$0xff] }
  0x66   : >> { %v472_v38 = vld [vmem:[%s2060_s4 + $0x3f0] sm:$0xff]  ;;  %v469_v39 = vld [vmem:[%s2060_s4 + $0x3d8] sm:$0xff] }
  0x67   : >> { %1131 = vmatpush2.bf16.msra.mxu0 %v1718_v46  ;;  %1172 = vmatpush2.bf16.msra.mxu1 %v1720_v47  ;;  %v2153_v46 = vpack.c.bf16 %v2101_v22, %v2101_v22  ;;  %v397_v47 = vld [vmem:[%s2060_s4 + $0x198] sm:$0xff] }
  0x68   : >> { %1132 = vmatprep.subr.bf16.mxu0 %v1711_v48  ;;  %1173 = vmatprep.subr.bf16.mxu1 %v1713_v49  ;;  %v401_v48 = vld [vmem:[%s2060_s4 + $0x1b8] sm:$0xff]  ;;  %v1658_v49 = vcombine.low %v404_v36, %v408_v37  ;;  %v468_v37 = vld [vmem:[%s2060_s4 + $0x3d0] sm:$0xff] }
  0x69   : >> { %v1653_v52 = vcombine.high %v397_v47, %v401_v48  ;;  %v389_v22 = vld [vmem:[%s2060_s4 + $0x158] sm:$0xff] }
  0x6b   : >> { %1133 = vmatpush2.bf16.msra.mxu0 %v1710_v54  ;;  %1174 = vmatpush2.bf16.msra.mxu1 %v1712_v55  ;;  %v392_v54 = vld [vmem:[%s2060_s4 + $0x170] sm:$0xff]  ;;  %v393_v55 = vld [vmem:[%s2060_s4 + $0x178] sm:$0xff] }
  0x6c   : >> { %1134 = vmatprep.subr.bf16.mxu0 %v1703_v56  ;;  %1175 = vmatprep.subr.bf16.mxu1 %v1705_v57  ;;  %v1650_v56 = vcombine.low %v396_v44, %v400_v45  ;;  %v1652_v57 = vcombine.low %v397_v47, %v401_v48  ;;  %v1643_v58 = vcombine.high %v388_v53, %v392_v54  ;;  %v460_v45 = vld [vmem:[%s2060_s4 + $0x390] sm:$0xff]  ;;  %v461_v48 = vld [vmem:[%s2060_s4 + $0x398] sm:$0xff] }
  0x6d   : >> { %v1645_v59 = vcombine.high %v389_v22, %v393_v55  ;;  %v464_v47 = vld [vmem:[%s2060_s4 + $0x3b0] sm:$0xff] }
  0x6f   : >> { %1135 = vmatpush2.bf16.msra.mxu0 %v1702_v62  ;;  %1176 = vmatpush2.bf16.msra.mxu1 %v1704_v63  ;;  %v381_v62 = vld [vmem:[%s2060_s4 + $0x118] sm:$0xff] }
  0x70   : >> { %1136 = vmatprep.subr.bf16.mxu0 %v1695_v0  ;;  %1177 = vmatprep.subr.bf16.mxu1 %v1697_v1  ;;  %v385_v63 = vld [vmem:[%s2060_s4 + $0x138] sm:$0xff]  ;;  %v1642_v0 = vcombine.low %v388_v53, %v392_v54  ;;  %v1644_v1 = vcombine.low %v389_v22, %v393_v55  ;;  %v452_v54 = vld [vmem:[%s2060_s4 + $0x350] sm:$0xff] }
  0x71   : >> { %v1637_v3 = vcombine.high %v381_v62, %v385_v63  ;;  %v456_v22 = vld [vmem:[%s2060_s4 + $0x370] sm:$0xff]  ;;  %v453_v55 = vld [vmem:[%s2060_s4 + $0x358] sm:$0xff] }
  0x73   : >> { %1137 = vmatpush2.bf16.msra.mxu0 %v1694_v6  ;;  %1178 = vmatpush2.bf16.msra.mxu1 %v1696_v7  ;;  %v373_v6 = vld [vmem:[%s2060_s4 + $0xd8] sm:$0xff] }
  0x74   : >> { %1138 = vmatprep.subr.bf16.mxu0 %v1687_v8  ;;  %1179 = vmatprep.subr.bf16.mxu1 %v1689_v9  ;;  %v377_v7 = vld [vmem:[%s2060_s4 + $0xf8] sm:$0xff]  ;;  %v1634_v8 = vcombine.low %v380_v60, %v384_v61  ;;  %v1627_v9 = vcombine.high %v372_v4, %v376_v5  ;;  %v444_v61 = vld [vmem:[%s2060_s4 + $0x310] sm:$0xff] }
  0x75   : >> { %v1629_v10 = vcombine.high %v373_v6, %v377_v7 }
  0x77   : >> { %1139 = vmatpush2.bf16.msra.mxu0 %v1686_v14  ;;  %1180 = vmatpush2.bf16.msra.mxu1 %v1688_v15  ;;  %v369_v14 = vld [vmem:[%s2060_s4 + $0xb8] sm:$0xff]  ;;  %v1626_v15 = vcombine.low %v372_v4, %v376_v5  ;;  %v436_v5 = vld [vmem:[%s2060_s4 + $0x2d0] sm:$0xff] }
  0x78   : >> { %1140 = vmatprep.subr.bf16.mxu0 %v1679_v16  ;;  %1181 = vmatprep.subr.bf16.mxu1 %v1681_v17  ;;  %v1628_v16 = vcombine.low %v373_v6, %v377_v7  ;;  %v1619_v17 = vcombine.high %v364_v11, %v368_v12  ;;  %v1621_v18 = vcombine.high %v365_v13, %v369_v14  ;;  %v440_v6 = vld [vmem:[%s2060_s4 + $0x2f0] sm:$0xff]  ;;  %v437_v7 = vld [vmem:[%s2060_s4 + $0x2d8] sm:$0xff] }
  0x7b   : >> { %1141 = vmatpush2.bf16.msra.mxu0 %v1678_v23  ;;  %1182 = vmatpush2.bf16.msra.mxu1 %v1680_v24  ;;  %v361_v23 = vld [vmem:[%s2060_s4 + $0x78] sm:$0xff]  ;;  %v1618_v24 = vcombine.low %v364_v11, %v368_v12  ;;  %v428_v12 = vld [vmem:[%s2060_s4 + $0x290] sm:$0xff] }
  0x7c   : >> { %1142 = vmatprep.subr.bf16.mxu0 %v1671_v25  ;;  %1183 = vmatprep.subr.bf16.mxu1 %v1673_v26  ;;  %v1620_v25 = vcombine.low %v365_v13, %v369_v14  ;;  %v1611_v26 = vcombine.high %v356_v19, %v360_v20  ;;  %v1613_v27 = vcombine.high %v357_v21, %v361_v23  ;;  %v432_v13 = vld [vmem:[%s2060_s4 + $0x2b0] sm:$0xff]  ;;  %v429_v14 = vld [vmem:[%s2060_s4 + $0x298] sm:$0xff] }
  0x7f   : >> { %1143 = vmatpush2.bf16.msra.mxu0 %v1670_v32  ;;  %1184 = vmatpush2.bf16.msra.mxu1 %v1672_v33  ;;  %v353_v32 = vld [vmem:[%s2060_s4 + $0x38] sm:$0xff]  ;;  %v1610_v33 = vcombine.low %v356_v19, %v360_v20  ;;  %v420_v20 = vld [vmem:[%s2060_s4 + $0x250] sm:$0xff] }
  0x80   : >> { %1144 = vmatprep.subr.bf16.mxu0 %v1663_v34  ;;  %1185 = vmatprep.subr.bf16.mxu1 %v1665_v35  ;;  %v1612_v34 = vcombine.low %v357_v21, %v361_v23  ;;  %v1603_v35 = vcombine.high %v348_v28, %v352_v29  ;;  %v1605_v36 = vcombine.high %v349_v31, %v353_v32  ;;  %v424_v21 = vld [vmem:[%s2060_s4 + $0x270] sm:$0xff]  ;;  %v421_v23 = vld [vmem:[%s2060_s4 + $0x258] sm:$0xff] }
  0x83   : >> { %1145 = vmatpush2.bf16.msra.mxu0 %v1662_v40  ;;  %1186 = vmatpush2.bf16.msra.mxu1 %v1664_v41  ;;  %v473_v40 = vld [vmem:[%s2060_s4 + $0x3f8] sm:$0xff]  ;;  %v1602_v41 = vcombine.low %v348_v28, %v352_v29  ;;  %v412_v29 = vld [vmem:[%s2060_s4 + $0x210] sm:$0xff] }
  0x84   : >> { %1196 = vmatprep.subr.bf16.mxu0 %v1659_v42  ;;  %1237 = vmatprep.subr.bf16.mxu1 %v1661_v43  ;;  %v1604_v42 = vcombine.low %v349_v31, %v353_v32  ;;  %v1723_v43 = vcombine.high %v468_v37, %v472_v38  ;;  %v1725_v44 = vcombine.high %v469_v39, %v473_v40  ;;  %v416_v31 = vld [vmem:[%s2060_s4 + $0x230] sm:$0xff]  ;;  %v413_v32 = vld [vmem:[%s2060_s4 + $0x218] sm:$0xff] }
  0x86   : >> { %1147 = vmatmul.mubr.bf16.vlgmr.msra.gmra.mxu0 %v2153_v46  ;;  %1188 = vmatmul.mubr.bf16.vlgmr.msra.gmra.mxu1 %v2153_v46 }
  0x87   : >> { %1197 = vmatpush1.bf16.msra.mxu0 %v1658_v49  ;;  %1238 = vmatpush1.bf16.msra.mxu1 %v1660_v50  ;;  %v465_v49 = vld [vmem:[%s2060_s4 + $0x3b8] sm:$0xff]  ;;  %v1722_v50 = vcombine.low %v468_v37, %v472_v38  ;;  %v1666_v38 = vcombine.low %v412_v29, %v416_v31 }
  0x88   : >> { %1198 = vmatprep.subr.bf16.mxu0 %v1651_v51  ;;  %1239 = vmatprep.subr.bf16.mxu1 %v1653_v52  ;;  %v1724_v51 = vcombine.low %v469_v39, %v473_v40  ;;  %v1715_v52 = vcombine.high %v460_v45, %v464_v47  ;;  %v1717_v53 = vcombine.high %v461_v48, %v465_v49 }
  0x89   : >> { %1228 = vmatprep.mubr.bf16.mxu0 %v2109_v30  ;;  %1269 = vmatprep.mubr.bf16.mxu1 %v2109_v30  ;;  %v1636_v30 = vcombine.low %v381_v62, %v385_v63  ;;  %v448_v62 = vld [vmem:[%s2060_s4 + $0x330] sm:$0xff]  ;;  %v445_v63 = vld [vmem:[%s2060_s4 + $0x318] sm:$0xff] }
  0x8b   : >> { %1199 = vmatpush1.bf16.msra.mxu0 %v1650_v56  ;;  %1240 = vmatpush1.bf16.msra.mxu1 %v1652_v57  ;;  %v457_v56 = vld [vmem:[%s2060_s4 + $0x378] sm:$0xff]  ;;  %v1714_v57 = vcombine.low %v460_v45, %v464_v47 }
  0x8c   : >> { %1200 = vmatprep.subr.bf16.mxu0 %v1643_v58  ;;  %1241 = vmatprep.subr.bf16.mxu1 %v1645_v59  ;;  %v1716_v58 = vcombine.low %v461_v48, %v465_v49  ;;  %v1707_v59 = vcombine.high %v452_v54, %v456_v22  ;;  %v1709_v60 = vcombine.high %v453_v55, %v457_v56  ;;  %v1900_v49 = vmov 1983009808  }
  0x8f   : >> { %1201 = vmatpush1.bf16.msra.mxu0 %v1642_v0  ;;  %1242 = vmatpush1.bf16.msra.mxu1 %v1644_v1  ;;  %v449_v0 = vld [vmem:[%s2060_s4 + $0x338] sm:$0xff]  ;;  %v1706_v1 = vcombine.low %v452_v54, %v456_v22 }
  0x90   : >> { %1202 = vmatprep.subr.bf16.mxu0 %v1635_v2  ;;  %1243 = vmatprep.subr.bf16.mxu1 %v1637_v3  ;;  %v1708_v2 = vcombine.low %v453_v55, %v457_v56  ;;  %v1699_v3 = vcombine.high %v444_v61, %v448_v62  ;;  %v1701_v4 = vcombine.high %v445_v63, %v449_v0 }
  0x93   : >> { %1203 = vmatpush1.bf16.msra.mxu0 %v1634_v8  ;;  %1244 = vmatpush1.bf16.msra.mxu1 %v1636_v30  ;;  %v441_v8 = vld [vmem:[%s2060_s4 + $0x2f8] sm:$0xff]  ;;  %v1698_v30 = vcombine.low %v444_v61, %v448_v62 }
  0x94   : >> { %1204 = vmatprep.subr.bf16.mxu0 %v1627_v9  ;;  %1245 = vmatprep.subr.bf16.mxu1 %v1629_v10  ;;  %v1700_v9 = vcombine.low %v445_v63, %v449_v0  ;;  %v1691_v10 = vcombine.high %v436_v5, %v440_v6  ;;  %v1693_v11 = vcombine.high %v437_v7, %v441_v8 }
  0x97   : >> { %1205 = vmatpush1.bf16.msra.mxu0 %v1626_v15  ;;  %1246 = vmatpush1.bf16.msra.mxu1 %v1628_v16  ;;  %v433_v15 = vld [vmem:[%s2060_s4 + $0x2b8] sm:$0xff]  ;;  %v1690_v16 = vcombine.low %v436_v5, %v440_v6 }
  0x98   : >> { %1206 = vmatprep.subr.bf16.mxu0 %v1619_v17  ;;  %1247 = vmatprep.subr.bf16.mxu1 %v1621_v18  ;;  %v1692_v17 = vcombine.low %v437_v7, %v441_v8  ;;  %v1683_v18 = vcombine.high %v428_v12, %v432_v13  ;;  %v1685_v19 = vcombine.high %v429_v14, %v433_v15 }
  0x9b   : >> { %1207 = vmatpush1.bf16.msra.mxu0 %v1618_v24  ;;  %1248 = vmatpush1.bf16.msra.mxu1 %v1620_v25  ;;  %v425_v24 = vld [vmem:[%s2060_s4 + $0x278] sm:$0xff]  ;;  %v1682_v25 = vcombine.low %v428_v12, %v432_v13 }
  0x9c   : >> { %1208 = vmatprep.subr.bf16.mxu0 %v1611_v26  ;;  %1249 = vmatprep.subr.bf16.mxu1 %v1613_v27  ;;  %v1684_v26 = vcombine.low %v429_v14, %v433_v15  ;;  %v1675_v27 = vcombine.high %v420_v20, %v424_v21  ;;  %v1677_v28 = vcombine.high %v421_v23, %v425_v24 }
  0x9f   : >> { %1209 = vmatpush1.bf16.msra.mxu0 %v1610_v33  ;;  %1250 = vmatpush1.bf16.msra.mxu1 %v1612_v34  ;;  %v417_v33 = vld [vmem:[%s2060_s4 + $0x238] sm:$0xff]  ;;  %v1674_v34 = vcombine.low %v420_v20, %v424_v21 }
  0xa0   : >> { %1210 = vmatprep.subr.bf16.mxu0 %v1603_v35  ;;  %1251 = vmatprep.subr.bf16.mxu1 %v1605_v36  ;;  %v1676_v35 = vcombine.low %v421_v23, %v425_v24  ;;  %v1667_v36 = vcombine.high %v412_v29, %v416_v31  ;;  %v1669_v37 = vcombine.high %v413_v32, %v417_v33  ;;  %v1343_v20 = vld [vmem:[#allocation3] sm:$0xf] }
  0xa1   : >> { %v1668_v39 = vcombine.low %v413_v32, %v417_v33 }
  0xa3   : >> { %1211 = vmatpush1.bf16.msra.mxu0 %v1602_v41  ;;  %1252 = vmatpush1.bf16.msra.mxu1 %v1604_v42 }
  0xa4   : >> { %1212 = vmatprep.subr.bf16.mxu0 %v1723_v43  ;;  %1253 = vmatprep.subr.bf16.mxu1 %v1725_v44 }
  0xa7   : >> { %1213 = vmatpush2.bf16.msra.mxu0 %v1722_v50  ;;  %1254 = vmatpush2.bf16.msra.mxu1 %v1724_v51  ;;  %v1289_v50 = vunpack.c.l.s4 %v1900_v49  ;;  %v1291_v51 = vlaneseq }
  0xa8   : >> { %1214 = vmatprep.subr.bf16.mxu0 %v1715_v52  ;;  %1255 = vmatprep.subr.bf16.mxu1 %v1717_v53 }
  0xa9   : >> { %v1290_v52 = vunpack.c.0.s8 %v1289_v50  ;;  %v1292_v53 = vshrl.u32 %v1291_v51, 7 }
  0xab   : >> { %1215 = vmatpush2.bf16.msra.mxu0 %v1714_v57  ;;  %1256 = vmatpush2.bf16.msra.mxu1 %v1716_v58  ;;  %v1293_v54 = vsub.s32 %v1290_v52, %v1292_v53  ;;  %v330_v58 = vld [vmem:[%s329_s17] sm:$0xff] }
  0xac   : >> { %1216 = vmatprep.subr.bf16.mxu0 %v1707_v59  ;;  %1257 = vmatprep.subr.bf16.mxu1 %v1709_v60 }
  0xaf   : >> { %1217 = vmatpush2.bf16.msra.mxu0 %v1706_v1  ;;  %1258 = vmatpush2.bf16.msra.mxu1 %v1708_v2 }
  0xb0   : >> { %1218 = vmatprep.subr.bf16.mxu0 %v1699_v3  ;;  %1259 = vmatprep.subr.bf16.mxu1 %v1701_v4 }
  0xb3   : >> { %1219 = vmatpush2.bf16.msra.mxu0 %v1698_v30  ;;  %1260 = vmatpush2.bf16.msra.mxu1 %v1700_v9  ;;  %v331_v9 = vld [vmem:[%s329_s17 + $0x8] sm:$0xff] }
  0xb4   : >> { %1220 = vmatprep.subr.bf16.mxu0 %v1691_v10  ;;  %1261 = vmatprep.subr.bf16.mxu1 %v1693_v11 }
  0xb7   : >> { %1221 = vmatpush2.bf16.msra.mxu0 %v1690_v16  ;;  %1262 = vmatpush2.bf16.msra.mxu1 %v1692_v17 }
  0xb8   : >> { %1222 = vmatprep.subr.bf16.mxu0 %v1683_v18  ;;  %1263 = vmatprep.subr.bf16.mxu1 %v1685_v19 }
  0xbb   : >> { %1223 = vmatpush2.bf16.msra.mxu0 %v1682_v25  ;;  %1264 = vmatpush2.bf16.msra.mxu1 %v1684_v26 }
  0xbc   : >> { %1224 = vmatprep.subr.bf16.mxu0 %v1675_v27  ;;  %1265 = vmatprep.subr.bf16.mxu1 %v1677_v28 }
  0xbf   : >> { %1225 = vmatpush2.bf16.msra.mxu0 %v1674_v34  ;;  %1266 = vmatpush2.bf16.msra.mxu1 %v1676_v35 }
  0xc0   : >> { %1226 = vmatprep.subr.bf16.mxu0 %v1667_v36  ;;  %1267 = vmatprep.subr.bf16.mxu1 %v1669_v37 }
  0xc3   : >> { %1227 = vmatpush2.bf16.msra.mxu0 %v1666_v38  ;;  %1268 = vmatpush2.bf16.msra.mxu1 %v1668_v39 }
  0xc6   : >> { %1229 = vmatmul.mubr.bf16.vlgmr.msra.gmra.mxu0 %v2153_v46  ;;  %1270 = vmatmul.mubr.bf16.vlgmr.msra.gmra.mxu1 %v2153_v46 }
 0x146   : >> { %v1148_v40 = vpop.f32.mrf.mxu0  ;;  %v1189_v41 = vpop.f32.mrf.mxu1 }
 0x148   : >> { %v1150_v42 = vpop.f32.mrf.mxu0  ;;  %v1191_v43 = vpop.f32.mrf.mxu1 }
 0x149   : >> { %v1286_v46 = vcombine.low %v1148_v40, %v1150_v42  ;;  %v1287_v22 = vcombine.low %v1189_v41, %v1191_v43 }
 0x14a   : >> { %v1152_v44 = vpop.f32.mrf.mxu0  ;;  %v1193_v45 = vpop.f32.mrf.mxu1 }
 0x14b   : >> { %v1294_v55 = vrot.slane %v1286_v46, %v1293_v54  ;;  %v1301_v56 = vrot.slane %v1287_v22, %v1293_v54 }
 0x14c   : >> { %v1153_v47 = vpop.f32.mrf.mxu0  ;;  %v1194_v48 = vpop.f32.mrf.mxu1 }
 0x14d   : >> { %v1302_v57 = vcombine.low %v1294_v55, %v1301_v56 }
 0x14f   : >> { %v1322_v59 = vadd.f32 %v1302_v57, %v330_v58 }
 0x151   : >> { %v1329_v60 = vrot.slane %v1322_v59, 4  ;;  %v1324_v62 = vmul.f32 0.5, %v1322_v59 }
 0x153   : >> { %v1331_v61 = vmul.f32 0.5, %v1329_v60 }
 0x155   : >> { %1800 = vtanh.f32 %v1331_v61 }
 0x156   : >> { %1802 = vtanh.f32 %v1324_v62 }
 0x162   : >> { %v1801_v14 = vpop.eup %1800 }
 0x163   : >> { %v1803_v15 = vpop.eup %1802  ;;  %v1333_v16 = vmul.f32 0.5, %v1801_v14 }
 0x164   : >> { %v1326_v18 = vmul.f32 0.5, %v1803_v15 }
 0x165   : >> { %v1334_v19 = vadd.f32 0.5, %v1333_v16 }
 0x166   : >> { %v1327_v21 = vadd.f32 0.5, %v1326_v18 }
 0x167   : >> { %v1344_v24 = vmul.f32 %v1343_v20, %v1334_v19 }
 0x186   : >> { %v1230_v63 = vpop.f32.mrf.mxu0  ;;  %v1271_v0 = vpop.f32.mrf.mxu1 }
 0x188   : >> { %v1232_v1 = vpop.f32.mrf.mxu0  ;;  %v1273_v3 = vpop.f32.mrf.mxu1 }
 0x189   : >> { %v1303_v2 = vcombine.low %v1230_v63, %v1232_v1  ;;  %v1304_v4 = vcombine.low %v1271_v0, %v1273_v3 }
 0x18a   : >> { %v1234_v5 = vpop.f32.mrf.mxu0  ;;  %v1275_v7 = vpop.f32.mrf.mxu1 }
 0x18b   : >> { %v1311_v6 = vrot.slane %v1303_v2, %v1293_v54  ;;  %v1318_v8 = vrot.slane %v1304_v4, %v1293_v54 }
 0x18c   : >> { %v1235_v30 = vpop.f32.mrf.mxu0  ;;  %v1276_v10 = vpop.f32.mrf.mxu1 }
 0x18d   : >> { %v1319_v11 = vcombine.low %v1311_v6, %v1318_v8 }
 0x18f   : >> { %v1323_v12 = vadd.f32 %v1319_v11, %v331_v9 }
 0x191   : >> { %1804 = vtanh.f32 %v1323_v12  ;;  %v1337_v13 = vrot.slane %v1323_v12, 4 }
 0x193   : >> { %v1339_v17 = vmul.f32 0.5, %v1337_v13 }
 0x195   : >> { %1806 = vtanh.f32 %v1339_v17 }
 0x19e   : >> { %v1805_v23 = vpop.eup %1804 }
 0x19f   : >> { %v1345_v25 = vmul.f32 %v1805_v23, %v1327_v21 }
 0x1a1   : >> { %v1346_v26 = vadd.f32 %v1345_v25, %v1344_v24 }
 0x1a2   : >> { %v1807_v27 = vpop.eup %1806 }
 0x1a3   : >> { %1808 = vtanh.f32 %v1346_v26  ;;  %1349 = vst [vmem:[#allocation3] sm:$0xf] %v1346_v26  ;;  %v1341_v28 = vmul.f32 0.5, %v1807_v27 }
 0x1a5   : >> { %v1342_v29 = vadd.f32 0.5, %v1341_v28 }
 0x1af   : > { %321 = sbr.rel (!%p319_p3) target bundleno = 66 (0x42), region = 153 }
 0x1b0   : >> { %v1809_v31 = vpop.eup %1808 }
 0x1b1   : >> { %v1348_v32 = vmul.f32 %v1809_v31, %v1342_v29 }
 0x1b3   : >> { %1350 = vst [vmem:[#allocation2] sm:$0xf] %v1348_v32  ;;  %1354 = vst [vmem:[%s1353_s23] sm:$0xf] %v1348_v32 }
 0x1b4   : > { %1361 = sbr.rel (!%p1966_p9) target bundleno = 453 (0x1c5), region = 70  ;;  %s1737_s24 = sshll.u32 (%p1966_p9), %s1882_s12, 2 }
 0x1b5   : > { %s1371_s27 = scalar_lea.vmem (%p1966_p9), %s2273_s2, %s1737_s24 }
 0x1ba   : > { %v1388_v33 = vld [vmem:[%s2066_s5] sm:$0xf]  ;;  %v1390_v34 = vld [vmem:[%s2066_s5 + $0x4] sm:$0xf]  ;;  %v1392_v35 = vld [vmem:[%s2066_s5 + $0x8] sm:$0xf] }
 0x1bb   : > { %v1394_v36 = vld [vmem:[%s2066_s5 + $0xc] sm:$0xf]  ;;  %v1396_v37 = vld [vmem:[%s2066_s5 + $0x10] sm:$0xf]  ;;  %1389 = vst [vmem:[%s1371_s27] sm:$0xf] %v1388_v33 }
 0x1bc   : > { %1391 = vst [vmem:[%s1371_s27 + $0x8] sm:$0xf] %v1390_v34  ;;  %1393 = vst [vmem:[%s1371_s27 + $0x10] sm:$0xf] %v1392_v35  ;;  %v1398_v38 = vld [vmem:[%s2066_s5 + $0x14] sm:$0xf] }
 0x1bd   : > { %1395 = vst [vmem:[%s1371_s27 + $0x18] sm:$0xf] %v1394_v36  ;;  %1397 = vst [vmem:[%s1371_s27 + $0x20] sm:$0xf] %v1396_v37  ;;  %v1400_v39 = vld [vmem:[%s2066_s5 + $0x18] sm:$0xf] }
 0x1be   : > { %v1402_v40 = vld [vmem:[%s2066_s5 + $0x1c] sm:$0xf]  ;;  %1399 = vst [vmem:[%s1371_s27 + $0x28] sm:$0xf] %v1398_v38  ;;  %1401 = vst [vmem:[%s1371_s27 + $0x30] sm:$0xf] %v1400_v39 }
 0x1bf   : > { %1403 = vst [vmem:[%s1371_s27 + $0x38] sm:$0xf] %v1402_v40  ;;  %v1404_v41 = vld [vmem:[%s2066_s5 + $0x20] sm:$0xf]  ;;  %v1406_v42 = vld [vmem:[%s2066_s5 + $0x24] sm:$0xf] }
 0x1c0   : > { %v1408_v43 = vld [vmem:[%s2066_s5 + $0x28] sm:$0xf]  ;;  %1405 = vst [vmem:[%s1371_s27 + $0x40] sm:$0xf] %v1404_v41  ;;  %1407 = vst [vmem:[%s1371_s27 + $0x48] sm:$0xf] %v1406_v42 }
 0x1c1   : > { %1409 = vst [vmem:[%s1371_s27 + $0x50] sm:$0xf] %v1408_v43  ;;  %v1410_v44 = vld [vmem:[%s2066_s5 + $0x2c] sm:$0xf]  ;;  %v1412_v45 = vld [vmem:[%s2066_s5 + $0x30] sm:$0xf] }
 0x1c2   : > { %v1414_v47 = vld [vmem:[%s2066_s5 + $0x34] sm:$0xf]  ;;  %1411 = vst [vmem:[%s1371_s27 + $0x58] sm:$0xf] %v1410_v44  ;;  %1413 = vst [vmem:[%s1371_s27 + $0x60] sm:$0xf] %v1412_v45 }
 0x1c3   : > { %1415 = vst [vmem:[%s1371_s27 + $0x68] sm:$0xf] %v1414_v47  ;;  %v1416_v48 = vld [vmem:[%s2066_s5 + $0x38] sm:$0xf]  ;;  %v1418_v49 = vld [vmem:[%s2066_s5 + $0x3c] sm:$0xf] }
 0x1c4   : > { %1417 = vst [vmem:[%s1371_s27 + $0x70] sm:$0xf] %v1416_v48  ;;  %1419 = vst [vmem:[%s1371_s27 + $0x78] sm:$0xf] %v1418_v49 }
 0x1c5 PF: > { %s15_s14 = sadd.s32 1, %s1890_s14   ;;  %s2277_s9 = smov %s1874_s10 }
 0x1c6   : > { %p12_p8 = scmp.ge.s32.totalorder %s15_s14, 4   ;;  %s2278_s10 = smov %s1878_s11 }
 0x1c7   : > { %s2279_s11 = smov %s1964_s21  ;;  %s2280_s12 = smov %s1886_s13 }
 0x1c8   : > { %s2281_s13 = smov %s2283_s16  ;;  %14 = sbr.rel (!%p12_p8) target bundleno = 4 (0x4), region = 164 }
 0x1cd   :  { %1485 = vsyncpa [#allocation6], 1 }
 0x1ce   :  { %1487 = vsyncpa [#allocation6 + $0x1], 1 }

// kernel: speech_model_forward.8
= control target key start
LH: loop header
LB: loop body
LE: loop exit
PB: predicated region body
PF: predicated region fallthrough
CT: control target
= control target key end

     0   :  { %18 = vsyncpa [#allocation4], 0  ;;  %s3357_s0 = inlined_call_operand.vmem [shape: f32[2,16,64], index: 0, kind: input, shape index: {}]   ;;  %s3358_s1 = inlined_call_operand.hbm [shape: bf16[3,64,64], index: 1, kind: input, shape index: {}]   ;;  %s3359_s2 = inlined_call_operand.hbm [shape: f32[1,64], index: 2, kind: input, shape index: {}]   ;;  %s3360_s3 = inlined_call_operand.hbm [shape: f32[1,64], index: 3, kind: input, shape index: {}]   ;;  %s3361_s4 = inlined_call_operand.hbm [shape: bf16[3,64,64], index: 4, kind: input, shape index: {}]   ;;  %s3362_s5 = inlined_call_operand.hbm [shape: f32[1,64], index: 5, kind: input, shape index: {}]   ;;  %s3363_s6 = inlined_call_operand.hbm [shape: f32[1,64], index: 6, kind: input, shape index: {}]   ;;  %s3364_s7 = inlined_call_operand.hbm [shape: bf16[3,64,64], index: 7, kind: input, shape index: {}]   ;;  %s3365_s8 = inlined_call_operand.hbm [shape: f32[1,64], index: 8, kind: input, shape index: {}]   ;;  %s3366_s9 = inlined_call_operand.hbm [shape: f32[1,64], index: 9, kind: input, shape index: {}]   ;;  %s3367_s10 = inlined_call_operand.hbm [shape: bf16[3,64,64], index: 10, kind: input, shape index: {}]   ;;  %s3368_s11 = inlined_call_operand.hbm [shape: f32[1,64], index: 11, kind: input, shape index: {}]   ;;  %s3369_s12 = inlined_call_operand.hbm [shape: f32[1,64], index: 12, kind: input, shape index: {}]   ;;  %s3370_s13 = inlined_call_operand.vmem [shape: f32[2,16,64], index: 13, kind: output, shape index: {}]  }
   0x1   :  { %19 = vsyncpa [#allocation6], 0 }
   0x2   :  { %20 = vsyncpa [#allocation9], 0 }
   0x3   :  { %21 = vsyncpa [#allocation12], 0 }
   0x4   :  { %22 = vsyncpa [#allocation15], 0 }
   0x5   :  { %23 = vsyncpa [#allocation18], 0 }
   0x6   :  { %24 = vsyncpa [#allocation21], 0  ;;  %s3056_s25 = smov 0  }
   0x7 LB: > { %s2969_s26 = smov [#allocation5]   ;;  %s3062_s28 = sadd.s32 4294967295, %s2967_s25   ;;  %s2967_s25 = sphi %s3056_s25, %s30_s25  }
   0x8   : > { %s365_s27 = sshll.u32 %s2969_s26, 4  ;;  %p2076_p0 = scmp.ge.s32.totalorder %s2967_s25, 1  ;;  %s366_s27 = int_to_ptr.vmem [resolvable:$true] %s365_s27 }
   0x9   : > { %p339_p1 = scmp.lt.s32.totalorder %s2967_s25, 3  ;;  %p3371_p2 = scmp.eq.s32.totalorder %s3062_s28, 0 }
   0xa   : > { %s2970_s30 = smov [#allocation8]   ;;  %s2971_s16 = smov [#allocation11]  }
   0xb   : > { %p3067_p3 = pnand %p2076_p0, %p339_p1  ;;  %s386_s14 = sshll.u32 %s2970_s30, 4  ;;  %s3073_s14 = int_to_ptr.vmem [resolvable:$true] %s386_s14 }
   0xc   : > { %s411_s17 = sshll.u32 %s2971_s16, 4  ;;  %s2972_s18 = smov [#allocation14]   ;;  %s3081_s17 = int_to_ptr.vmem [resolvable:$true] %s411_s17 }
   0xd   : > { %p2467_p4 = pneg %p3067_p3  ;;  %s3083_s19 = sshll.u32 %s2972_s18, 4  ;;  %s436_s19 = int_to_ptr.vmem [resolvable:$true] %s3083_s19 }
   0xe   : > { %s2632_s21 = scalar_lea.vmem %s366_s27, 16  ;;  %s2639_s22 = scalar_lea.vmem %s366_s27, 32 }
   0xf   : > { %p3077_p5 = pnand %p3371_p2, %p2467_p4  ;;  %p2633_p7 = scmp.ne.s32.totalorder %s366_s27, %s2632_s21 }
  0x10   : > { %p2640_p10 = scmp.lt.s32.totalorder %s366_s27, %s366_s27  ;;  %p2641_p11 = scmp.lt.s32.totalorder %s2639_s22, %s2632_s21 }
  0x11   : > { %p3087_p6 = pneg %p3077_p5 }
  0x12   : > { %p2642_p12 = por %p2641_p11, %p2640_p10 }
  0x13   : > { %p2635_p8 = pnand %p2633_p7, %p3087_p6 }
  0x15   : > { %p2636_p9 = pneg %p2635_p8 }
  0x17   : > { %p2643_p13 = pnand %p2642_p12, %p2636_p9 }
  0x19   : > { %2646 = shalt.err (!%p2643_p13)
}
  0x1a   : > { %2473 = dma.hbm_to_vmem [thread:$0]  (!%p3077_p5), %s3359_s2, 16, %s366_s27, [#allocation6]  }
  0x1b   : > { %s2658_s26 = scalar_lea.vmem %s3073_s14, 1536  ;;  %p2666_p7 = scmp.lt.s32.totalorder %s3073_s14, %s3073_s14 }
  0x1c   : > { %p2659_p0 = scmp.ne.s32.totalorder %s3073_s14, %s2658_s26  ;;  %p2667_p8 = scmp.lt.s32.totalorder %s2658_s26, %s2658_s26 }
  0x1e   : > { %p2661_p1 = pnand %p2659_p0, %p3087_p6  ;;  %p2668_p9 = por %p2667_p8, %p2666_p7 }
  0x20   : > { %p2662_p4 = pneg %p2661_p1 }
  0x22   : > { %p2669_p10 = pnand %p2668_p9, %p2662_p4 }
  0x24   : > { %2672 = shalt.err (!%p2669_p10)
}
  0x25   : > { %s2973_s30 = smov 64   ;;  %s2974_s27 = smov 4  }
  0x26   : > { %2479 = dma.hbm_to_vmem [thread:$0]  (!%p3077_p5), %s3361_s4, 1536, %s3073_s14, [#allocation9], %s2973_s30, %s2973_s30, %s2974_s27  }
  0x27   : > { %s2684_s21 = scalar_lea.vmem %s3081_s17, 16  ;;  %s2691_s22 = scalar_lea.vmem %s3081_s17, 32 }
  0x28   : > { %p2685_p11 = scmp.ne.s32.totalorder %s3081_s17, %s2684_s21  ;;  %p2692_p0 = scmp.lt.s32.totalorder %s3081_s17, %s3081_s17 }
  0x29   : > { %p2693_p1 = scmp.lt.s32.totalorder %s2691_s22, %s2684_s21 }
  0x2a   : > { %p2687_p12 = pnand %p2685_p11, %p3087_p6 }
  0x2b   : > { %p2694_p4 = por %p2693_p1, %p2692_p0 }
  0x2c   : > { %p2688_p13 = pneg %p2687_p12 }
  0x2e   : > { %p2695_p7 = pnand %p2694_p4, %p2688_p13 }
  0x30   : > { %2698 = shalt.err (!%p2695_p7)
}
  0x31   : > { %2485 = dma.hbm_to_vmem [thread:$0]  (!%p3077_p5), %s3363_s6, 16, %s3081_s17, [#allocation12]  }
  0x32   : > { %s2710_s14 = scalar_lea.vmem %s436_s19, 16  ;;  %s2717_s26 = scalar_lea.vmem %s436_s19, 32 }
  0x33   : > { %p2711_p8 = scmp.ne.s32.totalorder %s436_s19, %s2710_s14  ;;  %p2718_p11 = scmp.lt.s32.totalorder %s436_s19, %s436_s19 }
  0x34   : > { %p2719_p12 = scmp.lt.s32.totalorder %s2717_s26, %s2710_s14 }
  0x35   : > { %p2713_p9 = pnand %p2711_p8, %p3087_p6 }
  0x36   : > { %p2720_p13 = por %p2719_p12, %p2718_p11 }
  0x37   : > { %p2714_p10 = pneg %p2713_p9 }
  0x39   : > { %p2721_p0 = pnand %p2720_p13, %p2714_p10 }
  0x3b   : > { %2724 = shalt.err (!%p2721_p0)
}
  0x3c   : > { %2491 = dma.hbm_to_vmem [thread:$0]  (!%p3077_p5), %s3365_s8, 16, %s436_s19, [#allocation15]  }
  0x3d   : > { %s2975_s17 = smov [#allocation17]   ;;  %s2976_s22 = smov [#allocation3]  }
  0x3e   : > { %s456_s21 = sshll.u32 %s2975_s17, 4  ;;  %s351_s23 = sshll.u32 %s2976_s22, 4  ;;  %s457_s21 = int_to_ptr.vmem [resolvable:$true] %s456_s21  ;;  %s352_s23 = int_to_ptr.vmem [resolvable:$true] %s351_s23 }
  0x3f   : > { %s2736_s24 = scalar_lea.vmem %s457_s21, 1536  ;;  %p2744_p8 = scmp.lt.s32.totalorder %s457_s21, %s457_s21 }
  0x40   : > { %p2737_p1 = scmp.ne.s32.totalorder %s457_s21, %s2736_s24  ;;  %p2745_p9 = scmp.lt.s32.totalorder %s2736_s24, %s2736_s24 }
  0x42   : > { %p2739_p4 = pnand %p2737_p1, %p3087_p6  ;;  %p2746_p10 = por %p2745_p9, %p2744_p8 }
  0x44   : > { %p2740_p7 = pneg %p2739_p4 }
  0x46   : > { %p2747_p11 = pnand %p2746_p10, %p2740_p7 }
  0x48   : > { %2750 = shalt.err (!%p2747_p11)
}
  0x49   : > { %2497 = dma.hbm_to_vmem [thread:$0]  (!%p3077_p5), %s3367_s10, 1536, %s457_s21, [#allocation18], %s2973_s30, %s2973_s30, %s2974_s27  }
  0x4a   : > { %s2762_s26 = scalar_lea.vmem %s352_s23, 1536  ;;  %p2770_p1 = scmp.lt.s32.totalorder %s352_s23, %s352_s23 }
  0x4b   : > { %p2763_p12 = scmp.ne.s32.totalorder %s352_s23, %s2762_s26  ;;  %p2771_p4 = scmp.lt.s32.totalorder %s2762_s26, %s2762_s26 }
  0x4d   : > { %p2765_p13 = pnand %p2763_p12, %p3087_p6  ;;  %p2772_p7 = por %p2771_p4, %p2770_p1 }
  0x4f   : > { %p2766_p0 = pneg %p2765_p13 }
  0x51   : > { %p2773_p8 = pnand %p2772_p7, %p2766_p0 }
  0x53   : > { %2776 = shalt.err (!%p2773_p8)
}
  0x54   : > { %2470 = dma.hbm_to_vmem [thread:$0]  (!%p3077_p5), %s3358_s1, 1536, %s352_s23, [#allocation4], %s2973_s30, %s2973_s30, %s2974_s27  }
  0x55   : > { %s2977_s17 = smov [#allocation7]   ;;  %s2978_s22 = smov [#allocation10]  }
  0x56   : > { %s376_s21 = sshll.u32 %s2977_s17, 4  ;;  %s400_s24 = sshll.u32 %s2978_s22, 4  ;;  %s377_s21 = int_to_ptr.vmem [resolvable:$true] %s376_s21  ;;  %s401_s24 = int_to_ptr.vmem [resolvable:$true] %s400_s24 }
  0x57   : > { %s2788_s19 = scalar_lea.vmem %s377_s21, 16  ;;  %s2795_s14 = scalar_lea.vmem %s377_s21, 32 }
  0x58   : > { %p2789_p9 = scmp.ne.s32.totalorder %s377_s21, %s2788_s19  ;;  %p2796_p12 = scmp.lt.s32.totalorder %s377_s21, %s377_s21 }
  0x59   : > { %p2797_p13 = scmp.lt.s32.totalorder %s2795_s14, %s2788_s19 }
  0x5a   : > { %p2791_p10 = pnand %p2789_p9, %p3087_p6 }
  0x5b   : > { %p2798_p0 = por %p2797_p13, %p2796_p12 }
  0x5c   : > { %p2792_p11 = pneg %p2791_p10 }
  0x5e   : > { %p2799_p1 = pnand %p2798_p0, %p2792_p11 }
  0x60   : > { %2802 = shalt.err (!%p2799_p1)
}
  0x61   : > { %2476 = dma.hbm_to_vmem [thread:$0]  (!%p3077_p5), %s3360_s3, 16, %s377_s21, [#allocation6]  }
  0x62   : > { %s2814_s16 = scalar_lea.vmem %s401_s24, 16  ;;  %s2821_s18 = scalar_lea.vmem %s401_s24, 32 }
  0x63   : > { %p2815_p4 = scmp.ne.s32.totalorder %s401_s24, %s2814_s16  ;;  %p2822_p9 = scmp.lt.s32.totalorder %s401_s24, %s401_s24 }
  0x64   : > { %p2823_p10 = scmp.lt.s32.totalorder %s2821_s18, %s2814_s16 }
  0x65   : > { %p2817_p7 = pnand %p2815_p4, %p3087_p6 }
  0x66   : > { %p2824_p2 = por %p2823_p10, %p2822_p9 }
  0x67   : > { %p2818_p8 = pneg %p2817_p7 }
  0x69   : > { %p2825_p12 = pnand %p2824_p2, %p2818_p8 }
  0x6b   : > { %2828 = shalt.err (!%p2825_p12)
}
  0x6c   : > { %2482 = dma.hbm_to_vmem [thread:$0]  (!%p3077_p5), %s3362_s5, 16, %s401_s24, [#allocation9]  }
  0x6d   : > { %s2979_s21 = smov [#allocation13]   ;;  %s2980_s14 = smov [#allocation16]  }
  0x6e   : > { %s421_s19 = sshll.u32 %s2979_s21, 4  ;;  %s446_s26 = sshll.u32 %s2980_s14, 4  ;;  %s422_s19 = int_to_ptr.vmem [resolvable:$true] %s421_s19  ;;  %s447_s26 = int_to_ptr.vmem [resolvable:$true] %s446_s26 }
  0x6f   : > { %s2840_s23 = scalar_lea.vmem %s422_s19, 1536  ;;  %p2848_p1 = scmp.lt.s32.totalorder %s422_s19, %s422_s19 }
  0x70   : > { %p2841_p11 = scmp.ne.s32.totalorder %s422_s19, %s2840_s23  ;;  %p2849_p2 = scmp.lt.s32.totalorder %s2840_s23, %s2840_s23 }
  0x72   : > { %p2843_p13 = pnand %p2841_p11, %p3087_p6  ;;  %p2850_p4 = por %p2849_p2, %p2848_p1 }
  0x74   : > { %p2844_p0 = pneg %p2843_p13 }
  0x76   : > { %p2851_p7 = pnand %p2850_p4, %p2844_p0 }
  0x78   : > { %2854 = shalt.err (!%p2851_p7)
}
  0x79   : > { %2488 = dma.hbm_to_vmem [thread:$0]  (!%p3077_p5), %s3364_s7, 1536, %s422_s19, [#allocation12], %s2973_s30, %s2973_s30, %s2974_s27  }
  0x7a   : > { %s2866_s18 = scalar_lea.vmem %s447_s26, 16  ;;  %s2873_s17 = scalar_lea.vmem %s447_s26, 32 }
  0x7b   : > { %p2867_p8 = scmp.ne.s32.totalorder %s447_s26, %s2866_s18  ;;  %p2874_p12 = scmp.lt.s32.totalorder %s447_s26, %s447_s26 }
  0x7c   : > { %p2875_p11 = scmp.lt.s32.totalorder %s2873_s17, %s2866_s18 }
  0x7d   : > { %p2869_p9 = pnand %p2867_p8, %p3087_p6 }
  0x7e   : > { %p2876_p13 = por %p2875_p11, %p2874_p12 }
  0x7f   : > { %p2870_p10 = pneg %p2869_p9 }
  0x81   : > { %p2877_p0 = pnand %p2876_p13, %p2870_p10 }
  0x83   : > { %2880 = shalt.err (!%p2877_p0)
}
  0x84   : > { %2494 = dma.hbm_to_vmem [thread:$0]  (!%p3077_p5), %s3366_s9, 16, %s447_s26, [#allocation15]  }
  0x85   : > { %s2981_s30 = smov [#allocation19]   ;;  %s2982_s19 = smov [#allocation20]  }
  0x86   : > { %s470_s27 = sshll.u32 %s2981_s30, 4  ;;  %s481_s14 = sshll.u32 %s2982_s19, 4  ;;  %s471_s27 = int_to_ptr.vmem [resolvable:$true] %s470_s27  ;;  %s482_s14 = int_to_ptr.vmem [resolvable:$true] %s481_s14 }
  0x87   : > { %s2892_s23 = scalar_lea.vmem %s471_s27, 16  ;;  %s2899_s24 = scalar_lea.vmem %s471_s27, 32 }
  0x88   : > { %p2893_p1 = scmp.ne.s32.totalorder %s471_s27, %s2892_s23  ;;  %p2900_p7 = scmp.lt.s32.totalorder %s471_s27, %s471_s27 }
  0x89   : > { %p2901_p8 = scmp.lt.s32.totalorder %s2899_s24, %s2892_s23 }
  0x8a   : > { %p2895_p2 = pnand %p2893_p1, %p3087_p6 }
  0x8b   : > { %p2902_p9 = por %p2901_p8, %p2900_p7 }
  0x8c   : > { %p2896_p4 = pneg %p2895_p2 }
  0x8e   : > { %p2903_p10 = pnand %p2902_p9, %p2896_p4 }
  0x90   : > { %2906 = shalt.err (!%p2903_p10)
}
  0x91   : > { %2500 = dma.hbm_to_vmem [thread:$0]  (!%p3077_p5), %s3368_s11, 16, %s471_s27, [#allocation18]  }
  0x92   : > { %s2918_s18 = scalar_lea.vmem %s482_s14, 16  ;;  %s2925_s17 = scalar_lea.vmem %s482_s14, 32 }
  0x93   : > { %p2919_p12 = scmp.ne.s32.totalorder %s482_s14, %s2918_s18  ;;  %p2926_p0 = scmp.lt.s32.totalorder %s482_s14, %s482_s14 }
  0x94   : > { %p2927_p1 = scmp.lt.s32.totalorder %s2925_s17, %s2918_s18 }
  0x95   : > { %p2921_p11 = pnand %p2919_p12, %p3087_p6 }
  0x96   : > { %p2928_p2 = por %p2927_p1, %p2926_p0 }
  0x97   : > { %p2922_p13 = pneg %p2921_p11 }
  0x99   : > { %p2929_p7 = pnand %p2928_p2, %p2922_p13 }
  0x9b   : > { %2932 = shalt.err (!%p2929_p7)
}
  0x9c   : > { %2503 = dma.hbm_to_vmem [thread:$0]  (!%p3077_p5), %s3369_s12, 16, %s482_s14, [#allocation21]  }
  0x9d   : > { %502 = sbr.rel (%p3067_p3) target bundleno = 1178 (0x49a), region = 72  ;;  %p3375_p4 = scmp.eq.s32.totalorder (!%p3067_p3), %s3062_s28, 0 }
  0xa2   : > { %2938 = dma.done.wait (%p3375_p4), [#allocation4], 1536   ;;  %p3376_p6 = pmov %p3375_p4 }
  0xa3   : > { %p3377_p8 = pmov %p3375_p4 }
  0xa4   : > { %2940 = vsyncadd (%p3376_p6), [#allocation4], 4294965760 }
  0xa5   : > { %2942 = dma.done.wait (%p3377_p8), [#allocation6], 32   ;;  %p3378_p9 = pmov %p3375_p4 }
  0xa6   : > { %p3379_p10 = pmov %p3375_p4 }
  0xa7   : > { %2944 = vsyncadd (%p3378_p9), [#allocation6], 4294967264 }
  0xa8   : > { %2946 = dma.done.wait (%p3379_p10), [#allocation9], 1552   ;;  %p3380_p5 = pmov %p3375_p4 }
  0xa9   : > { %p3381_p3 = pmov %p3375_p4 }
  0xaa   : > { %2948 = vsyncadd (%p3380_p5), [#allocation9], 4294965744 }
  0xab   : > { %2950 = dma.done.wait (%p3381_p3), [#allocation12], 1552   ;;  %p3382_p12 = pmov %p3381_p3 }
  0xac   : > { %p3383_p11 = pmov %p3381_p3 }
  0xad   : > { %2952 = vsyncadd (%p3382_p12), [#allocation12], 4294965744 }
  0xae   : > { %2954 = dma.done.wait (%p3383_p11), [#allocation15], 32   ;;  %p3384_p13 = pmov %p3381_p3 }
  0xaf   : > { %p3385_p0 = pmov %p3381_p3 }
  0xb0   : > { %2956 = vsyncadd (%p3384_p13), [#allocation15], 4294967264 }
  0xb1   : > { %2958 = dma.done.wait (%p3385_p0), [#allocation18], 1552   ;;  %p3386_p1 = pmov %p3385_p0 }
  0xb2   : > { %p3387_p2 = pmov %p3385_p0 }
  0xb3   : > { %2960 = vsyncadd (%p3386_p1), [#allocation18], 4294965744 }
  0xb4   : > { %2962 = dma.done.wait (%p3387_p2), [#allocation21], 16   ;;  %p3388_p7 = pmov %p3385_p0 }
  0xb5   : > { %p590_p4 = scmp.lt.s32.totalorder %s3062_s28, 1  ;;  %v2983_v0 = vmov 0.0   ;;  %vm635_vm0 = vcmask 519168   ;;  %vm2984_vm1 = vmmov 0   ;;  %v2985_v1 = vmov 0   ;;  %v2553_v2 = vld [vmem:[#allocation3 + $0x38] sm:$0xff]  }
  0xb6   : > { %2964 = vsyncadd (%p3388_p7), [#allocation21], 4294967280  ;;  %2275 = vmatprep.subr.bf16.mxu0 %v2983_v0  ;;  %2287 = vmatprep.subr.bf16.mxu1 %v2983_v0  ;;  %638 = vst.msk [vmem:[#allocation2 + $0x8] sm:$0xf] %vm635_vm0, %v2985_v1  ;;  %v2554_v3 = vld [vmem:[#allocation3 + $0x30] sm:$0xff]   ;;  %v2556_v4 = vld [vmem:[#allocation3 + $0x18] sm:$0xff]  }
  0xb7   : > { %2283 = vmatprep.mubr.msk.bf16.mxu0 %vm2984_vm1, %v2983_v0  ;;  %639 = vst.msk [vmem:[#allocation2 + $0xc] sm:$0xf] %vm635_vm0, %v2985_v1  ;;  %637 = vst.msk [vmem:[#allocation2 + $0x4] sm:$0xf] %vm635_vm0, %v2985_v1  ;;  %2295 = vmatprep.mubr.msk.bf16.mxu1 %vm2984_vm1, %v2983_v0  ;;  %s3390_s28 = smov (!%p590_p4, %s3062_s28), 1  ;;  %v2555_v5 = vld [vmem:[#allocation3 + $0x28] sm:$0xff]  }
  0xb8   : > { %640 = vst.msk [vmem:[#allocation2 + $0x10] sm:$0xf] %vm635_vm0, %v2985_v1  ;;  %s2205_s29 = sshll.u32 %s3390_s28, 4  ;;  %2276 = vmatpush3.bf16.msra.mxu0 %v2553_v2  ;;  %2288 = vmatpush3.bf16.msra.mxu1 %v2556_v4  ;;  %v2558_v6 = vld [vmem:[#allocation3 + $0x10] sm:$0xff]   ;;  %vm605_vm2 = vcmask 523264   ;;  %v2557_v11 = vld [vmem:[#allocation3 + $0x20] sm:$0xff]  }
  0xb9   : > { %2277 = vmatprep.subr.bf16.mxu0 %v2983_v0  ;;  %s594_s30 = scalar_lea.vmem %s3357_s0, %s2205_s29  ;;  %2289 = vmatprep.subr.bf16.mxu1 %v2983_v0  ;;  %v2560_v14 = vld [vmem:[#allocation3 + $0x8] sm:$0xff]   ;;  %v2562_v17 = vld [vmem:[#allocation3] sm:$0xff]   ;;  %v2561_v45 = vld [vmem:[#allocation3 + $0x58] sm:$0xff]   ;;  %vm749_vm3 = vsmask.f32 4352  ;;  %s599_s14 = scalar_lea.vmem %s3370_s13, %s2205_s29 }
  0xba   : > { %v601_v7 = vld [vmem:[%s594_s30] sm:$0xff]  ;;  %v602_v8 = vld [vmem:[%s594_s30 + $0x8] sm:$0xff]  ;;  %vm855_vm4 = vsmask.f32 7424 }
  0xbb   : > { %v603_v9 = vadd.f32 1e-06, %v601_v7  ;;  %v604_v10 = vadd.f32 1e-06, %v602_v8  ;;  %v2563_v56 = vld [vmem:[#allocation3 + $0x50] sm:$0xff]   ;;  %v2564_v2 = vld [vmem:[#allocation3 + $0x48] sm:$0xff]  }
  0xbc   : > { %2278 = vmatpush3.bf16.msra.mxu0 %v2554_v3  ;;  %2290 = vmatpush3.bf16.msra.mxu1 %v2558_v6  ;;  %v2565_v7 = vld [vmem:[#allocation3 + $0x40] sm:$0xff]  }
  0xbd   : > { %2279 = vmatprep.subr.bf16.mxu0 %v2983_v0  ;;  %v606_v12 = vsel %vm605_vm2, %v603_v9, 0.0  ;;  %v607_v13 = vsel %vm605_vm2, %v604_v10, 0.0  ;;  %2291 = vmatprep.subr.bf16.mxu1 %v2983_v0 }
  0xbe   : > { %v608_v15 = vadd.f32 %v607_v13, %v606_v12  ;;  %v652_v44 = vld [vmem:[#allocation2 + $0x4] sm:$0x8]  ;;  %v2569_v12 = vld [vmem:[#allocation8 + $0x30] sm:$0xff]  }
  0xbf   : > { %v2567_v57 = vld [vmem:[#allocation2 + $0x10] ss:$0 sps:$4 sm:$0x11]   ;;  %v2570_v13 = vld [vmem:[#allocation8 + $0x28] sm:$0xff]  }
  0xc0   : > { %2280 = vmatpush3.bf16.msra.mxu0 %v2555_v5  ;;  %v609_v16 = vrot.slane %v608_v15, 4  ;;  %2292 = vmatpush3.bf16.msra.mxu1 %v2560_v14  ;;  %v864_v5 = vshll.u32 %v2567_v57, 16  ;;  %v2571_v14 = vld [vmem:[#allocation8 + $0x18] sm:$0xff]  }
  0xc1   : > { %2281 = vmatprep.subr.bf16.mxu0 %v2983_v0  ;;  %2293 = vmatprep.subr.bf16.mxu1 %v2983_v0 }
  0xc2   : > { %v610_v18 = vadd.f32 %v609_v16, %v608_v15  ;;  %v2572_v15 = vld [vmem:[#allocation8 + $0x20] sm:$0xff]   ;;  %v2573_v16 = vld [vmem:[#allocation8 + $0x10] sm:$0xff]  }
  0xc4   : > { %2282 = vmatpush3.bf16.msra.mxu0 %v2557_v11  ;;  %v611_v19 = vrot.slane %v610_v18, 2  ;;  %2294 = vmatpush3.bf16.msra.mxu1 %v2562_v17  ;;  %v2568_v11 = vld [vmem:[#allocation8 + $0x38] sm:$0xff]   ;;  %v2575_v17 = vld [vmem:[#allocation8 + $0x8] sm:$0xff]  }
  0xc5   : > { %2299 = vmatprep.subr.bf16.mxu0 %v2983_v0  ;;  %2311 = vmatprep.subr.bf16.mxu1 %v2983_v0 }
  0xc6   : > { %v612_v20 = vadd.f32 %v611_v19, %v610_v18  ;;  %v2577_v18 = vld [vmem:[#allocation8] sm:$0xff]  }
  0xc8   : > { %v613_v21 = vrot.slane %v612_v20, 1 }
  0xca   : > { %v614_v22 = vadd.f32 %v613_v21, %v612_v20 }
  0xcc   : > { %v616_v23 = vmul.f32 0.0625, %v614_v22 }
  0xce   : > { %v617_v24 = vsub.f32 %v603_v9, %v616_v23  ;;  %v618_v25 = vsub.f32 %v604_v10, %v616_v23  ;;  %v866_v9 = vrot.slane %v864_v5, 1 }
  0xd0   : > { %v619_v26 = vmul.f32 %v617_v24, %v617_v24  ;;  %v620_v27 = vmul.f32 %v618_v25, %v618_v25 }
  0xd2   : > { %v621_v28 = vsel %vm605_vm2, %v619_v26, 0.0  ;;  %v622_v29 = vsel %vm605_vm2, %v620_v27, 0.0 }
  0xd3   : > { %v623_v30 = vadd.f32 %v622_v29, %v621_v28  ;;  %v2129_v29 = vld [vmem:[#allocation5] ss:$0 sm:$0xff] }
  0xd5   : > { %v624_v31 = vrot.slane %v623_v30, 4 }
  0xd7   : > { %v625_v32 = vadd.f32 %v624_v31, %v623_v30  ;;  %v2130_v31 = vld [vmem:[#allocation7] ss:$0 sm:$0xff] }
  0xd9   : > { %v626_v33 = vrot.slane %v625_v32, 2 }
  0xdb   : > { %v627_v34 = vadd.f32 %v626_v33, %v625_v32 }
  0xdd   : > { %v628_v35 = vrot.slane %v627_v34, 1 }
  0xdf   : > { %v629_v36 = vadd.f32 %v628_v35, %v627_v34 }
  0xe1   : > { %v630_v37 = vmul.f32 0.0625, %v629_v36 }
  0xe3   : > { %v631_v38 = vadd.f32 1e-05, %v630_v37 }
  0xe5   : > { %2619 = vrsqrt.f32 %v631_v38 }
  0xf2   : > { %v2620_v39 = vpop.eup %2619 }
  0xf3   : > { %v633_v40 = vmul.f32 %v2620_v39, %v617_v24  ;;  %v634_v41 = vmul.f32 %v2620_v39, %v618_v25 }
  0xf5   : > { %v2207_v42 = vpack.c.bf16 %v633_v40, %v633_v40  ;;  %v2208_v43 = vpack.c.bf16 %v634_v41, %v634_v41 }
  0xf7   : > { %650 = vst.msk [vmem:[#allocation2 + $0x8] sm:$0xf] %vm635_vm0, %v2207_v42  ;;  %651 = vst.msk [vmem:[#allocation2 + $0xc] sm:$0xf] %vm635_vm0, %v2208_v43 }
  0xfe   : > { %v653_v46 = vld [vmem:[#allocation2 + $0x8] sm:$0xf]  ;;  %v654_v47 = vld [vmem:[#allocation2 + $0xc] sm:$0xf] }
  0xff   : > { %v2109_v48 = vcombine.low %v653_v46, %v654_v47  ;;  %v2115_v49 = vcombine.low %v652_v44, %v653_v46  ;;  %v2116_v50 = vcombine.low %v654_v47, %v654_v47  ;;  %v2566_v51 = vld [vmem:[#allocation2 + $0x8] sm:$0xff]  }
 0x100   : > { %v859_v58 = vshll.u32 %v2566_v51, 16  ;;  %v857_v3 = vshrl.u32 %v2566_v51, 16  ;;  %v2576_v51 = vld [vmem:[#allocation8 + $0x58] sm:$0xff]  }
 0x101   : > { %2284 = vmatmul.mubr.msk.bf16.vlgmr.msra.gmra.mxu0 %vm605_vm2, %v2109_v48  ;;  %v751_v52 = vshrl.u32 %v2115_v49, 16  ;;  %v754_v53 = vshll.u32 %v2115_v49, 16  ;;  %v759_v54 = vshrl.u32 %v2116_v50, 16  ;;  %v762_v55 = vshll.u32 %v2116_v50, 16 }
 0x102   : > { %2300 = vmatpush3.bf16.msra.mxu0 %v2561_v45  ;;  %2307 = vmatprep.mubr.msk.bf16.mxu0 %vm2984_vm1, %v2983_v0  ;;  %v861_v4 = vrot.slane %v859_v58, 1  ;;  %v968_v45 = vld [vmem:[#allocation2 + $0x4] sm:$0x8] }
 0x103   : > { %2301 = vmatprep.subr.bf16.mxu0 %v2983_v0  ;;  %v753_v59 = vrot.slane %v751_v52, 3  ;;  %v756_v60 = vrot.slane %v754_v53, 4  ;;  %v761_v61 = vrot.slane %v759_v54, 3  ;;  %v764_v62 = vrot.slane %v762_v55, 4 }
 0x104   : > { %v862_v8 = vor.u32 %v861_v4, %v857_v3  ;;  %v2581_v3 = vld [vmem:[#allocation8 + $0x48] sm:$0xff]  }
 0x105   : > { %v757_v63 = vor.u32 %v756_v60, %v753_v59  ;;  %v765_v1 = vor.u32 %v764_v62, %v761_v61  ;;  %v2578_v59 = vld [vmem:[#allocation8 + $0x50] sm:$0xff]  }
 0x106   : > { %2302 = vmatpush3.bf16.msra.mxu0 %v2563_v56  ;;  %v867_v10 = vsel %vm855_vm4, %v862_v8, %v866_v9  ;;  %v2584_v62 = vld [vmem:[#allocation2 + $0x10] ss:$0 sps:$4 sm:$0x11]  }
 0x107   : > { %v766_v6 = vsel %vm749_vm3, %v757_v63, %v765_v1  ;;  %2303 = vmatprep.subr.bf16.mxu0 %v2983_v0 }
 0x108   : > { %2296 = vmatmul.mubr.msk.bf16.vlgmr.msra.gmra.mxu1 %vm605_vm2, %v766_v6  ;;  %v1178_v6 = vshll.u32 %v2584_v62, 16 }
 0x109   : > { %2319 = vmatprep.mubr.msk.bf16.mxu1 %vm2984_vm1, %v2983_v0  ;;  %2312 = vmatpush3.bf16.msra.mxu1 %v2568_v11 }
 0x10a   : > { %2304 = vmatpush3.bf16.msra.mxu0 %v2564_v2  ;;  %2313 = vmatprep.subr.bf16.mxu1 %v2983_v0 }
 0x10b   : > { %2305 = vmatprep.subr.bf16.mxu0 %v2983_v0 }
 0x10d   : > { %2314 = vmatpush3.bf16.msra.mxu1 %v2569_v12  ;;  %v2585_v12 = vld [vmem:[#allocation13 + $0x38] sm:$0xff]  }
 0x10e   : > { %2306 = vmatpush3.bf16.msra.mxu0 %v2565_v7  ;;  %2315 = vmatprep.subr.bf16.mxu1 %v2983_v0  ;;  %v2582_v7 = vld [vmem:[#allocation8 + $0x40] sm:$0xff]  }
 0x10f   : > { %2323 = vmatprep.subr.bf16.mxu0 %v2983_v0 }
 0x111   : > { %2308 = vmatmul.mubr.msk.bf16.vlgmr.msra.gmra.mxu0 %vm605_vm2, %v867_v10  ;;  %2316 = vmatpush3.bf16.msra.mxu1 %v2570_v13  ;;  %v1180_v10 = vrot.slane %v1178_v6, 1  ;;  %v2586_v13 = vld [vmem:[#allocation13 + $0x30] sm:$0xff]  }
 0x112   : > { %2331 = vmatprep.mubr.msk.bf16.mxu0 %vm2984_vm1, %v2983_v0  ;;  %2324 = vmatpush3.bf16.msra.mxu0 %v2571_v14  ;;  %v2587_v14 = vld [vmem:[#allocation13 + $0x28] sm:$0xff]  }
 0x113   : > { %2317 = vmatprep.subr.bf16.mxu1 %v2983_v0  ;;  %2325 = vmatprep.subr.bf16.mxu0 %v2983_v0 }
 0x115   : > { %2318 = vmatpush3.bf16.msra.mxu1 %v2572_v15  ;;  %v2588_v15 = vld [vmem:[#allocation13 + $0x18] sm:$0xff]  }
 0x116   : > { %2326 = vmatpush3.bf16.msra.mxu0 %v2573_v16  ;;  %2335 = vmatprep.subr.bf16.mxu1 %v2983_v0  ;;  %v2589_v16 = vld [vmem:[#allocation13 + $0x20] sm:$0xff]  }
 0x117   : > { %2327 = vmatprep.subr.bf16.mxu0 %v2983_v0 }
 0x11a   : > { %2328 = vmatpush3.bf16.msra.mxu0 %v2575_v17  ;;  %v2590_v17 = vld [vmem:[#allocation13 + $0x10] sm:$0xff]  }
 0x11b   : > { %2329 = vmatprep.subr.bf16.mxu0 %v2983_v0 }
 0x11e   : > { %2330 = vmatpush3.bf16.msra.mxu0 %v2577_v18  ;;  %v2592_v18 = vld [vmem:[#allocation13 + $0x8] sm:$0xff]  }
 0x11f   : > { %2347 = vmatprep.subr.bf16.mxu0 %v2983_v0 }
 0x1c1   : > { %v738_v19 = vpop.f32.mrf.mxu0 }
 0x1c3   : > { %v2285_v20 = vpop.f32.mrf.mxu0 }
 0x1c5   : > { %v741_v21 = vpop.f32.mrf.mxu0 }
 0x1c7   : > { %v2286_v22 = vpop.f32.mrf.mxu0 }
 0x1c8   : > { %v828_v23 = vpop.f32.mrf.mxu1 }
 0x1c9   : > { %v829_v27 = vadd.f32 %v828_v23, %v738_v19  ;;  %v2594_v19 = vld [vmem:[#allocation13] sm:$0xff]  }
 0x1ca   : > { %v2297_v24 = vpop.f32.mrf.mxu1 }
 0x1cc   : > { %v831_v25 = vpop.f32.mrf.mxu1 }
 0x1cd   : > { %v832_v33 = vadd.f32 %v831_v25, %v741_v21 }
 0x1ce   : > { %v2298_v26 = vpop.f32.mrf.mxu1 }
 0x1d1   : > { %v929_v28 = vpop.f32.mrf.mxu0 }
 0x1d2   : > { %v936_v30 = vadd.f32 %v929_v28, %v829_v27 }
 0x1d3   : > { %v2309_v32 = vpop.f32.mrf.mxu0 }
 0x1d4   : > { %v945_v34 = vmul.f32 %v2129_v29, %v936_v30  ;;  %v2153_v30 = vld [vmem:[#allocation10] ss:$0 sm:$0xff]  ;;  %v2154_v32 = vld [vmem:[#allocation11] ss:$0 sm:$0xff] }
 0x1d5   : > { %v932_v35 = vpop.f32.mrf.mxu0 }
 0x1d6   : > { %v954_v36 = vadd.f32 %v2130_v31, %v945_v34  ;;  %v937_v37 = vadd.f32 %v932_v35, %v832_v33 }
 0x1d7   : > { %v2310_v38 = vpop.f32.mrf.mxu0 }
 0x1d8   : > { %v956_v39 = vmax.f32 %v954_v36, 0.0  ;;  %v946_v40 = vmul.f32 %v2129_v29, %v937_v37 }
 0x1da   : > { %v2209_v41 = vpack.c.bf16 %v956_v39, %v956_v39  ;;  %v955_v42 = vadd.f32 %v2130_v31, %v946_v40 }
 0x1dc   : > { %966 = vst.msk [vmem:[#allocation2 + $0x8] sm:$0xf] %vm635_vm0, %v2209_v41  ;;  %v957_v43 = vmax.f32 %v955_v42, 0.0 }
 0x1de   : > { %v2210_v44 = vpack.c.bf16 %v957_v43, %v957_v43 }
 0x1e0   : > { %967 = vst.msk [vmem:[#allocation2 + $0xc] sm:$0xf] %vm635_vm0, %v2210_v44 }
 0x1e3   : > { %v969_v46 = vld [vmem:[#allocation2 + $0x8] sm:$0xf] }
 0x1e4   : > { %v2139_v47 = vcombine.low %v968_v45, %v969_v46 }
 0x1e6   : > { %v1066_v48 = vshrl.u32 %v2139_v47, 16  ;;  %v1069_v49 = vshll.u32 %v2139_v47, 16 }
 0x1e7   : > { %v970_v50 = vld [vmem:[#allocation2 + $0xc] sm:$0xf] }
 0x1e8   : > { %v2133_v52 = vcombine.low %v969_v46, %v970_v50  ;;  %v2140_v53 = vcombine.low %v970_v50, %v970_v50  ;;  %v2583_v54 = vld [vmem:[#allocation2 + $0x8] sm:$0xff]   ;;  %v1068_v55 = vrot.slane %v1066_v48, 3  ;;  %v1071_v56 = vrot.slane %v1069_v49, 4  ;;  %v1282_v46 = vld [vmem:[#allocation2 + $0x4] sm:$0x8] }
 0x1e9   : > { %v1173_v63 = vshll.u32 %v2583_v54, 16  ;;  %v1171_v8 = vshrl.u32 %v2583_v54, 16 }
 0x1ea   : > { %2320 = vmatmul.mubr.msk.bf16.vlgmr.msra.gmra.mxu1 %vm605_vm2, %v2133_v52  ;;  %v1074_v57 = vshrl.u32 %v2140_v53, 16  ;;  %v1077_v58 = vshll.u32 %v2140_v53, 16  ;;  %v1072_v1 = vor.u32 %v1071_v56, %v1068_v55  ;;  %v2593_v52 = vld [vmem:[#allocation13 + $0x58] sm:$0xff]  }
 0x1eb   : > { %2336 = vmatpush3.bf16.msra.mxu1 %v2576_v51  ;;  %2343 = vmatprep.mubr.msk.bf16.mxu1 %vm2984_vm1, %v2983_v0  ;;  %v1175_v5 = vrot.slane %v1173_v63, 1  ;;  %v2601_v63 = vld [vmem:[#allocation2 + $0x10] ss:$0 sps:$4 sm:$0x11]  }
 0x1ec   : > { %2337 = vmatprep.subr.bf16.mxu1 %v2983_v0  ;;  %v1076_v60 = vrot.slane %v1074_v57, 3  ;;  %v1079_v61 = vrot.slane %v1077_v58, 4 }
 0x1ed   : > { %v1176_v9 = vor.u32 %v1175_v5, %v1171_v8  ;;  %v2599_v8 = vld [vmem:[#allocation13 + $0x40] sm:$0xff]  }
 0x1ee   : > { %v1080_v2 = vor.u32 %v1079_v61, %v1076_v60  ;;  %v2595_v60 = vld [vmem:[#allocation13 + $0x50] sm:$0xff]  }
 0x1ef   : > { %2338 = vmatpush3.bf16.msra.mxu1 %v2578_v59  ;;  %v1181_v11 = vsel %vm855_vm4, %v1176_v9, %v1180_v10 }
 0x1f0   : > { %v1081_v4 = vsel %vm749_vm3, %v1072_v1, %v1080_v2  ;;  %2339 = vmatprep.subr.bf16.mxu1 %v2983_v0 }
 0x1f1   : > { %2332 = vmatmul.mubr.msk.bf16.vlgmr.msra.gmra.mxu0 %vm605_vm2, %v1081_v4  ;;  %v2598_v4 = vld [vmem:[#allocation13 + $0x48] sm:$0xff]  }
 0x1f2   : > { %2355 = vmatprep.mubr.msk.bf16.mxu0 %vm2984_vm1, %v2983_v0  ;;  %2348 = vmatpush3.bf16.msra.mxu0 %v2585_v12 }
 0x1f3   : > { %2340 = vmatpush3.bf16.msra.mxu1 %v2581_v3  ;;  %2349 = vmatprep.subr.bf16.mxu0 %v2983_v0 }
 0x1f4   : > { %2341 = vmatprep.subr.bf16.mxu1 %v2983_v0 }
 0x1f6   : > { %2350 = vmatpush3.bf16.msra.mxu0 %v2586_v13  ;;  %v2602_v13 = vld [vmem:[#allocation17 + $0x38] sm:$0xff]  }
 0x1f7   : > { %2342 = vmatpush3.bf16.msra.mxu1 %v2582_v7  ;;  %2351 = vmatprep.subr.bf16.mxu0 %v2983_v0  ;;  %v1492_v7 = vshll.u32 %v2601_v63, 16 }
 0x1f8   : > { %2359 = vmatprep.subr.bf16.mxu1 %v2983_v0 }
 0x1fa   : > { %2344 = vmatmul.mubr.msk.bf16.vlgmr.msra.gmra.mxu1 %vm605_vm2, %v1181_v11  ;;  %2352 = vmatpush3.bf16.msra.mxu0 %v2587_v14  ;;  %v1494_v11 = vrot.slane %v1492_v7, 1  ;;  %v2603_v14 = vld [vmem:[#allocation17 + $0x30] sm:$0xff]  }
 0x1fb   : > { %2367 = vmatprep.mubr.msk.bf16.mxu1 %vm2984_vm1, %v2983_v0  ;;  %2360 = vmatpush3.bf16.msra.mxu1 %v2588_v15  ;;  %v2604_v15 = vld [vmem:[#allocation17 + $0x28] sm:$0xff]  }
 0x1fc   : > { %2353 = vmatprep.subr.bf16.mxu0 %v2983_v0  ;;  %2361 = vmatprep.subr.bf16.mxu1 %v2983_v0 }
 0x1fe   : > { %2354 = vmatpush3.bf16.msra.mxu0 %v2589_v16  ;;  %v2605_v16 = vld [vmem:[#allocation17 + $0x18] sm:$0xff]  }
 0x1ff   : > { %2362 = vmatpush3.bf16.msra.mxu1 %v2590_v17  ;;  %2371 = vmatprep.subr.bf16.mxu0 %v2983_v0  ;;  %v2606_v17 = vld [vmem:[#allocation17 + $0x20] sm:$0xff]  }
 0x200   : > { %2363 = vmatprep.subr.bf16.mxu1 %v2983_v0 }
 0x203   : > { %2364 = vmatpush3.bf16.msra.mxu1 %v2592_v18  ;;  %v2607_v18 = vld [vmem:[#allocation17 + $0x10] sm:$0xff]  }
 0x204   : > { %2365 = vmatprep.subr.bf16.mxu1 %v2983_v0 }
 0x207   : > { %2366 = vmatpush3.bf16.msra.mxu1 %v2594_v19  ;;  %v2611_v19 = vld [vmem:[#allocation17 + $0x8] sm:$0xff]  }
 0x208   : > { %2383 = vmatprep.subr.bf16.mxu1 %v2983_v0 }
 0x2aa   : > { %v1054_v20 = vpop.f32.mrf.mxu1 }
 0x2ac   : > { %v2321_v21 = vpop.f32.mrf.mxu1 }
 0x2ae   : > { %v1057_v22 = vpop.f32.mrf.mxu1 }
 0x2b0   : > { %v2322_v23 = vpop.f32.mrf.mxu1 }
 0x2b1   : > { %v1143_v24 = vpop.f32.mrf.mxu0 }
 0x2b2   : > { %v1144_v28 = vadd.f32 %v1143_v24, %v1054_v20  ;;  %v2613_v20 = vld [vmem:[#allocation17] sm:$0xff]  }
 0x2b3   : > { %v2333_v25 = vpop.f32.mrf.mxu0 }
 0x2b5   : > { %v1146_v26 = vpop.f32.mrf.mxu0 }
 0x2b6   : > { %v1147_v34 = vadd.f32 %v1146_v26, %v1057_v22 }
 0x2b7   : > { %v2334_v27 = vpop.f32.mrf.mxu0 }
 0x2ba   : > { %v1243_v29 = vpop.f32.mrf.mxu1 }
 0x2bb   : > { %v1250_v31 = vadd.f32 %v1243_v29, %v1144_v28 }
 0x2bc   : > { %v2345_v33 = vpop.f32.mrf.mxu1 }
 0x2bd   : > { %v1259_v35 = vmul.f32 %v2153_v30, %v1250_v31  ;;  %v2177_v31 = vld [vmem:[#allocation14] ss:$0 sm:$0xff]  ;;  %v2178_v33 = vld [vmem:[#allocation16] ss:$0 sm:$0xff] }
 0x2be   : > { %v1246_v36 = vpop.f32.mrf.mxu1 }
 0x2bf   : > { %v1268_v37 = vadd.f32 %v2154_v32, %v1259_v35  ;;  %v1251_v38 = vadd.f32 %v1246_v36, %v1147_v34 }
 0x2c0   : > { %v2346_v39 = vpop.f32.mrf.mxu1 }
 0x2c1   : > { %v1270_v40 = vmax.f32 %v1268_v37, 0.0  ;;  %v1260_v41 = vmul.f32 %v2153_v30, %v1251_v38 }
 0x2c3   : > { %v2211_v42 = vpack.c.bf16 %v1270_v40, %v1270_v40  ;;  %v1269_v43 = vadd.f32 %v2154_v32, %v1260_v41 }
 0x2c5   : > { %1280 = vst.msk [vmem:[#allocation2 + $0x8] sm:$0xf] %vm635_vm0, %v2211_v42  ;;  %v1271_v44 = vmax.f32 %v1269_v43, 0.0 }
 0x2c7   : > { %v2212_v45 = vpack.c.bf16 %v1271_v44, %v1271_v44 }
 0x2c9   : > { %1281 = vst.msk [vmem:[#allocation2 + $0xc] sm:$0xf] %vm635_vm0, %v2212_v45 }
 0x2cc   : > { %v1283_v47 = vld [vmem:[#allocation2 + $0x8] sm:$0xf] }
 0x2cd   : > { %v2163_v48 = vcombine.low %v1282_v46, %v1283_v47 }
 0x2cf   : > { %v1380_v49 = vshrl.u32 %v2163_v48, 16  ;;  %v1383_v50 = vshll.u32 %v2163_v48, 16 }
 0x2d0   : > { %v1284_v51 = vld [vmem:[#allocation2 + $0xc] sm:$0xf] }
 0x2d1   : > { %v2157_v53 = vcombine.low %v1283_v47, %v1284_v51  ;;  %v2164_v54 = vcombine.low %v1284_v51, %v1284_v51  ;;  %v2600_v55 = vld [vmem:[#allocation2 + $0x8] sm:$0xff]   ;;  %v1382_v56 = vrot.slane %v1380_v49, 3  ;;  %v1385_v57 = vrot.slane %v1383_v50, 4  ;;  %v1596_v47 = vld [vmem:[#allocation2 + $0x4] sm:$0x8] }
 0x2d2   : > { %v1487_v1 = vshll.u32 %v2600_v55, 16  ;;  %v1485_v9 = vshrl.u32 %v2600_v55, 16 }
 0x2d3   : > { %2356 = vmatmul.mubr.msk.bf16.vlgmr.msra.gmra.mxu0 %vm605_vm2, %v2157_v53  ;;  %v1388_v58 = vshrl.u32 %v2164_v54, 16  ;;  %v1391_v59 = vshll.u32 %v2164_v54, 16  ;;  %v1386_v2 = vor.u32 %v1385_v57, %v1382_v56  ;;  %v2612_v53 = vld [vmem:[#allocation17 + $0x58] sm:$0xff]  }
 0x2d4   : > { %2372 = vmatpush3.bf16.msra.mxu0 %v2593_v52  ;;  %2379 = vmatprep.mubr.msk.bf16.mxu0 %vm2984_vm1, %v2983_v0  ;;  %v1489_v6 = vrot.slane %v1487_v1, 1  ;;  %v2618_v1 = vld [vmem:[#allocation2 + $0x10] ss:$0 sps:$4 sm:$0x11]  }
 0x2d5   : > { %2373 = vmatprep.subr.bf16.mxu0 %v2983_v0  ;;  %v1390_v61 = vrot.slane %v1388_v58, 3  ;;  %v1393_v62 = vrot.slane %v1391_v59, 4 }
 0x2d6   : > { %v1490_v10 = vor.u32 %v1489_v6, %v1485_v9  ;;  %v2616_v9 = vld [vmem:[#allocation17 + $0x40] sm:$0xff]  }
 0x2d7   : > { %v1394_v3 = vor.u32 %v1393_v62, %v1390_v61  ;;  %v2614_v61 = vld [vmem:[#allocation17 + $0x50] sm:$0xff]  }
 0x2d8   : > { %2374 = vmatpush3.bf16.msra.mxu0 %v2595_v60  ;;  %v1495_v12 = vsel %vm855_vm4, %v1490_v10, %v1494_v11 }
 0x2d9   : > { %v1395_v5 = vsel %vm749_vm3, %v1386_v2, %v1394_v3  ;;  %2375 = vmatprep.subr.bf16.mxu0 %v2983_v0 }
 0x2da   : > { %2368 = vmatmul.mubr.msk.bf16.vlgmr.msra.gmra.mxu1 %vm605_vm2, %v1395_v5  ;;  %v2615_v5 = vld [vmem:[#allocation17 + $0x48] sm:$0xff]  }
 0x2db   : > { %2391 = vmatprep.mubr.msk.bf16.mxu1 %vm2984_vm1, %v2983_v0  ;;  %2384 = vmatpush3.bf16.msra.mxu1 %v2602_v13 }
 0x2dc   : > { %2376 = vmatpush3.bf16.msra.mxu0 %v2598_v4  ;;  %2385 = vmatprep.subr.bf16.mxu1 %v2983_v0 }
 0x2dd   : > { %2377 = vmatprep.subr.bf16.mxu0 %v2983_v0 }
 0x2df   : > { %2386 = vmatpush3.bf16.msra.mxu1 %v2603_v14 }
 0x2e0   : > { %2378 = vmatpush3.bf16.msra.mxu0 %v2599_v8  ;;  %2387 = vmatprep.subr.bf16.mxu1 %v2983_v0  ;;  %v1806_v8 = vshll.u32 %v2618_v1, 16 }
 0x2e1   : > { %2395 = vmatprep.subr.bf16.mxu0 %v2983_v0 }
 0x2e3   : > { %2380 = vmatmul.mubr.msk.bf16.vlgmr.msra.gmra.mxu0 %vm605_vm2, %v1495_v12  ;;  %2388 = vmatpush3.bf16.msra.mxu1 %v2604_v15  ;;  %v1808_v12 = vrot.slane %v1806_v8, 1 }
 0x2e4   : > { %2403 = vmatprep.mubr.msk.bf16.mxu0 %vm2984_vm1, %v2983_v0  ;;  %2396 = vmatpush3.bf16.msra.mxu0 %v2605_v16 }
 0x2e5   : > { %2389 = vmatprep.subr.bf16.mxu1 %v2983_v0  ;;  %2397 = vmatprep.subr.bf16.mxu0 %v2983_v0 }
 0x2e7   : > { %2390 = vmatpush3.bf16.msra.mxu1 %v2606_v17 }
 0x2e8   : > { %2398 = vmatpush3.bf16.msra.mxu0 %v2607_v18  ;;  %2407 = vmatprep.subr.bf16.mxu1 %v2983_v0 }
 0x2e9   : > { %2399 = vmatprep.subr.bf16.mxu0 %v2983_v0 }
 0x2ec   : > { %2400 = vmatpush3.bf16.msra.mxu0 %v2611_v19 }
 0x2ed   : > { %2401 = vmatprep.subr.bf16.mxu0 %v2983_v0 }
 0x2f0   : > { %2402 = vmatpush3.bf16.msra.mxu0 %v2613_v20 }
 0x393   : > { %v1368_v21 = vpop.f32.mrf.mxu0 }
 0x395   : > { %v2357_v22 = vpop.f32.mrf.mxu0 }
 0x397   : > { %v1371_v23 = vpop.f32.mrf.mxu0 }
 0x399   : > { %v2358_v24 = vpop.f32.mrf.mxu0 }
 0x39a   : > { %v1457_v25 = vpop.f32.mrf.mxu1  ;;  %v2201_v24 = vld [vmem:[#allocation19] ss:$0 sm:$0xff] }
 0x39b   : > { %v1458_v29 = vadd.f32 %v1457_v25, %v1368_v21  ;;  %v2202_v25 = vld [vmem:[#allocation20] ss:$0 sm:$0xff] }
 0x39c   : > { %v2369_v26 = vpop.f32.mrf.mxu1 }
 0x39e   : > { %v1460_v27 = vpop.f32.mrf.mxu1 }
 0x39f   : > { %v1461_v35 = vadd.f32 %v1460_v27, %v1371_v23 }
 0x3a0   : > { %v2370_v28 = vpop.f32.mrf.mxu1 }
 0x3a3   : > { %v1557_v30 = vpop.f32.mrf.mxu0 }
 0x3a4   : > { %v1564_v32 = vadd.f32 %v1557_v30, %v1458_v29 }
 0x3a5   : > { %v2381_v34 = vpop.f32.mrf.mxu0 }
 0x3a6   : > { %v1573_v36 = vmul.f32 %v2177_v31, %v1564_v32 }
 0x3a7   : > { %v1560_v37 = vpop.f32.mrf.mxu0 }
 0x3a8   : > { %v1582_v38 = vadd.f32 %v2178_v33, %v1573_v36  ;;  %v1565_v39 = vadd.f32 %v1560_v37, %v1461_v35 }
 0x3a9   : > { %v2382_v40 = vpop.f32.mrf.mxu0 }
 0x3aa   : > { %v1584_v41 = vmax.f32 %v1582_v38, 0.0  ;;  %v1574_v42 = vmul.f32 %v2177_v31, %v1565_v39 }
 0x3ac   : > { %v2213_v43 = vpack.c.bf16 %v1584_v41, %v1584_v41  ;;  %v1583_v44 = vadd.f32 %v2178_v33, %v1574_v42 }
 0x3ae   : > { %1594 = vst.msk [vmem:[#allocation2 + $0x8] sm:$0xf] %vm635_vm0, %v2213_v43  ;;  %v1585_v45 = vmax.f32 %v1583_v44, 0.0 }
 0x3b0   : > { %v2214_v46 = vpack.c.bf16 %v1585_v45, %v1585_v45 }
 0x3b2   : > { %1595 = vst.msk [vmem:[#allocation2 + $0xc] sm:$0xf] %vm635_vm0, %v2214_v46 }
 0x3b5   : > { %v1597_v48 = vld [vmem:[#allocation2 + $0x8] sm:$0xf] }
 0x3b6   : > { %v2187_v49 = vcombine.low %v1596_v47, %v1597_v48 }
 0x3b8   : > { %v1694_v50 = vshrl.u32 %v2187_v49, 16  ;;  %v1697_v51 = vshll.u32 %v2187_v49, 16 }
 0x3b9   : > { %v1598_v52 = vld [vmem:[#allocation2 + $0xc] sm:$0xf] }
 0x3ba   : > { %v2181_v54 = vcombine.low %v1597_v48, %v1598_v52  ;;  %v2188_v55 = vcombine.low %v1598_v52, %v1598_v52  ;;  %v2617_v56 = vld [vmem:[#allocation2 + $0x8] sm:$0xff]   ;;  %v1696_v57 = vrot.slane %v1694_v50, 3  ;;  %v1699_v58 = vrot.slane %v1697_v51, 4 }
 0x3bb   : > { %v1801_v2 = vshll.u32 %v2617_v56, 16  ;;  %v1799_v10 = vshrl.u32 %v2617_v56, 16 }
 0x3bc   : > { %2392 = vmatmul.mubr.msk.bf16.vlgmr.msra.gmra.mxu1 %vm605_vm2, %v2181_v54  ;;  %v1702_v59 = vshrl.u32 %v2188_v55, 16  ;;  %v1705_v60 = vshll.u32 %v2188_v55, 16  ;;  %v1700_v3 = vor.u32 %v1699_v58, %v1696_v57 }
 0x3bd   : > { %2408 = vmatpush3.bf16.msra.mxu1 %v2612_v53  ;;  %2415 = vmatprep.mubr.msk.bf16.mxu1 %vm2984_vm1, %v2983_v0  ;;  %v1803_v7 = vrot.slane %v1801_v2, 1 }
 0x3be   : > { %2409 = vmatprep.subr.bf16.mxu1 %v2983_v0  ;;  %v1704_v62 = vrot.slane %v1702_v59, 3  ;;  %v1707_v63 = vrot.slane %v1705_v60, 4 }
 0x3bf   : > { %v1804_v11 = vor.u32 %v1803_v7, %v1799_v10 }
 0x3c0   : > { %v1708_v4 = vor.u32 %v1707_v63, %v1704_v62 }
 0x3c1   : > { %2410 = vmatpush3.bf16.msra.mxu1 %v2614_v61  ;;  %v1809_v13 = vsel %vm855_vm4, %v1804_v11, %v1808_v12 }
 0x3c2   : > { %v1709_v6 = vsel %vm749_vm3, %v1700_v3, %v1708_v4  ;;  %2411 = vmatprep.subr.bf16.mxu1 %v2983_v0 }
 0x3c3   : > { %2404 = vmatmul.mubr.msk.bf16.vlgmr.msra.gmra.mxu0 %vm605_vm2, %v1709_v6 }
 0x3c5   : > { %2412 = vmatpush3.bf16.msra.mxu1 %v2615_v5 }
 0x3c6   : > { %2413 = vmatprep.subr.bf16.mxu1 %v2983_v0 }
 0x3c9   : > { %2414 = vmatpush3.bf16.msra.mxu1 %v2616_v9 }
 0x3cc   : > { %2416 = vmatmul.mubr.msk.bf16.vlgmr.msra.gmra.mxu1 %vm605_vm2, %v1809_v13 }
 0x47c   : > { %v1682_v14 = vpop.f32.mrf.mxu1 }
 0x47e   : > { %v2393_v15 = vpop.f32.mrf.mxu1 }
 0x480   : > { %v1685_v16 = vpop.f32.mrf.mxu1 }
 0x482   : > { %v2394_v17 = vpop.f32.mrf.mxu1 }
 0x483   : > { %v1771_v18 = vpop.f32.mrf.mxu0 }
 0x484   : > { %v1772_v22 = vadd.f32 %v1771_v18, %v1682_v14 }
 0x485   : > { %v2405_v19 = vpop.f32.mrf.mxu0 }
 0x487   : > { %v1774_v20 = vpop.f32.mrf.mxu0 }
 0x488   : > { %v1775_v27 = vadd.f32 %v1774_v20, %v1685_v16 }
 0x489   : > { %v2406_v21 = vpop.f32.mrf.mxu0 }
 0x48c   : > { %v1871_v23 = vpop.f32.mrf.mxu1 }
 0x48d   : > { %v1878_v0 = vadd.f32 %v1871_v23, %v1772_v22 }
 0x48e   : > { %v2417_v26 = vpop.f32.mrf.mxu1 }
 0x48f   : > { %v1887_v28 = vmul.f32 %v2201_v24, %v1878_v0 }
 0x490   : > { %v1874_v29 = vpop.f32.mrf.mxu1 }
 0x491   : > { %v1896_v30 = vadd.f32 %v2202_v25, %v1887_v28  ;;  %v1879_v31 = vadd.f32 %v1874_v29, %v1775_v27 }
 0x492   : > { %v2418_v32 = vpop.f32.mrf.mxu1 }
 0x493   : > { %v1898_v33 = vmax.f32 %v1896_v30, 0.0  ;;  %v1888_v34 = vmul.f32 %v2201_v24, %v1879_v31 }
 0x495   : > { %1900 = vst.msk [vmem:[%s599_s14] sm:$0xff] %vm605_vm2, %v1898_v33  ;;  %v1897_v35 = vadd.f32 %v2202_v25, %v1888_v34 }
 0x497   : > { %v1899_v36 = vmax.f32 %v1897_v35, 0.0 }
 0x499   : > { %1901 = vst.msk [vmem:[%s599_s14 + $0x8] sm:$0xff] %vm605_vm2, %v1899_v36 }
 0x49a PF: > { %s30_s25 = sadd.s32 1, %s2967_s25  }
 0x49b   : > { %p27_p6 = scmp.ge.s32.totalorder %s30_s25, 4  }
 0x49d   :  { %29 = sbr.rel (!%p27_p6) target bundleno = 7 (0x7), region = 159 }
 0x4a2   :  { %1923 = vsyncpa [#allocation4], 1 }
 0x4a3   :  { %1925 = vsyncpa [#allocation4 + $0x1], 1 }
 0x4a4   :  { %1926 = vsyncpa [#allocation6], 1 }
 0x4a5   :  { %1927 = vsyncpa [#allocation9], 1 }
 0x4a6   :  { %1928 = vsyncpa [#allocation12], 1 }
 0x4a7   :  { %1929 = vsyncpa [#allocation15], 1 }
 0x4a8   :  { %1930 = vsyncpa [#allocation18], 1 }
 0x4a9   :  { %1931 = vsyncpa [#allocation21], 1 }

// kernel: speech_model_forward.15
= control target key start
LH: loop header
LB: loop body
LE: loop exit
PB: predicated region body
PF: predicated region fallthrough
CT: control target
= control target key end

     0   :  { %s708_s1 = inlined_call_operand.vmem [shape: bf16[512,128], index: 1, kind: input, shape index: {}]   ;;  %s709_s0 = inlined_call_operand.vmem [shape: f32[32,512], index: 0, kind: input, shape index: {}]   ;;  %s710_s2 = inlined_call_operand.vmem [shape: f32[1,128], index: 2, kind: input, shape index: {}]   ;;  %s711_s3 = inlined_call_operand.vmem [shape: f32[32,128], index: 3, kind: output, shape index: {}]  }
   0x1   :  { %v497_v0 = vld [vmem:[%s708_s1 + $0x78] sm:$0xff]   ;;  %v501_v4 = vld [vmem:[%s708_s1 + $0x70] sm:$0xff]   ;;  %v505_v8 = vld [vmem:[%s708_s1 + $0x68] sm:$0xff]  }
   0x2   :  { %v498_v1 = vld [vmem:[%s708_s1 + $0xf8] sm:$0xff]   ;;  %441 = vmatprep.subr.bf16.mxu0 %v497_v0  ;;  %v502_v5 = vld [vmem:[%s708_s1 + $0xf0] sm:$0xff]   ;;  %v506_v9 = vld [vmem:[%s708_s1 + $0xe8] sm:$0xff]  }
   0x3   :  { %v499_v2 = vld [vmem:[%s708_s1 + $0x38] sm:$0xff]   ;;  %469 = vmatprep.subr.bf16.mxu1 %v498_v1  ;;  %v503_v6 = vld [vmem:[%s708_s1 + $0x30] sm:$0xff]   ;;  %v507_v10 = vld [vmem:[%s708_s1 + $0x28] sm:$0xff]  }
   0x4   :  { %v500_v3 = vld [vmem:[%s708_s1 + $0xb8] sm:$0xff]   ;;  %442 = vmatpush3.bf16.msra.mxu0 %v499_v2  ;;  %v504_v7 = vld [vmem:[%s708_s1 + $0xb0] sm:$0xff]   ;;  %v508_v11 = vld [vmem:[%s708_s1 + $0xa8] sm:$0xff]  }
   0x5   :  { %470 = vmatpush3.bf16.msra.mxu1 %v500_v3  ;;  %443 = vmatprep.subr.bf16.mxu0 %v501_v4  ;;  %v509_v12 = vld [vmem:[%s708_s1 + $0x60] sm:$0xff]   ;;  %v513_v16 = vld [vmem:[%s708_s1 + $0x58] sm:$0xff]   ;;  %v517_v20 = vld [vmem:[%s708_s1 + $0x50] sm:$0xff]  }
   0x6   :  { %471 = vmatprep.subr.bf16.mxu1 %v502_v5  ;;  %v510_v13 = vld [vmem:[%s708_s1 + $0xe0] sm:$0xff]   ;;  %v514_v17 = vld [vmem:[%s708_s1 + $0xd8] sm:$0xff]   ;;  %v518_v21 = vld [vmem:[%s708_s1 + $0xd0] sm:$0xff]  }
   0x7   :  { %v511_v14 = vld [vmem:[%s708_s1 + $0x20] sm:$0xff]   ;;  %v515_v18 = vld [vmem:[%s708_s1 + $0x18] sm:$0xff]   ;;  %v519_v22 = vld [vmem:[%s708_s1 + $0x10] sm:$0xff]  }
   0x8   :  { %444 = vmatpush3.bf16.msra.mxu0 %v503_v6  ;;  %v512_v15 = vld [vmem:[%s708_s1 + $0xa0] sm:$0xff]   ;;  %v516_v19 = vld [vmem:[%s708_s1 + $0x98] sm:$0xff]   ;;  %v520_v23 = vld [vmem:[%s708_s1 + $0x90] sm:$0xff]  }
   0x9   :  { %472 = vmatpush3.bf16.msra.mxu1 %v504_v7  ;;  %445 = vmatprep.subr.bf16.mxu0 %v505_v8  ;;  %v521_v24 = vld [vmem:[%s708_s1 + $0x48] sm:$0xff]   ;;  %v525_v28 = vld [vmem:[%s708_s1 + $0x40] sm:$0xff]   ;;  %v18_v34 = vld [vmem:[%s709_s0 + $0x18] sm:$0xff] }
   0xa   :  { %473 = vmatprep.subr.bf16.mxu1 %v506_v9  ;;  %v522_v25 = vld [vmem:[%s708_s1 + $0xc8] sm:$0xff]   ;;  %v526_v29 = vld [vmem:[%s708_s1 + $0xc0] sm:$0xff]   ;;  %v22_v36 = vld [vmem:[%s709_s0 + $0x38] sm:$0xff] }
   0xb   :  { %v523_v26 = vld [vmem:[%s708_s1 + $0x8] sm:$0xff]   ;;  %v527_v30 = vld [vmem:[%s708_s1] sm:$0xff]   ;;  %v34_v39 = vpack.c.bf16 %v22_v36, %v18_v34  ;;  %v17_v41 = vld [vmem:[%s709_s0 + $0x10] sm:$0xff] }
   0xc   :  { %446 = vmatpush3.bf16.msra.mxu0 %v507_v10  ;;  %v524_v27 = vld [vmem:[%s708_s1 + $0x88] sm:$0xff]   ;;  %v528_v31 = vld [vmem:[%s708_s1 + $0x80] sm:$0xff]   ;;  %v21_v42 = vld [vmem:[%s709_s0 + $0x30] sm:$0xff] }
   0xd   :  { %474 = vmatpush3.bf16.msra.mxu1 %v508_v11  ;;  %447 = vmatprep.subr.bf16.mxu0 %v509_v12  ;;  %v16_v32 = vld [vmem:[%s709_s0 + $0x8] sm:$0xff]  ;;  %v15_v37 = vld [vmem:[%s709_s0] sm:$0xff]  ;;  %v33_v44 = vpack.c.bf16 %v21_v42, %v17_v41  ;;  %v26_v46 = vld [vmem:[%s709_s0 + $0x58] sm:$0xff] }
   0xe   :  { %475 = vmatprep.subr.bf16.mxu1 %v510_v13  ;;  %v20_v33 = vld [vmem:[%s709_s0 + $0x28] sm:$0xff]  ;;  %v19_v38 = vld [vmem:[%s709_s0 + $0x20] sm:$0xff]  ;;  %v30_v47 = vld [vmem:[%s709_s0 + $0x78] sm:$0xff]  ;;  %383 = vmatprep.mubr.bf16.mxu1 %v34_v39 }
   0xf   :  { %v32_v35 = vpack.c.bf16 %v20_v33, %v16_v32  ;;  %v31_v40 = vpack.c.bf16 %v19_v38, %v15_v37  ;;  %v24_v43 = vld [vmem:[%s709_s0 + $0x48] sm:$0xff]  ;;  %v38_v49 = vpack.c.bf16 %v30_v47, %v26_v46  ;;  %v23_v50 = vld [vmem:[%s709_s0 + $0x40] sm:$0xff]  ;;  %v25_v52 = vld [vmem:[%s709_s0 + $0x50] sm:$0xff] }
  0x10   :  { %448 = vmatpush3.bf16.msra.mxu0 %v511_v14  ;;  %v28_v45 = vld [vmem:[%s709_s0 + $0x68] sm:$0xff]  ;;  %v27_v51 = vld [vmem:[%s709_s0 + $0x60] sm:$0xff]  ;;  %v29_v53 = vld [vmem:[%s709_s0 + $0x70] sm:$0xff] }
  0x11   :  { %476 = vmatpush3.bf16.msra.mxu1 %v512_v15  ;;  %449 = vmatprep.subr.bf16.mxu0 %v513_v16  ;;  %v36_v48 = vpack.c.bf16 %v28_v45, %v24_v43  ;;  %v35_v54 = vpack.c.bf16 %v27_v51, %v23_v50  ;;  %v37_v55 = vpack.c.bf16 %v29_v53, %v25_v52  ;;  %v408_v58 = vld [vmem:[%s710_s2] ss:$0 sm:$0xff] }
  0x12   :  { %477 = vmatprep.subr.bf16.mxu1 %v514_v17  ;;  %334 = vmatprep.mubr.bf16.mxu0 %v32_v35 }
  0x14   :  { %450 = vmatpush3.bf16.msra.mxu0 %v515_v18 }
  0x15   :  { %478 = vmatpush3.bf16.msra.mxu1 %v516_v19  ;;  %451 = vmatprep.subr.bf16.mxu0 %v517_v20 }
  0x16   :  { %479 = vmatprep.subr.bf16.mxu1 %v518_v21 }
  0x18   :  { %452 = vmatpush3.bf16.msra.mxu0 %v519_v22 }
  0x19   :  { %480 = vmatpush3.bf16.msra.mxu1 %v520_v23  ;;  %453 = vmatprep.subr.bf16.mxu0 %v521_v24 }
  0x1a   :  { %481 = vmatprep.subr.bf16.mxu1 %v522_v25 }
  0x1c   :  { %454 = vmatpush3.bf16.msra.mxu0 %v523_v26 }
  0x1d   :  { %482 = vmatpush3.bf16.msra.mxu1 %v524_v27  ;;  %455 = vmatprep.subr.bf16.mxu0 %v525_v28 }
  0x1e   :  { %483 = vmatprep.subr.bf16.mxu1 %v526_v29 }
  0x20   :  { %456 = vmatpush3.bf16.msra.mxu0 %v527_v30 }
  0x21   :  { %484 = vmatpush3.bf16.msra.mxu1 %v528_v31 }
  0x23   :  { %335 = vmatmul.mubr.bf16.vlgmr.msra.gmra.mxu0 %v31_v40 }
  0x24   :  { %384 = vmatmul.mubr.bf16.vlgmr.msra.gmra.mxu1 %v33_v44  ;;  %342 = vmatprep.mubr.bf16.mxu0 %v36_v48 }
  0x25   :  { %391 = vmatprep.mubr.bf16.mxu1 %v38_v49 }
  0x2b   :  { %343 = vmatmul.mubr.bf16.gmra.mxu0 %v35_v54 }
  0x2c   :  { %392 = vmatmul.mubr.bf16.gmra.mxu1 %v37_v55 }
  0xe3   :  { %v457_v56 = vpop.f32.mrf.mxu0 }
  0xe4   :  { %v485_v57 = vpop.f32.mrf.mxu1 }
  0xe5   :  { %v458_v59 = vpop.f32.mrf.mxu0 }
  0xe6   :  { %v459_v60 = vadd.f32 %v458_v59, %v457_v56  ;;  %v486_v61 = vpop.f32.mrf.mxu1 }
  0xe7   :  { %v460_v62 = vpop.f32.mrf.mxu0  ;;  %v487_v0 = vadd.f32 %v486_v61, %v485_v57 }
  0xe8   :  { %v337_v63 = vadd.f32 %v459_v60, %v408_v58  ;;  %v488_v1 = vpop.f32.mrf.mxu1 }
  0xe9   :  { %v461_v2 = vpop.f32.mrf.mxu0 }
  0xea   :  { %v386_v3 = vadd.f32 %v487_v0, %v337_v63  ;;  %v462_v4 = vadd.f32 %v461_v2, %v460_v62  ;;  %v489_v5 = vpop.f32.mrf.mxu1 }
  0xeb   :  { %v463_v6 = vpop.f32.mrf.mxu0  ;;  %v490_v8 = vadd.f32 %v489_v5, %v488_v1 }
  0xec   :  { %400 = vst [vmem:[%s711_s3] sm:$0xff] %v386_v3  ;;  %v340_v7 = vadd.f32 %v462_v4, %v408_v58  ;;  %v491_v9 = vpop.f32.mrf.mxu1 }
  0xed   :  { %v464_v10 = vpop.f32.mrf.mxu0 }
  0xee   :  { %v389_v11 = vadd.f32 %v490_v8, %v340_v7  ;;  %v465_v12 = vadd.f32 %v464_v10, %v463_v6  ;;  %v492_v13 = vpop.f32.mrf.mxu1 }
  0xef   :  { %v466_v14 = vpop.f32.mrf.mxu0  ;;  %v493_v16 = vadd.f32 %v492_v13, %v491_v9 }
  0xf0   :  { %401 = vst [vmem:[%s711_s3 + $0x8] sm:$0xff] %v389_v11  ;;  %v345_v15 = vadd.f32 %v465_v12, %v408_v58  ;;  %v494_v17 = vpop.f32.mrf.mxu1 }
  0xf1   :  { %v467_v18 = vpop.f32.mrf.mxu0 }
  0xf2   :  { %v394_v19 = vadd.f32 %v493_v16, %v345_v15  ;;  %v468_v20 = vadd.f32 %v467_v18, %v466_v14  ;;  %v495_v21 = vpop.f32.mrf.mxu1 }
  0xf3   :  { %v496_v23 = vadd.f32 %v495_v21, %v494_v17 }
  0xf4   :  { %402 = vst [vmem:[%s711_s3 + $0x10] sm:$0xff] %v394_v19  ;;  %v348_v22 = vadd.f32 %v468_v20, %v408_v58 }
  0xf6   :  { %v397_v24 = vadd.f32 %v496_v23, %v348_v22 }
  0xf8   :  { %403 = vst [vmem:[%s711_s3 + $0x18] sm:$0xff] %v397_v24 }

// kernel: speech_model_forward.12
= control target key start
LH: loop header
LB: loop body
LE: loop exit
PB: predicated region body
PF: predicated region fallthrough
CT: control target
= control target key end

     0   :  { %s1830_s9 = smov 0   ;;  %s1832_s10 = smov 0   ;;  %s2162_s0 = inlined_call_operand.vmem [shape: f32[16,2,2048], index: 0, kind: input, shape index: {}]   ;;  %s2163_s1 = inlined_call_operand.vmem [shape: bf16[2,256,1024], index: 1, kind: input, shape index: {}]   ;;  %s2164_s2 = inlined_call_operand.vmem [shape: f32[16,2,512], index: 2, kind: output, shape index: {}]  }
   0x1   :  { %s1834_s11 = smov 0   ;;  %s1836_s12 = smov 0  }
   0x2   :  { %s1838_s13 = smov 0  }
   0x3 LB: > { %s24_s14 = sadd.s32 1, %s1803_s12  ;;  %s1549_s15 = sadd.s32 4294967295, %s1807_s13   ;;  %s1807_s13 = sphi %s1838_s13, %s12_s13   ;;  %s1803_s12 = sphi %s1836_s12, %s2169_s12   ;;  %s1799_s11 = sphi %s1834_s11, %s2168_s11   ;;  %s1795_s10 = sphi %s1832_s10, %s2167_s10   ;;  %s1791_s9 = sphi %s1830_s9, %s2166_s9  }
   0x4   : > { %p26_p0 = scmp.ge.s32.totalorder %s24_s14, 2  ;;  %p48_p1 = scmp.ne.s32.totalorder %s1795_s10, %s1791_s9 }
   0x5   : > { %p49_p2 = scmp.eq.s32.totalorder %s1807_s13, 0  ;;  %p114_p4 = scmp.eq.s32.totalorder %s1549_s15, 1 }
   0x6   : > { %s2171_s14 = smov (%p26_p0, %s24_s14), 0  ;;  %s41_s17 = sadd.s32 1, %s1795_s10 }
   0x7   : > { %p50_p3 = por %p49_p2, %p48_p1  ;;  %s37_s16 = ssub.s32 %s1803_s12, %s2171_s14 }
   0x8   : > { %p39_p5 = scmp.eq.s32.totalorder %s37_s16, 0  ;;  %p1865_p6 = por %p114_p4, %p48_p1 }
   0x9   : > { %p1552_p7 = scmp.ge.s32.totalorder %s1807_s13, 2 }
   0xa   : > { %s1870_s19 = scalar_select %p39_p5, %s1795_s10, %s41_s17  }
   0xb   : > { %136 = sbr.rel (%p1552_p7) target bundleno = 36 (0x24), region = 16 }
  0x10   : > { %139 = sbr.rel (!%p50_p3) target bundleno = 36 (0x24), region = 20  ;;  %s141_s20 = sand.u32 (%p50_p3), 1, %s1795_s10  }
  0x11   : > { %s1700_s21 = sshll.u32 (%p50_p3), %s1803_s12, 4  ;;  %s1553_s22 = sshll.u32 (%p50_p3), %s141_s20, 8 }
  0x12   : > { %s1878_s25 = scalar_lea.vmem (%p50_p3), %s2162_s0, %s1700_s21  ;;  %s1883_s26 = scalar_lea.vmem (%p50_p3), [#allocation4], %s1553_s22 }
  0x13   : > { %v166_v0 = vld [vmem:[%s1878_s25] sm:$0xff] (%p50_p3)  ;;  %v168_v1 = vld [vmem:[%s1878_s25 + $0x8] sm:$0xff] (%p50_p3) }
  0x14   : > { %v170_v2 = vld [vmem:[%s1878_s25 + $0x20] sm:$0xff] (%p50_p3)  ;;  %167 = vst [vmem:[%s1883_s26] sm:$0xff] (%p50_p3), %v166_v0  ;;  %169 = vst [vmem:[%s1883_s26 + $0x8] sm:$0xff] (%p50_p3), %v168_v1  ;;  %v172_v3 = vld [vmem:[%s1878_s25 + $0x28] sm:$0xff] (%p50_p3) }
  0x15   : > { %171 = vst [vmem:[%s1883_s26 + $0x10] sm:$0xff] %v170_v2  ;;  %v174_v4 = vld [vmem:[%s1878_s25 + $0x40] sm:$0xff]  ;;  %v176_v5 = vld [vmem:[%s1878_s25 + $0x48] sm:$0xff]  ;;  %173 = vst [vmem:[%s1883_s26 + $0x18] sm:$0xff] %v172_v3 }
  0x16   : > { %175 = vst [vmem:[%s1883_s26 + $0x20] sm:$0xff] %v174_v4  ;;  %177 = vst [vmem:[%s1883_s26 + $0x28] sm:$0xff] %v176_v5  ;;  %v178_v6 = vld [vmem:[%s1878_s25 + $0x60] sm:$0xff]  ;;  %v180_v7 = vld [vmem:[%s1878_s25 + $0x68] sm:$0xff] }
  0x17   : > { %v182_v8 = vld [vmem:[%s1878_s25 + $0x80] sm:$0xff]  ;;  %179 = vst [vmem:[%s1883_s26 + $0x30] sm:$0xff] %v178_v6  ;;  %181 = vst [vmem:[%s1883_s26 + $0x38] sm:$0xff] %v180_v7  ;;  %v184_v9 = vld [vmem:[%s1878_s25 + $0x88] sm:$0xff] }
  0x18   : > { %183 = vst [vmem:[%s1883_s26 + $0x40] sm:$0xff] %v182_v8  ;;  %v186_v10 = vld [vmem:[%s1878_s25 + $0xa0] sm:$0xff]  ;;  %v188_v11 = vld [vmem:[%s1878_s25 + $0xa8] sm:$0xff]  ;;  %185 = vst [vmem:[%s1883_s26 + $0x48] sm:$0xff] %v184_v9 }
  0x19   : > { %187 = vst [vmem:[%s1883_s26 + $0x50] sm:$0xff] %v186_v10  ;;  %189 = vst [vmem:[%s1883_s26 + $0x58] sm:$0xff] %v188_v11  ;;  %v190_v12 = vld [vmem:[%s1878_s25 + $0xc0] sm:$0xff]  ;;  %v192_v13 = vld [vmem:[%s1878_s25 + $0xc8] sm:$0xff] }
  0x1a   : > { %v194_v14 = vld [vmem:[%s1878_s25 + $0xe0] sm:$0xff]  ;;  %191 = vst [vmem:[%s1883_s26 + $0x60] sm:$0xff] %v190_v12  ;;  %193 = vst [vmem:[%s1883_s26 + $0x68] sm:$0xff] %v192_v13  ;;  %v196_v15 = vld [vmem:[%s1878_s25 + $0xe8] sm:$0xff] }
  0x1b   : > { %195 = vst [vmem:[%s1883_s26 + $0x70] sm:$0xff] %v194_v14  ;;  %v198_v16 = vld [vmem:[%s1878_s25 + $0x100] sm:$0xff]  ;;  %v200_v17 = vld [vmem:[%s1878_s25 + $0x108] sm:$0xff]  ;;  %197 = vst [vmem:[%s1883_s26 + $0x78] sm:$0xff] %v196_v15 }
  0x1c   : > { %199 = vst [vmem:[%s1883_s26 + $0x80] sm:$0xff] %v198_v16  ;;  %201 = vst [vmem:[%s1883_s26 + $0x88] sm:$0xff] %v200_v17  ;;  %v202_v18 = vld [vmem:[%s1878_s25 + $0x120] sm:$0xff]  ;;  %v204_v19 = vld [vmem:[%s1878_s25 + $0x128] sm:$0xff] }
  0x1d   : > { %v206_v20 = vld [vmem:[%s1878_s25 + $0x140] sm:$0xff]  ;;  %203 = vst [vmem:[%s1883_s26 + $0x90] sm:$0xff] %v202_v18  ;;  %205 = vst [vmem:[%s1883_s26 + $0x98] sm:$0xff] %v204_v19  ;;  %v208_v21 = vld [vmem:[%s1878_s25 + $0x148] sm:$0xff] }
  0x1e   : > { %207 = vst [vmem:[%s1883_s26 + $0xa0] sm:$0xff] %v206_v20  ;;  %v210_v22 = vld [vmem:[%s1878_s25 + $0x160] sm:$0xff]  ;;  %v212_v23 = vld [vmem:[%s1878_s25 + $0x168] sm:$0xff]  ;;  %209 = vst [vmem:[%s1883_s26 + $0xa8] sm:$0xff] %v208_v21 }
  0x1f   : > { %211 = vst [vmem:[%s1883_s26 + $0xb0] sm:$0xff] %v210_v22  ;;  %213 = vst [vmem:[%s1883_s26 + $0xb8] sm:$0xff] %v212_v23  ;;  %v214_v24 = vld [vmem:[%s1878_s25 + $0x180] sm:$0xff]  ;;  %v216_v25 = vld [vmem:[%s1878_s25 + $0x188] sm:$0xff] }
  0x20   : > { %v218_v26 = vld [vmem:[%s1878_s25 + $0x1a0] sm:$0xff]  ;;  %215 = vst [vmem:[%s1883_s26 + $0xc0] sm:$0xff] %v214_v24  ;;  %217 = vst [vmem:[%s1883_s26 + $0xc8] sm:$0xff] %v216_v25  ;;  %v220_v27 = vld [vmem:[%s1878_s25 + $0x1a8] sm:$0xff] }
  0x21   : > { %219 = vst [vmem:[%s1883_s26 + $0xd0] sm:$0xff] %v218_v26  ;;  %v222_v28 = vld [vmem:[%s1878_s25 + $0x1c0] sm:$0xff]  ;;  %v224_v29 = vld [vmem:[%s1878_s25 + $0x1c8] sm:$0xff]  ;;  %221 = vst [vmem:[%s1883_s26 + $0xd8] sm:$0xff] %v220_v27 }
  0x22   : > { %223 = vst [vmem:[%s1883_s26 + $0xe0] sm:$0xff] %v222_v28  ;;  %225 = vst [vmem:[%s1883_s26 + $0xe8] sm:$0xff] %v224_v29  ;;  %v226_v30 = vld [vmem:[%s1878_s25 + $0x1e0] sm:$0xff]  ;;  %v228_v31 = vld [vmem:[%s1878_s25 + $0x1e8] sm:$0xff] }
  0x23   : > { %227 = vst [vmem:[%s1883_s26 + $0xf0] sm:$0xff] %v226_v30  ;;  %229 = vst [vmem:[%s1883_s26 + $0xf8] sm:$0xff] %v228_v31 }
  0x24 PF: > { %p1556_p8 = scmp.ge.s32.totalorder %s1807_s13, 1  ;;  %p242_p9 = scmp.lt.s32.totalorder %s1807_s13, 3 }
  0x26   : > { %p243_p10 = pnand %p1556_p8, %p242_p9 }
  0x27   : > { %s249_s27 = sand.u32 (!%p243_p10), 1, %s1791_s9   ;;  %p280_p11 = scmp.lt.s32.totalorder (!%p243_p10), %s1799_s11, 1 }
  0x28   : > { %246 = sbr.rel (%p243_p10) target bundleno = 436 (0x1b4), region = 47  ;;  %s1950_s28 = sshll.u32 (!%p243_p10), %s249_s27, 8 }
  0x29   : > { %s1558_s29 = sshll.u32 (!%p243_p10), %s249_s27, 6  ;;  %s251_s7 = scalar_lea.vmem (!%p243_p10), [#allocation4], %s1950_s28 }
  0x2a   : > { %s1959_s8 = scalar_lea.vmem (!%p243_p10), [#allocation5], %s1558_s29  ;;  %s1961_s15 = smov (!%p243_p10), 0  }
  0x2d   : > { %v1813_v32 = vmov 0.0   ;;  %s281_s30 = scalar_select %p280_p11, %s1799_s11, 1 }
  0x2e   : > { %295 = vst [vmem:[#allocation2] sm:$0xf] %v1813_v32  ;;  %296 = vst [vmem:[#allocation3] sm:$0xf] %v1813_v32 }
  0x2f   : > { %s1701_s3 = sshll.u32 %s281_s30, 10 }
  0x30   : > { %s1956_s6 = scalar_lea.vmem %s2163_s1, %s1701_s3 }
  0x31 LB: >> { %v382_v33 = vld [vmem:[%s1956_s6 + $0x1c0] sm:$0xff]  ;;  %v383_v35 = vld [vmem:[%s1956_s6 + $0x1c8] sm:$0xff]  ;;  %s1561_s9 = sshll.u32 %s1811_s15, 1  ;;  %s1811_s15 = sphi %s1961_s15, %s302_s15  }
  0x32   : >> { %v386_v34 = vld [vmem:[%s1956_s6 + $0x1e0] sm:$0xff]  ;;  %v387_v37 = vld [vmem:[%s1956_s6 + $0x1e8] sm:$0xff]  ;;  %s304_s16 = ssub.s32 15, %s1561_s9 }
  0x33   : >> { %v1622_v36 = vcombine.high %v382_v33, %v386_v34  ;;  %v1621_v38 = vcombine.low %v382_v33, %v386_v34  ;;  %v374_v39 = vld [vmem:[%s1956_s6 + $0x180] sm:$0xff]  ;;  %v1624_v41 = vcombine.high %v383_v35, %v387_v37  ;;  %v1623_v42 = vcombine.low %v383_v35, %v387_v37  ;;  %v375_v44 = vld [vmem:[%s1956_s6 + $0x188] sm:$0xff]  ;;  %s305_s17 = smul.u32 %s1799_s11, %s304_s16 }
  0x34   : >> { %v378_v40 = vld [vmem:[%s1956_s6 + $0x1a0] sm:$0xff]  ;;  %v379_v45 = vld [vmem:[%s1956_s6 + $0x1a8] sm:$0xff] }
  0x35   : >> { %v1614_v43 = vcombine.high %v374_v39, %v378_v40  ;;  %v366_v46 = vld [vmem:[%s1956_s6 + $0x140] sm:$0xff]  ;;  %1094 = vmatprep.subr.bf16.mxu0 %v1622_v36  ;;  %v1616_v47 = vcombine.high %v375_v44, %v379_v45  ;;  %v367_v49 = vld [vmem:[%s1956_s6 + $0x148] sm:$0xff]  ;;  %1135 = vmatprep.subr.bf16.mxu1 %v1624_v41  ;;  %v1613_v51 = vcombine.low %v374_v39, %v378_v40  ;;  %s2115_s20 = sadd.s32 %s1811_s15, %s305_s17  ;;  %s302_s15 = sadd.s32 1, %s1811_s15  }
  0x36   : >> { %v370_v48 = vld [vmem:[%s1956_s6 + $0x160] sm:$0xff]  ;;  %v371_v50 = vld [vmem:[%s1956_s6 + $0x168] sm:$0xff]  ;;  %1095 = vmatpush1.bf16.msra.mxu0 %v1621_v38  ;;  %1136 = vmatpush1.bf16.msra.mxu1 %v1623_v42  ;;  %v1615_v52 = vcombine.low %v375_v44, %v379_v45  ;;  %s1702_s21 = sshll.u32 %s2115_s20, 4  ;;  %s1703_s23 = sshll.u32 %s2115_s20, 2 }
  0x37   : >> { %1096 = vmatprep.subr.bf16.mxu0 %v1614_v43  ;;  %v1606_v53 = vcombine.high %v366_v46, %v370_v48  ;;  %1137 = vmatprep.subr.bf16.mxu1 %v1616_v47  ;;  %v1608_v54 = vcombine.high %v367_v49, %v371_v50  ;;  %v358_v55 = vld [vmem:[%s1956_s6 + $0x100] sm:$0xff]  ;;  %v359_v57 = vld [vmem:[%s1956_s6 + $0x108] sm:$0xff]  ;;  %v1605_v59 = vcombine.low %v366_v46, %v370_v48  ;;  %s309_s22 = scalar_lea.vmem %s251_s7, %s1702_s21 [#allocation4]  ;;  %s1333_s24 = scalar_lea.vmem %s1959_s8, %s1703_s23 [#allocation5] }
  0x38   : >> { %v362_v56 = vld [vmem:[%s1956_s6 + $0x120] sm:$0xff]  ;;  %v363_v58 = vld [vmem:[%s1956_s6 + $0x128] sm:$0xff]  ;;  %v1607_v60 = vcombine.low %v367_v49, %v371_v50  ;;  %p299_p12 = scmp.ge.s32.totalorder %s302_s15, 16  }
  0x39   : >> { %v1598_v61 = vcombine.high %v358_v55, %v362_v56  ;;  %v1600_v62 = vcombine.high %v359_v57, %v363_v58  ;;  %v350_v63 = vld [vmem:[%s1956_s6 + $0xc0] sm:$0xff]  ;;  %v351_v1 = vld [vmem:[%s1956_s6 + $0xc8] sm:$0xff]  ;;  %v1597_v3 = vcombine.low %v358_v55, %v362_v56  ;;  %v1599_v4 = vcombine.low %v359_v57, %v363_v58 }
  0x3a   : >> { %1097 = vmatpush1.bf16.msra.mxu0 %v1613_v51  ;;  %1138 = vmatpush1.bf16.msra.mxu1 %v1615_v52  ;;  %v354_v0 = vld [vmem:[%s1956_s6 + $0xe0] sm:$0xff]  ;;  %v355_v2 = vld [vmem:[%s1956_s6 + $0xe8] sm:$0xff] }
  0x3b   : >> { %1098 = vmatprep.subr.bf16.mxu0 %v1606_v53  ;;  %1139 = vmatprep.subr.bf16.mxu1 %v1608_v54  ;;  %v1590_v5 = vcombine.high %v350_v63, %v354_v0  ;;  %v1592_v6 = vcombine.high %v351_v1, %v355_v2  ;;  %v342_v7 = vld [vmem:[%s1956_s6 + $0x80] sm:$0xff]  ;;  %v343_v9 = vld [vmem:[%s1956_s6 + $0x88] sm:$0xff]  ;;  %v1589_v11 = vcombine.low %v350_v63, %v354_v0 }
  0x3c   : >> { %v346_v8 = vld [vmem:[%s1956_s6 + $0xa0] sm:$0xff]  ;;  %v347_v10 = vld [vmem:[%s1956_s6 + $0xa8] sm:$0xff]  ;;  %v1591_v12 = vcombine.low %v351_v1, %v355_v2 }
  0x3d   : >> { %v1582_v13 = vcombine.high %v342_v7, %v346_v8  ;;  %v1584_v14 = vcombine.high %v343_v9, %v347_v10  ;;  %v334_v15 = vld [vmem:[%s1956_s6 + $0x40] sm:$0xff]  ;;  %v335_v17 = vld [vmem:[%s1956_s6 + $0x48] sm:$0xff]  ;;  %v1581_v19 = vcombine.low %v342_v7, %v346_v8  ;;  %v1583_v20 = vcombine.low %v343_v9, %v347_v10 }
  0x3e   : >> { %1099 = vmatpush1.bf16.msra.mxu0 %v1605_v59  ;;  %1140 = vmatpush1.bf16.msra.mxu1 %v1607_v60  ;;  %v338_v16 = vld [vmem:[%s1956_s6 + $0x60] sm:$0xff]  ;;  %v339_v18 = vld [vmem:[%s1956_s6 + $0x68] sm:$0xff] }
  0x3f   : >> { %1100 = vmatprep.subr.bf16.mxu0 %v1598_v61  ;;  %1141 = vmatprep.subr.bf16.mxu1 %v1600_v62  ;;  %v1574_v21 = vcombine.high %v334_v15, %v338_v16  ;;  %v1994_v22 = vld.sshfl [vmem:[#allocation2] sm:$0x33 pattern:$0x76325410]  ;;  %v1576_v23 = vcombine.high %v335_v17, %v339_v18  ;;  %v327_v27 = vld [vmem:[%s1956_s6 + $0x8] sm:$0xff]  ;;  %v1573_v29 = vcombine.low %v334_v15, %v338_v16 }
  0x40   : >> { %v326_v24 = vld [vmem:[%s1956_s6] sm:$0xff]  ;;  %v321_v26 = vcombine.high %v1994_v22, %v1994_v22  ;;  %v331_v28 = vld [vmem:[%s1956_s6 + $0x28] sm:$0xff]  ;;  %v1575_v31 = vcombine.low %v335_v17, %v339_v18 }
  0x41   : >> { %v330_v25 = vld [vmem:[%s1956_s6 + $0x20] sm:$0xff]  ;;  %v1568_v33 = vcombine.high %v327_v27, %v331_v28  ;;  %v447_v36 = vld [vmem:[%s1956_s6 + $0x3c8] sm:$0xff]  ;;  %v1567_v39 = vcombine.low %v327_v27, %v331_v28 }
  0x42   : >> { %1101 = vmatpush1.bf16.msra.mxu0 %v1597_v3  ;;  %1142 = vmatpush1.bf16.msra.mxu1 %v1599_v4  ;;  %v2002_v30 = vpack.c.bf16 %v321_v26, %v321_v26  ;;  %v1566_v32 = vcombine.high %v326_v24, %v330_v25  ;;  %v446_v34 = vld [vmem:[%s1956_s6 + $0x3c0] sm:$0xff]  ;;  %v451_v37 = vld [vmem:[%s1956_s6 + $0x3e8] sm:$0xff]  ;;  %v1565_v38 = vcombine.low %v326_v24, %v330_v25 }
  0x43   : >> { %1102 = vmatprep.subr.bf16.mxu0 %v1590_v5  ;;  %1143 = vmatprep.subr.bf16.mxu1 %v1592_v6  ;;  %v450_v35 = vld [vmem:[%s1956_s6 + $0x3e0] sm:$0xff]  ;;  %v1688_v41 = vcombine.high %v447_v36, %v451_v37  ;;  %v439_v44 = vld [vmem:[%s1956_s6 + $0x388] sm:$0xff]  ;;  %v1687_v47 = vcombine.low %v447_v36, %v451_v37  ;;  %v384_v36 = vld [vmem:[%s1956_s6 + $0x1d0] sm:$0xff] }
  0x44   : >> { %1126 = vmatprep.mubr.bf16.mxu0 %v2002_v30  ;;  %1167 = vmatprep.mubr.bf16.mxu1 %v2002_v30  ;;  %v1686_v40 = vcombine.high %v446_v34, %v450_v35  ;;  %v438_v42 = vld [vmem:[%s1956_s6 + $0x380] sm:$0xff]  ;;  %v443_v45 = vld [vmem:[%s1956_s6 + $0x3a8] sm:$0xff]  ;;  %v1685_v46 = vcombine.low %v446_v34, %v450_v35  ;;  %v388_v37 = vld [vmem:[%s1956_s6 + $0x1f0] sm:$0xff] }
  0x45   : >> { %v442_v43 = vld [vmem:[%s1956_s6 + $0x3a0] sm:$0xff]  ;;  %v1680_v49 = vcombine.high %v439_v44, %v443_v45  ;;  %v431_v52 = vld [vmem:[%s1956_s6 + $0x348] sm:$0xff]  ;;  %v1679_v55 = vcombine.low %v439_v44, %v443_v45  ;;  %v376_v44 = vld [vmem:[%s1956_s6 + $0x190] sm:$0xff] }
  0x46   : >> { %1103 = vmatpush1.bf16.msra.mxu0 %v1589_v11  ;;  %1144 = vmatpush1.bf16.msra.mxu1 %v1591_v12  ;;  %v1678_v48 = vcombine.high %v438_v42, %v442_v43  ;;  %v430_v50 = vld [vmem:[%s1956_s6 + $0x340] sm:$0xff]  ;;  %v435_v53 = vld [vmem:[%s1956_s6 + $0x368] sm:$0xff]  ;;  %v1677_v54 = vcombine.low %v438_v42, %v442_v43  ;;  %v1626_v42 = vcombine.high %v384_v36, %v388_v37  ;;  %v380_v45 = vld [vmem:[%s1956_s6 + $0x1b0] sm:$0xff] }
  0x47   : >> { %1104 = vmatprep.subr.bf16.mxu0 %v1582_v13  ;;  %1145 = vmatprep.subr.bf16.mxu1 %v1584_v14  ;;  %v434_v51 = vld [vmem:[%s1956_s6 + $0x360] sm:$0xff]  ;;  %v1672_v57 = vcombine.high %v431_v52, %v435_v53  ;;  %v423_v60 = vld [vmem:[%s1956_s6 + $0x308] sm:$0xff]  ;;  %v1671_v63 = vcombine.low %v431_v52, %v435_v53  ;;  %v368_v53 = vld [vmem:[%s1956_s6 + $0x150] sm:$0xff] }
  0x48   : >> { %v1670_v56 = vcombine.high %v430_v50, %v434_v51  ;;  %v422_v58 = vld [vmem:[%s1956_s6 + $0x300] sm:$0xff]  ;;  %v427_v61 = vld [vmem:[%s1956_s6 + $0x328] sm:$0xff]  ;;  %v1669_v62 = vcombine.low %v430_v50, %v434_v51  ;;  %v1618_v51 = vcombine.high %v376_v44, %v380_v45 }
  0x49   : >> { %v426_v59 = vld [vmem:[%s1956_s6 + $0x320] sm:$0xff]  ;;  %v1664_v1 = vcombine.high %v423_v60, %v427_v61  ;;  %v415_v4 = vld [vmem:[%s1956_s6 + $0x2c8] sm:$0xff]  ;;  %v1663_v7 = vcombine.low %v423_v60, %v427_v61  ;;  %v360_v60 = vld [vmem:[%s1956_s6 + $0x110] sm:$0xff] }
  0x4a   : >> { %1105 = vmatpush1.bf16.msra.mxu0 %v1581_v19  ;;  %1146 = vmatpush1.bf16.msra.mxu1 %v1583_v20  ;;  %v1662_v0 = vcombine.high %v422_v58, %v426_v59  ;;  %v414_v2 = vld [vmem:[%s1956_s6 + $0x2c0] sm:$0xff]  ;;  %v419_v5 = vld [vmem:[%s1956_s6 + $0x2e8] sm:$0xff]  ;;  %v1661_v6 = vcombine.low %v422_v58, %v426_v59  ;;  %v364_v61 = vld [vmem:[%s1956_s6 + $0x130] sm:$0xff] }
  0x4b   : >> { %1106 = vmatprep.subr.bf16.mxu0 %v1574_v21  ;;  %1147 = vmatprep.subr.bf16.mxu1 %v1576_v23  ;;  %v418_v3 = vld [vmem:[%s1956_s6 + $0x2e0] sm:$0xff]  ;;  %v1656_v9 = vcombine.high %v415_v4, %v419_v5  ;;  %v407_v12 = vld [vmem:[%s1956_s6 + $0x288] sm:$0xff]  ;;  %v1655_v15 = vcombine.low %v415_v4, %v419_v5  ;;  %v352_v4 = vld [vmem:[%s1956_s6 + $0xd0] sm:$0xff] }
  0x4c   : >> { %v1654_v8 = vcombine.high %v414_v2, %v418_v3  ;;  %v406_v10 = vld [vmem:[%s1956_s6 + $0x280] sm:$0xff]  ;;  %v411_v13 = vld [vmem:[%s1956_s6 + $0x2a8] sm:$0xff]  ;;  %v1653_v14 = vcombine.low %v414_v2, %v418_v3  ;;  %v1602_v2 = vcombine.high %v360_v60, %v364_v61  ;;  %v356_v5 = vld [vmem:[%s1956_s6 + $0xf0] sm:$0xff] }
  0x4d   : >> { %v410_v11 = vld [vmem:[%s1956_s6 + $0x2a0] sm:$0xff]  ;;  %v1648_v17 = vcombine.high %v407_v12, %v411_v13  ;;  %v399_v20 = vld [vmem:[%s1956_s6 + $0x248] sm:$0xff]  ;;  %v1647_v24 = vcombine.low %v407_v12, %v411_v13  ;;  %v348_v12 = vld [vmem:[%s1956_s6 + $0xb0] sm:$0xff] }
  0x4e   : >> { %1107 = vmatpush1.bf16.msra.mxu0 %v1573_v29  ;;  %1148 = vmatpush1.bf16.msra.mxu1 %v1575_v31  ;;  %v1646_v16 = vcombine.high %v406_v10, %v410_v11  ;;  %v398_v18 = vld [vmem:[%s1956_s6 + $0x240] sm:$0xff]  ;;  %v403_v21 = vld [vmem:[%s1956_s6 + $0x268] sm:$0xff]  ;;  %v1645_v23 = vcombine.low %v406_v10, %v410_v11  ;;  %v344_v11 = vld [vmem:[%s1956_s6 + $0x90] sm:$0xff] }
  0x4f   : >> { %1108 = vmatprep.subr.bf16.mxu0 %v1566_v32  ;;  %1149 = vmatprep.subr.bf16.mxu1 %v1568_v33  ;;  %v402_v19 = vld [vmem:[%s1956_s6 + $0x260] sm:$0xff]  ;;  %v1640_v26 = vcombine.high %v399_v20, %v403_v21  ;;  %v391_v29 = vld [vmem:[%s1956_s6 + $0x208] sm:$0xff]  ;;  %v1639_v33 = vcombine.low %v399_v20, %v403_v21  ;;  %v345_v13 = vld [vmem:[%s1956_s6 + $0x98] sm:$0xff] }
  0x50   : >> { %v1638_v25 = vcombine.high %v398_v18, %v402_v19  ;;  %v390_v27 = vld [vmem:[%s1956_s6 + $0x200] sm:$0xff]  ;;  %v395_v31 = vld [vmem:[%s1956_s6 + $0x228] sm:$0xff]  ;;  %v1637_v32 = vcombine.low %v398_v18, %v402_v19  ;;  %v336_v19 = vld [vmem:[%s1956_s6 + $0x50] sm:$0xff] }
  0x51   : >> { %v394_v28 = vld [vmem:[%s1956_s6 + $0x220] sm:$0xff]  ;;  %v1632_v35 = vcombine.high %v391_v29, %v395_v31  ;;  %v340_v20 = vld [vmem:[%s1956_s6 + $0x70] sm:$0xff]  ;;  %v337_v21 = vld [vmem:[%s1956_s6 + $0x58] sm:$0xff] }
  0x52   : >> { %1109 = vmatpush1.bf16.msra.mxu0 %v1565_v38  ;;  %1150 = vmatpush1.bf16.msra.mxu1 %v1567_v39  ;;  %v1630_v34 = vcombine.high %v390_v27, %v394_v28  ;;  %v385_v38 = vld [vmem:[%s1956_s6 + $0x1d8] sm:$0xff] }
  0x53   : >> { %1110 = vmatprep.subr.bf16.mxu0 %v1686_v40  ;;  %1151 = vmatprep.subr.bf16.mxu1 %v1688_v41  ;;  %v389_v39 = vld [vmem:[%s1956_s6 + $0x1f8] sm:$0xff]  ;;  %v1629_v40 = vcombine.low %v390_v27, %v394_v28  ;;  %v1631_v41 = vcombine.low %v391_v29, %v395_v31  ;;  %v328_v28 = vld [vmem:[%s1956_s6 + $0x10] sm:$0xff] }
  0x54   : >> { %v1628_v43 = vcombine.high %v385_v38, %v389_v39  ;;  %v1627_v50 = vcombine.low %v385_v38, %v389_v39  ;;  %v332_v29 = vld [vmem:[%s1956_s6 + $0x30] sm:$0xff]  ;;  %v329_v31 = vld [vmem:[%s1956_s6 + $0x18] sm:$0xff] }
  0x55   : >> { %v452_v38 = vld [vmem:[%s1956_s6 + $0x3f0] sm:$0xff]  ;;  %v449_v39 = vld [vmem:[%s1956_s6 + $0x3d8] sm:$0xff] }
  0x56   : >> { %1111 = vmatpush2.bf16.msra.mxu0 %v1685_v46  ;;  %1152 = vmatpush2.bf16.msra.mxu1 %v1687_v47  ;;  %v2046_v46 = vpack.c.bf16 %v1994_v22, %v1994_v22  ;;  %v377_v47 = vld [vmem:[%s1956_s6 + $0x198] sm:$0xff] }
  0x57   : >> { %1112 = vmatprep.subr.bf16.mxu0 %v1678_v48  ;;  %1153 = vmatprep.subr.bf16.mxu1 %v1680_v49  ;;  %v381_v48 = vld [vmem:[%s1956_s6 + $0x1b8] sm:$0xff]  ;;  %v1625_v49 = vcombine.low %v384_v36, %v388_v37  ;;  %v448_v37 = vld [vmem:[%s1956_s6 + $0x3d0] sm:$0xff] }
  0x58   : >> { %v1620_v52 = vcombine.high %v377_v47, %v381_v48  ;;  %v369_v22 = vld [vmem:[%s1956_s6 + $0x158] sm:$0xff] }
  0x5a   : >> { %1113 = vmatpush2.bf16.msra.mxu0 %v1677_v54  ;;  %1154 = vmatpush2.bf16.msra.mxu1 %v1679_v55  ;;  %v372_v54 = vld [vmem:[%s1956_s6 + $0x170] sm:$0xff]  ;;  %v373_v55 = vld [vmem:[%s1956_s6 + $0x178] sm:$0xff] }
  0x5b   : >> { %1114 = vmatprep.subr.bf16.mxu0 %v1670_v56  ;;  %1155 = vmatprep.subr.bf16.mxu1 %v1672_v57  ;;  %v1617_v56 = vcombine.low %v376_v44, %v380_v45  ;;  %v1619_v57 = vcombine.low %v377_v47, %v381_v48  ;;  %v1610_v58 = vcombine.high %v368_v53, %v372_v54  ;;  %v440_v45 = vld [vmem:[%s1956_s6 + $0x390] sm:$0xff]  ;;  %v441_v48 = vld [vmem:[%s1956_s6 + $0x398] sm:$0xff] }
  0x5c   : >> { %v1612_v59 = vcombine.high %v369_v22, %v373_v55  ;;  %v444_v47 = vld [vmem:[%s1956_s6 + $0x3b0] sm:$0xff] }
  0x5e   : >> { %1115 = vmatpush2.bf16.msra.mxu0 %v1669_v62  ;;  %1156 = vmatpush2.bf16.msra.mxu1 %v1671_v63  ;;  %v361_v62 = vld [vmem:[%s1956_s6 + $0x118] sm:$0xff] }
  0x5f   : >> { %1116 = vmatprep.subr.bf16.mxu0 %v1662_v0  ;;  %1157 = vmatprep.subr.bf16.mxu1 %v1664_v1  ;;  %v365_v63 = vld [vmem:[%s1956_s6 + $0x138] sm:$0xff]  ;;  %v1609_v0 = vcombine.low %v368_v53, %v372_v54  ;;  %v1611_v1 = vcombine.low %v369_v22, %v373_v55  ;;  %v432_v54 = vld [vmem:[%s1956_s6 + $0x350] sm:$0xff] }
  0x60   : >> { %v1604_v3 = vcombine.high %v361_v62, %v365_v63  ;;  %v436_v22 = vld [vmem:[%s1956_s6 + $0x370] sm:$0xff]  ;;  %v433_v55 = vld [vmem:[%s1956_s6 + $0x358] sm:$0xff] }
  0x62   : >> { %1117 = vmatpush2.bf16.msra.mxu0 %v1661_v6  ;;  %1158 = vmatpush2.bf16.msra.mxu1 %v1663_v7  ;;  %v353_v6 = vld [vmem:[%s1956_s6 + $0xd8] sm:$0xff] }
  0x63   : >> { %1118 = vmatprep.subr.bf16.mxu0 %v1654_v8  ;;  %1159 = vmatprep.subr.bf16.mxu1 %v1656_v9  ;;  %v357_v7 = vld [vmem:[%s1956_s6 + $0xf8] sm:$0xff]  ;;  %v1601_v8 = vcombine.low %v360_v60, %v364_v61  ;;  %v1594_v9 = vcombine.high %v352_v4, %v356_v5  ;;  %v424_v61 = vld [vmem:[%s1956_s6 + $0x310] sm:$0xff] }
  0x64   : >> { %v1596_v10 = vcombine.high %v353_v6, %v357_v7 }
  0x66   : >> { %1119 = vmatpush2.bf16.msra.mxu0 %v1653_v14  ;;  %1160 = vmatpush2.bf16.msra.mxu1 %v1655_v15  ;;  %v349_v14 = vld [vmem:[%s1956_s6 + $0xb8] sm:$0xff]  ;;  %v1593_v15 = vcombine.low %v352_v4, %v356_v5  ;;  %v416_v5 = vld [vmem:[%s1956_s6 + $0x2d0] sm:$0xff] }
  0x67   : >> { %1120 = vmatprep.subr.bf16.mxu0 %v1646_v16  ;;  %1161 = vmatprep.subr.bf16.mxu1 %v1648_v17  ;;  %v1595_v16 = vcombine.low %v353_v6, %v357_v7  ;;  %v1586_v17 = vcombine.high %v344_v11, %v348_v12  ;;  %v1588_v18 = vcombine.high %v345_v13, %v349_v14  ;;  %v420_v6 = vld [vmem:[%s1956_s6 + $0x2f0] sm:$0xff]  ;;  %v417_v7 = vld [vmem:[%s1956_s6 + $0x2d8] sm:$0xff] }
  0x6a   : >> { %1121 = vmatpush2.bf16.msra.mxu0 %v1645_v23  ;;  %1162 = vmatpush2.bf16.msra.mxu1 %v1647_v24  ;;  %v341_v23 = vld [vmem:[%s1956_s6 + $0x78] sm:$0xff]  ;;  %v1585_v24 = vcombine.low %v344_v11, %v348_v12  ;;  %v408_v12 = vld [vmem:[%s1956_s6 + $0x290] sm:$0xff] }
  0x6b   : >> { %1122 = vmatprep.subr.bf16.mxu0 %v1638_v25  ;;  %1163 = vmatprep.subr.bf16.mxu1 %v1640_v26  ;;  %v1587_v25 = vcombine.low %v345_v13, %v349_v14  ;;  %v1578_v26 = vcombine.high %v336_v19, %v340_v20  ;;  %v1580_v27 = vcombine.high %v337_v21, %v341_v23  ;;  %v412_v13 = vld [vmem:[%s1956_s6 + $0x2b0] sm:$0xff]  ;;  %v409_v14 = vld [vmem:[%s1956_s6 + $0x298] sm:$0xff] }
  0x6e   : >> { %1123 = vmatpush2.bf16.msra.mxu0 %v1637_v32  ;;  %1164 = vmatpush2.bf16.msra.mxu1 %v1639_v33  ;;  %v333_v32 = vld [vmem:[%s1956_s6 + $0x38] sm:$0xff]  ;;  %v1577_v33 = vcombine.low %v336_v19, %v340_v20  ;;  %v400_v20 = vld [vmem:[%s1956_s6 + $0x250] sm:$0xff] }
  0x6f   : >> { %1124 = vmatprep.subr.bf16.mxu0 %v1630_v34  ;;  %1165 = vmatprep.subr.bf16.mxu1 %v1632_v35  ;;  %v1579_v34 = vcombine.low %v337_v21, %v341_v23  ;;  %v1570_v35 = vcombine.high %v328_v28, %v332_v29  ;;  %v1572_v36 = vcombine.high %v329_v31, %v333_v32  ;;  %v404_v21 = vld [vmem:[%s1956_s6 + $0x270] sm:$0xff]  ;;  %v401_v23 = vld [vmem:[%s1956_s6 + $0x258] sm:$0xff] }
  0x72   : >> { %1125 = vmatpush2.bf16.msra.mxu0 %v1629_v40  ;;  %1166 = vmatpush2.bf16.msra.mxu1 %v1631_v41  ;;  %v453_v40 = vld [vmem:[%s1956_s6 + $0x3f8] sm:$0xff]  ;;  %v1569_v41 = vcombine.low %v328_v28, %v332_v29  ;;  %v392_v29 = vld [vmem:[%s1956_s6 + $0x210] sm:$0xff] }
  0x73   : >> { %1176 = vmatprep.subr.bf16.mxu0 %v1626_v42  ;;  %1217 = vmatprep.subr.bf16.mxu1 %v1628_v43  ;;  %v1571_v42 = vcombine.low %v329_v31, %v333_v32  ;;  %v1690_v43 = vcombine.high %v448_v37, %v452_v38  ;;  %v1692_v44 = vcombine.high %v449_v39, %v453_v40  ;;  %v396_v31 = vld [vmem:[%s1956_s6 + $0x230] sm:$0xff]  ;;  %v393_v32 = vld [vmem:[%s1956_s6 + $0x218] sm:$0xff] }
  0x75   : >> { %1127 = vmatmul.mubr.bf16.vlgmr.msra.gmra.mxu0 %v2046_v46  ;;  %1168 = vmatmul.mubr.bf16.vlgmr.msra.gmra.mxu1 %v2046_v46 }
  0x76   : >> { %1177 = vmatpush1.bf16.msra.mxu0 %v1625_v49  ;;  %1218 = vmatpush1.bf16.msra.mxu1 %v1627_v50  ;;  %v445_v49 = vld [vmem:[%s1956_s6 + $0x3b8] sm:$0xff]  ;;  %v1689_v50 = vcombine.low %v448_v37, %v452_v38  ;;  %v1633_v38 = vcombine.low %v392_v29, %v396_v31 }
  0x77   : >> { %1178 = vmatprep.subr.bf16.mxu0 %v1618_v51  ;;  %1219 = vmatprep.subr.bf16.mxu1 %v1620_v52  ;;  %v1691_v51 = vcombine.low %v449_v39, %v453_v40  ;;  %v1682_v52 = vcombine.high %v440_v45, %v444_v47  ;;  %v1684_v53 = vcombine.high %v441_v48, %v445_v49 }
  0x78   : >> { %1208 = vmatprep.mubr.bf16.mxu0 %v2002_v30  ;;  %1249 = vmatprep.mubr.bf16.mxu1 %v2002_v30  ;;  %v1603_v30 = vcombine.low %v361_v62, %v365_v63  ;;  %v428_v62 = vld [vmem:[%s1956_s6 + $0x330] sm:$0xff]  ;;  %v425_v63 = vld [vmem:[%s1956_s6 + $0x318] sm:$0xff] }
  0x7a   : >> { %1179 = vmatpush1.bf16.msra.mxu0 %v1617_v56  ;;  %1220 = vmatpush1.bf16.msra.mxu1 %v1619_v57  ;;  %v437_v56 = vld [vmem:[%s1956_s6 + $0x378] sm:$0xff]  ;;  %v1681_v57 = vcombine.low %v440_v45, %v444_v47 }
  0x7b   : >> { %1180 = vmatprep.subr.bf16.mxu0 %v1610_v58  ;;  %1221 = vmatprep.subr.bf16.mxu1 %v1612_v59  ;;  %v1683_v58 = vcombine.low %v441_v48, %v445_v49  ;;  %v1674_v59 = vcombine.high %v432_v54, %v436_v22  ;;  %v1676_v60 = vcombine.high %v433_v55, %v437_v56  ;;  %v1814_v49 = vmov 1983009808  }
  0x7e   : >> { %1181 = vmatpush1.bf16.msra.mxu0 %v1609_v0  ;;  %1222 = vmatpush1.bf16.msra.mxu1 %v1611_v1  ;;  %v429_v0 = vld [vmem:[%s1956_s6 + $0x338] sm:$0xff]  ;;  %v1673_v1 = vcombine.low %v432_v54, %v436_v22 }
  0x7f   : >> { %1182 = vmatprep.subr.bf16.mxu0 %v1602_v2  ;;  %1223 = vmatprep.subr.bf16.mxu1 %v1604_v3  ;;  %v1675_v2 = vcombine.low %v433_v55, %v437_v56  ;;  %v1666_v3 = vcombine.high %v424_v61, %v428_v62  ;;  %v1668_v4 = vcombine.high %v425_v63, %v429_v0 }
  0x82   : >> { %1183 = vmatpush1.bf16.msra.mxu0 %v1601_v8  ;;  %1224 = vmatpush1.bf16.msra.mxu1 %v1603_v30  ;;  %v421_v8 = vld [vmem:[%s1956_s6 + $0x2f8] sm:$0xff]  ;;  %v1665_v30 = vcombine.low %v424_v61, %v428_v62 }
  0x83   : >> { %1184 = vmatprep.subr.bf16.mxu0 %v1594_v9  ;;  %1225 = vmatprep.subr.bf16.mxu1 %v1596_v10  ;;  %v1667_v9 = vcombine.low %v425_v63, %v429_v0  ;;  %v1658_v10 = vcombine.high %v416_v5, %v420_v6  ;;  %v1660_v11 = vcombine.high %v417_v7, %v421_v8 }
  0x86   : >> { %1185 = vmatpush1.bf16.msra.mxu0 %v1593_v15  ;;  %1226 = vmatpush1.bf16.msra.mxu1 %v1595_v16  ;;  %v413_v15 = vld [vmem:[%s1956_s6 + $0x2b8] sm:$0xff]  ;;  %v1657_v16 = vcombine.low %v416_v5, %v420_v6 }
  0x87   : >> { %1186 = vmatprep.subr.bf16.mxu0 %v1586_v17  ;;  %1227 = vmatprep.subr.bf16.mxu1 %v1588_v18  ;;  %v1659_v17 = vcombine.low %v417_v7, %v421_v8  ;;  %v1650_v18 = vcombine.high %v408_v12, %v412_v13  ;;  %v1652_v19 = vcombine.high %v409_v14, %v413_v15 }
  0x8a   : >> { %1187 = vmatpush1.bf16.msra.mxu0 %v1585_v24  ;;  %1228 = vmatpush1.bf16.msra.mxu1 %v1587_v25  ;;  %v405_v24 = vld [vmem:[%s1956_s6 + $0x278] sm:$0xff]  ;;  %v1649_v25 = vcombine.low %v408_v12, %v412_v13 }
  0x8b   : >> { %1188 = vmatprep.subr.bf16.mxu0 %v1578_v26  ;;  %1229 = vmatprep.subr.bf16.mxu1 %v1580_v27  ;;  %v1651_v26 = vcombine.low %v409_v14, %v413_v15  ;;  %v1642_v27 = vcombine.high %v400_v20, %v404_v21  ;;  %v1644_v28 = vcombine.high %v401_v23, %v405_v24 }
  0x8e   : >> { %1189 = vmatpush1.bf16.msra.mxu0 %v1577_v33  ;;  %1230 = vmatpush1.bf16.msra.mxu1 %v1579_v34  ;;  %v397_v33 = vld [vmem:[%s1956_s6 + $0x238] sm:$0xff]  ;;  %v1641_v34 = vcombine.low %v400_v20, %v404_v21  ;;  %v1323_v20 = vld [vmem:[#allocation3] sm:$0xf] }
  0x8f   : >> { %1190 = vmatprep.subr.bf16.mxu0 %v1570_v35  ;;  %1231 = vmatprep.subr.bf16.mxu1 %v1572_v36  ;;  %v1643_v35 = vcombine.low %v401_v23, %v405_v24  ;;  %v1634_v36 = vcombine.high %v392_v29, %v396_v31  ;;  %v1636_v37 = vcombine.high %v393_v32, %v397_v33 }
  0x90   : >> { %v1635_v39 = vcombine.low %v393_v32, %v397_v33 }
  0x92   : >> { %1191 = vmatpush1.bf16.msra.mxu0 %v1569_v41  ;;  %1232 = vmatpush1.bf16.msra.mxu1 %v1571_v42 }
  0x93   : >> { %1192 = vmatprep.subr.bf16.mxu0 %v1690_v43  ;;  %1233 = vmatprep.subr.bf16.mxu1 %v1692_v44 }
  0x96   : >> { %1193 = vmatpush2.bf16.msra.mxu0 %v1689_v50  ;;  %1234 = vmatpush2.bf16.msra.mxu1 %v1691_v51  ;;  %v1269_v50 = vunpack.c.l.s4 %v1814_v49  ;;  %v1271_v51 = vlaneseq }
  0x97   : >> { %1194 = vmatprep.subr.bf16.mxu0 %v1682_v52  ;;  %1235 = vmatprep.subr.bf16.mxu1 %v1684_v53 }
  0x98   : >> { %v1270_v52 = vunpack.c.0.s8 %v1269_v50  ;;  %v1272_v53 = vshrl.u32 %v1271_v51, 7 }
  0x9a   : >> { %1195 = vmatpush2.bf16.msra.mxu0 %v1681_v57  ;;  %1236 = vmatpush2.bf16.msra.mxu1 %v1683_v58  ;;  %v1273_v54 = vsub.s32 %v1270_v52, %v1272_v53  ;;  %v310_v58 = vld [vmem:[%s309_s22] sm:$0xff] }
  0x9b   : >> { %1196 = vmatprep.subr.bf16.mxu0 %v1674_v59  ;;  %1237 = vmatprep.subr.bf16.mxu1 %v1676_v60 }
  0x9e   : >> { %1197 = vmatpush2.bf16.msra.mxu0 %v1673_v1  ;;  %1238 = vmatpush2.bf16.msra.mxu1 %v1675_v2 }
  0x9f   : >> { %1198 = vmatprep.subr.bf16.mxu0 %v1666_v3  ;;  %1239 = vmatprep.subr.bf16.mxu1 %v1668_v4 }
  0xa2   : >> { %1199 = vmatpush2.bf16.msra.mxu0 %v1665_v30  ;;  %1240 = vmatpush2.bf16.msra.mxu1 %v1667_v9  ;;  %v311_v9 = vld [vmem:[%s309_s22 + $0x8] sm:$0xff] }
  0xa3   : >> { %1200 = vmatprep.subr.bf16.mxu0 %v1658_v10  ;;  %1241 = vmatprep.subr.bf16.mxu1 %v1660_v11 }
  0xa6   : >> { %1201 = vmatpush2.bf16.msra.mxu0 %v1657_v16  ;;  %1242 = vmatpush2.bf16.msra.mxu1 %v1659_v17 }
  0xa7   : >> { %1202 = vmatprep.subr.bf16.mxu0 %v1650_v18  ;;  %1243 = vmatprep.subr.bf16.mxu1 %v1652_v19 }
  0xaa   : >> { %1203 = vmatpush2.bf16.msra.mxu0 %v1649_v25  ;;  %1244 = vmatpush2.bf16.msra.mxu1 %v1651_v26 }
  0xab   : >> { %1204 = vmatprep.subr.bf16.mxu0 %v1642_v27  ;;  %1245 = vmatprep.subr.bf16.mxu1 %v1644_v28 }
  0xae   : >> { %1205 = vmatpush2.bf16.msra.mxu0 %v1641_v34  ;;  %1246 = vmatpush2.bf16.msra.mxu1 %v1643_v35 }
  0xaf   : >> { %1206 = vmatprep.subr.bf16.mxu0 %v1634_v36  ;;  %1247 = vmatprep.subr.bf16.mxu1 %v1636_v37 }
  0xb2   : >> { %1207 = vmatpush2.bf16.msra.mxu0 %v1633_v38  ;;  %1248 = vmatpush2.bf16.msra.mxu1 %v1635_v39 }
  0xb5   : >> { %1209 = vmatmul.mubr.bf16.vlgmr.msra.gmra.mxu0 %v2046_v46  ;;  %1250 = vmatmul.mubr.bf16.vlgmr.msra.gmra.mxu1 %v2046_v46 }
 0x135   : >> { %v1128_v40 = vpop.f32.mrf.mxu0  ;;  %v1169_v41 = vpop.f32.mrf.mxu1 }
 0x137   : >> { %v1130_v42 = vpop.f32.mrf.mxu0  ;;  %v1171_v43 = vpop.f32.mrf.mxu1 }
 0x138   : >> { %v1266_v46 = vcombine.low %v1128_v40, %v1130_v42  ;;  %v1267_v22 = vcombine.low %v1169_v41, %v1171_v43 }
 0x139   : >> { %v1132_v44 = vpop.f32.mrf.mxu0  ;;  %v1173_v45 = vpop.f32.mrf.mxu1 }
 0x13a   : >> { %v1274_v55 = vrot.slane %v1266_v46, %v1273_v54  ;;  %v1281_v56 = vrot.slane %v1267_v22, %v1273_v54 }
 0x13b   : >> { %v1133_v47 = vpop.f32.mrf.mxu0  ;;  %v1174_v48 = vpop.f32.mrf.mxu1 }
 0x13c   : >> { %v1282_v57 = vcombine.low %v1274_v55, %v1281_v56 }
 0x13e   : >> { %v1302_v59 = vadd.f32 %v1282_v57, %v310_v58 }
 0x140   : >> { %v1309_v60 = vrot.slane %v1302_v59, 4  ;;  %v1304_v62 = vmul.f32 0.5, %v1302_v59 }
 0x142   : >> { %v1311_v61 = vmul.f32 0.5, %v1309_v60 }
 0x144   : >> { %1755 = vtanh.f32 %v1311_v61 }
 0x145   : >> { %1757 = vtanh.f32 %v1304_v62 }
 0x151   : >> { %v1756_v14 = vpop.eup %1755 }
 0x152   : >> { %v1758_v15 = vpop.eup %1757  ;;  %v1313_v16 = vmul.f32 0.5, %v1756_v14 }
 0x153   : >> { %v1306_v18 = vmul.f32 0.5, %v1758_v15 }
 0x154   : >> { %v1314_v19 = vadd.f32 0.5, %v1313_v16 }
 0x155   : >> { %v1307_v21 = vadd.f32 0.5, %v1306_v18 }
 0x156   : >> { %v1324_v24 = vmul.f32 %v1323_v20, %v1314_v19 }
 0x175   : >> { %v1210_v63 = vpop.f32.mrf.mxu0  ;;  %v1251_v0 = vpop.f32.mrf.mxu1 }
 0x177   : >> { %v1212_v1 = vpop.f32.mrf.mxu0  ;;  %v1253_v3 = vpop.f32.mrf.mxu1 }
 0x178   : >> { %v1283_v2 = vcombine.low %v1210_v63, %v1212_v1  ;;  %v1284_v4 = vcombine.low %v1251_v0, %v1253_v3 }
 0x179   : >> { %v1214_v5 = vpop.f32.mrf.mxu0  ;;  %v1255_v7 = vpop.f32.mrf.mxu1 }
 0x17a   : >> { %v1291_v6 = vrot.slane %v1283_v2, %v1273_v54  ;;  %v1298_v8 = vrot.slane %v1284_v4, %v1273_v54 }
 0x17b   : >> { %v1215_v30 = vpop.f32.mrf.mxu0  ;;  %v1256_v10 = vpop.f32.mrf.mxu1 }
 0x17c   : >> { %v1299_v11 = vcombine.low %v1291_v6, %v1298_v8 }
 0x17e   : >> { %v1303_v12 = vadd.f32 %v1299_v11, %v311_v9 }
 0x180   : >> { %1759 = vtanh.f32 %v1303_v12  ;;  %v1317_v13 = vrot.slane %v1303_v12, 4 }
 0x182   : >> { %v1319_v17 = vmul.f32 0.5, %v1317_v13 }
 0x184   : >> { %1761 = vtanh.f32 %v1319_v17 }
 0x18d   : >> { %v1760_v23 = vpop.eup %1759 }
 0x18e   : >> { %v1325_v25 = vmul.f32 %v1760_v23, %v1307_v21 }
 0x190   : >> { %v1326_v26 = vadd.f32 %v1325_v25, %v1324_v24 }
 0x191   : >> { %v1762_v27 = vpop.eup %1761 }
 0x192   : >> { %1763 = vtanh.f32 %v1326_v26  ;;  %1329 = vst [vmem:[#allocation3] sm:$0xf] %v1326_v26  ;;  %v1321_v28 = vmul.f32 0.5, %v1762_v27 }
 0x194   : >> { %v1322_v29 = vadd.f32 0.5, %v1321_v28 }
 0x19e   : > { %301 = sbr.rel (!%p299_p12) target bundleno = 49 (0x31), region = 143 }
 0x19f   : >> { %v1764_v31 = vpop.eup %1763 }
 0x1a0   : >> { %v1328_v32 = vmul.f32 %v1764_v31, %v1322_v29 }
 0x1a2   : >> { %1330 = vst [vmem:[#allocation2] sm:$0xf] %v1328_v32  ;;  %1334 = vst [vmem:[%s1333_s24] sm:$0xf] %v1328_v32 }
 0x1a3   : > { %1341 = sbr.rel (!%p1865_p6) target bundleno = 436 (0x1b4), region = 66  ;;  %s1704_s25 = sshll.u32 (%p1865_p6), %s1799_s11, 2 }
 0x1a4   : > { %s1351_s29 = scalar_lea.vmem (%p1865_p6), %s2164_s2, %s1704_s25 }
 0x1a9   : > { %v1368_v33 = vld [vmem:[%s1959_s8] sm:$0xf]  ;;  %v1370_v34 = vld [vmem:[%s1959_s8 + $0x4] sm:$0xf]  ;;  %v1372_v35 = vld [vmem:[%s1959_s8 + $0x8] sm:$0xf] }
 0x1aa   : > { %v1374_v36 = vld [vmem:[%s1959_s8 + $0xc] sm:$0xf]  ;;  %v1376_v37 = vld [vmem:[%s1959_s8 + $0x10] sm:$0xf]  ;;  %1369 = vst [vmem:[%s1351_s29] sm:$0xf] %v1368_v33 }
 0x1ab   : > { %1371 = vst [vmem:[%s1351_s29 + $0x8] sm:$0xf] %v1370_v34  ;;  %1373 = vst [vmem:[%s1351_s29 + $0x10] sm:$0xf] %v1372_v35  ;;  %v1378_v38 = vld [vmem:[%s1959_s8 + $0x14] sm:$0xf] }
 0x1ac   : > { %1375 = vst [vmem:[%s1351_s29 + $0x18] sm:$0xf] %v1374_v36  ;;  %1377 = vst [vmem:[%s1351_s29 + $0x20] sm:$0xf] %v1376_v37  ;;  %v1380_v39 = vld [vmem:[%s1959_s8 + $0x18] sm:$0xf] }
 0x1ad   : > { %v1382_v40 = vld [vmem:[%s1959_s8 + $0x1c] sm:$0xf]  ;;  %1379 = vst [vmem:[%s1351_s29 + $0x28] sm:$0xf] %v1378_v38  ;;  %1381 = vst [vmem:[%s1351_s29 + $0x30] sm:$0xf] %v1380_v39 }
 0x1ae   : > { %1383 = vst [vmem:[%s1351_s29 + $0x38] sm:$0xf] %v1382_v40  ;;  %v1384_v41 = vld [vmem:[%s1959_s8 + $0x20] sm:$0xf]  ;;  %v1386_v42 = vld [vmem:[%s1959_s8 + $0x24] sm:$0xf] }
 0x1af   : > { %v1388_v43 = vld [vmem:[%s1959_s8 + $0x28] sm:$0xf]  ;;  %1385 = vst [vmem:[%s1351_s29 + $0x40] sm:$0xf] %v1384_v41  ;;  %1387 = vst [vmem:[%s1351_s29 + $0x48] sm:$0xf] %v1386_v42 }
 0x1b0   : > { %1389 = vst [vmem:[%s1351_s29 + $0x50] sm:$0xf] %v1388_v43  ;;  %v1390_v44 = vld [vmem:[%s1959_s8 + $0x2c] sm:$0xf]  ;;  %v1392_v45 = vld [vmem:[%s1959_s8 + $0x30] sm:$0xf] }
 0x1b1   : > { %v1394_v47 = vld [vmem:[%s1959_s8 + $0x34] sm:$0xf]  ;;  %1391 = vst [vmem:[%s1351_s29 + $0x58] sm:$0xf] %v1390_v44  ;;  %1393 = vst [vmem:[%s1351_s29 + $0x60] sm:$0xf] %v1392_v45 }
 0x1b2   : > { %1395 = vst [vmem:[%s1351_s29 + $0x68] sm:$0xf] %v1394_v47  ;;  %v1396_v48 = vld [vmem:[%s1959_s8 + $0x38] sm:$0xf]  ;;  %v1398_v49 = vld [vmem:[%s1959_s8 + $0x3c] sm:$0xf] }
 0x1b3   : > { %1397 = vst [vmem:[%s1351_s29 + $0x70] sm:$0xf] %v1396_v48  ;;  %1399 = vst [vmem:[%s1351_s29 + $0x78] sm:$0xf] %v1398_v49 }
 0x1b4 PF: > { %s12_s13 = sadd.s32 1, %s1807_s13   ;;  %s2166_s9 = smov %s1795_s10 }
 0x1b5   : > { %p9_p13 = scmp.ge.s32.totalorder %s12_s13, 4   ;;  %s2167_s10 = smov %s1870_s19 }
 0x1b6   : > { %s2168_s11 = smov %s1803_s12  ;;  %s2169_s12 = smov %s2171_s14 }
 0x1b7   :  { %11 = sbr.rel (!%p9_p13) target bundleno = 3 (0x3), region = 154 }

// kernel: speech_model_forward.11
= control target key start
LH: loop header
LB: loop body
LE: loop exit
PB: predicated region body
PF: predicated region fallthrough
CT: control target
= control target key end

     0   :  { %s6616_s1 = inlined_call_operand.vmem [shape: bf16[512,2048], index: 1, kind: input, shape index: {}]   ;;  %s6617_s0 = inlined_call_operand.vmem [shape: f32[32,512], index: 0, kind: input, shape index: {}]   ;;  %s6618_s2 = inlined_call_operand.vmem [shape: f32[1,2048], index: 2, kind: input, shape index: {}]   ;;  %s6619_s3 = inlined_call_operand.vmem [shape: f32[32,2048], index: 3, kind: output, shape index: {}]  }
   0x1   :  { %v150_v0 = vld [vmem:[%s6616_s1 + $0x380] sm:$0xff]  ;;  %v15_v54 = vld [vmem:[%s6617_s0 + $0x8] sm:$0xff]  ;;  %v17_v59 = vld [vmem:[%s6617_s0 + $0x18] sm:$0xff] }
   0x2   :  { %v158_v1 = vld [vmem:[%s6616_s1 + $0x3c0] sm:$0xff]  ;;  %v19_v55 = vld [vmem:[%s6617_s0 + $0x28] sm:$0xff]  ;;  %v21_v60 = vld [vmem:[%s6617_s0 + $0x38] sm:$0xff] }
   0x3   :  { %v406_v2 = vld [vmem:[%s6616_s1 + $0xb80] sm:$0xff]  ;;  %v4223_v3 = vcombine.high %v150_v0, %v158_v1  ;;  %v4222_v5 = vcombine.low %v150_v0, %v158_v1  ;;  %v4739_v58 = vpack.c.bf16 %v19_v55, %v15_v54  ;;  %v4753_v63 = vpack.c.bf16 %v21_v60, %v17_v59 }
   0x4   :  { %v414_v4 = vld [vmem:[%s6616_s1 + $0xbc0] sm:$0xff] }
   0x5   :  { %v134_v6 = vld [vmem:[%s6616_s1 + $0x300] sm:$0xff]  ;;  %v4479_v8 = vcombine.high %v406_v2, %v414_v4  ;;  %v4478_v9 = vcombine.low %v406_v2, %v414_v4  ;;  %3194 = vmatprep.subr.bf16.mxu0 %v4223_v3  ;;  %3226 = vmatprep.mubr.bf16.mxu0 %v4739_v58 }
   0x6   :  { %v142_v7 = vld [vmem:[%s6616_s1 + $0x340] sm:$0xff]  ;;  %3195 = vmatpush1.bf16.msra.mxu0 %v4222_v5  ;;  %3279 = vmatprep.mubr.bf16.mxu1 %v4753_v63 }
   0x7   :  { %v4207_v10 = vcombine.high %v134_v6, %v142_v7  ;;  %v390_v11 = vld [vmem:[%s6616_s1 + $0xb00] sm:$0xff]  ;;  %3247 = vmatprep.subr.bf16.mxu1 %v4479_v8  ;;  %v4206_v18 = vcombine.low %v134_v6, %v142_v7 }
   0x8   :  { %v398_v12 = vld [vmem:[%s6616_s1 + $0xb40] sm:$0xff]  ;;  %3248 = vmatpush1.bf16.msra.mxu1 %v4478_v9 }
   0x9   :  { %v118_v13 = vld [vmem:[%s6616_s1 + $0x280] sm:$0xff]  ;;  %v4463_v14 = vcombine.high %v390_v11, %v398_v12  ;;  %3196 = vmatprep.subr.bf16.mxu0 %v4207_v10  ;;  %v4462_v19 = vcombine.low %v390_v11, %v398_v12 }
   0xa   :  { %v126_v15 = vld [vmem:[%s6616_s1 + $0x2c0] sm:$0xff]  ;;  %3197 = vmatpush1.bf16.msra.mxu0 %v4206_v18 }
   0xb   :  { %v374_v16 = vld [vmem:[%s6616_s1 + $0xa80] sm:$0xff]  ;;  %v4191_v20 = vcombine.high %v118_v13, %v126_v15  ;;  %3249 = vmatprep.subr.bf16.mxu1 %v4463_v14  ;;  %v4190_v26 = vcombine.low %v118_v13, %v126_v15 }
   0xc   :  { %v382_v17 = vld [vmem:[%s6616_s1 + $0xac0] sm:$0xff]  ;;  %3250 = vmatpush1.bf16.msra.mxu1 %v4462_v19 }
   0xd   :  { %v4447_v21 = vcombine.high %v374_v16, %v382_v17  ;;  %v102_v22 = vld [vmem:[%s6616_s1 + $0x200] sm:$0xff]  ;;  %3198 = vmatprep.subr.bf16.mxu0 %v4191_v20  ;;  %v4446_v27 = vcombine.low %v374_v16, %v382_v17 }
   0xe   :  { %v110_v23 = vld [vmem:[%s6616_s1 + $0x240] sm:$0xff]  ;;  %3199 = vmatpush1.bf16.msra.mxu0 %v4190_v26 }
   0xf   :  { %v358_v24 = vld [vmem:[%s6616_s1 + $0xa00] sm:$0xff]  ;;  %v4175_v28 = vcombine.high %v102_v22, %v110_v23  ;;  %3251 = vmatprep.subr.bf16.mxu1 %v4447_v21  ;;  %v4174_v34 = vcombine.low %v102_v22, %v110_v23 }
  0x10   :  { %v366_v25 = vld [vmem:[%s6616_s1 + $0xa40] sm:$0xff]  ;;  %3252 = vmatpush1.bf16.msra.mxu1 %v4446_v27 }
  0x11   :  { %v4431_v29 = vcombine.high %v358_v24, %v366_v25  ;;  %v86_v30 = vld [vmem:[%s6616_s1 + $0x180] sm:$0xff]  ;;  %3200 = vmatprep.subr.bf16.mxu0 %v4175_v28  ;;  %v4430_v35 = vcombine.low %v358_v24, %v366_v25 }
  0x12   :  { %v94_v31 = vld [vmem:[%s6616_s1 + $0x1c0] sm:$0xff]  ;;  %3201 = vmatpush1.bf16.msra.mxu0 %v4174_v34 }
  0x13   :  { %v342_v32 = vld [vmem:[%s6616_s1 + $0x980] sm:$0xff]  ;;  %v4159_v36 = vcombine.high %v86_v30, %v94_v31  ;;  %3253 = vmatprep.subr.bf16.mxu1 %v4431_v29  ;;  %v4158_v42 = vcombine.low %v86_v30, %v94_v31 }
  0x14   :  { %v350_v33 = vld [vmem:[%s6616_s1 + $0x9c0] sm:$0xff]  ;;  %3254 = vmatpush1.bf16.msra.mxu1 %v4430_v35 }
  0x15   :  { %v4415_v37 = vcombine.high %v342_v32, %v350_v33  ;;  %v70_v38 = vld [vmem:[%s6616_s1 + $0x100] sm:$0xff]  ;;  %3202 = vmatprep.subr.bf16.mxu0 %v4159_v36  ;;  %v4414_v43 = vcombine.low %v342_v32, %v350_v33 }
  0x16   :  { %v78_v39 = vld [vmem:[%s6616_s1 + $0x140] sm:$0xff]  ;;  %3203 = vmatpush1.bf16.msra.mxu0 %v4158_v42 }
  0x17   :  { %v326_v40 = vld [vmem:[%s6616_s1 + $0x900] sm:$0xff]  ;;  %v4143_v44 = vcombine.high %v70_v38, %v78_v39  ;;  %3255 = vmatprep.subr.bf16.mxu1 %v4415_v37  ;;  %v4142_v50 = vcombine.low %v70_v38, %v78_v39 }
  0x18   :  { %v334_v41 = vld [vmem:[%s6616_s1 + $0x940] sm:$0xff]  ;;  %3256 = vmatpush1.bf16.msra.mxu1 %v4414_v43 }
  0x19   :  { %v4399_v45 = vcombine.high %v326_v40, %v334_v41  ;;  %v54_v46 = vld [vmem:[%s6616_s1 + $0x80] sm:$0xff]  ;;  %3204 = vmatprep.subr.bf16.mxu0 %v4143_v44  ;;  %v4398_v51 = vcombine.low %v326_v40, %v334_v41 }
  0x1a   :  { %v62_v47 = vld [vmem:[%s6616_s1 + $0xc0] sm:$0xff]  ;;  %3205 = vmatpush1.bf16.msra.mxu0 %v4142_v50 }
  0x1b   :  { %v310_v48 = vld [vmem:[%s6616_s1 + $0x880] sm:$0xff]  ;;  %v4127_v52 = vcombine.high %v54_v46, %v62_v47  ;;  %3257 = vmatprep.subr.bf16.mxu1 %v4399_v45  ;;  %v4126_v0 = vcombine.low %v54_v46, %v62_v47 }
  0x1c   :  { %v318_v49 = vld [vmem:[%s6616_s1 + $0x8c0] sm:$0xff]  ;;  %3258 = vmatpush1.bf16.msra.mxu1 %v4398_v51 }
  0x1d   :  { %v38_v53 = vld [vmem:[%s6616_s1] sm:$0xff]  ;;  %v4383_v56 = vcombine.high %v310_v48, %v318_v49  ;;  %3206 = vmatprep.subr.bf16.mxu0 %v4127_v52  ;;  %v4382_v1 = vcombine.low %v310_v48, %v318_v49 }
  0x1e   :  { %v46_v57 = vld [vmem:[%s6616_s1 + $0x40] sm:$0xff]  ;;  %3207 = vmatpush1.bf16.msra.mxu0 %v4126_v0 }
  0x1f   :  { %v294_v61 = vld [vmem:[%s6616_s1 + $0x800] sm:$0xff]  ;;  %v4111_v2 = vcombine.high %v38_v53, %v46_v57  ;;  %3259 = vmatprep.subr.bf16.mxu1 %v4383_v56  ;;  %v4110_v8 = vcombine.low %v38_v53, %v46_v57 }
  0x20   :  { %v302_v62 = vld [vmem:[%s6616_s1 + $0x840] sm:$0xff]  ;;  %3260 = vmatpush1.bf16.msra.mxu1 %v4382_v1 }
  0x21   :  { %v4367_v3 = vcombine.high %v294_v61, %v302_v62  ;;  %v278_v4 = vld [vmem:[%s6616_s1 + $0x780] sm:$0xff]  ;;  %3208 = vmatprep.subr.bf16.mxu0 %v4111_v2  ;;  %v4366_v9 = vcombine.low %v294_v61, %v302_v62 }
  0x22   :  { %v286_v5 = vld [vmem:[%s6616_s1 + $0x7c0] sm:$0xff]  ;;  %3209 = vmatpush1.bf16.msra.mxu0 %v4110_v8  ;;  %v407_v8 = vld [vmem:[%s6616_s1 + $0xb88] sm:$0xff] }
  0x23   :  { %v534_v6 = vld [vmem:[%s6616_s1 + $0xf80] sm:$0xff]  ;;  %v4351_v10 = vcombine.high %v278_v4, %v286_v5  ;;  %3261 = vmatprep.subr.bf16.mxu1 %v4367_v3  ;;  %v4350_v16 = vcombine.low %v278_v4, %v286_v5 }
  0x24   :  { %v542_v7 = vld [vmem:[%s6616_s1 + $0xfc0] sm:$0xff]  ;;  %3262 = vmatpush1.bf16.msra.mxu1 %v4366_v9  ;;  %v415_v9 = vld [vmem:[%s6616_s1 + $0xbc8] sm:$0xff] }
  0x25   :  { %v4607_v11 = vcombine.high %v534_v6, %v542_v7  ;;  %v262_v12 = vld [vmem:[%s6616_s1 + $0x700] sm:$0xff]  ;;  %3210 = vmatprep.subr.bf16.mxu0 %v4351_v10  ;;  %v4606_v17 = vcombine.low %v534_v6, %v542_v7  ;;  %v151_v6 = vld [vmem:[%s6616_s1 + $0x388] sm:$0xff] }
  0x26   :  { %v270_v13 = vld [vmem:[%s6616_s1 + $0x740] sm:$0xff]  ;;  %3211 = vmatpush2.bf16.msra.mxu0 %v4350_v16  ;;  %v159_v7 = vld [vmem:[%s6616_s1 + $0x3c8] sm:$0xff] }
  0x27   :  { %v518_v14 = vld [vmem:[%s6616_s1 + $0xf00] sm:$0xff]  ;;  %v4335_v18 = vcombine.high %v262_v12, %v270_v13  ;;  %3263 = vmatprep.subr.bf16.mxu1 %v4607_v11  ;;  %v4334_v24 = vcombine.low %v262_v12, %v270_v13  ;;  %v4225_v16 = vcombine.high %v151_v6, %v159_v7 }
  0x28   :  { %v526_v15 = vld [vmem:[%s6616_s1 + $0xf40] sm:$0xff]  ;;  %3264 = vmatpush2.bf16.msra.mxu1 %v4606_v17  ;;  %v4481_v17 = vcombine.high %v407_v8, %v415_v9 }
  0x29   :  { %v4591_v19 = vcombine.high %v518_v14, %v526_v15  ;;  %v246_v20 = vld [vmem:[%s6616_s1 + $0x680] sm:$0xff]  ;;  %3212 = vmatprep.subr.bf16.mxu0 %v4335_v18  ;;  %v4590_v25 = vcombine.low %v518_v14, %v526_v15  ;;  %v16_v14 = vld [vmem:[%s6617_s0 + $0x10] sm:$0xff]  ;;  %v135_v18 = vld [vmem:[%s6616_s1 + $0x308] sm:$0xff] }
  0x2a   :  { %v254_v21 = vld [vmem:[%s6616_s1 + $0x6c0] sm:$0xff]  ;;  %3213 = vmatpush2.bf16.msra.mxu0 %v4334_v24  ;;  %v20_v15 = vld [vmem:[%s6617_s0 + $0x30] sm:$0xff]  ;;  %v27_v24 = vld [vmem:[%s6617_s0 + $0x68] sm:$0xff] }
  0x2b   :  { %v502_v22 = vld [vmem:[%s6616_s1 + $0xe80] sm:$0xff]  ;;  %v4319_v26 = vcombine.high %v246_v20, %v254_v21  ;;  %3265 = vmatprep.subr.bf16.mxu1 %v4591_v19  ;;  %v4318_v32 = vcombine.low %v246_v20, %v254_v21  ;;  %v143_v19 = vld [vmem:[%s6616_s1 + $0x348] sm:$0xff] }
  0x2c   :  { %v510_v23 = vld [vmem:[%s6616_s1 + $0xec0] sm:$0xff]  ;;  %3266 = vmatpush2.bf16.msra.mxu1 %v4590_v25  ;;  %v391_v20 = vld [vmem:[%s6616_s1 + $0xb08] sm:$0xff]  ;;  %v4897_v25 = vpack.c.bf16 %v20_v15, %v16_v14 }
  0x2d   :  { %v4575_v27 = vcombine.high %v502_v22, %v510_v23  ;;  %v230_v28 = vld [vmem:[%s6616_s1 + $0x600] sm:$0xff]  ;;  %3214 = vmatprep.subr.bf16.mxu0 %v4319_v26  ;;  %v4574_v33 = vcombine.low %v502_v22, %v510_v23  ;;  %v399_v22 = vld [vmem:[%s6616_s1 + $0xb48] sm:$0xff]  ;;  %v4224_v26 = vcombine.low %v151_v6, %v159_v7 }
  0x2e   :  { %v238_v29 = vld [vmem:[%s6616_s1 + $0x640] sm:$0xff]  ;;  %3215 = vmatpush2.bf16.msra.mxu0 %v4318_v32  ;;  %v23_v23 = vld [vmem:[%s6617_s0 + $0x48] sm:$0xff] }
  0x2f   :  { %v486_v30 = vld [vmem:[%s6616_s1 + $0xe00] sm:$0xff]  ;;  %v4303_v34 = vcombine.high %v230_v28, %v238_v29  ;;  %3267 = vmatprep.subr.bf16.mxu1 %v4575_v27  ;;  %v4302_v40 = vcombine.low %v230_v28, %v238_v29  ;;  %v25_v27 = vld [vmem:[%s6617_s0 + $0x58] sm:$0xff]  ;;  %v4480_v29 = vcombine.low %v407_v8, %v415_v9  ;;  %v119_v32 = vld [vmem:[%s6616_s1 + $0x288] sm:$0xff] }
  0x30   :  { %v494_v31 = vld [vmem:[%s6616_s1 + $0xe40] sm:$0xff]  ;;  %3268 = vmatpush2.bf16.msra.mxu1 %v4574_v33  ;;  %v29_v28 = vld [vmem:[%s6617_s0 + $0x78] sm:$0xff]  ;;  %v127_v33 = vld [vmem:[%s6616_s1 + $0x2c8] sm:$0xff] }
  0x31   :  { %v4559_v35 = vcombine.high %v486_v30, %v494_v31  ;;  %v214_v36 = vld [vmem:[%s6616_s1 + $0x580] sm:$0xff]  ;;  %3216 = vmatprep.subr.bf16.mxu0 %v4303_v34  ;;  %v4558_v41 = vcombine.low %v486_v30, %v494_v31  ;;  %v4209_v30 = vcombine.high %v135_v18, %v143_v19  ;;  %v4465_v31 = vcombine.high %v391_v20, %v399_v22 }
  0x32   :  { %v222_v37 = vld [vmem:[%s6616_s1 + $0x5c0] sm:$0xff]  ;;  %3217 = vmatpush2.bf16.msra.mxu0 %v4302_v40  ;;  %v4911_v34 = vpack.c.bf16 %v27_v24, %v23_v23 }
  0x33   :  { %v470_v38 = vld [vmem:[%s6616_s1 + $0xd80] sm:$0xff]  ;;  %v4287_v42 = vcombine.high %v214_v36, %v222_v37  ;;  %3269 = vmatprep.subr.bf16.mxu1 %v4559_v35  ;;  %v4286_v48 = vcombine.low %v214_v36, %v222_v37  ;;  %v375_v35 = vld [vmem:[%s6616_s1 + $0xa88] sm:$0xff]  ;;  %v4920_v37 = vpack.c.bf16 %v29_v28, %v25_v27 }
  0x34   :  { %v478_v39 = vld [vmem:[%s6616_s1 + $0xdc0] sm:$0xff]  ;;  %3270 = vmatpush2.bf16.msra.mxu1 %v4558_v41  ;;  %v383_v36 = vld [vmem:[%s6616_s1 + $0xac8] sm:$0xff]  ;;  %v4464_v41 = vcombine.low %v391_v20, %v399_v22 }
  0x35   :  { %v4543_v43 = vcombine.high %v470_v38, %v478_v39  ;;  %v198_v44 = vld [vmem:[%s6616_s1 + $0x500] sm:$0xff]  ;;  %3218 = vmatprep.subr.bf16.mxu0 %v4287_v42  ;;  %v4542_v49 = vcombine.low %v470_v38, %v478_v39  ;;  %v4208_v38 = vcombine.low %v135_v18, %v143_v19  ;;  %v4193_v42 = vcombine.high %v119_v32, %v127_v33  ;;  %v39_v18 = vld [vmem:[%s6616_s1 + $0x8] sm:$0xff] }
  0x36   :  { %v206_v45 = vld [vmem:[%s6616_s1 + $0x540] sm:$0xff]  ;;  %3219 = vmatpush2.bf16.msra.mxu0 %v4286_v48  ;;  %v359_v48 = vld [vmem:[%s6616_s1 + $0xa08] sm:$0xff] }
  0x37   :  { %v454_v46 = vld [vmem:[%s6616_s1 + $0xd00] sm:$0xff]  ;;  %v4271_v50 = vcombine.high %v198_v44, %v206_v45  ;;  %3271 = vmatprep.subr.bf16.mxu1 %v4543_v43  ;;  %v4270_v56 = vcombine.low %v198_v44, %v206_v45  ;;  %v24_v43 = vld [vmem:[%s6617_s0 + $0x50] sm:$0xff]  ;;  %v4449_v45 = vcombine.high %v375_v35, %v383_v36  ;;  %v47_v19 = vld [vmem:[%s6616_s1 + $0x48] sm:$0xff] }
  0x38   :  { %v462_v47 = vld [vmem:[%s6616_s1 + $0xd40] sm:$0xff]  ;;  %3272 = vmatpush2.bf16.msra.mxu1 %v4542_v49  ;;  %v28_v44 = vld [vmem:[%s6617_s0 + $0x70] sm:$0xff]  ;;  %v367_v49 = vld [vmem:[%s6616_s1 + $0xa48] sm:$0xff] }
  0x39   :  { %v4527_v51 = vcombine.high %v454_v46, %v462_v47  ;;  %v182_v52 = vld [vmem:[%s6616_s1 + $0x480] sm:$0xff]  ;;  %3220 = vmatprep.subr.bf16.mxu0 %v4271_v50  ;;  %v4526_v57 = vcombine.low %v454_v46, %v462_v47  ;;  %v103_v46 = vld [vmem:[%s6616_s1 + $0x208] sm:$0xff] }
  0x3a   :  { %v190_v53 = vld [vmem:[%s6616_s1 + $0x4c0] sm:$0xff]  ;;  %3221 = vmatpush2.bf16.msra.mxu0 %v4270_v56  ;;  %v111_v47 = vld [vmem:[%s6616_s1 + $0x248] sm:$0xff] }
  0x3b   :  { %v438_v54 = vld [vmem:[%s6616_s1 + $0xc80] sm:$0xff]  ;;  %v4255_v59 = vcombine.high %v182_v52, %v190_v53  ;;  %3273 = vmatprep.subr.bf16.mxu1 %v4527_v51  ;;  %v4254_v2 = vcombine.low %v182_v52, %v190_v53  ;;  %v4192_v51 = vcombine.low %v119_v32, %v127_v33  ;;  %v4951_v52 = vpack.c.bf16 %v28_v44, %v24_v43  ;;  %v87_v56 = vld [vmem:[%s6616_s1 + $0x188] sm:$0xff] }
  0x3c   :  { %v446_v55 = vld [vmem:[%s6616_s1 + $0xcc0] sm:$0xff]  ;;  %3274 = vmatpush2.bf16.msra.mxu1 %v4526_v57  ;;  %v4448_v53 = vcombine.low %v375_v35, %v383_v36  ;;  %v95_v57 = vld [vmem:[%s6616_s1 + $0x1c8] sm:$0xff]  ;;  %v4112_v32 = vcombine.low %v39_v18, %v47_v19 }
  0x3d   :  { %v4511_v60 = vcombine.high %v438_v54, %v446_v55  ;;  %v166_v61 = vld [vmem:[%s6616_s1 + $0x400] sm:$0xff]  ;;  %3222 = vmatprep.subr.bf16.mxu0 %v4255_v59  ;;  %v4510_v3 = vcombine.low %v438_v54, %v446_v55  ;;  %v4177_v54 = vcombine.high %v103_v46, %v111_v47  ;;  %v4433_v55 = vcombine.high %v359_v48, %v367_v49  ;;  %v343_v59 = vld [vmem:[%s6616_s1 + $0x988] sm:$0xff] }
  0x3e   :  { %v174_v62 = vld [vmem:[%s6616_s1 + $0x440] sm:$0xff]  ;;  %3223 = vmatpush2.bf16.msra.mxu0 %v4254_v2  ;;  %v71_v2 = vld [vmem:[%s6616_s1 + $0x108] sm:$0xff]  ;;  %v4160_v6 = vcombine.low %v87_v56, %v95_v57 }
  0x3f   :  { %v422_v0 = vld [vmem:[%s6616_s1 + $0xc00] sm:$0xff]  ;;  %v4239_v4 = vcombine.high %v166_v61, %v174_v62  ;;  %3275 = vmatprep.subr.bf16.mxu1 %v4511_v60  ;;  %v4238_v10 = vcombine.low %v166_v61, %v174_v62  ;;  %v351_v60 = vld [vmem:[%s6616_s1 + $0x9c8] sm:$0xff]  ;;  %v4176_v61 = vcombine.low %v103_v46, %v111_v47  ;;  %v4432_v62 = vcombine.low %v359_v48, %v367_v49 }
  0x40   :  { %v430_v1 = vld [vmem:[%s6616_s1 + $0xc40] sm:$0xff]  ;;  %3276 = vmatpush2.bf16.msra.mxu1 %v4510_v3  ;;  %v79_v3 = vld [vmem:[%s6616_s1 + $0x148] sm:$0xff]  ;;  %v4416_v7 = vcombine.low %v343_v59, %v351_v60 }
  0x41   :  { %v4495_v5 = vcombine.high %v422_v0, %v430_v1  ;;  %v14_v11 = vld [vmem:[%s6617_s0] sm:$0xff]  ;;  %3224 = vmatprep.subr.bf16.mxu0 %v4239_v4  ;;  %v4494_v13 = vcombine.low %v422_v0, %v430_v1  ;;  %v4161_v0 = vcombine.high %v87_v56, %v95_v57  ;;  %v4417_v1 = vcombine.high %v343_v59, %v351_v60  ;;  %v327_v4 = vld [vmem:[%s6616_s1 + $0x908] sm:$0xff] }
  0x42   :  { %v18_v12 = vld [vmem:[%s6617_s0 + $0x20] sm:$0xff]  ;;  %3225 = vmatpush2.bf16.msra.mxu0 %v4238_v10  ;;  %v4145_v8 = vcombine.high %v71_v2, %v79_v3  ;;  %v55_v10 = vld [vmem:[%s6616_s1 + $0x88] sm:$0xff]  ;;  %v4144_v14 = vcombine.low %v71_v2, %v79_v3 }
  0x43   :  { %3277 = vmatprep.subr.bf16.mxu1 %v4495_v5  ;;  %v4886_v21 = vpack.c.bf16 %v18_v12, %v14_v11  ;;  %3300 = vmatprep.subr.bf16.mxu0 %v4225_v16  ;;  %v22_v39 = vld [vmem:[%s6617_s0 + $0x40] sm:$0xff]  ;;  %v335_v5 = vld [vmem:[%s6616_s1 + $0x948] sm:$0xff] }
  0x44   :  { %3278 = vmatpush2.bf16.msra.mxu1 %v4494_v13  ;;  %v26_v40 = vld [vmem:[%s6617_s0 + $0x60] sm:$0xff]  ;;  %v4401_v9 = vcombine.high %v327_v4, %v335_v5  ;;  %v63_v11 = vld [vmem:[%s6616_s1 + $0xc8] sm:$0xff]  ;;  %v4400_v15 = vcombine.low %v327_v4, %v335_v5 }
  0x45   :  { %3353 = vmatprep.subr.bf16.mxu1 %v4481_v17  ;;  %3227 = vmatmul.mubr.bf16.vlgmr.msra.gmra.mxu0 %v4886_v21  ;;  %v4948_v50 = vpack.c.bf16 %v26_v40, %v22_v39  ;;  %v311_v12 = vld [vmem:[%s6616_s1 + $0x888] sm:$0xff]  ;;  %v4129_v16 = vcombine.high %v55_v10, %v63_v11  ;;  %v4128_v23 = vcombine.low %v55_v10, %v63_v11 }
  0x46   :  { %3301 = vmatpush1.bf16.msra.mxu0 %v4224_v26  ;;  %3236 = vmatprep.mubr.bf16.mxu0 %v4911_v34  ;;  %v319_v13 = vld [vmem:[%s6616_s1 + $0x8c8] sm:$0xff]  ;;  %v4113_v26 = vcombine.high %v39_v18, %v47_v19 }
  0x47   :  { %3280 = vmatmul.mubr.bf16.vlgmr.msra.gmra.mxu1 %v4897_v25  ;;  %3302 = vmatprep.subr.bf16.mxu0 %v4209_v30  ;;  %v4385_v17 = vcombine.high %v311_v12, %v319_v13  ;;  %v295_v20 = vld [vmem:[%s6616_s1 + $0x808] sm:$0xff]  ;;  %v4384_v24 = vcombine.low %v311_v12, %v319_v13 }
  0x48   :  { %3354 = vmatpush1.bf16.msra.mxu1 %v4480_v29  ;;  %3289 = vmatprep.mubr.bf16.mxu1 %v4920_v37  ;;  %v303_v22 = vld [vmem:[%s6616_s1 + $0x848] sm:$0xff] }
  0x49   :  { %3355 = vmatprep.subr.bf16.mxu1 %v4465_v31  ;;  %v4369_v27 = vcombine.high %v295_v20, %v303_v22  ;;  %v279_v28 = vld [vmem:[%s6616_s1 + $0x788] sm:$0xff]  ;;  %v4368_v33 = vcombine.low %v295_v20, %v303_v22 }
  0x4a   :  { %3303 = vmatpush1.bf16.msra.mxu0 %v4208_v38  ;;  %v287_v29 = vld [vmem:[%s6616_s1 + $0x7c8] sm:$0xff] }
  0x4b   :  { %3304 = vmatprep.subr.bf16.mxu0 %v4193_v42  ;;  %v535_v30 = vld [vmem:[%s6616_s1 + $0xf88] sm:$0xff]  ;;  %v4353_v35 = vcombine.high %v279_v28, %v287_v29  ;;  %v4352_v42 = vcombine.low %v279_v28, %v287_v29 }
  0x4c   :  { %3356 = vmatpush1.bf16.msra.mxu1 %v4464_v41  ;;  %v543_v31 = vld [vmem:[%s6616_s1 + $0xfc8] sm:$0xff] }
  0x4d   :  { %3357 = vmatprep.subr.bf16.mxu1 %v4449_v45  ;;  %3237 = vmatmul.mubr.bf16.gmra.mxu0 %v4948_v50  ;;  %v4609_v36 = vcombine.high %v535_v30, %v543_v31  ;;  %v263_v38 = vld [vmem:[%s6616_s1 + $0x708] sm:$0xff]  ;;  %v4608_v43 = vcombine.low %v535_v30, %v543_v31 }
  0x4e   :  { %3305 = vmatpush1.bf16.msra.mxu0 %v4192_v51  ;;  %3332 = vmatprep.mubr.bf16.mxu0 %v4739_v58  ;;  %v271_v39 = vld [vmem:[%s6616_s1 + $0x748] sm:$0xff] }
  0x4f   :  { %3290 = vmatmul.mubr.bf16.gmra.mxu1 %v4951_v52  ;;  %3306 = vmatprep.subr.bf16.mxu0 %v4177_v54  ;;  %v519_v40 = vld [vmem:[%s6616_s1 + $0xf08] sm:$0xff]  ;;  %v4337_v44 = vcombine.high %v263_v38, %v271_v39  ;;  %v4336_v51 = vcombine.low %v263_v38, %v271_v39  ;;  %v152_v38 = vld [vmem:[%s6616_s1 + $0x390] sm:$0xff] }
  0x50   :  { %3358 = vmatpush1.bf16.msra.mxu1 %v4448_v53  ;;  %3385 = vmatprep.mubr.bf16.mxu1 %v4753_v63  ;;  %v527_v41 = vld [vmem:[%s6616_s1 + $0xf48] sm:$0xff]  ;;  %v160_v39 = vld [vmem:[%s6616_s1 + $0x3d0] sm:$0xff] }
  0x51   :  { %3359 = vmatprep.subr.bf16.mxu1 %v4433_v55  ;;  %v4593_v45 = vcombine.high %v519_v40, %v527_v41  ;;  %v247_v46 = vld [vmem:[%s6616_s1 + $0x688] sm:$0xff]  ;;  %v4592_v53 = vcombine.low %v519_v40, %v527_v41  ;;  %v408_v40 = vld [vmem:[%s6616_s1 + $0xb90] sm:$0xff] }
  0x52   :  { %3307 = vmatpush1.bf16.msra.mxu0 %v4176_v61  ;;  %v255_v47 = vld [vmem:[%s6616_s1 + $0x6c8] sm:$0xff]  ;;  %v416_v41 = vld [vmem:[%s6616_s1 + $0xbd0] sm:$0xff] }
  0x53   :  { %3308 = vmatprep.subr.bf16.mxu0 %v4161_v0  ;;  %v503_v48 = vld [vmem:[%s6616_s1 + $0xe88] sm:$0xff]  ;;  %v4321_v54 = vcombine.high %v247_v46, %v255_v47  ;;  %v4320_v61 = vcombine.low %v247_v46, %v255_v47  ;;  %v136_v46 = vld [vmem:[%s6616_s1 + $0x310] sm:$0xff] }
  0x54   :  { %3360 = vmatpush1.bf16.msra.mxu1 %v4432_v62  ;;  %v511_v49 = vld [vmem:[%s6616_s1 + $0xec8] sm:$0xff]  ;;  %v144_v47 = vld [vmem:[%s6616_s1 + $0x350] sm:$0xff] }
  0x55   :  { %3361 = vmatprep.subr.bf16.mxu1 %v4417_v1  ;;  %v4577_v55 = vcombine.high %v503_v48, %v511_v49  ;;  %v231_v56 = vld [vmem:[%s6616_s1 + $0x608] sm:$0xff]  ;;  %v4576_v62 = vcombine.low %v503_v48, %v511_v49  ;;  %v392_v48 = vld [vmem:[%s6616_s1 + $0xb10] sm:$0xff] }
  0x56   :  { %3309 = vmatpush1.bf16.msra.mxu0 %v4160_v6  ;;  %v239_v57 = vld [vmem:[%s6616_s1 + $0x648] sm:$0xff]  ;;  %v400_v49 = vld [vmem:[%s6616_s1 + $0xb50] sm:$0xff] }
  0x57   :  { %3310 = vmatprep.subr.bf16.mxu0 %v4145_v8  ;;  %v487_v59 = vld [vmem:[%s6616_s1 + $0xe08] sm:$0xff]  ;;  %v4305_v0 = vcombine.high %v231_v56, %v239_v57  ;;  %v4304_v6 = vcombine.low %v231_v56, %v239_v57  ;;  %v120_v56 = vld [vmem:[%s6616_s1 + $0x290] sm:$0xff] }
  0x58   :  { %3362 = vmatpush1.bf16.msra.mxu1 %v4416_v7  ;;  %v495_v60 = vld [vmem:[%s6616_s1 + $0xe48] sm:$0xff]  ;;  %v128_v57 = vld [vmem:[%s6616_s1 + $0x2d0] sm:$0xff] }
  0x59   :  { %3363 = vmatprep.subr.bf16.mxu1 %v4401_v9  ;;  %v4561_v1 = vcombine.high %v487_v59, %v495_v60  ;;  %v215_v2 = vld [vmem:[%s6616_s1 + $0x588] sm:$0xff]  ;;  %v4560_v7 = vcombine.low %v487_v59, %v495_v60  ;;  %v376_v59 = vld [vmem:[%s6616_s1 + $0xa90] sm:$0xff] }
  0x5a   :  { %3311 = vmatpush1.bf16.msra.mxu0 %v4144_v14  ;;  %v223_v3 = vld [vmem:[%s6616_s1 + $0x5c8] sm:$0xff]  ;;  %v384_v60 = vld [vmem:[%s6616_s1 + $0xad0] sm:$0xff] }
  0x5b   :  { %3312 = vmatprep.subr.bf16.mxu0 %v4129_v16  ;;  %v471_v4 = vld [vmem:[%s6616_s1 + $0xd88] sm:$0xff]  ;;  %v4289_v8 = vcombine.high %v215_v2, %v223_v3  ;;  %v4288_v14 = vcombine.low %v215_v2, %v223_v3  ;;  %v104_v2 = vld [vmem:[%s6616_s1 + $0x210] sm:$0xff] }
  0x5c   :  { %3364 = vmatpush1.bf16.msra.mxu1 %v4400_v15  ;;  %v479_v5 = vld [vmem:[%s6616_s1 + $0xdc8] sm:$0xff]  ;;  %v112_v3 = vld [vmem:[%s6616_s1 + $0x250] sm:$0xff] }
  0x5d   :  { %3365 = vmatprep.subr.bf16.mxu1 %v4385_v17  ;;  %v4545_v9 = vcombine.high %v471_v4, %v479_v5  ;;  %v199_v10 = vld [vmem:[%s6616_s1 + $0x508] sm:$0xff]  ;;  %v4544_v15 = vcombine.low %v471_v4, %v479_v5  ;;  %v360_v4 = vld [vmem:[%s6616_s1 + $0xa10] sm:$0xff] }
  0x5e   :  { %3313 = vmatpush1.bf16.msra.mxu0 %v4128_v23  ;;  %v207_v11 = vld [vmem:[%s6616_s1 + $0x548] sm:$0xff]  ;;  %v368_v5 = vld [vmem:[%s6616_s1 + $0xa50] sm:$0xff] }
  0x5f   :  { %3314 = vmatprep.subr.bf16.mxu0 %v4113_v26  ;;  %v455_v12 = vld [vmem:[%s6616_s1 + $0xd08] sm:$0xff]  ;;  %v4273_v16 = vcombine.high %v199_v10, %v207_v11  ;;  %v4272_v23 = vcombine.low %v199_v10, %v207_v11  ;;  %v88_v10 = vld [vmem:[%s6616_s1 + $0x190] sm:$0xff] }
  0x60   :  { %3366 = vmatpush1.bf16.msra.mxu1 %v4384_v24  ;;  %v463_v13 = vld [vmem:[%s6616_s1 + $0xd48] sm:$0xff]  ;;  %v96_v11 = vld [vmem:[%s6616_s1 + $0x1d0] sm:$0xff] }
  0x61   :  { %3367 = vmatprep.subr.bf16.mxu1 %v4369_v27  ;;  %v4529_v17 = vcombine.high %v455_v12, %v463_v13  ;;  %v183_v18 = vld [vmem:[%s6616_s1 + $0x488] sm:$0xff]  ;;  %v4528_v24 = vcombine.low %v455_v12, %v463_v13  ;;  %v344_v12 = vld [vmem:[%s6616_s1 + $0x990] sm:$0xff] }
  0x62   :  { %3315 = vmatpush1.bf16.msra.mxu0 %v4112_v32  ;;  %v191_v19 = vld [vmem:[%s6616_s1 + $0x4c8] sm:$0xff]  ;;  %v352_v13 = vld [vmem:[%s6616_s1 + $0x9d0] sm:$0xff] }
  0x63   :  { %3316 = vmatprep.subr.bf16.mxu0 %v4353_v35  ;;  %v439_v20 = vld [vmem:[%s6616_s1 + $0xc88] sm:$0xff]  ;;  %v4257_v26 = vcombine.high %v183_v18, %v191_v19  ;;  %v4256_v32 = vcombine.low %v183_v18, %v191_v19  ;;  %v72_v18 = vld [vmem:[%s6616_s1 + $0x110] sm:$0xff] }
  0x64   :  { %3368 = vmatpush1.bf16.msra.mxu1 %v4368_v33  ;;  %v447_v22 = vld [vmem:[%s6616_s1 + $0xcc8] sm:$0xff]  ;;  %v80_v19 = vld [vmem:[%s6616_s1 + $0x150] sm:$0xff] }
  0x65   :  { %3369 = vmatprep.subr.bf16.mxu1 %v4609_v36  ;;  %v4513_v27 = vcombine.high %v439_v20, %v447_v22  ;;  %v167_v28 = vld [vmem:[%s6616_s1 + $0x408] sm:$0xff]  ;;  %v4512_v33 = vcombine.low %v439_v20, %v447_v22  ;;  %v328_v20 = vld [vmem:[%s6616_s1 + $0x910] sm:$0xff] }
  0x66   :  { %3317 = vmatpush2.bf16.msra.mxu0 %v4352_v42  ;;  %v175_v29 = vld [vmem:[%s6616_s1 + $0x448] sm:$0xff]  ;;  %v336_v22 = vld [vmem:[%s6616_s1 + $0x950] sm:$0xff] }
  0x67   :  { %3318 = vmatprep.subr.bf16.mxu0 %v4337_v44  ;;  %v423_v30 = vld [vmem:[%s6616_s1 + $0xc08] sm:$0xff]  ;;  %v4241_v35 = vcombine.high %v167_v28, %v175_v29  ;;  %v4240_v42 = vcombine.low %v167_v28, %v175_v29  ;;  %v4227_v44 = vcombine.high %v152_v38, %v160_v39  ;;  %v56_v28 = vld [vmem:[%s6616_s1 + $0x90] sm:$0xff] }
  0x68   :  { %3370 = vmatpush2.bf16.msra.mxu1 %v4608_v43  ;;  %v431_v31 = vld [vmem:[%s6616_s1 + $0xc48] sm:$0xff]  ;;  %v64_v29 = vld [vmem:[%s6616_s1 + $0xd0] sm:$0xff] }
  0x69   :  { %3371 = vmatprep.subr.bf16.mxu1 %v4593_v45  ;;  %v4497_v36 = vcombine.high %v423_v30, %v431_v31  ;;  %v4496_v43 = vcombine.low %v423_v30, %v431_v31  ;;  %v4483_v45 = vcombine.high %v408_v40, %v416_v41  ;;  %v312_v30 = vld [vmem:[%s6616_s1 + $0x890] sm:$0xff] }
  0x6a   :  { %3319 = vmatpush2.bf16.msra.mxu0 %v4336_v51  ;;  %v4226_v51 = vcombine.low %v152_v38, %v160_v39  ;;  %v320_v31 = vld [vmem:[%s6616_s1 + $0x8d0] sm:$0xff] }
  0x6b   :  { %3320 = vmatprep.subr.bf16.mxu0 %v4321_v54  ;;  %v4211_v54 = vcombine.high %v136_v46, %v144_v47  ;;  %v40_v38 = vld [vmem:[%s6616_s1 + $0x10] sm:$0xff] }
  0x6c   :  { %3372 = vmatpush2.bf16.msra.mxu1 %v4592_v53  ;;  %v4482_v53 = vcombine.low %v408_v40, %v416_v41  ;;  %v48_v39 = vld [vmem:[%s6616_s1 + $0x50] sm:$0xff] }
  0x6d   :  { %3373 = vmatprep.subr.bf16.mxu1 %v4577_v55  ;;  %v4467_v55 = vcombine.high %v392_v48, %v400_v49  ;;  %v296_v40 = vld [vmem:[%s6616_s1 + $0x810] sm:$0xff] }
  0x6e   :  { %3321 = vmatpush2.bf16.msra.mxu0 %v4320_v61  ;;  %v4210_v61 = vcombine.low %v136_v46, %v144_v47  ;;  %v304_v41 = vld [vmem:[%s6616_s1 + $0x850] sm:$0xff] }
  0x6f   :  { %3322 = vmatprep.subr.bf16.mxu0 %v4305_v0  ;;  %v4195_v0 = vcombine.high %v120_v56, %v128_v57  ;;  %v280_v46 = vld [vmem:[%s6616_s1 + $0x790] sm:$0xff] }
  0x70   :  { %3374 = vmatpush2.bf16.msra.mxu1 %v4576_v62  ;;  %v4466_v62 = vcombine.low %v392_v48, %v400_v49  ;;  %v288_v47 = vld [vmem:[%s6616_s1 + $0x7d0] sm:$0xff] }
  0x71   :  { %3375 = vmatprep.subr.bf16.mxu1 %v4561_v1  ;;  %v4451_v1 = vcombine.high %v376_v59, %v384_v60  ;;  %v536_v48 = vld [vmem:[%s6616_s1 + $0xf90] sm:$0xff] }
  0x72   :  { %3323 = vmatpush2.bf16.msra.mxu0 %v4304_v6  ;;  %v4194_v6 = vcombine.low %v120_v56, %v128_v57  ;;  %v544_v49 = vld [vmem:[%s6616_s1 + $0xfd0] sm:$0xff] }
  0x73   :  { %3324 = vmatprep.subr.bf16.mxu0 %v4289_v8  ;;  %v4179_v8 = vcombine.high %v104_v2, %v112_v3  ;;  %v264_v56 = vld [vmem:[%s6616_s1 + $0x710] sm:$0xff] }
  0x74   :  { %3376 = vmatpush2.bf16.msra.mxu1 %v4560_v7  ;;  %v4450_v7 = vcombine.low %v376_v59, %v384_v60  ;;  %v272_v57 = vld [vmem:[%s6616_s1 + $0x750] sm:$0xff] }
  0x75   :  { %3377 = vmatprep.subr.bf16.mxu1 %v4545_v9  ;;  %v4435_v9 = vcombine.high %v360_v4, %v368_v5  ;;  %v520_v59 = vld [vmem:[%s6616_s1 + $0xf10] sm:$0xff] }
  0x76   :  { %3325 = vmatpush2.bf16.msra.mxu0 %v4288_v14  ;;  %v4178_v14 = vcombine.low %v104_v2, %v112_v3  ;;  %v528_v60 = vld [vmem:[%s6616_s1 + $0xf50] sm:$0xff] }
  0x77   :  { %3326 = vmatprep.subr.bf16.mxu0 %v4273_v16  ;;  %v4163_v16 = vcombine.high %v88_v10, %v96_v11  ;;  %v248_v2 = vld [vmem:[%s6616_s1 + $0x690] sm:$0xff] }
  0x78   :  { %3378 = vmatpush2.bf16.msra.mxu1 %v4544_v15  ;;  %v4434_v15 = vcombine.low %v360_v4, %v368_v5  ;;  %v256_v3 = vld [vmem:[%s6616_s1 + $0x6d0] sm:$0xff] }
  0x79   :  { %3379 = vmatprep.subr.bf16.mxu1 %v4529_v17  ;;  %v4419_v17 = vcombine.high %v344_v12, %v352_v13  ;;  %v504_v4 = vld [vmem:[%s6616_s1 + $0xe90] sm:$0xff] }
  0x7a   :  { %3327 = vmatpush2.bf16.msra.mxu0 %v4272_v23  ;;  %v4162_v23 = vcombine.low %v88_v10, %v96_v11  ;;  %v512_v5 = vld [vmem:[%s6616_s1 + $0xed0] sm:$0xff] }
  0x7b   :  { %3328 = vmatprep.subr.bf16.mxu0 %v4257_v26  ;;  %v4147_v26 = vcombine.high %v72_v18, %v80_v19  ;;  %v232_v10 = vld [vmem:[%s6616_s1 + $0x610] sm:$0xff] }
  0x7c   :  { %3380 = vmatpush2.bf16.msra.mxu1 %v4528_v24  ;;  %v4418_v24 = vcombine.low %v344_v12, %v352_v13  ;;  %v240_v11 = vld [vmem:[%s6616_s1 + $0x650] sm:$0xff] }
  0x7d   :  { %3381 = vmatprep.subr.bf16.mxu1 %v4513_v27  ;;  %v4403_v27 = vcombine.high %v328_v20, %v336_v22  ;;  %v488_v12 = vld [vmem:[%s6616_s1 + $0xe10] sm:$0xff] }
  0x7e   :  { %3329 = vmatpush2.bf16.msra.mxu0 %v4256_v32  ;;  %v4146_v32 = vcombine.low %v72_v18, %v80_v19  ;;  %v496_v13 = vld [vmem:[%s6616_s1 + $0xe50] sm:$0xff] }
  0x7f   :  { %3330 = vmatprep.subr.bf16.mxu0 %v4241_v35  ;;  %v4131_v35 = vcombine.high %v56_v28, %v64_v29  ;;  %v216_v18 = vld [vmem:[%s6616_s1 + $0x590] sm:$0xff] }
  0x80   :  { %3382 = vmatpush2.bf16.msra.mxu1 %v4512_v33  ;;  %v4402_v33 = vcombine.low %v328_v20, %v336_v22  ;;  %v224_v19 = vld [vmem:[%s6616_s1 + $0x5d0] sm:$0xff] }
  0x81   :  { %3383 = vmatprep.subr.bf16.mxu1 %v4497_v36  ;;  %v4387_v36 = vcombine.high %v312_v30, %v320_v31  ;;  %v472_v20 = vld [vmem:[%s6616_s1 + $0xd90] sm:$0xff] }
  0x82   :  { %3331 = vmatpush2.bf16.msra.mxu0 %v4240_v42  ;;  %v4130_v42 = vcombine.low %v56_v28, %v64_v29  ;;  %v480_v22 = vld [vmem:[%s6616_s1 + $0xdd0] sm:$0xff] }
  0x83   :  { %3406 = vmatprep.subr.bf16.mxu0 %v4227_v44  ;;  %v4115_v44 = vcombine.high %v40_v38, %v48_v39  ;;  %v200_v28 = vld [vmem:[%s6616_s1 + $0x510] sm:$0xff] }
  0x84   :  { %3384 = vmatpush2.bf16.msra.mxu1 %v4496_v43  ;;  %v4386_v43 = vcombine.low %v312_v30, %v320_v31  ;;  %v208_v29 = vld [vmem:[%s6616_s1 + $0x550] sm:$0xff] }
  0x85   :  { %3459 = vmatprep.subr.bf16.mxu1 %v4483_v45  ;;  %3333 = vmatmul.mubr.bf16.vlgmr.msra.gmra.mxu0 %v4886_v21  ;;  %v4371_v45 = vcombine.high %v296_v40, %v304_v41  ;;  %v456_v30 = vld [vmem:[%s6616_s1 + $0xd10] sm:$0xff] }
  0x86   :  { %3407 = vmatpush1.bf16.msra.mxu0 %v4226_v51  ;;  %3342 = vmatprep.mubr.bf16.mxu0 %v4911_v34  ;;  %v4114_v51 = vcombine.low %v40_v38, %v48_v39  ;;  %v464_v31 = vld [vmem:[%s6616_s1 + $0xd50] sm:$0xff] }
  0x87   :  { %3386 = vmatmul.mubr.bf16.vlgmr.msra.gmra.mxu1 %v4897_v25  ;;  %3408 = vmatprep.subr.bf16.mxu0 %v4211_v54  ;;  %v4355_v54 = vcombine.high %v280_v46, %v288_v47  ;;  %v184_v38 = vld [vmem:[%s6616_s1 + $0x490] sm:$0xff] }
  0x88   :  { %3460 = vmatpush1.bf16.msra.mxu1 %v4482_v53  ;;  %3395 = vmatprep.mubr.bf16.mxu1 %v4920_v37  ;;  %v4370_v53 = vcombine.low %v296_v40, %v304_v41  ;;  %v192_v39 = vld [vmem:[%s6616_s1 + $0x4d0] sm:$0xff] }
  0x89   :  { %3461 = vmatprep.subr.bf16.mxu1 %v4467_v55  ;;  %v4611_v55 = vcombine.high %v536_v48, %v544_v49  ;;  %v440_v40 = vld [vmem:[%s6616_s1 + $0xc90] sm:$0xff] }
  0x8a   :  { %3409 = vmatpush1.bf16.msra.mxu0 %v4210_v61  ;;  %v4354_v61 = vcombine.low %v280_v46, %v288_v47  ;;  %v448_v41 = vld [vmem:[%s6616_s1 + $0xcd0] sm:$0xff] }
  0x8b   :  { %3410 = vmatprep.subr.bf16.mxu0 %v4195_v0  ;;  %v4339_v0 = vcombine.high %v264_v56, %v272_v57  ;;  %v168_v46 = vld [vmem:[%s6616_s1 + $0x410] sm:$0xff] }
  0x8c   :  { %3462 = vmatpush1.bf16.msra.mxu1 %v4466_v62  ;;  %v4610_v62 = vcombine.low %v536_v48, %v544_v49  ;;  %v176_v47 = vld [vmem:[%s6616_s1 + $0x450] sm:$0xff] }
  0x8d   :  { %3463 = vmatprep.subr.bf16.mxu1 %v4451_v1  ;;  %3343 = vmatmul.mubr.bf16.gmra.mxu0 %v4948_v50  ;;  %v4595_v1 = vcombine.high %v520_v59, %v528_v60  ;;  %v424_v48 = vld [vmem:[%s6616_s1 + $0xc10] sm:$0xff] }
  0x8e   :  { %3411 = vmatpush1.bf16.msra.mxu0 %v4194_v6  ;;  %3438 = vmatprep.mubr.bf16.mxu0 %v4739_v58  ;;  %v4338_v6 = vcombine.low %v264_v56, %v272_v57  ;;  %v432_v49 = vld [vmem:[%s6616_s1 + $0xc50] sm:$0xff]  ;;  %v153_v56 = vld [vmem:[%s6616_s1 + $0x398] sm:$0xff] }
  0x8f   :  { %3396 = vmatmul.mubr.bf16.gmra.mxu1 %v4951_v52  ;;  %3412 = vmatprep.subr.bf16.mxu0 %v4179_v8  ;;  %v4323_v8 = vcombine.high %v248_v2, %v256_v3  ;;  %v161_v57 = vld [vmem:[%s6616_s1 + $0x3d8] sm:$0xff] }
  0x90   :  { %3464 = vmatpush1.bf16.msra.mxu1 %v4450_v7  ;;  %3491 = vmatprep.mubr.bf16.mxu1 %v4753_v63  ;;  %v4594_v7 = vcombine.low %v520_v59, %v528_v60  ;;  %v409_v59 = vld [vmem:[%s6616_s1 + $0xb98] sm:$0xff] }
  0x91   :  { %3465 = vmatprep.subr.bf16.mxu1 %v4435_v9  ;;  %v4579_v9 = vcombine.high %v504_v4, %v512_v5  ;;  %v417_v60 = vld [vmem:[%s6616_s1 + $0xbd8] sm:$0xff] }
  0x92   :  { %3413 = vmatpush1.bf16.msra.mxu0 %v4178_v14  ;;  %v4322_v14 = vcombine.low %v248_v2, %v256_v3  ;;  %v137_v2 = vld [vmem:[%s6616_s1 + $0x318] sm:$0xff] }
  0x93   :  { %3414 = vmatprep.subr.bf16.mxu0 %v4163_v16  ;;  %v4307_v16 = vcombine.high %v232_v10, %v240_v11  ;;  %v145_v3 = vld [vmem:[%s6616_s1 + $0x358] sm:$0xff] }
  0x94   :  { %3466 = vmatpush1.bf16.msra.mxu1 %v4434_v15  ;;  %v4578_v15 = vcombine.low %v504_v4, %v512_v5  ;;  %v393_v4 = vld [vmem:[%s6616_s1 + $0xb18] sm:$0xff] }
  0x95   :  { %3467 = vmatprep.subr.bf16.mxu1 %v4419_v17  ;;  %v4563_v17 = vcombine.high %v488_v12, %v496_v13  ;;  %v401_v5 = vld [vmem:[%s6616_s1 + $0xb58] sm:$0xff] }
  0x96   :  { %3415 = vmatpush1.bf16.msra.mxu0 %v4162_v23  ;;  %v4306_v23 = vcombine.low %v232_v10, %v240_v11  ;;  %v121_v10 = vld [vmem:[%s6616_s1 + $0x298] sm:$0xff] }
  0x97   :  { %3416 = vmatprep.subr.bf16.mxu0 %v4147_v26  ;;  %v4291_v26 = vcombine.high %v216_v18, %v224_v19  ;;  %v129_v11 = vld [vmem:[%s6616_s1 + $0x2d8] sm:$0xff] }
  0x98   :  { %3468 = vmatpush1.bf16.msra.mxu1 %v4418_v24  ;;  %v4562_v24 = vcombine.low %v488_v12, %v496_v13  ;;  %v377_v12 = vld [vmem:[%s6616_s1 + $0xa98] sm:$0xff] }
  0x99   :  { %3469 = vmatprep.subr.bf16.mxu1 %v4403_v27  ;;  %v4547_v27 = vcombine.high %v472_v20, %v480_v22  ;;  %v385_v13 = vld [vmem:[%s6616_s1 + $0xad8] sm:$0xff] }
  0x9a   :  { %3417 = vmatpush1.bf16.msra.mxu0 %v4146_v32  ;;  %v4290_v32 = vcombine.low %v216_v18, %v224_v19  ;;  %v105_v18 = vld [vmem:[%s6616_s1 + $0x218] sm:$0xff] }
  0x9b   :  { %3418 = vmatprep.subr.bf16.mxu0 %v4131_v35  ;;  %v4275_v35 = vcombine.high %v200_v28, %v208_v29  ;;  %v113_v19 = vld [vmem:[%s6616_s1 + $0x258] sm:$0xff] }
  0x9c   :  { %3470 = vmatpush1.bf16.msra.mxu1 %v4402_v33  ;;  %v4546_v33 = vcombine.low %v472_v20, %v480_v22  ;;  %v361_v20 = vld [vmem:[%s6616_s1 + $0xa18] sm:$0xff] }
  0x9d   :  { %3471 = vmatprep.subr.bf16.mxu1 %v4387_v36  ;;  %v4531_v36 = vcombine.high %v456_v30, %v464_v31  ;;  %v369_v22 = vld [vmem:[%s6616_s1 + $0xa58] sm:$0xff] }
  0x9e   :  { %3419 = vmatpush1.bf16.msra.mxu0 %v4130_v42  ;;  %v4274_v42 = vcombine.low %v200_v28, %v208_v29  ;;  %v89_v28 = vld [vmem:[%s6616_s1 + $0x198] sm:$0xff] }
  0x9f   :  { %3420 = vmatprep.subr.bf16.mxu0 %v4115_v44  ;;  %v4259_v44 = vcombine.high %v184_v38, %v192_v39  ;;  %v97_v29 = vld [vmem:[%s6616_s1 + $0x1d8] sm:$0xff] }
  0xa0   :  { %3472 = vmatpush1.bf16.msra.mxu1 %v4386_v43  ;;  %v4530_v43 = vcombine.low %v456_v30, %v464_v31  ;;  %v345_v30 = vld [vmem:[%s6616_s1 + $0x998] sm:$0xff] }
  0xa1   :  { %3473 = vmatprep.subr.bf16.mxu1 %v4371_v45  ;;  %v4515_v45 = vcombine.high %v440_v40, %v448_v41  ;;  %v353_v31 = vld [vmem:[%s6616_s1 + $0x9d8] sm:$0xff] }
  0xa2   :  { %3421 = vmatpush1.bf16.msra.mxu0 %v4114_v51  ;;  %v4258_v51 = vcombine.low %v184_v38, %v192_v39  ;;  %v73_v38 = vld [vmem:[%s6616_s1 + $0x118] sm:$0xff] }
  0xa3   :  { %3422 = vmatprep.subr.bf16.mxu0 %v4355_v54  ;;  %v4243_v54 = vcombine.high %v168_v46, %v176_v47  ;;  %v81_v39 = vld [vmem:[%s6616_s1 + $0x158] sm:$0xff] }
  0xa4   :  { %3474 = vmatpush1.bf16.msra.mxu1 %v4370_v53  ;;  %v4514_v53 = vcombine.low %v440_v40, %v448_v41  ;;  %v329_v40 = vld [vmem:[%s6616_s1 + $0x918] sm:$0xff] }
  0xa5   :  { %3475 = vmatprep.subr.bf16.mxu1 %v4611_v55  ;;  %v4499_v55 = vcombine.high %v424_v48, %v432_v49  ;;  %v337_v41 = vld [vmem:[%s6616_s1 + $0x958] sm:$0xff] }
  0xa6   :  { %3423 = vmatpush2.bf16.msra.mxu0 %v4354_v61  ;;  %v4242_v61 = vcombine.low %v168_v46, %v176_v47  ;;  %v57_v46 = vld [vmem:[%s6616_s1 + $0x98] sm:$0xff] }
  0xa7   :  { %3424 = vmatprep.subr.bf16.mxu0 %v4339_v0  ;;  %v4229_v0 = vcombine.high %v153_v56, %v161_v57  ;;  %v65_v47 = vld [vmem:[%s6616_s1 + $0xd8] sm:$0xff] }
  0xa8   :  { %3476 = vmatpush2.bf16.msra.mxu1 %v4610_v62  ;;  %v4498_v62 = vcombine.low %v424_v48, %v432_v49  ;;  %v313_v48 = vld [vmem:[%s6616_s1 + $0x898] sm:$0xff] }
  0xa9   :  { %3477 = vmatprep.subr.bf16.mxu1 %v4595_v1  ;;  %v4485_v1 = vcombine.high %v409_v59, %v417_v60  ;;  %v321_v49 = vld [vmem:[%s6616_s1 + $0x8d8] sm:$0xff] }
  0xaa   :  { %3425 = vmatpush2.bf16.msra.mxu0 %v4338_v6  ;;  %v4228_v6 = vcombine.low %v153_v56, %v161_v57  ;;  %v41_v56 = vld [vmem:[%s6616_s1 + $0x18] sm:$0xff] }
  0xab   :  { %3426 = vmatprep.subr.bf16.mxu0 %v4323_v8  ;;  %v4213_v8 = vcombine.high %v137_v2, %v145_v3  ;;  %v49_v57 = vld [vmem:[%s6616_s1 + $0x58] sm:$0xff] }
  0xac   :  { %3478 = vmatpush2.bf16.msra.mxu1 %v4594_v7  ;;  %v4484_v7 = vcombine.low %v409_v59, %v417_v60  ;;  %v297_v59 = vld [vmem:[%s6616_s1 + $0x818] sm:$0xff] }
  0xad   :  { %3479 = vmatprep.subr.bf16.mxu1 %v4579_v9  ;;  %v4469_v9 = vcombine.high %v393_v4, %v401_v5  ;;  %v305_v60 = vld [vmem:[%s6616_s1 + $0x858] sm:$0xff] }
  0xae   :  { %3427 = vmatpush2.bf16.msra.mxu0 %v4322_v14  ;;  %v4212_v14 = vcombine.low %v137_v2, %v145_v3  ;;  %v281_v2 = vld [vmem:[%s6616_s1 + $0x798] sm:$0xff] }
  0xaf   :  { %3428 = vmatprep.subr.bf16.mxu0 %v4307_v16  ;;  %v4197_v16 = vcombine.high %v121_v10, %v129_v11  ;;  %v289_v3 = vld [vmem:[%s6616_s1 + $0x7d8] sm:$0xff] }
  0xb0   :  { %3480 = vmatpush2.bf16.msra.mxu1 %v4578_v15  ;;  %v4468_v15 = vcombine.low %v393_v4, %v401_v5  ;;  %v537_v4 = vld [vmem:[%s6616_s1 + $0xf98] sm:$0xff] }
  0xb1   :  { %3481 = vmatprep.subr.bf16.mxu1 %v4563_v17  ;;  %v4453_v17 = vcombine.high %v377_v12, %v385_v13  ;;  %v545_v5 = vld [vmem:[%s6616_s1 + $0xfd8] sm:$0xff] }
  0xb2   :  { %3429 = vmatpush2.bf16.msra.mxu0 %v4306_v23  ;;  %v4196_v23 = vcombine.low %v121_v10, %v129_v11  ;;  %v265_v10 = vld [vmem:[%s6616_s1 + $0x718] sm:$0xff] }
  0xb3   :  { %3430 = vmatprep.subr.bf16.mxu0 %v4291_v26  ;;  %v4181_v26 = vcombine.high %v105_v18, %v113_v19  ;;  %v273_v11 = vld [vmem:[%s6616_s1 + $0x758] sm:$0xff] }
  0xb4   :  { %3482 = vmatpush2.bf16.msra.mxu1 %v4562_v24  ;;  %v4452_v24 = vcombine.low %v377_v12, %v385_v13  ;;  %v521_v12 = vld [vmem:[%s6616_s1 + $0xf18] sm:$0xff] }
  0xb5   :  { %3483 = vmatprep.subr.bf16.mxu1 %v4547_v27  ;;  %v4437_v27 = vcombine.high %v361_v20, %v369_v22  ;;  %v529_v13 = vld [vmem:[%s6616_s1 + $0xf58] sm:$0xff] }
  0xb6   :  { %3431 = vmatpush2.bf16.msra.mxu0 %v4290_v32  ;;  %v4180_v32 = vcombine.low %v105_v18, %v113_v19  ;;  %v249_v18 = vld [vmem:[%s6616_s1 + $0x698] sm:$0xff] }
  0xb7   :  { %3432 = vmatprep.subr.bf16.mxu0 %v4275_v35  ;;  %v4165_v35 = vcombine.high %v89_v28, %v97_v29  ;;  %v257_v19 = vld [vmem:[%s6616_s1 + $0x6d8] sm:$0xff] }
  0xb8   :  { %3484 = vmatpush2.bf16.msra.mxu1 %v4546_v33  ;;  %v4436_v33 = vcombine.low %v361_v20, %v369_v22  ;;  %v505_v20 = vld [vmem:[%s6616_s1 + $0xe98] sm:$0xff] }
  0xb9   :  { %3485 = vmatprep.subr.bf16.mxu1 %v4531_v36  ;;  %v4421_v36 = vcombine.high %v345_v30, %v353_v31  ;;  %v513_v22 = vld [vmem:[%s6616_s1 + $0xed8] sm:$0xff] }
  0xba   :  { %3433 = vmatpush2.bf16.msra.mxu0 %v4274_v42  ;;  %v4164_v42 = vcombine.low %v89_v28, %v97_v29  ;;  %v233_v28 = vld [vmem:[%s6616_s1 + $0x618] sm:$0xff] }
  0xbb   :  { %3434 = vmatprep.subr.bf16.mxu0 %v4259_v44  ;;  %v4149_v44 = vcombine.high %v73_v38, %v81_v39  ;;  %v241_v29 = vld [vmem:[%s6616_s1 + $0x658] sm:$0xff] }
  0xbc   :  { %3486 = vmatpush2.bf16.msra.mxu1 %v4530_v43  ;;  %v4420_v43 = vcombine.low %v345_v30, %v353_v31  ;;  %v489_v30 = vld [vmem:[%s6616_s1 + $0xe18] sm:$0xff] }
  0xbd   :  { %3487 = vmatprep.subr.bf16.mxu1 %v4515_v45  ;;  %v4405_v45 = vcombine.high %v329_v40, %v337_v41  ;;  %v497_v31 = vld [vmem:[%s6616_s1 + $0xe58] sm:$0xff] }
  0xbe   :  { %3435 = vmatpush2.bf16.msra.mxu0 %v4258_v51  ;;  %v4148_v51 = vcombine.low %v73_v38, %v81_v39  ;;  %v217_v38 = vld [vmem:[%s6616_s1 + $0x598] sm:$0xff] }
  0xbf   :  { %3436 = vmatprep.subr.bf16.mxu0 %v4243_v54  ;;  %v4133_v54 = vcombine.high %v57_v46, %v65_v47  ;;  %v225_v39 = vld [vmem:[%s6616_s1 + $0x5d8] sm:$0xff] }
  0xc0   :  { %3488 = vmatpush2.bf16.msra.mxu1 %v4514_v53  ;;  %v4404_v53 = vcombine.low %v329_v40, %v337_v41  ;;  %v473_v40 = vld [vmem:[%s6616_s1 + $0xd98] sm:$0xff] }
  0xc1   :  { %3489 = vmatprep.subr.bf16.mxu1 %v4499_v55  ;;  %v4389_v55 = vcombine.high %v313_v48, %v321_v49  ;;  %v481_v41 = vld [vmem:[%s6616_s1 + $0xdd8] sm:$0xff] }
  0xc2   :  { %3437 = vmatpush2.bf16.msra.mxu0 %v4242_v61  ;;  %v4132_v61 = vcombine.low %v57_v46, %v65_v47  ;;  %v201_v46 = vld [vmem:[%s6616_s1 + $0x518] sm:$0xff] }
  0xc3   :  { %3512 = vmatprep.subr.bf16.mxu0 %v4229_v0  ;;  %v4117_v0 = vcombine.high %v41_v56, %v49_v57  ;;  %v209_v47 = vld [vmem:[%s6616_s1 + $0x558] sm:$0xff] }
  0xc4   :  { %3490 = vmatpush2.bf16.msra.mxu1 %v4498_v62  ;;  %v4388_v62 = vcombine.low %v313_v48, %v321_v49  ;;  %v457_v48 = vld [vmem:[%s6616_s1 + $0xd18] sm:$0xff] }
  0xc5   :  { %3565 = vmatprep.subr.bf16.mxu1 %v4485_v1  ;;  %3439 = vmatmul.mubr.bf16.vlgmr.msra.gmra.mxu0 %v4886_v21  ;;  %v4373_v1 = vcombine.high %v297_v59, %v305_v60  ;;  %v465_v49 = vld [vmem:[%s6616_s1 + $0xd58] sm:$0xff] }
  0xc6   :  { %3513 = vmatpush1.bf16.msra.mxu0 %v4228_v6  ;;  %3448 = vmatprep.mubr.bf16.mxu0 %v4911_v34  ;;  %v4116_v6 = vcombine.low %v41_v56, %v49_v57  ;;  %v185_v56 = vld [vmem:[%s6616_s1 + $0x498] sm:$0xff] }
  0xc7   :  { %3492 = vmatmul.mubr.bf16.vlgmr.msra.gmra.mxu1 %v4897_v25  ;;  %3514 = vmatprep.subr.bf16.mxu0 %v4213_v8  ;;  %v4357_v8 = vcombine.high %v281_v2, %v289_v3  ;;  %v193_v57 = vld [vmem:[%s6616_s1 + $0x4d8] sm:$0xff] }
  0xc8   :  { %3566 = vmatpush1.bf16.msra.mxu1 %v4484_v7  ;;  %3501 = vmatprep.mubr.bf16.mxu1 %v4920_v37  ;;  %v4372_v7 = vcombine.low %v297_v59, %v305_v60  ;;  %v441_v59 = vld [vmem:[%s6616_s1 + $0xc98] sm:$0xff] }
  0xc9   :  { %3567 = vmatprep.subr.bf16.mxu1 %v4469_v9  ;;  %v4613_v9 = vcombine.high %v537_v4, %v545_v5  ;;  %v449_v60 = vld [vmem:[%s6616_s1 + $0xcd8] sm:$0xff] }
  0xca   :  { %3515 = vmatpush1.bf16.msra.mxu0 %v4212_v14  ;;  %v4356_v14 = vcombine.low %v281_v2, %v289_v3  ;;  %v4517_v2 = vcombine.high %v441_v59, %v449_v60  ;;  %v169_v3 = vld [vmem:[%s6616_s1 + $0x418] sm:$0xff] }
  0xcb   :  { %3516 = vmatprep.subr.bf16.mxu0 %v4197_v16  ;;  %v4341_v16 = vcombine.high %v265_v10, %v273_v11 }
  0xcc   :  { %3568 = vmatpush1.bf16.msra.mxu1 %v4468_v15  ;;  %v4612_v15 = vcombine.low %v537_v4, %v545_v5  ;;  %v177_v4 = vld [vmem:[%s6616_s1 + $0x458] sm:$0xff] }
  0xcd   :  { %3569 = vmatprep.subr.bf16.mxu1 %v4453_v17  ;;  %3449 = vmatmul.mubr.bf16.gmra.mxu0 %v4948_v50  ;;  %v4597_v17 = vcombine.high %v521_v12, %v529_v13  ;;  %v425_v5 = vld [vmem:[%s6616_s1 + $0xc18] sm:$0xff] }
  0xce   :  { %3517 = vmatpush1.bf16.msra.mxu0 %v4196_v23  ;;  %3544 = vmatprep.mubr.bf16.mxu0 %v4739_v58  ;;  %v4340_v23 = vcombine.low %v265_v10, %v273_v11  ;;  %v4245_v10 = vcombine.high %v169_v3, %v177_v4 }
  0xcf   :  { %3502 = vmatmul.mubr.bf16.gmra.mxu1 %v4951_v52  ;;  %3518 = vmatprep.subr.bf16.mxu0 %v4181_v26  ;;  %v4325_v26 = vcombine.high %v249_v18, %v257_v19 }
  0xd0   :  { %3570 = vmatpush1.bf16.msra.mxu1 %v4452_v24  ;;  %3597 = vmatprep.mubr.bf16.mxu1 %v4753_v63  ;;  %v4596_v24 = vcombine.low %v521_v12, %v529_v13  ;;  %v154_v12 = vld [vmem:[%s6616_s1 + $0x3a0] sm:$0xff] }
  0xd1   :  { %3571 = vmatprep.subr.bf16.mxu1 %v4437_v27  ;;  %v4581_v27 = vcombine.high %v505_v20, %v513_v22  ;;  %v162_v13 = vld [vmem:[%s6616_s1 + $0x3e0] sm:$0xff] }
  0xd2   :  { %3519 = vmatpush1.bf16.msra.mxu0 %v4180_v32  ;;  %v4324_v32 = vcombine.low %v249_v18, %v257_v19  ;;  %v5519_v19 = vld [vmem:[%s6618_s2] sm:$0xff] }
  0xd3   :  { %3520 = vmatprep.subr.bf16.mxu0 %v4165_v35  ;;  %v4309_v35 = vcombine.high %v233_v28, %v241_v29 }
  0xd4   :  { %3572 = vmatpush1.bf16.msra.mxu1 %v4436_v33  ;;  %v4580_v33 = vcombine.low %v505_v20, %v513_v22  ;;  %v4231_v20 = vcombine.high %v154_v12, %v162_v13 }
  0xd5   :  { %3573 = vmatprep.subr.bf16.mxu1 %v4421_v36  ;;  %v4565_v36 = vcombine.high %v489_v30, %v497_v31 }
  0xd6   :  { %3521 = vmatpush1.bf16.msra.mxu0 %v4164_v42  ;;  %v4308_v42 = vcombine.low %v233_v28, %v241_v29  ;;  %v402_v28 = vld [vmem:[%s6616_s1 + $0xb60] sm:$0xff] }
  0xd7   :  { %3522 = vmatprep.subr.bf16.mxu0 %v4149_v44  ;;  %v4293_v44 = vcombine.high %v217_v38, %v225_v39 }
  0xd8   :  { %3574 = vmatpush1.bf16.msra.mxu1 %v4420_v43  ;;  %v4564_v43 = vcombine.low %v489_v30, %v497_v31  ;;  %v4230_v30 = vcombine.low %v154_v12, %v162_v13  ;;  %v354_v12 = vld [vmem:[%s6616_s1 + $0x9e0] sm:$0xff] }
  0xd9   :  { %3575 = vmatprep.subr.bf16.mxu1 %v4405_v45  ;;  %v4549_v45 = vcombine.high %v473_v40, %v481_v41 }
  0xda   :  { %3523 = vmatpush1.bf16.msra.mxu0 %v4148_v51  ;;  %v4292_v51 = vcombine.low %v217_v38, %v225_v39  ;;  %v130_v38 = vld [vmem:[%s6616_s1 + $0x2e0] sm:$0xff] }
  0xdb   :  { %3524 = vmatprep.subr.bf16.mxu0 %v4133_v54  ;;  %v4277_v54 = vcombine.high %v201_v46, %v209_v47 }
  0xdc   :  { %3576 = vmatpush1.bf16.msra.mxu1 %v4404_v53  ;;  %v4548_v53 = vcombine.low %v473_v40, %v481_v41  ;;  %v378_v40 = vld [vmem:[%s6616_s1 + $0xaa0] sm:$0xff] }
  0xdd   :  { %3577 = vmatprep.subr.bf16.mxu1 %v4389_v55  ;;  %v4533_v55 = vcombine.high %v457_v48, %v465_v49  ;;  %v386_v41 = vld [vmem:[%s6616_s1 + $0xae0] sm:$0xff] }
  0xde   :  { %3525 = vmatpush1.bf16.msra.mxu0 %v4132_v61  ;;  %v4276_v61 = vcombine.low %v201_v46, %v209_v47 }
  0xdf   :  { %3526 = vmatprep.subr.bf16.mxu0 %v4117_v0  ;;  %v4532_v0 = vcombine.low %v457_v48, %v465_v49 }
  0xe0   :  { %3578 = vmatpush1.bf16.msra.mxu1 %v4388_v62  ;;  %v554_v62 = vlaneseq }
  0xe1   :  { %3579 = vmatprep.subr.bf16.mxu1 %v4373_v1  ;;  %v4261_v1 = vcombine.high %v185_v56, %v193_v57 }
  0xe2   :  { %3527 = vmatpush1.bf16.msra.mxu0 %v4116_v6  ;;  %v433_v6 = vld [vmem:[%s6616_s1 + $0xc58] sm:$0xff] }
  0xe3   :  { %3528 = vmatprep.subr.bf16.mxu0 %v4357_v8  ;;  %v5501_v8 = vshrl.u32 %v554_v62, 7  ;;  %v4501_v11 = vcombine.high %v425_v5, %v433_v6  ;;  %v4500_v18 = vcombine.low %v425_v5, %v433_v6 }
  0xe4   :  { %3580 = vmatpush1.bf16.msra.mxu1 %v4372_v7  ;;  %v4260_v7 = vcombine.low %v185_v56, %v193_v57  ;;  %v362_v57 = vld [vmem:[%s6616_s1 + $0xa20] sm:$0xff] }
  0xe5   :  { %3581 = vmatprep.subr.bf16.mxu1 %v4613_v9  ;;  %v4516_v9 = vcombine.low %v441_v59, %v449_v60  ;;  %v370_v59 = vld [vmem:[%s6616_s1 + $0xa60] sm:$0xff] }
  0xe6   :  { %3529 = vmatpush2.bf16.msra.mxu0 %v4356_v14  ;;  %v410_v14 = vld [vmem:[%s6616_s1 + $0xba0] sm:$0xff] }
  0xe7   :  { %3530 = vmatprep.subr.bf16.mxu0 %v4341_v16  ;;  %v4244_v16 = vcombine.low %v169_v3, %v177_v4 }
  0xe8   :  { %3582 = vmatpush2.bf16.msra.mxu1 %v4612_v15  ;;  %v418_v15 = vld [vmem:[%s6616_s1 + $0xbe0] sm:$0xff] }
  0xe9   :  { %3583 = vmatprep.subr.bf16.mxu1 %v4597_v17  ;;  %v556_v17 = vsub.s32 0, %v5501_v8  ;;  %v4487_v22 = vcombine.high %v410_v14, %v418_v15  ;;  %v4486_v31 = vcombine.low %v410_v14, %v418_v15 }
  0xea   :  { %3531 = vmatpush2.bf16.msra.mxu0 %v4340_v23  ;;  %v560_v23 = vsub.s32 1, %v5501_v8 }
  0xeb   :  { %3532 = vmatprep.subr.bf16.mxu0 %v4325_v26  ;;  %v146_v26 = vld [vmem:[%s6616_s1 + $0x360] sm:$0xff]  ;;  %v5537_v29 = vrot.slane %v5519_v19, %v556_v17 }
  0xec   :  { %3584 = vmatpush2.bf16.msra.mxu1 %v4596_v24  ;;  %v138_v24 = vld [vmem:[%s6616_s1 + $0x320] sm:$0xff] }
  0xed   :  { %3585 = vmatprep.subr.bf16.mxu1 %v4581_v27  ;;  %v394_v27 = vld [vmem:[%s6616_s1 + $0xb20] sm:$0xff] }
  0xee   :  { %3533 = vmatpush2.bf16.msra.mxu0 %v4324_v32  ;;  %v4215_v32 = vcombine.high %v138_v24, %v146_v26  ;;  %v4470_v46 = vcombine.low %v394_v27, %v402_v28 }
  0xef   :  { %3534 = vmatprep.subr.bf16.mxu0 %v4309_v35  ;;  %v4471_v35 = vcombine.high %v394_v27, %v402_v28  ;;  %v74_v27 = vld [vmem:[%s6616_s1 + $0x120] sm:$0xff] }
  0xf0   :  { %3586 = vmatpush2.bf16.msra.mxu1 %v4580_v33  ;;  %v5542_v33 = vrot.slane %v5519_v19, %v560_v23  ;;  %v82_v28 = vld [vmem:[%s6616_s1 + $0x160] sm:$0xff] }
  0xf1   :  { %3587 = vmatprep.subr.bf16.mxu1 %v4565_v36  ;;  %v122_v36 = vld [vmem:[%s6616_s1 + $0x2a0] sm:$0xff] }
  0xf2   :  { %3535 = vmatpush2.bf16.msra.mxu0 %v4308_v42  ;;  %v4199_v47 = vcombine.high %v122_v36, %v130_v38 }
  0xf3   :  { %3536 = vmatprep.subr.bf16.mxu0 %v4293_v44  ;;  %v4214_v44 = vcombine.low %v138_v24, %v146_v26 }
  0xf4   :  { %3588 = vmatpush2.bf16.msra.mxu1 %v4564_v43 }
  0xf5   :  { %3589 = vmatprep.subr.bf16.mxu1 %v4549_v45 }
  0xf6   :  { %3537 = vmatpush2.bf16.msra.mxu0 %v4292_v51 }
  0xf7   :  { %3538 = vmatprep.subr.bf16.mxu0 %v4277_v54  ;;  %v106_v54 = vld [vmem:[%s6616_s1 + $0x220] sm:$0xff] }
  0xf8   :  { %3590 = vmatpush2.bf16.msra.mxu1 %v4548_v53  ;;  %v4455_v53 = vcombine.high %v378_v40, %v386_v41 }
  0xf9   :  { %3591 = vmatprep.subr.bf16.mxu1 %v4533_v55  ;;  %v114_v55 = vld [vmem:[%s6616_s1 + $0x260] sm:$0xff] }
  0xfa   :  { %3539 = vmatpush2.bf16.msra.mxu0 %v4276_v61  ;;  %v4183_v3 = vcombine.high %v106_v54, %v114_v55  ;;  %v4182_v15 = vcombine.low %v106_v54, %v114_v55  ;;  %v322_v54 = vld [vmem:[%s6616_s1 + $0x8e0] sm:$0xff]  ;;  %v4150_v55 = vcombine.low %v74_v27, %v82_v28 }
  0xfb   :  { %3540 = vmatprep.subr.bf16.mxu0 %v4261_v1 }
  0xfc   :  { %3592 = vmatpush2.bf16.msra.mxu1 %v4532_v0  ;;  %v4198_v0 = vcombine.low %v122_v36, %v130_v38  ;;  %v338_v36 = vld [vmem:[%s6616_s1 + $0x960] sm:$0xff] }
  0xfd   :  { %3593 = vmatprep.subr.bf16.mxu1 %v4517_v2  ;;  %v4454_v2 = vcombine.low %v378_v40, %v386_v41 }
  0xfe   :  { %3541 = vmatpush2.bf16.msra.mxu0 %v4260_v7  ;;  %v4439_v7 = vcombine.high %v362_v57, %v370_v59 }
  0xff   :  { %3542 = vmatprep.subr.bf16.mxu0 %v4245_v10  ;;  %v98_v10 = vld [vmem:[%s6616_s1 + $0x1e0] sm:$0xff] }
 0x100   :  { %3594 = vmatpush2.bf16.msra.mxu1 %v4516_v9  ;;  %v90_v9 = vld [vmem:[%s6616_s1 + $0x1a0] sm:$0xff] }
 0x101   :  { %3595 = vmatprep.subr.bf16.mxu1 %v4501_v11  ;;  %v346_v11 = vld [vmem:[%s6616_s1 + $0x9a0] sm:$0xff] }
 0x102   :  { %3543 = vmatpush2.bf16.msra.mxu0 %v4244_v16  ;;  %v4423_v26 = vcombine.high %v346_v11, %v354_v12 }
 0x103   :  { %3618 = vmatprep.subr.bf16.mxu0 %v4231_v20  ;;  %v4438_v20 = vcombine.low %v362_v57, %v370_v59 }
 0x104   :  { %3596 = vmatpush2.bf16.msra.mxu1 %v4500_v18 }
 0x105   :  { %3671 = vmatprep.subr.bf16.mxu1 %v4487_v22  ;;  %v3228_v39 = vpop.f32.mrf.mxu0  ;;  %3545 = vmatmul.mubr.bf16.vlgmr.msra.gmra.mxu0 %v4886_v21  ;;  %v4167_v22 = vcombine.high %v90_v9, %v98_v10 }
 0x106   :  { %v3229_v42 = vadd.f32 %v3228_v39, %v5537_v29  ;;  %3619 = vmatpush1.bf16.msra.mxu0 %v4230_v30  ;;  %3554 = vmatprep.mubr.bf16.mxu0 %v4911_v34  ;;  %v4166_v39 = vcombine.low %v90_v9, %v98_v10  ;;  %v546_v9 = vld [vmem:[%s6616_s1 + $0xfe0] sm:$0xff] }
 0x107   :  { %v3281_v43 = vpop.f32.mrf.mxu1  ;;  %3598 = vmatmul.mubr.bf16.vlgmr.msra.gmra.mxu1 %v4897_v25  ;;  %v3230_v45 = vpop.f32.mrf.mxu0  ;;  %3620 = vmatprep.subr.bf16.mxu0 %v4215_v32 }
 0x108   :  { %3672 = vmatpush1.bf16.msra.mxu1 %v4486_v31  ;;  %v3282_v48 = vadd.f32 %v3281_v43, %v3229_v42  ;;  %v3231_v49 = vadd.f32 %v3230_v45, %v5542_v33  ;;  %3607 = vmatprep.mubr.bf16.mxu1 %v4920_v37  ;;  %v4422_v43 = vcombine.low %v346_v11, %v354_v12 }
 0x109   :  { %v3283_v51 = vpop.f32.mrf.mxu1  ;;  %3673 = vmatprep.subr.bf16.mxu1 %v4471_v35  ;;  %v3232_v56 = vpop.f32.mrf.mxu0  ;;  %v330_v35 = vld [vmem:[%s6616_s1 + $0x920] sm:$0xff] }
 0x10a   :  { %4042 = vst [vmem:[%s6619_s3] sm:$0xff] %v3282_v48  ;;  %v3284_v60 = vadd.f32 %v3283_v51, %v3231_v49  ;;  %v3233_v61 = vadd.f32 %v3232_v56, %v5537_v29  ;;  %3621 = vmatpush1.bf16.msra.mxu0 %v4214_v44  ;;  %v4151_v44 = vcombine.high %v74_v27, %v82_v28  ;;  %v66_v48 = vld [vmem:[%s6616_s1 + $0xe0] sm:$0xff] }
 0x10b   :  { %v3285_v62 = vpop.f32.mrf.mxu1  ;;  %v3234_v1 = vpop.f32.mrf.mxu0  ;;  %3622 = vmatprep.subr.bf16.mxu0 %v4199_v47  ;;  %v58_v47 = vld [vmem:[%s6616_s1 + $0xa0] sm:$0xff] }
 0x10c   :  { %3674 = vmatpush1.bf16.msra.mxu1 %v4470_v46  ;;  %4043 = vst [vmem:[%s6619_s3 + $0x8] sm:$0xff] %v3284_v60  ;;  %v3286_v4 = vadd.f32 %v3285_v62, %v3233_v61  ;;  %v3235_v5 = vadd.f32 %v3234_v1, %v5542_v33  ;;  %v4407_v46 = vcombine.high %v330_v35, %v338_v36  ;;  %v42_v60 = vld [vmem:[%s6616_s1 + $0x20] sm:$0xff] }
 0x10d   :  { %v3287_v6 = vpop.f32.mrf.mxu1  ;;  %3675 = vmatprep.subr.bf16.mxu1 %v4455_v53  ;;  %v3238_v13 = vpop.f32.mrf.mxu0  ;;  %3555 = vmatmul.mubr.bf16.gmra.mxu0 %v4948_v50  ;;  %v314_v53 = vld [vmem:[%s6616_s1 + $0x8a0] sm:$0xff]  ;;  %v4135_v57 = vcombine.high %v58_v47, %v66_v48  ;;  %v4134_v1 = vcombine.low %v58_v47, %v66_v48 }
 0x10e   :  { %4058 = vst [vmem:[%s6619_s3 + $0x80] sm:$0xff] %v3286_v4  ;;  %v3288_v14 = vadd.f32 %v3287_v6, %v3235_v5  ;;  %3623 = vmatpush1.bf16.msra.mxu0 %v4198_v0  ;;  %v3239_v16 = vadd.f32 %v3238_v13, %v5537_v29  ;;  %3650 = vmatprep.mubr.bf16.mxu0 %v4739_v58  ;;  %v50_v61 = vld [vmem:[%s6616_s1 + $0x60] sm:$0xff] }
 0x10f   :  { %v3291_v18 = vpop.f32.mrf.mxu1  ;;  %3608 = vmatmul.mubr.bf16.gmra.mxu1 %v4951_v52  ;;  %3624 = vmatprep.subr.bf16.mxu0 %v4183_v3  ;;  %v3240_v24 = vpop.f32.mrf.mxu0  ;;  %v4391_v59 = vcombine.high %v314_v53, %v322_v54  ;;  %v298_v62 = vld [vmem:[%s6616_s1 + $0x820] sm:$0xff]  ;;  %v4119_v3 = vcombine.high %v42_v60, %v50_v61  ;;  %v4118_v10 = vcombine.low %v42_v60, %v50_v61 }
 0x110   :  { %3676 = vmatpush1.bf16.msra.mxu1 %v4454_v2  ;;  %4059 = vst [vmem:[%s6619_s3 + $0x88] sm:$0xff] %v3288_v14  ;;  %v3241_v30 = vadd.f32 %v3240_v24, %v5542_v33  ;;  %v3292_v31 = vadd.f32 %v3291_v18, %v3239_v16  ;;  %3703 = vmatprep.mubr.bf16.mxu1 %v4753_v63  ;;  %v306_v0 = vld [vmem:[%s6616_s1 + $0x860] sm:$0xff] }
 0x111   :  { %3677 = vmatprep.subr.bf16.mxu1 %v4439_v7  ;;  %v3293_v32 = vpop.f32.mrf.mxu1  ;;  %v3242_v38 = vpop.f32.mrf.mxu0  ;;  %v4390_v2 = vcombine.low %v314_v53, %v322_v54  ;;  %v4375_v4 = vcombine.high %v298_v62, %v306_v0  ;;  %v282_v5 = vld [vmem:[%s6616_s1 + $0x7a0] sm:$0xff]  ;;  %v4374_v11 = vcombine.low %v298_v62, %v306_v0 }
 0x112   :  { %3625 = vmatpush1.bf16.msra.mxu0 %v4182_v15  ;;  %4074 = vst [vmem:[%s6619_s3 + $0x100] sm:$0xff] %v3292_v31  ;;  %v3243_v40 = vadd.f32 %v3242_v38, %v5537_v29  ;;  %v3294_v41 = vadd.f32 %v3293_v32, %v3241_v30  ;;  %v290_v6 = vld [vmem:[%s6616_s1 + $0x7e0] sm:$0xff] }
 0x113   :  { %v3295_v42 = vpop.f32.mrf.mxu1  ;;  %3626 = vmatprep.subr.bf16.mxu0 %v4167_v22  ;;  %v3244_v45 = vpop.f32.mrf.mxu0  ;;  %v538_v7 = vld [vmem:[%s6616_s1 + $0xfa0] sm:$0xff]  ;;  %v4359_v12 = vcombine.high %v282_v5, %v290_v6 }
 0x114   :  { %3678 = vmatpush1.bf16.msra.mxu1 %v4438_v20  ;;  %4075 = vst [vmem:[%s6619_s3 + $0x108] sm:$0xff] %v3294_v41  ;;  %v3245_v29 = vadd.f32 %v3244_v45, %v5542_v33  ;;  %v3296_v49 = vadd.f32 %v3295_v42, %v3243_v40  ;;  %v4406_v33 = vcombine.low %v330_v35, %v338_v36  ;;  %v266_v14 = vld [vmem:[%s6616_s1 + $0x720] sm:$0xff] }
 0x115   :  { %3679 = vmatprep.subr.bf16.mxu1 %v4423_v26  ;;  %v3297_v51 = vpop.f32.mrf.mxu1  ;;  %v4615_v13 = vcombine.high %v538_v7, %v546_v9  ;;  %v274_v15 = vld [vmem:[%s6616_s1 + $0x760] sm:$0xff]  ;;  %v4358_v20 = vcombine.low %v282_v5, %v290_v6  ;;  %v4614_v22 = vcombine.low %v538_v7, %v546_v9 }
 0x116   :  { %3627 = vmatpush1.bf16.msra.mxu0 %v4166_v39  ;;  %4090 = vst [vmem:[%s6619_s3 + $0x180] sm:$0xff] %v3296_v49  ;;  %v3298_v56 = vadd.f32 %v3297_v51, %v3245_v29  ;;  %v522_v16 = vld [vmem:[%s6616_s1 + $0xf20] sm:$0xff]  ;;  %v4343_v24 = vcombine.high %v266_v14, %v274_v15  ;;  %v4342_v32 = vcombine.low %v266_v14, %v274_v15 }
 0x117   :  { %3628 = vmatprep.subr.bf16.mxu0 %v4151_v44  ;;  %v530_v18 = vld [vmem:[%s6616_s1 + $0xf60] sm:$0xff] }
 0x118   :  { %3680 = vmatpush1.bf16.msra.mxu1 %v4422_v43  ;;  %4091 = vst [vmem:[%s6619_s3 + $0x188] sm:$0xff] %v3298_v56  ;;  %v4599_v26 = vcombine.high %v522_v16, %v530_v18  ;;  %v250_v27 = vld [vmem:[%s6616_s1 + $0x6a0] sm:$0xff]  ;;  %v4598_v35 = vcombine.low %v522_v16, %v530_v18 }
 0x119   :  { %3681 = vmatprep.subr.bf16.mxu1 %v4407_v46  ;;  %v258_v28 = vld [vmem:[%s6616_s1 + $0x6e0] sm:$0xff] }
 0x11a   :  { %3629 = vmatpush1.bf16.msra.mxu0 %v4150_v55  ;;  %v506_v30 = vld [vmem:[%s6616_s1 + $0xea0] sm:$0xff]  ;;  %v4327_v36 = vcombine.high %v250_v27, %v258_v28  ;;  %v4326_v43 = vcombine.low %v250_v27, %v258_v28  ;;  %v564_v28 = vsub.s32 2, %v5501_v8 }
 0x11b   :  { %3630 = vmatprep.subr.bf16.mxu0 %v4135_v57  ;;  %v514_v31 = vld [vmem:[%s6616_s1 + $0xee0] sm:$0xff] }
 0x11c   :  { %3682 = vmatpush1.bf16.msra.mxu1 %v4406_v33  ;;  %v4583_v38 = vcombine.high %v506_v30, %v514_v31  ;;  %v234_v39 = vld [vmem:[%s6616_s1 + $0x620] sm:$0xff]  ;;  %v4582_v44 = vcombine.low %v506_v30, %v514_v31 }
 0x11d   :  { %3683 = vmatprep.subr.bf16.mxu1 %v4391_v59  ;;  %v242_v40 = vld [vmem:[%s6616_s1 + $0x660] sm:$0xff] }
 0x11e   :  { %3631 = vmatpush1.bf16.msra.mxu0 %v4134_v1  ;;  %v490_v41 = vld [vmem:[%s6616_s1 + $0xe20] sm:$0xff]  ;;  %v4311_v45 = vcombine.high %v234_v39, %v242_v40  ;;  %v4310_v51 = vcombine.low %v234_v39, %v242_v40  ;;  %v395_v39 = vld [vmem:[%s6616_s1 + $0xb28] sm:$0xff] }
 0x11f   :  { %3632 = vmatprep.subr.bf16.mxu0 %v4119_v3  ;;  %v498_v42 = vld [vmem:[%s6616_s1 + $0xe60] sm:$0xff]  ;;  %v403_v40 = vld [vmem:[%s6616_s1 + $0xb68] sm:$0xff] }
 0x120   :  { %3684 = vmatpush1.bf16.msra.mxu1 %v4390_v2  ;;  %v4567_v46 = vcombine.high %v490_v41, %v498_v42  ;;  %v218_v47 = vld [vmem:[%s6616_s1 + $0x5a0] sm:$0xff]  ;;  %v4566_v53 = vcombine.low %v490_v41, %v498_v42  ;;  %v5781_v41 = vrot.slane %v5519_v19, %v564_v28 }
 0x121   :  { %3685 = vmatprep.subr.bf16.mxu1 %v4375_v4  ;;  %v226_v48 = vld [vmem:[%s6616_s1 + $0x5e0] sm:$0xff] }
 0x122   :  { %3633 = vmatpush1.bf16.msra.mxu0 %v4118_v10  ;;  %v474_v29 = vld [vmem:[%s6616_s1 + $0xda0] sm:$0xff]  ;;  %v4295_v54 = vcombine.high %v218_v47, %v226_v48  ;;  %v4294_v60 = vcombine.low %v218_v47, %v226_v48  ;;  %v123_v47 = vld [vmem:[%s6616_s1 + $0x2a8] sm:$0xff] }
 0x123   :  { %3634 = vmatprep.subr.bf16.mxu0 %v4359_v12  ;;  %v482_v49 = vld [vmem:[%s6616_s1 + $0xde0] sm:$0xff]  ;;  %v131_v48 = vld [vmem:[%s6616_s1 + $0x2e8] sm:$0xff] }
 0x124   :  { %3686 = vmatpush1.bf16.msra.mxu1 %v4374_v11  ;;  %v4551_v55 = vcombine.high %v474_v29, %v482_v49  ;;  %v202_v56 = vld [vmem:[%s6616_s1 + $0x520] sm:$0xff]  ;;  %v4550_v61 = vcombine.low %v474_v29, %v482_v49  ;;  %v379_v49 = vld [vmem:[%s6616_s1 + $0xaa8] sm:$0xff] }
 0x125   :  { %3687 = vmatprep.subr.bf16.mxu1 %v4615_v13  ;;  %v210_v33 = vld [vmem:[%s6616_s1 + $0x560] sm:$0xff] }
 0x126   :  { %3635 = vmatpush2.bf16.msra.mxu0 %v4358_v20  ;;  %v458_v57 = vld [vmem:[%s6616_s1 + $0xd20] sm:$0xff]  ;;  %v4279_v62 = vcombine.high %v202_v56, %v210_v33  ;;  %v4278_v5 = vcombine.low %v202_v56, %v210_v33  ;;  %v155_v20 = vld [vmem:[%s6616_s1 + $0x3a8] sm:$0xff]  ;;  %v4472_v33 = vcombine.low %v395_v39, %v403_v40 }
 0x127   :  { %3636 = vmatprep.subr.bf16.mxu0 %v4343_v24  ;;  %v466_v59 = vld [vmem:[%s6616_s1 + $0xd60] sm:$0xff]  ;;  %v411_v24 = vld [vmem:[%s6616_s1 + $0xba8] sm:$0xff] }
 0x128   :  { %3688 = vmatpush2.bf16.msra.mxu1 %v4614_v22  ;;  %v4535_v0 = vcombine.high %v458_v57, %v466_v59  ;;  %v186_v1 = vld [vmem:[%s6616_s1 + $0x4a0] sm:$0xff]  ;;  %v4534_v6 = vcombine.low %v458_v57, %v466_v59  ;;  %v163_v22 = vld [vmem:[%s6616_s1 + $0x3e8] sm:$0xff]  ;;  %v4201_v57 = vcombine.high %v123_v47, %v131_v48 }
 0x129   :  { %3689 = vmatprep.subr.bf16.mxu1 %v4599_v26  ;;  %v194_v2 = vld [vmem:[%s6616_s1 + $0x4e0] sm:$0xff]  ;;  %v419_v26 = vld [vmem:[%s6616_s1 + $0xbe8] sm:$0xff]  ;;  %v4233_v31 = vcombine.high %v155_v20, %v163_v22  ;;  %v4232_v42 = vcombine.low %v155_v20, %v163_v22 }
 0x12a   :  { %3637 = vmatpush2.bf16.msra.mxu0 %v4342_v32  ;;  %v442_v3 = vld [vmem:[%s6616_s1 + $0xca0] sm:$0xff]  ;;  %v4263_v7 = vcombine.high %v186_v1, %v194_v2  ;;  %v4262_v14 = vcombine.low %v186_v1, %v194_v2  ;;  %v4489_v32 = vcombine.high %v411_v24, %v419_v26  ;;  %v115_v1 = vld [vmem:[%s6616_s1 + $0x268] sm:$0xff] }
 0x12b   :  { %3638 = vmatprep.subr.bf16.mxu0 %v4327_v36  ;;  %v450_v4 = vld [vmem:[%s6616_s1 + $0xce0] sm:$0xff]  ;;  %v139_v36 = vld [vmem:[%s6616_s1 + $0x328] sm:$0xff] }
 0x12c   :  { %3690 = vmatpush2.bf16.msra.mxu1 %v4598_v35  ;;  %v4519_v9 = vcombine.high %v442_v3, %v450_v4  ;;  %v170_v10 = vld [vmem:[%s6616_s1 + $0x420] sm:$0xff]  ;;  %v4518_v15 = vcombine.low %v442_v3, %v450_v4  ;;  %v568_v35 = vsub.s32 3, %v5501_v8  ;;  %v363_v3 = vld [vmem:[%s6616_s1 + $0xa28] sm:$0xff] }
 0x12d   :  { %3691 = vmatprep.subr.bf16.mxu1 %v4583_v38  ;;  %v178_v11 = vld [vmem:[%s6616_s1 + $0x460] sm:$0xff]  ;;  %v147_v38 = vld [vmem:[%s6616_s1 + $0x368] sm:$0xff] }
 0x12e   :  { %3639 = vmatpush2.bf16.msra.mxu0 %v4326_v43  ;;  %v426_v12 = vld [vmem:[%s6616_s1 + $0xc20] sm:$0xff]  ;;  %v4247_v16 = vcombine.high %v170_v10, %v178_v11  ;;  %v4246_v27 = vcombine.low %v170_v10, %v178_v11  ;;  %v4488_v43 = vcombine.low %v411_v24, %v419_v26  ;;  %v371_v4 = vld [vmem:[%s6616_s1 + $0xa68] sm:$0xff] }
 0x12f   :  { %3640 = vmatprep.subr.bf16.mxu0 %v4311_v45  ;;  %v434_v13 = vld [vmem:[%s6616_s1 + $0xc60] sm:$0xff]  ;;  %v5786_v45 = vrot.slane %v5519_v19, %v568_v35  ;;  %v99_v20 = vld [vmem:[%s6616_s1 + $0x1e8] sm:$0xff] }
 0x130   :  { %3692 = vmatpush2.bf16.msra.mxu1 %v4582_v44  ;;  %v4503_v18 = vcombine.high %v426_v12, %v434_v13  ;;  %v4502_v30 = vcombine.low %v426_v12, %v434_v13  ;;  %v4217_v44 = vcombine.high %v139_v36, %v147_v38  ;;  %v347_v22 = vld [vmem:[%s6616_s1 + $0x9a8] sm:$0xff] }
 0x131   :  { %3693 = vmatprep.subr.bf16.mxu1 %v4567_v46  ;;  %v4473_v46 = vcombine.high %v395_v39, %v403_v40  ;;  %v355_v24 = vld [vmem:[%s6616_s1 + $0x9e8] sm:$0xff] }
 0x132   :  { %3641 = vmatpush2.bf16.msra.mxu0 %v4310_v51  ;;  %v387_v51 = vld [vmem:[%s6616_s1 + $0xae8] sm:$0xff]  ;;  %v4425_v40 = vcombine.high %v347_v22, %v355_v24 }
 0x133   :  { %3642 = vmatprep.subr.bf16.mxu0 %v4295_v54  ;;  %v4456_v11 = vcombine.low %v379_v49, %v387_v51 }
 0x134   :  { %3694 = vmatpush2.bf16.msra.mxu1 %v4566_v53 }
 0x135   :  { %3695 = vmatprep.subr.bf16.mxu1 %v4551_v55  ;;  %v4216_v55 = vcombine.low %v139_v36, %v147_v38  ;;  %v4440_v36 = vcombine.low %v363_v3, %v371_v4 }
 0x136   :  { %3643 = vmatpush2.bf16.msra.mxu0 %v4294_v60 }
 0x137   :  { %3644 = vmatprep.subr.bf16.mxu0 %v4279_v62  ;;  %v4457_v62 = vcombine.high %v379_v49, %v387_v51 }
 0x138   :  { %3696 = vmatpush2.bf16.msra.mxu1 %v4550_v61 }
 0x139   :  { %3697 = vmatprep.subr.bf16.mxu1 %v4535_v0  ;;  %v107_v0 = vld [vmem:[%s6616_s1 + $0x228] sm:$0xff] }
 0x13a   :  { %3645 = vmatpush2.bf16.msra.mxu0 %v4278_v5  ;;  %v4185_v12 = vcombine.high %v107_v0, %v115_v1 }
 0x13b   :  { %3646 = vmatprep.subr.bf16.mxu0 %v4263_v7 }
 0x13c   :  { %3698 = vmatpush2.bf16.msra.mxu1 %v4534_v6 }
 0x13d   :  { %3699 = vmatprep.subr.bf16.mxu1 %v4519_v9  ;;  %v4200_v9 = vcombine.low %v123_v47, %v131_v48  ;;  %v331_v48 = vld [vmem:[%s6616_s1 + $0x928] sm:$0xff] }
 0x13e   :  { %3647 = vmatpush2.bf16.msra.mxu0 %v4262_v14 }
 0x13f   :  { %3648 = vmatprep.subr.bf16.mxu0 %v4247_v16  ;;  %v4441_v16 = vcombine.high %v363_v3, %v371_v4 }
 0x140   :  { %3700 = vmatpush2.bf16.msra.mxu1 %v4518_v15 }
 0x141   :  { %3701 = vmatprep.subr.bf16.mxu1 %v4503_v18  ;;  %v91_v18 = vld [vmem:[%s6616_s1 + $0x1a8] sm:$0xff] }
 0x142   :  { %3649 = vmatpush2.bf16.msra.mxu0 %v4246_v27  ;;  %v4169_v38 = vcombine.high %v91_v18, %v99_v20  ;;  %v4168_v51 = vcombine.low %v91_v18, %v99_v20  ;;  %v291_v18 = vld [vmem:[%s6616_s1 + $0x7e8] sm:$0xff] }
 0x143   :  { %3724 = vmatprep.subr.bf16.mxu0 %v4233_v31  ;;  %v539_v20 = vld [vmem:[%s6616_s1 + $0xfa8] sm:$0xff] }
 0x144   :  { %3702 = vmatpush2.bf16.msra.mxu1 %v4502_v30  ;;  %v4184_v30 = vcombine.low %v107_v0, %v115_v1  ;;  %v315_v1 = vld [vmem:[%s6616_s1 + $0x8a8] sm:$0xff] }
 0x145   :  { %3777 = vmatprep.subr.bf16.mxu1 %v4489_v32  ;;  %v3334_v29 = vpop.f32.mrf.mxu0  ;;  %3651 = vmatmul.mubr.bf16.vlgmr.msra.gmra.mxu0 %v4886_v21 }
 0x146   :  { %v3335_v53 = vadd.f32 %v3334_v29, %v5781_v41  ;;  %3725 = vmatpush1.bf16.msra.mxu0 %v4232_v42  ;;  %3660 = vmatprep.mubr.bf16.mxu0 %v4911_v34  ;;  %v75_v42 = vld [vmem:[%s6616_s1 + $0x128] sm:$0xff] }
 0x147   :  { %v3387_v54 = vpop.f32.mrf.mxu1  ;;  %3704 = vmatmul.mubr.bf16.vlgmr.msra.gmra.mxu1 %v4897_v25  ;;  %v3336_v56 = vpop.f32.mrf.mxu0  ;;  %3726 = vmatprep.subr.bf16.mxu0 %v4217_v44  ;;  %v339_v29 = vld [vmem:[%s6616_s1 + $0x968] sm:$0xff] }
 0x148   :  { %3778 = vmatpush1.bf16.msra.mxu1 %v4488_v43  ;;  %v3388_v59 = vadd.f32 %v3387_v54, %v3335_v53  ;;  %v3337_v60 = vadd.f32 %v3336_v56, %v5786_v45  ;;  %3713 = vmatprep.mubr.bf16.mxu1 %v4920_v37  ;;  %v83_v43 = vld [vmem:[%s6616_s1 + $0x168] sm:$0xff]  ;;  %v4424_v56 = vcombine.low %v347_v22, %v355_v24 }
 0x149   :  { %v3389_v61 = vpop.f32.mrf.mxu1  ;;  %3779 = vmatprep.subr.bf16.mxu1 %v4473_v46  ;;  %v3338_v2 = vpop.f32.mrf.mxu0  ;;  %v4152_v3 = vcombine.low %v75_v42, %v83_v43  ;;  %v547_v22 = vld [vmem:[%s6616_s1 + $0xfe8] sm:$0xff] }
 0x14a   :  { %4044 = vst [vmem:[%s6619_s3 + $0x10] sm:$0xff] %v3388_v59  ;;  %v3390_v5 = vadd.f32 %v3389_v61, %v3337_v60  ;;  %v3339_v6 = vadd.f32 %v3338_v2, %v5781_v41  ;;  %3727 = vmatpush1.bf16.msra.mxu0 %v4216_v55  ;;  %v4409_v59 = vcombine.high %v331_v48, %v339_v29  ;;  %v59_v60 = vld [vmem:[%s6616_s1 + $0xa8] sm:$0xff] }
 0x14b   :  { %v3391_v7 = vpop.f32.mrf.mxu1  ;;  %v3340_v10 = vpop.f32.mrf.mxu0  ;;  %3728 = vmatprep.subr.bf16.mxu0 %v4201_v57  ;;  %v67_v61 = vld [vmem:[%s6616_s1 + $0xe8] sm:$0xff] }
 0x14c   :  { %3780 = vmatpush1.bf16.msra.mxu1 %v4472_v33  ;;  %4045 = vst [vmem:[%s6619_s3 + $0x18] sm:$0xff] %v3390_v5  ;;  %v3392_v13 = vadd.f32 %v3391_v7, %v3339_v6  ;;  %v3341_v14 = vadd.f32 %v3340_v10, %v5786_v45  ;;  %v4153_v33 = vcombine.high %v75_v42, %v83_v43  ;;  %v323_v2 = vld [vmem:[%s6616_s1 + $0x8e8] sm:$0xff] }
 0x14d   :  { %v3393_v15 = vpop.f32.mrf.mxu1  ;;  %3781 = vmatprep.subr.bf16.mxu1 %v4457_v62  ;;  %v3344_v26 = vpop.f32.mrf.mxu0  ;;  %3661 = vmatmul.mubr.bf16.gmra.mxu0 %v4948_v50  ;;  %v4137_v5 = vcombine.high %v59_v60, %v67_v61  ;;  %v4393_v6 = vcombine.high %v315_v1, %v323_v2  ;;  %v43_v7 = vld [vmem:[%s6616_s1 + $0x28] sm:$0xff] }
 0x14e   :  { %4060 = vst [vmem:[%s6619_s3 + $0x90] sm:$0xff] %v3392_v13  ;;  %v3394_v27 = vadd.f32 %v3393_v15, %v3341_v14  ;;  %3729 = vmatpush1.bf16.msra.mxu0 %v4200_v9  ;;  %v3345_v31 = vadd.f32 %v3344_v26, %v5781_v41  ;;  %3756 = vmatprep.mubr.bf16.mxu0 %v4739_v58  ;;  %v51_v9 = vld [vmem:[%s6616_s1 + $0x68] sm:$0xff] }
 0x14f   :  { %v3397_v32 = vpop.f32.mrf.mxu1  ;;  %3714 = vmatmul.mubr.bf16.gmra.mxu1 %v4951_v52  ;;  %3730 = vmatprep.subr.bf16.mxu0 %v4185_v12  ;;  %v3346_v39 = vpop.f32.mrf.mxu0  ;;  %v299_v10 = vld [vmem:[%s6616_s1 + $0x828] sm:$0xff]  ;;  %v4136_v12 = vcombine.low %v59_v60, %v67_v61  ;;  %v4392_v13 = vcombine.low %v315_v1, %v323_v2  ;;  %v4121_v14 = vcombine.high %v43_v7, %v51_v9 }
 0x150   :  { %3782 = vmatpush1.bf16.msra.mxu1 %v4456_v11  ;;  %4061 = vst [vmem:[%s6619_s3 + $0x98] sm:$0xff] %v3394_v27  ;;  %v3347_v44 = vadd.f32 %v3346_v39, %v5786_v45  ;;  %v3398_v46 = vadd.f32 %v3397_v32, %v3345_v31  ;;  %3809 = vmatprep.mubr.bf16.mxu1 %v4753_v63  ;;  %v307_v11 = vld [vmem:[%s6616_s1 + $0x868] sm:$0xff] }
 0x151   :  { %3783 = vmatprep.subr.bf16.mxu1 %v4441_v16  ;;  %v3399_v47 = vpop.f32.mrf.mxu1  ;;  %v3348_v49 = vpop.f32.mrf.mxu0  ;;  %v4377_v15 = vcombine.high %v299_v10, %v307_v11  ;;  %v283_v16 = vld [vmem:[%s6616_s1 + $0x7a8] sm:$0xff]  ;;  %v4120_v24 = vcombine.low %v43_v7, %v51_v9  ;;  %v4376_v26 = vcombine.low %v299_v10, %v307_v11 }
 0x152   :  { %3731 = vmatpush1.bf16.msra.mxu0 %v4184_v30  ;;  %4076 = vst [vmem:[%s6619_s3 + $0x110] sm:$0xff] %v3398_v46  ;;  %v3349_v53 = vadd.f32 %v3348_v49, %v5781_v41  ;;  %v3400_v54 = vadd.f32 %v3399_v47, %v3347_v44  ;;  %v4361_v27 = vcombine.high %v283_v16, %v291_v18  ;;  %v267_v31 = vld [vmem:[%s6616_s1 + $0x728] sm:$0xff] }
 0x153   :  { %v3401_v55 = vpop.f32.mrf.mxu1  ;;  %3732 = vmatprep.subr.bf16.mxu0 %v4169_v38  ;;  %v3350_v57 = vpop.f32.mrf.mxu0  ;;  %v4617_v30 = vcombine.high %v539_v20, %v547_v22  ;;  %v275_v32 = vld [vmem:[%s6616_s1 + $0x768] sm:$0xff]  ;;  %v4360_v39 = vcombine.low %v283_v16, %v291_v18 }
 0x154   :  { %3784 = vmatpush1.bf16.msra.mxu1 %v4440_v36  ;;  %4077 = vst [vmem:[%s6619_s3 + $0x118] sm:$0xff] %v3400_v54  ;;  %v3351_v41 = vadd.f32 %v3350_v57, %v5786_v45  ;;  %v3402_v62 = vadd.f32 %v3401_v55, %v3349_v53  ;;  %v4408_v45 = vcombine.low %v331_v48, %v339_v29  ;;  %v523_v36 = vld [vmem:[%s6616_s1 + $0xf28] sm:$0xff] }
 0x155   :  { %3785 = vmatprep.subr.bf16.mxu1 %v4425_v40  ;;  %v3403_v0 = vpop.f32.mrf.mxu1  ;;  %v531_v38 = vld [vmem:[%s6616_s1 + $0xf68] sm:$0xff]  ;;  %v4616_v40 = vcombine.low %v539_v20, %v547_v22  ;;  %v4345_v42 = vcombine.high %v267_v31, %v275_v32  ;;  %v4344_v29 = vcombine.low %v267_v31, %v275_v32 }
 0x156   :  { %3733 = vmatpush1.bf16.msra.mxu0 %v4168_v51  ;;  %4092 = vst [vmem:[%s6619_s3 + $0x190] sm:$0xff] %v3402_v62  ;;  %v3404_v4 = vadd.f32 %v3403_v0, %v3351_v41  ;;  %v4601_v43 = vcombine.high %v523_v36, %v531_v38  ;;  %v251_v44 = vld [vmem:[%s6616_s1 + $0x6a8] sm:$0xff]  ;;  %v4600_v49 = vcombine.low %v523_v36, %v531_v38 }
 0x157   :  { %3734 = vmatprep.subr.bf16.mxu0 %v4153_v33  ;;  %v259_v46 = vld [vmem:[%s6616_s1 + $0x6e8] sm:$0xff] }
 0x158   :  { %3786 = vmatpush1.bf16.msra.mxu1 %v4424_v56  ;;  %4093 = vst [vmem:[%s6619_s3 + $0x198] sm:$0xff] %v3404_v4  ;;  %v507_v47 = vld [vmem:[%s6616_s1 + $0xea8] sm:$0xff]  ;;  %v4329_v51 = vcombine.high %v251_v44, %v259_v46  ;;  %v4328_v57 = vcombine.low %v251_v44, %v259_v46  ;;  %v412_v44 = vld [vmem:[%s6616_s1 + $0xbb0] sm:$0xff] }
 0x159   :  { %3787 = vmatprep.subr.bf16.mxu1 %v4409_v59  ;;  %v515_v48 = vld [vmem:[%s6616_s1 + $0xee8] sm:$0xff]  ;;  %v420_v46 = vld [vmem:[%s6616_s1 + $0xbf0] sm:$0xff] }
 0x15a   :  { %3735 = vmatpush1.bf16.msra.mxu0 %v4152_v3  ;;  %v4585_v53 = vcombine.high %v507_v47, %v515_v48  ;;  %v235_v54 = vld [vmem:[%s6616_s1 + $0x628] sm:$0xff]  ;;  %v4584_v59 = vcombine.low %v507_v47, %v515_v48  ;;  %v572_v48 = vsub.s32 4, %v5501_v8 }
 0x15b   :  { %3736 = vmatprep.subr.bf16.mxu0 %v4137_v5  ;;  %v243_v55 = vld [vmem:[%s6616_s1 + $0x668] sm:$0xff] }
 0x15c   :  { %3788 = vmatpush1.bf16.msra.mxu1 %v4408_v45  ;;  %v491_v56 = vld [vmem:[%s6616_s1 + $0xe28] sm:$0xff]  ;;  %v4313_v60 = vcombine.high %v235_v54, %v243_v55  ;;  %v4312_v2 = vcombine.low %v235_v54, %v243_v55  ;;  %v140_v54 = vld [vmem:[%s6616_s1 + $0x330] sm:$0xff] }
 0x15d   :  { %3789 = vmatprep.subr.bf16.mxu1 %v4393_v6  ;;  %v499_v33 = vld [vmem:[%s6616_s1 + $0xe68] sm:$0xff]  ;;  %v148_v55 = vld [vmem:[%s6616_s1 + $0x370] sm:$0xff] }
 0x15e   :  { %3737 = vmatpush1.bf16.msra.mxu0 %v4136_v12  ;;  %v4569_v61 = vcombine.high %v491_v56, %v499_v33  ;;  %v219_v41 = vld [vmem:[%s6616_s1 + $0x5a8] sm:$0xff]  ;;  %v4568_v3 = vcombine.low %v491_v56, %v499_v33  ;;  %v396_v56 = vld [vmem:[%s6616_s1 + $0xb30] sm:$0xff] }
 0x15f   :  { %3738 = vmatprep.subr.bf16.mxu0 %v4121_v14  ;;  %v227_v62 = vld [vmem:[%s6616_s1 + $0x5e8] sm:$0xff]  ;;  %v404_v33 = vld [vmem:[%s6616_s1 + $0xb70] sm:$0xff] }
 0x160   :  { %3790 = vmatpush1.bf16.msra.mxu1 %v4392_v13  ;;  %v475_v0 = vld [vmem:[%s6616_s1 + $0xda8] sm:$0xff]  ;;  %v4297_v4 = vcombine.high %v219_v41, %v227_v62  ;;  %v4296_v10 = vcombine.low %v219_v41, %v227_v62  ;;  %v4475_v62 = vcombine.high %v396_v56, %v404_v33 }
 0x161   :  { %3791 = vmatprep.subr.bf16.mxu1 %v4377_v15  ;;  %v483_v1 = vld [vmem:[%s6616_s1 + $0xde8] sm:$0xff] }
 0x162   :  { %3739 = vmatpush1.bf16.msra.mxu0 %v4120_v24  ;;  %v4553_v45 = vcombine.high %v475_v0, %v483_v1  ;;  %v203_v5 = vld [vmem:[%s6616_s1 + $0x528] sm:$0xff]  ;;  %v4552_v11 = vcombine.low %v475_v0, %v483_v1  ;;  %v124_v0 = vld [vmem:[%s6616_s1 + $0x2b0] sm:$0xff] }
 0x163   :  { %3740 = vmatprep.subr.bf16.mxu0 %v4361_v27  ;;  %v211_v6 = vld [vmem:[%s6616_s1 + $0x568] sm:$0xff]  ;;  %v132_v1 = vld [vmem:[%s6616_s1 + $0x2f0] sm:$0xff] }
 0x164   :  { %3792 = vmatpush1.bf16.msra.mxu1 %v4376_v26  ;;  %v459_v7 = vld [vmem:[%s6616_s1 + $0xd28] sm:$0xff]  ;;  %v4281_v12 = vcombine.high %v203_v5, %v211_v6  ;;  %v4280_v20 = vcombine.low %v203_v5, %v211_v6  ;;  %v4218_v5 = vcombine.low %v140_v54, %v148_v55 }
 0x165   :  { %3793 = vmatprep.subr.bf16.mxu1 %v4617_v30  ;;  %v467_v9 = vld [vmem:[%s6616_s1 + $0xd68] sm:$0xff] }
 0x166   :  { %3741 = vmatpush2.bf16.msra.mxu0 %v4360_v39  ;;  %v4537_v13 = vcombine.high %v459_v7, %v467_v9  ;;  %v187_v14 = vld [vmem:[%s6616_s1 + $0x4a8] sm:$0xff]  ;;  %v4536_v22 = vcombine.low %v459_v7, %v467_v9  ;;  %v4474_v7 = vcombine.low %v396_v56, %v404_v33  ;;  %v4203_v9 = vcombine.high %v124_v0, %v132_v1 }
 0x167   :  { %3742 = vmatprep.subr.bf16.mxu0 %v4345_v42  ;;  %v195_v15 = vld [vmem:[%s6616_s1 + $0x4e8] sm:$0xff]  ;;  %v156_v42 = vld [vmem:[%s6616_s1 + $0x3b0] sm:$0xff] }
 0x168   :  { %3794 = vmatpush2.bf16.msra.mxu1 %v4616_v40  ;;  %v443_v16 = vld [vmem:[%s6616_s1 + $0xca8] sm:$0xff]  ;;  %v4265_v24 = vcombine.high %v187_v14, %v195_v15  ;;  %v4264_v36 = vcombine.low %v187_v14, %v195_v15  ;;  %v108_v14 = vld [vmem:[%s6616_s1 + $0x230] sm:$0xff] }
 0x169   :  { %3795 = vmatprep.subr.bf16.mxu1 %v4601_v43  ;;  %v451_v18 = vld [vmem:[%s6616_s1 + $0xce8] sm:$0xff]  ;;  %v164_v43 = vld [vmem:[%s6616_s1 + $0x3f0] sm:$0xff] }
 0x16a   :  { %3743 = vmatpush2.bf16.msra.mxu0 %v4344_v29  ;;  %v4521_v26 = vcombine.high %v443_v16, %v451_v18  ;;  %v171_v27 = vld [vmem:[%s6616_s1 + $0x428] sm:$0xff]  ;;  %v4520_v38 = vcombine.low %v443_v16, %v451_v18  ;;  %v116_v15 = vld [vmem:[%s6616_s1 + $0x270] sm:$0xff] }
 0x16b   :  { %3744 = vmatprep.subr.bf16.mxu0 %v4329_v51  ;;  %v179_v30 = vld [vmem:[%s6616_s1 + $0x468] sm:$0xff]  ;;  %v4491_v51 = vcombine.high %v412_v44, %v420_v46  ;;  %v364_v18 = vld [vmem:[%s6616_s1 + $0xa30] sm:$0xff] }
 0x16c   :  { %3796 = vmatpush2.bf16.msra.mxu1 %v4600_v49  ;;  %v427_v31 = vld [vmem:[%s6616_s1 + $0xc28] sm:$0xff]  ;;  %v4249_v39 = vcombine.high %v171_v27, %v179_v30  ;;  %v4248_v47 = vcombine.low %v171_v27, %v179_v30  ;;  %v4235_v49 = vcombine.high %v156_v42, %v164_v43  ;;  %v4202_v27 = vcombine.low %v124_v0, %v132_v1 }
 0x16d   :  { %3797 = vmatprep.subr.bf16.mxu1 %v4585_v53  ;;  %v435_v32 = vld [vmem:[%s6616_s1 + $0xc68] sm:$0xff]  ;;  %v576_v53 = vsub.s32 5, %v5501_v8 }
 0x16e   :  { %3745 = vmatpush2.bf16.msra.mxu0 %v4328_v57  ;;  %v4505_v40 = vcombine.high %v427_v31, %v435_v32  ;;  %v4504_v29 = vcombine.low %v427_v31, %v435_v32  ;;  %v6025_v57 = vrot.slane %v5519_v19, %v572_v48  ;;  %v4187_v32 = vcombine.high %v108_v14, %v116_v15 }
 0x16f   :  { %3746 = vmatprep.subr.bf16.mxu0 %v4313_v60  ;;  %v4490_v60 = vcombine.low %v412_v44, %v420_v46  ;;  %v6030_v41 = vrot.slane %v5519_v19, %v576_v53  ;;  %v388_v19 = vld [vmem:[%s6616_s1 + $0xaf0] sm:$0xff] }
 0x170   :  { %3798 = vmatpush2.bf16.msra.mxu1 %v4584_v59  ;;  %v4234_v59 = vcombine.low %v156_v42, %v164_v43  ;;  %v92_v42 = vld [vmem:[%s6616_s1 + $0x1b0] sm:$0xff] }
 0x171   :  { %3799 = vmatprep.subr.bf16.mxu1 %v4569_v61  ;;  %v4219_v61 = vcombine.high %v140_v54, %v148_v55  ;;  %v100_v43 = vld [vmem:[%s6616_s1 + $0x1f0] sm:$0xff] }
 0x172   :  { %3747 = vmatpush2.bf16.msra.mxu0 %v4312_v2  ;;  %v348_v44 = vld [vmem:[%s6616_s1 + $0x9b0] sm:$0xff]  ;;  %v4171_v56 = vcombine.high %v92_v42, %v100_v43 }
 0x173   :  { %3748 = vmatprep.subr.bf16.mxu0 %v4297_v4  ;;  %v356_v46 = vld [vmem:[%s6616_s1 + $0x9f0] sm:$0xff] }
 0x174   :  { %3800 = vmatpush2.bf16.msra.mxu1 %v4568_v3  ;;  %v380_v3 = vld [vmem:[%s6616_s1 + $0xab0] sm:$0xff] }
 0x175   :  { %3801 = vmatprep.subr.bf16.mxu1 %v4553_v45  ;;  %v4458_v31 = vcombine.low %v380_v3, %v388_v19 }
 0x176   :  { %3749 = vmatpush2.bf16.msra.mxu0 %v4296_v10 }
 0x177   :  { %3750 = vmatprep.subr.bf16.mxu0 %v4281_v12 }
 0x178   :  { %3802 = vmatpush2.bf16.msra.mxu1 %v4552_v11 }
 0x179   :  { %3803 = vmatprep.subr.bf16.mxu1 %v4537_v13  ;;  %v4459_v13 = vcombine.high %v380_v3, %v388_v19  ;;  %v340_v3 = vld [vmem:[%s6616_s1 + $0x970] sm:$0xff] }
 0x17a   :  { %3751 = vmatpush2.bf16.msra.mxu0 %v4280_v20  ;;  %v372_v20 = vld [vmem:[%s6616_s1 + $0xa70] sm:$0xff] }
 0x17b   :  { %3752 = vmatprep.subr.bf16.mxu0 %v4265_v24  ;;  %v4442_v55 = vcombine.low %v364_v18, %v372_v20 }
 0x17c   :  { %3804 = vmatpush2.bf16.msra.mxu1 %v4536_v22 }
 0x17d   :  { %3805 = vmatprep.subr.bf16.mxu1 %v4521_v26 }
 0x17e   :  { %3753 = vmatpush2.bf16.msra.mxu0 %v4264_v36 }
 0x17f   :  { %3754 = vmatprep.subr.bf16.mxu0 %v4249_v39 }
 0x180   :  { %3806 = vmatpush2.bf16.msra.mxu1 %v4520_v38 }
 0x181   :  { %3807 = vmatprep.subr.bf16.mxu1 %v4505_v40  ;;  %v4443_v40 = vcombine.high %v364_v18, %v372_v20  ;;  %v324_v18 = vld [vmem:[%s6616_s1 + $0x8f0] sm:$0xff] }
 0x182   :  { %3755 = vmatpush2.bf16.msra.mxu0 %v4248_v47 }
 0x183   :  { %3830 = vmatprep.subr.bf16.mxu0 %v4235_v49  ;;  %v4186_v49 = vcombine.low %v108_v14, %v116_v15 }
 0x184   :  { %3808 = vmatpush2.bf16.msra.mxu1 %v4504_v29 }
 0x185   :  { %3883 = vmatprep.subr.bf16.mxu1 %v4491_v51  ;;  %v3440_v2 = vpop.f32.mrf.mxu0  ;;  %3757 = vmatmul.mubr.bf16.vlgmr.msra.gmra.mxu0 %v4886_v21 }
 0x186   :  { %v3441_v4 = vadd.f32 %v3440_v2, %v6025_v57  ;;  %3831 = vmatpush1.bf16.msra.mxu0 %v4234_v59  ;;  %3766 = vmatprep.mubr.bf16.mxu0 %v4911_v34  ;;  %v4427_v59 = vcombine.high %v348_v44, %v356_v46  ;;  %v332_v2 = vld [vmem:[%s6616_s1 + $0x930] sm:$0xff] }
 0x187   :  { %v3493_v45 = vpop.f32.mrf.mxu1  ;;  %3810 = vmatmul.mubr.bf16.vlgmr.msra.gmra.mxu1 %v4897_v25  ;;  %v3442_v6 = vpop.f32.mrf.mxu0  ;;  %3832 = vmatprep.subr.bf16.mxu0 %v4219_v61  ;;  %v84_v61 = vld [vmem:[%s6616_s1 + $0x170] sm:$0xff] }
 0x188   :  { %3884 = vmatpush1.bf16.msra.mxu1 %v4490_v60  ;;  %v3494_v10 = vadd.f32 %v3493_v45, %v3441_v4  ;;  %v3443_v11 = vadd.f32 %v3442_v6, %v6030_v41  ;;  %3819 = vmatprep.mubr.bf16.mxu1 %v4920_v37  ;;  %v76_v60 = vld [vmem:[%s6616_s1 + $0x130] sm:$0xff]  ;;  %v4170_v4 = vcombine.low %v92_v42, %v100_v43 }
 0x189   :  { %v3495_v12 = vpop.f32.mrf.mxu1  ;;  %3885 = vmatprep.subr.bf16.mxu1 %v4475_v62  ;;  %v3444_v16 = vpop.f32.mrf.mxu0  ;;  %v4154_v20 = vcombine.low %v76_v60, %v84_v61  ;;  %v284_v42 = vld [vmem:[%s6616_s1 + $0x7b0] sm:$0xff] }
 0x18a   :  { %4046 = vst [vmem:[%s6619_s3 + $0x20] sm:$0xff] %v3494_v10  ;;  %v3496_v22 = vadd.f32 %v3495_v12, %v3443_v11  ;;  %v3445_v24 = vadd.f32 %v3444_v16, %v6025_v57  ;;  %3833 = vmatpush1.bf16.msra.mxu0 %v4218_v5  ;;  %v4411_v11 = vcombine.high %v332_v2, %v340_v3  ;;  %v60_v12 = vld [vmem:[%s6616_s1 + $0xb0] sm:$0xff] }
 0x18b   :  { %v3497_v26 = vpop.f32.mrf.mxu1  ;;  %v3446_v30 = vpop.f32.mrf.mxu0  ;;  %3834 = vmatprep.subr.bf16.mxu0 %v4203_v9  ;;  %v4155_v9 = vcombine.high %v76_v60, %v84_v61  ;;  %v316_v16 = vld [vmem:[%s6616_s1 + $0x8b0] sm:$0xff] }
 0x18c   :  { %3886 = vmatpush1.bf16.msra.mxu1 %v4474_v7  ;;  %4047 = vst [vmem:[%s6619_s3 + $0x28] sm:$0xff] %v3496_v22  ;;  %v3498_v36 = vadd.f32 %v3497_v26, %v3445_v24  ;;  %v3447_v38 = vadd.f32 %v3446_v30, %v6030_v41  ;;  %v4426_v7 = vcombine.low %v348_v44, %v356_v46  ;;  %v52_v30 = vld [vmem:[%s6616_s1 + $0x70] sm:$0xff] }
 0x18d   :  { %v3499_v39 = vpop.f32.mrf.mxu1  ;;  %3887 = vmatprep.subr.bf16.mxu1 %v4459_v13  ;;  %v3450_v47 = vpop.f32.mrf.mxu0  ;;  %3767 = vmatmul.mubr.bf16.gmra.mxu0 %v4948_v50  ;;  %v68_v13 = vld [vmem:[%s6616_s1 + $0xf0] sm:$0xff]  ;;  %v4395_v26 = vcombine.high %v316_v16, %v324_v18 }
 0x18e   :  { %4062 = vst [vmem:[%s6619_s3 + $0xa0] sm:$0xff] %v3498_v36  ;;  %v3500_v29 = vadd.f32 %v3499_v39, %v3447_v38  ;;  %3835 = vmatpush1.bf16.msra.mxu0 %v4202_v27  ;;  %v3451_v51 = vadd.f32 %v3450_v47, %v6025_v57  ;;  %3862 = vmatprep.mubr.bf16.mxu0 %v4739_v58  ;;  %v44_v27 = vld [vmem:[%s6616_s1 + $0x30] sm:$0xff] }
 0x18f   :  { %v3503_v54 = vpop.f32.mrf.mxu1  ;;  %3820 = vmatmul.mubr.bf16.gmra.mxu1 %v4951_v52  ;;  %3836 = vmatprep.subr.bf16.mxu0 %v4187_v32  ;;  %v3452_v33 = vpop.f32.mrf.mxu0  ;;  %v4139_v24 = vcombine.high %v60_v12, %v68_v13  ;;  %v308_v32 = vld [vmem:[%s6616_s1 + $0x870] sm:$0xff]  ;;  %v4138_v36 = vcombine.low %v60_v12, %v68_v13  ;;  %v4394_v38 = vcombine.low %v316_v16, %v324_v18 }
 0x190   :  { %3888 = vmatpush1.bf16.msra.mxu1 %v4458_v31  ;;  %4063 = vst [vmem:[%s6619_s3 + $0xa8] sm:$0xff] %v3500_v29  ;;  %v3453_v62 = vadd.f32 %v3452_v33, %v6030_v41  ;;  %v3504_v0 = vadd.f32 %v3503_v54, %v3451_v51  ;;  %3915 = vmatprep.mubr.bf16.mxu1 %v4753_v63  ;;  %v300_v31 = vld [vmem:[%s6616_s1 + $0x830] sm:$0xff] }
 0x191   :  { %3889 = vmatprep.subr.bf16.mxu1 %v4443_v40  ;;  %v3505_v1 = vpop.f32.mrf.mxu1  ;;  %v3454_v19 = vpop.f32.mrf.mxu0  ;;  %v4123_v39 = vcombine.high %v44_v27, %v52_v30  ;;  %v4379_v40 = vcombine.high %v300_v31, %v308_v32  ;;  %v292_v43 = vld [vmem:[%s6616_s1 + $0x7f0] sm:$0xff]  ;;  %v4122_v47 = vcombine.low %v44_v27, %v52_v30  ;;  %v4378_v29 = vcombine.low %v300_v31, %v308_v32 }
 0x192   :  { %3837 = vmatpush1.bf16.msra.mxu0 %v4186_v49  ;;  %4078 = vst [vmem:[%s6619_s3 + $0x120] sm:$0xff] %v3504_v0  ;;  %v3455_v45 = vadd.f32 %v3454_v19, %v6025_v57  ;;  %v3506_v5 = vadd.f32 %v3505_v1, %v3453_v62  ;;  %v540_v44 = vld [vmem:[%s6616_s1 + $0xfb0] sm:$0xff]  ;;  %v4363_v49 = vcombine.high %v284_v42, %v292_v43 }
 0x193   :  { %v3507_v6 = vpop.f32.mrf.mxu1  ;;  %3838 = vmatprep.subr.bf16.mxu0 %v4171_v56  ;;  %v3456_v10 = vpop.f32.mrf.mxu0  ;;  %v548_v46 = vld [vmem:[%s6616_s1 + $0xff0] sm:$0xff] }
 0x194   :  { %3890 = vmatpush1.bf16.msra.mxu1 %v4442_v55  ;;  %4079 = vst [vmem:[%s6619_s3 + $0x128] sm:$0xff] %v3506_v5  ;;  %v3457_v57 = vadd.f32 %v3456_v10, %v6030_v41  ;;  %v3508_v14 = vadd.f32 %v3507_v6, %v3455_v45  ;;  %v4410_v41 = vcombine.low %v332_v2, %v340_v3  ;;  %v268_v54 = vld [vmem:[%s6616_s1 + $0x730] sm:$0xff] }
 0x195   :  { %3891 = vmatprep.subr.bf16.mxu1 %v4427_v59  ;;  %v3509_v15 = vpop.f32.mrf.mxu1  ;;  %v4619_v51 = vcombine.high %v540_v44, %v548_v46  ;;  %v276_v55 = vld [vmem:[%s6616_s1 + $0x770] sm:$0xff]  ;;  %v4362_v59 = vcombine.low %v284_v42, %v292_v43  ;;  %v4618_v60 = vcombine.low %v540_v44, %v548_v46 }
 0x196   :  { %3839 = vmatpush1.bf16.msra.mxu0 %v4170_v4  ;;  %4094 = vst [vmem:[%s6619_s3 + $0x1a0] sm:$0xff] %v3508_v14  ;;  %v3510_v22 = vadd.f32 %v3509_v15, %v3457_v57  ;;  %v524_v56 = vld [vmem:[%s6616_s1 + $0xf30] sm:$0xff]  ;;  %v4347_v61 = vcombine.high %v268_v54, %v276_v55  ;;  %v4346_v19 = vcombine.low %v268_v54, %v276_v55 }
 0x197   :  { %3840 = vmatprep.subr.bf16.mxu0 %v4155_v9  ;;  %v532_v33 = vld [vmem:[%s6616_s1 + $0xf70] sm:$0xff] }
 0x198   :  { %3892 = vmatpush1.bf16.msra.mxu1 %v4426_v7  ;;  %4095 = vst [vmem:[%s6619_s3 + $0x1a8] sm:$0xff] %v3510_v22  ;;  %v4603_v62 = vcombine.high %v524_v56, %v532_v33  ;;  %v252_v0 = vld [vmem:[%s6616_s1 + $0x6b0] sm:$0xff]  ;;  %v4602_v4 = vcombine.low %v524_v56, %v532_v33 }
 0x199   :  { %3893 = vmatprep.subr.bf16.mxu1 %v4411_v11  ;;  %v260_v1 = vld [vmem:[%s6616_s1 + $0x6f0] sm:$0xff] }
 0x19a   :  { %3841 = vmatpush1.bf16.msra.mxu0 %v4154_v20  ;;  %v508_v2 = vld [vmem:[%s6616_s1 + $0xeb0] sm:$0xff]  ;;  %v4331_v45 = vcombine.high %v252_v0, %v260_v1  ;;  %v4330_v11 = vcombine.low %v252_v0, %v260_v1  ;;  %v165_v0 = vld [vmem:[%s6616_s1 + $0x3f8] sm:$0xff] }
 0x19b   :  { %3842 = vmatprep.subr.bf16.mxu0 %v4139_v24  ;;  %v516_v3 = vld [vmem:[%s6616_s1 + $0xef0] sm:$0xff]  ;;  %v413_v1 = vld [vmem:[%s6616_s1 + $0xbb8] sm:$0xff] }
 0x19c   :  { %3894 = vmatpush1.bf16.msra.mxu1 %v4410_v41  ;;  %v4587_v5 = vcombine.high %v508_v2, %v516_v3  ;;  %v236_v6 = vld [vmem:[%s6616_s1 + $0x630] sm:$0xff]  ;;  %v4586_v12 = vcombine.low %v508_v2, %v516_v3  ;;  %v421_v2 = vld [vmem:[%s6616_s1 + $0xbf8] sm:$0xff] }
 0x19d   :  { %3895 = vmatprep.subr.bf16.mxu1 %v4395_v26  ;;  %v244_v7 = vld [vmem:[%s6616_s1 + $0x670] sm:$0xff] }
 0x19e   :  { %3843 = vmatpush1.bf16.msra.mxu0 %v4138_v36  ;;  %v492_v9 = vld [vmem:[%s6616_s1 + $0xe30] sm:$0xff]  ;;  %v4315_v13 = vcombine.high %v236_v6, %v244_v7  ;;  %v4314_v20 = vcombine.low %v236_v6, %v244_v7  ;;  %v584_v6 = vsub.s32 7, %v5501_v8  ;;  %v141_v7 = vld [vmem:[%s6616_s1 + $0x338] sm:$0xff] }
 0x19f   :  { %3844 = vmatprep.subr.bf16.mxu0 %v4123_v39  ;;  %v500_v10 = vld [vmem:[%s6616_s1 + $0xe70] sm:$0xff] }
 0x1a0   :  { %3896 = vmatpush1.bf16.msra.mxu1 %v4394_v38  ;;  %v4571_v57 = vcombine.high %v492_v9, %v500_v10  ;;  %v220_v14 = vld [vmem:[%s6616_s1 + $0x5b0] sm:$0xff]  ;;  %v4570_v22 = vcombine.low %v492_v9, %v500_v10  ;;  %v149_v9 = vld [vmem:[%s6616_s1 + $0x378] sm:$0xff] }
 0x1a1   :  { %3897 = vmatprep.subr.bf16.mxu1 %v4379_v40  ;;  %v228_v15 = vld [vmem:[%s6616_s1 + $0x5f0] sm:$0xff]  ;;  %v397_v10 = vld [vmem:[%s6616_s1 + $0xb38] sm:$0xff] }
 0x1a2   :  { %3845 = vmatpush1.bf16.msra.mxu0 %v4122_v47  ;;  %v476_v16 = vld [vmem:[%s6616_s1 + $0xdb0] sm:$0xff]  ;;  %v4299_v41 = vcombine.high %v220_v14, %v228_v15  ;;  %v4298_v32 = vcombine.low %v220_v14, %v228_v15  ;;  %v4492_v14 = vcombine.low %v413_v1, %v421_v2  ;;  %v4221_v15 = vcombine.high %v141_v7, %v149_v9 }
 0x1a3   :  { %3846 = vmatprep.subr.bf16.mxu0 %v4363_v49  ;;  %v484_v18 = vld [vmem:[%s6616_s1 + $0xdf0] sm:$0xff] }
 0x1a4   :  { %3898 = vmatpush1.bf16.msra.mxu1 %v4378_v29  ;;  %v4555_v24 = vcombine.high %v476_v16, %v484_v18  ;;  %v204_v26 = vld [vmem:[%s6616_s1 + $0x530] sm:$0xff]  ;;  %v4554_v36 = vcombine.low %v476_v16, %v484_v18 }
 0x1a5   :  { %3899 = vmatprep.subr.bf16.mxu1 %v4619_v51  ;;  %v212_v27 = vld [vmem:[%s6616_s1 + $0x570] sm:$0xff] }
 0x1a6   :  { %3847 = vmatpush2.bf16.msra.mxu0 %v4362_v59  ;;  %v460_v30 = vld [vmem:[%s6616_s1 + $0xd30] sm:$0xff]  ;;  %v4283_v38 = vcombine.high %v204_v26, %v212_v27  ;;  %v4282_v46 = vcombine.low %v204_v26, %v212_v27  ;;  %v389_v26 = vld [vmem:[%s6616_s1 + $0xaf8] sm:$0xff] }
 0x1a7   :  { %3848 = vmatprep.subr.bf16.mxu0 %v4347_v61  ;;  %v468_v31 = vld [vmem:[%s6616_s1 + $0xd70] sm:$0xff] }
 0x1a8   :  { %3900 = vmatpush2.bf16.msra.mxu1 %v4618_v60  ;;  %v4539_v39 = vcombine.high %v460_v30, %v468_v31  ;;  %v188_v40 = vld [vmem:[%s6616_s1 + $0x4b0] sm:$0xff]  ;;  %v4538_v47 = vcombine.low %v460_v30, %v468_v31  ;;  %v4220_v31 = vcombine.low %v141_v7, %v149_v9 }
 0x1a9   :  { %3901 = vmatprep.subr.bf16.mxu1 %v4603_v62  ;;  %v196_v42 = vld [vmem:[%s6616_s1 + $0x4f0] sm:$0xff]  ;;  %v157_v62 = vld [vmem:[%s6616_s1 + $0x3b8] sm:$0xff] }
 0x1aa   :  { %3849 = vmatpush2.bf16.msra.mxu0 %v4346_v19  ;;  %v444_v43 = vld [vmem:[%s6616_s1 + $0xcb0] sm:$0xff]  ;;  %v4267_v29 = vcombine.high %v188_v40, %v196_v42  ;;  %v4266_v33 = vcombine.low %v188_v40, %v196_v42  ;;  %v580_v19 = vsub.s32 6, %v5501_v8 }
 0x1ab   :  { %3850 = vmatprep.subr.bf16.mxu0 %v4331_v45  ;;  %v452_v44 = vld [vmem:[%s6616_s1 + $0xcf0] sm:$0xff]  ;;  %v4237_v45 = vcombine.high %v157_v62, %v165_v0 }
 0x1ac   :  { %3902 = vmatpush2.bf16.msra.mxu1 %v4602_v4  ;;  %v4523_v49 = vcombine.high %v444_v43, %v452_v44  ;;  %v172_v51 = vld [vmem:[%s6616_s1 + $0x430] sm:$0xff]  ;;  %v4522_v59 = vcombine.low %v444_v43, %v452_v44  ;;  %v109_v44 = vld [vmem:[%s6616_s1 + $0x238] sm:$0xff] }
 0x1ad   :  { %3903 = vmatprep.subr.bf16.mxu1 %v4587_v5  ;;  %v180_v54 = vld [vmem:[%s6616_s1 + $0x470] sm:$0xff]  ;;  %v4493_v5 = vcombine.high %v413_v1, %v421_v2  ;;  %v93_v2 = vld [vmem:[%s6616_s1 + $0x1b8] sm:$0xff] }
 0x1ae   :  { %3851 = vmatpush2.bf16.msra.mxu0 %v4330_v11  ;;  %v428_v55 = vld [vmem:[%s6616_s1 + $0xc30] sm:$0xff]  ;;  %v4251_v60 = vcombine.high %v172_v51, %v180_v54  ;;  %v4250_v3 = vcombine.low %v172_v51, %v180_v54  ;;  %v405_v11 = vld [vmem:[%s6616_s1 + $0xb78] sm:$0xff] }
 0x1af   :  { %3852 = vmatprep.subr.bf16.mxu0 %v4315_v13  ;;  %v436_v56 = vld [vmem:[%s6616_s1 + $0xc70] sm:$0xff]  ;;  %v4477_v18 = vcombine.high %v397_v10, %v405_v11 }
 0x1b0   :  { %3904 = vmatpush2.bf16.msra.mxu1 %v4586_v12  ;;  %v4507_v61 = vcombine.high %v428_v55, %v436_v56  ;;  %v4506_v4 = vcombine.low %v428_v55, %v436_v56  ;;  %v4622_v12 = vld [vmem:[%s6618_s2] sm:$0xff] }
 0x1b1   :  { %3905 = vmatprep.subr.bf16.mxu1 %v4571_v57  ;;  %v6271_v13 = vrot.slane %v4622_v12, %v580_v19  ;;  %v4236_v57 = vcombine.low %v157_v62, %v165_v0  ;;  %v6275_v16 = vrot.slane %v4622_v12, %v584_v6 }
 0x1b2   :  { %3853 = vmatpush2.bf16.msra.mxu0 %v4314_v20  ;;  %v125_v20 = vld [vmem:[%s6616_s1 + $0x2b8] sm:$0xff] }
 0x1b3   :  { %3854 = vmatprep.subr.bf16.mxu0 %v4299_v41 }
 0x1b4   :  { %3906 = vmatpush2.bf16.msra.mxu1 %v4570_v22  ;;  %v133_v22 = vld [vmem:[%s6616_s1 + $0x2f8] sm:$0xff] }
 0x1b5   :  { %3907 = vmatprep.subr.bf16.mxu1 %v4555_v24  ;;  %v381_v24 = vld [vmem:[%s6616_s1 + $0xab8] sm:$0xff]  ;;  %v4204_v56 = vcombine.low %v125_v20, %v133_v22 }
 0x1b6   :  { %3855 = vmatpush2.bf16.msra.mxu0 %v4298_v32  ;;  %v4461_v43 = vcombine.high %v381_v24, %v389_v26 }
 0x1b7   :  { %3856 = vmatprep.subr.bf16.mxu0 %v4283_v38  ;;  %v4205_v38 = vcombine.high %v125_v20, %v133_v22  ;;  %v85_v20 = vld [vmem:[%s6616_s1 + $0x178] sm:$0xff] }
 0x1b8   :  { %3908 = vmatpush2.bf16.msra.mxu1 %v4554_v36  ;;  %v4476_v36 = vcombine.low %v397_v10, %v405_v11 }
 0x1b9   :  { %3909 = vmatprep.subr.bf16.mxu1 %v4539_v39 }
 0x1ba   :  { %3857 = vmatpush2.bf16.msra.mxu0 %v4282_v46  ;;  %v117_v46 = vld [vmem:[%s6616_s1 + $0x278] sm:$0xff] }
 0x1bb   :  { %3858 = vmatprep.subr.bf16.mxu0 %v4267_v29  ;;  %v365_v29 = vld [vmem:[%s6616_s1 + $0xa38] sm:$0xff]  ;;  %v4188_v9 = vcombine.low %v109_v44, %v117_v46 }
 0x1bc   :  { %3910 = vmatpush2.bf16.msra.mxu1 %v4538_v47 }
 0x1bd   :  { %3911 = vmatprep.subr.bf16.mxu1 %v4523_v49  ;;  %v373_v49 = vld [vmem:[%s6616_s1 + $0xa78] sm:$0xff] }
 0x1be   :  { %3859 = vmatpush2.bf16.msra.mxu0 %v4266_v33  ;;  %v4445_v1 = vcombine.high %v365_v29, %v373_v49  ;;  %v4444_v12 = vcombine.low %v365_v29, %v373_v49  ;;  %v325_v29 = vld [vmem:[%s6616_s1 + $0x8f8] sm:$0xff] }
 0x1bf   :  { %3860 = vmatprep.subr.bf16.mxu0 %v4251_v60  ;;  %v4189_v60 = vcombine.high %v109_v44, %v117_v46 }
 0x1c0   :  { %3912 = vmatpush2.bf16.msra.mxu1 %v4522_v59  ;;  %v4460_v59 = vcombine.low %v381_v24, %v389_v26  ;;  %v333_v26 = vld [vmem:[%s6616_s1 + $0x938] sm:$0xff] }
 0x1c1   :  { %3913 = vmatprep.subr.bf16.mxu1 %v4507_v61 }
 0x1c2   :  { %3861 = vmatpush2.bf16.msra.mxu0 %v4250_v3  ;;  %v101_v3 = vld [vmem:[%s6616_s1 + $0x1f8] sm:$0xff] }
 0x1c3   :  { %3936 = vmatprep.subr.bf16.mxu0 %v4237_v45  ;;  %v357_v45 = vld [vmem:[%s6616_s1 + $0x9f8] sm:$0xff] }
 0x1c4   :  { %3914 = vmatpush2.bf16.msra.mxu1 %v4506_v4  ;;  %v349_v4 = vld [vmem:[%s6616_s1 + $0x9b8] sm:$0xff] }
 0x1c5   :  { %3989 = vmatprep.subr.bf16.mxu1 %v4493_v5  ;;  %v3546_v41 = vpop.f32.mrf.mxu0  ;;  %3863 = vmatmul.mubr.bf16.vlgmr.msra.gmra.mxu0 %v4886_v21 }
 0x1c6   :  { %v3547_v27 = vadd.f32 %v3546_v41, %v6271_v13  ;;  %3937 = vmatpush1.bf16.msra.mxu0 %v4236_v57  ;;  %3872 = vmatprep.mubr.bf16.mxu0 %v4911_v34  ;;  %v4173_v57 = vcombine.high %v93_v2, %v101_v3 }
 0x1c7   :  { %v3599_v30 = vpop.f32.mrf.mxu1  ;;  %3916 = vmatmul.mubr.bf16.vlgmr.msra.gmra.mxu1 %v4897_v25  ;;  %v3548_v32 = vpop.f32.mrf.mxu0  ;;  %3938 = vmatprep.subr.bf16.mxu0 %v4221_v15  ;;  %v4429_v15 = vcombine.high %v349_v4, %v357_v45 }
 0x1c8   :  { %3990 = vmatpush1.bf16.msra.mxu1 %v4492_v14  ;;  %v3600_v39 = vadd.f32 %v3599_v30, %v3547_v27  ;;  %v3549_v40 = vadd.f32 %v3548_v32, %v6275_v16  ;;  %3925 = vmatprep.mubr.bf16.mxu1 %v4920_v37  ;;  %v341_v27 = vld [vmem:[%s6616_s1 + $0x978] sm:$0xff] }
 0x1c9   :  { %v3601_v42 = vpop.f32.mrf.mxu1  ;;  %3991 = vmatprep.subr.bf16.mxu1 %v4477_v18  ;;  %v3550_v47 = vpop.f32.mrf.mxu0  ;;  %v77_v18 = vld [vmem:[%s6616_s1 + $0x138] sm:$0xff] }
 0x1ca   :  { %4048 = vst [vmem:[%s6619_s3 + $0x30] sm:$0xff] %v3600_v39  ;;  %v3602_v51 = vadd.f32 %v3601_v42, %v3549_v40  ;;  %v3551_v54 = vadd.f32 %v3550_v47, %v6271_v13  ;;  %3939 = vmatpush1.bf16.msra.mxu0 %v4220_v31  ;;  %v4172_v31 = vcombine.low %v93_v2, %v101_v3  ;;  %v317_v47 = vld [vmem:[%s6616_s1 + $0x8b8] sm:$0xff] }
 0x1cb   :  { %v3603_v55 = vpop.f32.mrf.mxu1  ;;  %v3552_v33 = vpop.f32.mrf.mxu0  ;;  %3940 = vmatprep.subr.bf16.mxu0 %v4205_v38  ;;  %v4428_v38 = vcombine.low %v349_v4, %v357_v45  ;;  %v4157_v39 = vcombine.high %v77_v18, %v85_v20  ;;  %v4413_v42 = vcombine.high %v333_v26, %v341_v27  ;;  %v4156_v49 = vcombine.low %v77_v18, %v85_v20  ;;  %v285_v2 = vld [vmem:[%s6616_s1 + $0x7b8] sm:$0xff] }
 0x1cc   :  { %3992 = vmatpush1.bf16.msra.mxu1 %v4476_v36  ;;  %4049 = vst [vmem:[%s6619_s3 + $0x38] sm:$0xff] %v3602_v51  ;;  %v3604_v61 = vadd.f32 %v3603_v55, %v3551_v54  ;;  %v3553_v62 = vadd.f32 %v3552_v33, %v6275_v16  ;;  %v4397_v55 = vcombine.high %v317_v47, %v325_v29  ;;  %v53_v33 = vld [vmem:[%s6616_s1 + $0x78] sm:$0xff] }
 0x1cd   :  { %v3605_v0 = vpop.f32.mrf.mxu1  ;;  %3993 = vmatprep.subr.bf16.mxu1 %v4461_v43  ;;  %3873 = vmatmul.mubr.bf16.gmra.mxu0 %v4948_v50  ;;  %v3556_v5 = vpop.f32.mrf.mxu0  ;;  %v69_v43 = vld [vmem:[%s6616_s1 + $0xf8] sm:$0xff] }
 0x1ce   :  { %4064 = vst [vmem:[%s6619_s3 + $0xb0] sm:$0xff] %v3604_v61  ;;  %v3606_v7 = vadd.f32 %v3605_v0, %v3553_v62  ;;  %3941 = vmatpush1.bf16.msra.mxu0 %v4204_v56  ;;  %v3557_v10 = vadd.f32 %v3556_v5, %v6271_v13  ;;  %3968 = vmatprep.mubr.bf16.mxu0 %v4739_v58  ;;  %v45_v56 = vld [vmem:[%s6616_s1 + $0x38] sm:$0xff] }
 0x1cf   :  { %3926 = vmatmul.mubr.bf16.gmra.mxu1 %v4951_v52  ;;  %v3609_v11 = vpop.f32.mrf.mxu1  ;;  %3942 = vmatprep.subr.bf16.mxu0 %v4189_v60  ;;  %v3558_v14 = vpop.f32.mrf.mxu0  ;;  %v309_v60 = vld [vmem:[%s6616_s1 + $0x878] sm:$0xff]  ;;  %v4396_v62 = vcombine.low %v317_v47, %v325_v29  ;;  %v4125_v0 = vcombine.high %v45_v56, %v53_v33  ;;  %v4124_v5 = vcombine.low %v45_v56, %v53_v33 }
 0x1d0   :  { %3994 = vmatpush1.bf16.msra.mxu1 %v4460_v59  ;;  %4065 = vst [vmem:[%s6619_s3 + $0xb8] sm:$0xff] %v3606_v7  ;;  %v3559_v22 = vadd.f32 %v3558_v14, %v6275_v16  ;;  %v3610_v41 = vadd.f32 %v3609_v11, %v3557_v10  ;;  %4021 = vmatprep.mubr.bf16.mxu1 %v4753_v63  ;;  %v61_v63 = vld [vmem:[%s6616_s1 + $0xb8] sm:$0xff] }
 0x1d1   :  { %3995 = vmatprep.subr.bf16.mxu1 %v4445_v1  ;;  %v3611_v24 = vpop.f32.mrf.mxu1  ;;  %v3560_v30 = vpop.f32.mrf.mxu0  ;;  %v4141_v54 = vcombine.high %v61_v63, %v69_v43  ;;  %v301_v59 = vld [vmem:[%s6616_s1 + $0x838] sm:$0xff]  ;;  %v4140_v61 = vcombine.low %v61_v63, %v69_v43 }
 0x1d2   :  { %3943 = vmatpush1.bf16.msra.mxu0 %v4188_v9  ;;  %4080 = vst [vmem:[%s6619_s3 + $0x130] sm:$0xff] %v3610_v41  ;;  %v3561_v32 = vadd.f32 %v3560_v30, %v6271_v13  ;;  %v3612_v58 = vadd.f32 %v3611_v24, %v3559_v22  ;;  %v4381_v1 = vcombine.high %v301_v59, %v309_v60  ;;  %v293_v3 = vld [vmem:[%s6616_s1 + $0x7f8] sm:$0xff] }
 0x1d3   :  { %v3613_v36 = vpop.f32.mrf.mxu1  ;;  %3944 = vmatprep.subr.bf16.mxu0 %v4173_v57  ;;  %v3562_v40 = vpop.f32.mrf.mxu0  ;;  %v541_v4 = vld [vmem:[%s6616_s1 + $0xfb8] sm:$0xff]  ;;  %v4380_v7 = vcombine.low %v301_v59, %v309_v60  ;;  %v4365_v9 = vcombine.high %v285_v2, %v293_v3 }
 0x1d4   :  { %3996 = vmatpush1.bf16.msra.mxu1 %v4444_v12  ;;  %4081 = vst [vmem:[%s6619_s3 + $0x138] sm:$0xff] %v3612_v58  ;;  %v3563_v13 = vadd.f32 %v3562_v40, %v6275_v16  ;;  %v3614_v44 = vadd.f32 %v3613_v36, %v3561_v32  ;;  %v4412_v16 = vcombine.low %v333_v26, %v341_v27  ;;  %v549_v45 = vld [vmem:[%s6616_s1 + $0xff8] sm:$0xff] }
 0x1d5   :  { %3997 = vmatprep.subr.bf16.mxu1 %v4429_v15  ;;  %v3615_v46 = vpop.f32.mrf.mxu1  ;;  %v4621_v10 = vcombine.high %v541_v4, %v549_v45  ;;  %v269_v11 = vld [vmem:[%s6616_s1 + $0x738] sm:$0xff]  ;;  %v4364_v15 = vcombine.low %v285_v2, %v293_v3  ;;  %v4620_v18 = vcombine.low %v541_v4, %v549_v45 }
 0x1d6   :  { %3945 = vmatpush1.bf16.msra.mxu0 %v4172_v31  ;;  %4096 = vst [vmem:[%s6619_s3 + $0x1b0] sm:$0xff] %v3614_v44  ;;  %v3616_v51 = vadd.f32 %v3615_v46, %v3563_v13  ;;  %v277_v12 = vld [vmem:[%s6616_s1 + $0x778] sm:$0xff] }
 0x1d7   :  { %3946 = vmatprep.subr.bf16.mxu0 %v4157_v39  ;;  %v525_v57 = vld [vmem:[%s6616_s1 + $0xf38] sm:$0xff]  ;;  %v4349_v20 = vcombine.high %v269_v11, %v277_v12  ;;  %v4348_v30 = vcombine.low %v269_v11, %v277_v12 }
 0x1d8   :  { %3998 = vmatpush1.bf16.msra.mxu1 %v4428_v38  ;;  %4097 = vst [vmem:[%s6619_s3 + $0x1b8] sm:$0xff] %v3616_v51  ;;  %v533_v14 = vld [vmem:[%s6616_s1 + $0xf78] sm:$0xff] }
 0x1d9   :  { %3999 = vmatprep.subr.bf16.mxu1 %v4413_v42  ;;  %v4605_v22 = vcombine.high %v525_v57, %v533_v14  ;;  %v253_v41 = vld [vmem:[%s6616_s1 + $0x6b8] sm:$0xff]  ;;  %v4604_v31 = vcombine.low %v525_v57, %v533_v14 }
 0x1da   :  { %3947 = vmatpush1.bf16.msra.mxu0 %v4156_v49  ;;  %v261_v24 = vld [vmem:[%s6616_s1 + $0x6f8] sm:$0xff] }
 0x1db   :  { %3948 = vmatprep.subr.bf16.mxu0 %v4141_v54  ;;  %v509_v26 = vld [vmem:[%s6616_s1 + $0xeb8] sm:$0xff]  ;;  %v4333_v32 = vcombine.high %v253_v41, %v261_v24  ;;  %v4332_v42 = vcombine.low %v253_v41, %v261_v24  ;;  %v6488_v24 = vld [vmem:[%s6618_s2 + $0x8] sm:$0xff] }
 0x1dc   :  { %4000 = vmatpush1.bf16.msra.mxu1 %v4412_v16  ;;  %v517_v27 = vld [vmem:[%s6616_s1 + $0xef8] sm:$0xff] }
 0x1dd   :  { %4001 = vmatprep.subr.bf16.mxu1 %v4397_v55  ;;  %v4589_v58 = vcombine.high %v509_v26, %v517_v27  ;;  %v237_v36 = vld [vmem:[%s6616_s1 + $0x638] sm:$0xff]  ;;  %v4588_v63 = vcombine.low %v509_v26, %v517_v27  ;;  %v589_v26 = vrot.slane %v6488_v24, %v556_v17  ;;  %v593_v27 = vrot.slane %v6488_v24, %v560_v23 }
 0x1de   :  { %3949 = vmatpush1.bf16.msra.mxu0 %v4140_v61  ;;  %v245_v38 = vld [vmem:[%s6616_s1 + $0x678] sm:$0xff] }
 0x1df   :  { %3950 = vmatprep.subr.bf16.mxu0 %v4125_v0  ;;  %v493_v39 = vld [vmem:[%s6616_s1 + $0xe38] sm:$0xff]  ;;  %v4317_v43 = vcombine.high %v237_v36, %v245_v38  ;;  %v4316_v49 = vcombine.low %v237_v36, %v245_v38 }
 0x1e0   :  { %4002 = vmatpush1.bf16.msra.mxu1 %v4396_v62  ;;  %v501_v40 = vld [vmem:[%s6616_s1 + $0xe78] sm:$0xff] }
 0x1e1   :  { %4003 = vmatprep.subr.bf16.mxu1 %v4381_v1  ;;  %v4573_v13 = vcombine.high %v493_v39, %v501_v40  ;;  %v221_v44 = vld [vmem:[%s6616_s1 + $0x5b8] sm:$0xff]  ;;  %v4572_v51 = vcombine.low %v493_v39, %v501_v40 }
 0x1e2   :  { %3951 = vmatpush1.bf16.msra.mxu0 %v4124_v5  ;;  %v229_v46 = vld [vmem:[%s6616_s1 + $0x5f8] sm:$0xff] }
 0x1e3   :  { %3952 = vmatprep.subr.bf16.mxu0 %v4365_v9  ;;  %v477_v47 = vld [vmem:[%s6616_s1 + $0xdb8] sm:$0xff]  ;;  %v4301_v16 = vcombine.high %v221_v44, %v229_v46  ;;  %v4300_v60 = vcombine.low %v221_v44, %v229_v46 }
 0x1e4   :  { %4004 = vmatpush1.bf16.msra.mxu1 %v4380_v7  ;;  %v485_v29 = vld [vmem:[%s6616_s1 + $0xdf8] sm:$0xff] }
 0x1e5   :  { %4005 = vmatprep.subr.bf16.mxu1 %v4621_v10  ;;  %v4557_v54 = vcombine.high %v477_v47, %v485_v29  ;;  %v205_v55 = vld [vmem:[%s6616_s1 + $0x538] sm:$0xff]  ;;  %v4556_v61 = vcombine.low %v477_v47, %v485_v29 }
 0x1e6   :  { %3953 = vmatpush2.bf16.msra.mxu0 %v4364_v15  ;;  %v213_v56 = vld [vmem:[%s6616_s1 + $0x578] sm:$0xff] }
 0x1e7   :  { %3954 = vmatprep.subr.bf16.mxu0 %v4349_v20  ;;  %v461_v33 = vld [vmem:[%s6616_s1 + $0xd38] sm:$0xff]  ;;  %v4285_v62 = vcombine.high %v205_v55, %v213_v56  ;;  %v4284_v45 = vcombine.low %v205_v55, %v213_v56 }
 0x1e8   :  { %4006 = vmatpush2.bf16.msra.mxu1 %v4620_v18  ;;  %v469_v59 = vld [vmem:[%s6616_s1 + $0xd78] sm:$0xff] }
 0x1e9   :  { %4007 = vmatprep.subr.bf16.mxu1 %v4605_v22  ;;  %v4541_v0 = vcombine.high %v461_v33, %v469_v59  ;;  %v189_v1 = vld [vmem:[%s6616_s1 + $0x4b8] sm:$0xff]  ;;  %v4540_v5 = vcombine.low %v461_v33, %v469_v59 }
 0x1ea   :  { %3955 = vmatpush2.bf16.msra.mxu0 %v4348_v30  ;;  %v197_v2 = vld [vmem:[%s6616_s1 + $0x4f8] sm:$0xff] }
 0x1eb   :  { %3956 = vmatprep.subr.bf16.mxu0 %v4333_v32  ;;  %v445_v3 = vld [vmem:[%s6616_s1 + $0xcb8] sm:$0xff]  ;;  %v4269_v7 = vcombine.high %v189_v1, %v197_v2  ;;  %v4268_v14 = vcombine.low %v189_v1, %v197_v2 }
 0x1ec   :  { %4008 = vmatpush2.bf16.msra.mxu1 %v4604_v31  ;;  %v453_v4 = vld [vmem:[%s6616_s1 + $0xcf8] sm:$0xff] }
 0x1ed   :  { %4009 = vmatprep.subr.bf16.mxu1 %v4589_v58  ;;  %v4525_v9 = vcombine.high %v445_v3, %v453_v4  ;;  %v173_v10 = vld [vmem:[%s6616_s1 + $0x438] sm:$0xff]  ;;  %v4524_v15 = vcombine.low %v445_v3, %v453_v4 }
 0x1ee   :  { %3957 = vmatpush2.bf16.msra.mxu0 %v4332_v42  ;;  %v181_v11 = vld [vmem:[%s6616_s1 + $0x478] sm:$0xff] }
 0x1ef   :  { %3958 = vmatprep.subr.bf16.mxu0 %v4317_v43  ;;  %v429_v12 = vld [vmem:[%s6616_s1 + $0xc38] sm:$0xff]  ;;  %v4253_v18 = vcombine.high %v173_v10, %v181_v11  ;;  %v4252_v22 = vcombine.low %v173_v10, %v181_v11 }
 0x1f0   :  { %4010 = vmatpush2.bf16.msra.mxu1 %v4588_v63  ;;  %v437_v57 = vld [vmem:[%s6616_s1 + $0xc78] sm:$0xff] }
 0x1f1   :  { %4011 = vmatprep.subr.bf16.mxu1 %v4573_v13  ;;  %v4509_v20 = vcombine.high %v429_v12, %v437_v57  ;;  %v4508_v41 = vcombine.low %v429_v12, %v437_v57 }
 0x1f2   :  { %3959 = vmatpush2.bf16.msra.mxu0 %v4316_v49 }
 0x1f3   :  { %3960 = vmatprep.subr.bf16.mxu0 %v4301_v16 }
 0x1f4   :  { %4012 = vmatpush2.bf16.msra.mxu1 %v4572_v51 }
 0x1f5   :  { %4013 = vmatprep.subr.bf16.mxu1 %v4557_v54 }
 0x1f6   :  { %3961 = vmatpush2.bf16.msra.mxu0 %v4300_v60  ;;  %v597_v60 = vrot.slane %v6488_v24, %v564_v28 }
 0x1f7   :  { %3962 = vmatprep.subr.bf16.mxu0 %v4285_v62 }
 0x1f8   :  { %4014 = vmatpush2.bf16.msra.mxu1 %v4556_v61  ;;  %v601_v61 = vrot.slane %v6488_v24, %v568_v35 }
 0x1f9   :  { %4015 = vmatprep.subr.bf16.mxu1 %v4541_v0 }
 0x1fa   :  { %3963 = vmatpush2.bf16.msra.mxu0 %v4284_v45 }
 0x1fb   :  { %3964 = vmatprep.subr.bf16.mxu0 %v4269_v7 }
 0x1fc   :  { %4016 = vmatpush2.bf16.msra.mxu1 %v4540_v5 }
 0x1fd   :  { %4017 = vmatprep.subr.bf16.mxu1 %v4525_v9 }
 0x1fe   :  { %3965 = vmatpush2.bf16.msra.mxu0 %v4268_v14 }
 0x1ff   :  { %3966 = vmatprep.subr.bf16.mxu0 %v4253_v18 }
 0x200   :  { %4018 = vmatpush2.bf16.msra.mxu1 %v4524_v15 }
 0x201   :  { %4019 = vmatprep.subr.bf16.mxu1 %v4509_v20 }
 0x202   :  { %3967 = vmatpush2.bf16.msra.mxu0 %v4252_v22 }
 0x204   :  { %4020 = vmatpush2.bf16.msra.mxu1 %v4508_v41 }
 0x205   :  { %v3652_v30 = vpop.f32.mrf.mxu0  ;;  %3969 = vmatmul.mubr.bf16.vlgmr.msra.gmra.mxu0 %v4886_v21 }
 0x206   :  { %v3653_v31 = vadd.f32 %v3652_v30, %v589_v26  ;;  %3978 = vmatprep.mubr.bf16.mxu0 %v4911_v34 }
 0x207   :  { %v3705_v32 = vpop.f32.mrf.mxu1  ;;  %4022 = vmatmul.mubr.bf16.vlgmr.msra.gmra.mxu1 %v4897_v25  ;;  %v3654_v58 = vpop.f32.mrf.mxu0 }
 0x208   :  { %4031 = vmatprep.mubr.bf16.mxu1 %v4920_v37  ;;  %v3706_v36 = vadd.f32 %v3705_v32, %v3653_v31  ;;  %v3655_v38 = vadd.f32 %v3654_v58, %v593_v27 }
 0x209   :  { %v3707_v17 = vpop.f32.mrf.mxu1  ;;  %v3656_v39 = vpop.f32.mrf.mxu0 }
 0x20a   :  { %4050 = vst [vmem:[%s6619_s3 + $0x40] sm:$0xff] %v3706_v36  ;;  %v3708_v23 = vadd.f32 %v3707_v17, %v3655_v38  ;;  %v3657_v40 = vadd.f32 %v3656_v39, %v589_v26 }
 0x20b   :  { %v3709_v21 = vpop.f32.mrf.mxu1  ;;  %v3658_v42 = vpop.f32.mrf.mxu0 }
 0x20c   :  { %4051 = vst [vmem:[%s6619_s3 + $0x48] sm:$0xff] %v3708_v23  ;;  %v3710_v25 = vadd.f32 %v3709_v21, %v3657_v40  ;;  %v3659_v34 = vadd.f32 %v3658_v42, %v593_v27  ;;  %v605_v23 = vrot.slane %v6488_v24, %v572_v48  ;;  %v609_v40 = vrot.slane %v6488_v24, %v576_v53 }
 0x20d   :  { %v3711_v63 = vpop.f32.mrf.mxu1  ;;  %3979 = vmatmul.mubr.bf16.gmra.mxu0 %v4948_v50  ;;  %v3662_v37 = vpop.f32.mrf.mxu0 }
 0x20e   :  { %4066 = vst [vmem:[%s6619_s3 + $0xc0] sm:$0xff] %v3710_v25  ;;  %v3712_v43 = vadd.f32 %v3711_v63, %v3659_v34  ;;  %v3663_v13 = vadd.f32 %v3662_v37, %v589_v26 }
 0x20f   :  { %4032 = vmatmul.mubr.bf16.gmra.mxu1 %v4951_v52  ;;  %v3715_v44 = vpop.f32.mrf.mxu1  ;;  %v3664_v46 = vpop.f32.mrf.mxu0 }
 0x210   :  { %4067 = vst [vmem:[%s6619_s3 + $0xc8] sm:$0xff] %v3712_v43  ;;  %v3665_v47 = vadd.f32 %v3664_v46, %v593_v27  ;;  %v3716_v29 = vadd.f32 %v3715_v44, %v3663_v13 }
 0x211   :  { %v3717_v49 = vpop.f32.mrf.mxu1  ;;  %v3666_v51 = vpop.f32.mrf.mxu0 }
 0x212   :  { %4082 = vst [vmem:[%s6619_s3 + $0x140] sm:$0xff] %v3716_v29  ;;  %v3667_v50 = vadd.f32 %v3666_v51, %v589_v26  ;;  %v3718_v16 = vadd.f32 %v3717_v49, %v3665_v47 }
 0x213   :  { %v3719_v54 = vpop.f32.mrf.mxu1  ;;  %v3668_v55 = vpop.f32.mrf.mxu0 }
 0x214   :  { %4083 = vst [vmem:[%s6619_s3 + $0x148] sm:$0xff] %v3718_v16  ;;  %v3669_v52 = vadd.f32 %v3668_v55, %v593_v27  ;;  %v3720_v56 = vadd.f32 %v3719_v54, %v3667_v50 }
 0x215   :  { %v3721_v33 = vpop.f32.mrf.mxu1 }
 0x216   :  { %4098 = vst [vmem:[%s6619_s3 + $0x1c0] sm:$0xff] %v3720_v56  ;;  %v3722_v59 = vadd.f32 %v3721_v33, %v3669_v52 }
 0x218   :  { %4099 = vst [vmem:[%s6619_s3 + $0x1c8] sm:$0xff] %v3722_v59 }
 0x245   :  { %v3758_v62 = vpop.f32.mrf.mxu0 }
 0x246   :  { %v3759_v0 = vadd.f32 %v3758_v62, %v597_v60 }
 0x247   :  { %v3811_v1 = vpop.f32.mrf.mxu1  ;;  %v3760_v2 = vpop.f32.mrf.mxu0 }
 0x248   :  { %v3812_v3 = vadd.f32 %v3811_v1, %v3759_v0  ;;  %v3761_v4 = vadd.f32 %v3760_v2, %v601_v61 }
 0x249   :  { %v3813_v45 = vpop.f32.mrf.mxu1  ;;  %v3762_v5 = vpop.f32.mrf.mxu0 }
 0x24a   :  { %4052 = vst [vmem:[%s6619_s3 + $0x50] sm:$0xff] %v3812_v3  ;;  %v3814_v7 = vadd.f32 %v3813_v45, %v3761_v4  ;;  %v3763_v9 = vadd.f32 %v3762_v5, %v597_v60  ;;  %v613_v45 = vrot.slane %v6488_v24, %v580_v19  ;;  %v617_v5 = vrot.slane %v6488_v24, %v584_v6 }
 0x24b   :  { %v3815_v10 = vpop.f32.mrf.mxu1  ;;  %v3764_v28 = vpop.f32.mrf.mxu0 }
 0x24c   :  { %4053 = vst [vmem:[%s6619_s3 + $0x58] sm:$0xff] %v3814_v7  ;;  %v3816_v35 = vadd.f32 %v3815_v10, %v3763_v9  ;;  %v3765_v11 = vadd.f32 %v3764_v28, %v601_v61 }
 0x24d   :  { %v3817_v12 = vpop.f32.mrf.mxu1  ;;  %v3768_v57 = vpop.f32.mrf.mxu0 }
 0x24e   :  { %4068 = vst [vmem:[%s6619_s3 + $0xd0] sm:$0xff] %v3816_v35  ;;  %v3818_v14 = vadd.f32 %v3817_v12, %v3765_v11  ;;  %v3769_v15 = vadd.f32 %v3768_v57, %v597_v60 }
 0x24f   :  { %v3821_v18 = vpop.f32.mrf.mxu1  ;;  %v3770_v20 = vpop.f32.mrf.mxu0 }
 0x250   :  { %4069 = vst [vmem:[%s6619_s3 + $0xd8] sm:$0xff] %v3818_v14  ;;  %v3771_v22 = vadd.f32 %v3770_v20, %v601_v61  ;;  %v3822_v41 = vadd.f32 %v3821_v18, %v3769_v15 }
 0x251   :  { %v3823_v26 = vpop.f32.mrf.mxu1  ;;  %v3772_v27 = vpop.f32.mrf.mxu0 }
 0x252   :  { %4084 = vst [vmem:[%s6619_s3 + $0x150] sm:$0xff] %v3822_v41  ;;  %v3773_v30 = vadd.f32 %v3772_v27, %v597_v60  ;;  %v3824_v31 = vadd.f32 %v3823_v26, %v3771_v22 }
 0x253   :  { %v3825_v32 = vpop.f32.mrf.mxu1  ;;  %v3774_v58 = vpop.f32.mrf.mxu0 }
 0x254   :  { %4085 = vst [vmem:[%s6619_s3 + $0x158] sm:$0xff] %v3824_v31  ;;  %v3775_v36 = vadd.f32 %v3774_v58, %v601_v61  ;;  %v3826_v38 = vadd.f32 %v3825_v32, %v3773_v30 }
 0x255   :  { %v3827_v17 = vpop.f32.mrf.mxu1 }
 0x256   :  { %4100 = vst [vmem:[%s6619_s3 + $0x1d0] sm:$0xff] %v3826_v38  ;;  %v3828_v39 = vadd.f32 %v3827_v17, %v3775_v36 }
 0x258   :  { %4101 = vst [vmem:[%s6619_s3 + $0x1d8] sm:$0xff] %v3828_v39 }
 0x285   :  { %v3864_v21 = vpop.f32.mrf.mxu0 }
 0x286   :  { %v3865_v42 = vadd.f32 %v3864_v21, %v605_v23 }
 0x287   :  { %v3917_v25 = vpop.f32.mrf.mxu1  ;;  %v3866_v34 = vpop.f32.mrf.mxu0 }
 0x288   :  { %v3918_v63 = vadd.f32 %v3917_v25, %v3865_v42  ;;  %v3867_v37 = vadd.f32 %v3866_v34, %v609_v40 }
 0x289   :  { %v3919_v43 = vpop.f32.mrf.mxu1  ;;  %v3868_v13 = vpop.f32.mrf.mxu0 }
 0x28a   :  { %4054 = vst [vmem:[%s6619_s3 + $0x60] sm:$0xff] %v3918_v63  ;;  %v3920_v44 = vadd.f32 %v3919_v43, %v3867_v37  ;;  %v3869_v46 = vadd.f32 %v3868_v13, %v605_v23 }
 0x28b   :  { %v3921_v47 = vpop.f32.mrf.mxu1  ;;  %v3870_v48 = vpop.f32.mrf.mxu0 }
 0x28c   :  { %4055 = vst [vmem:[%s6619_s3 + $0x68] sm:$0xff] %v3920_v44  ;;  %v3922_v53 = vadd.f32 %v3921_v47, %v3869_v46  ;;  %v3871_v29 = vadd.f32 %v3870_v48, %v609_v40 }
 0x28d   :  { %v3923_v49 = vpop.f32.mrf.mxu1  ;;  %v3874_v51 = vpop.f32.mrf.mxu0 }
 0x28e   :  { %4070 = vst [vmem:[%s6619_s3 + $0xe0] sm:$0xff] %v3922_v53  ;;  %v3924_v50 = vadd.f32 %v3923_v49, %v3871_v29  ;;  %v3875_v16 = vadd.f32 %v3874_v51, %v605_v23 }
 0x28f   :  { %v3927_v54 = vpop.f32.mrf.mxu1  ;;  %v3876_v55 = vpop.f32.mrf.mxu0 }
 0x290   :  { %4071 = vst [vmem:[%s6619_s3 + $0xe8] sm:$0xff] %v3924_v50  ;;  %v3877_v52 = vadd.f32 %v3876_v55, %v609_v40  ;;  %v3928_v56 = vadd.f32 %v3927_v54, %v3875_v16 }
 0x291   :  { %v3929_v33 = vpop.f32.mrf.mxu1  ;;  %v3878_v59 = vpop.f32.mrf.mxu0 }
 0x292   :  { %4086 = vst [vmem:[%s6619_s3 + $0x160] sm:$0xff] %v3928_v56  ;;  %v3879_v60 = vadd.f32 %v3878_v59, %v605_v23  ;;  %v3930_v61 = vadd.f32 %v3929_v33, %v3877_v52 }
 0x293   :  { %v3931_v62 = vpop.f32.mrf.mxu1  ;;  %v3880_v0 = vpop.f32.mrf.mxu0 }
 0x294   :  { %4087 = vst [vmem:[%s6619_s3 + $0x168] sm:$0xff] %v3930_v61  ;;  %v3881_v1 = vadd.f32 %v3880_v0, %v609_v40  ;;  %v3932_v2 = vadd.f32 %v3931_v62, %v3879_v60 }
 0x295   :  { %v3933_v3 = vpop.f32.mrf.mxu1 }
 0x296   :  { %4102 = vst [vmem:[%s6619_s3 + $0x1e0] sm:$0xff] %v3932_v2  ;;  %v3934_v4 = vadd.f32 %v3933_v3, %v3881_v1 }
 0x298   :  { %4103 = vst [vmem:[%s6619_s3 + $0x1e8] sm:$0xff] %v3934_v4 }
 0x2c5   :  { %v3970_v7 = vpop.f32.mrf.mxu0 }
 0x2c6   :  { %v3971_v9 = vadd.f32 %v3970_v7, %v613_v45 }
 0x2c7   :  { %v4023_v10 = vpop.f32.mrf.mxu1  ;;  %v3972_v28 = vpop.f32.mrf.mxu0 }
 0x2c8   :  { %v4024_v35 = vadd.f32 %v4023_v10, %v3971_v9  ;;  %v3973_v11 = vadd.f32 %v3972_v28, %v617_v5 }
 0x2c9   :  { %v4025_v12 = vpop.f32.mrf.mxu1  ;;  %v3974_v57 = vpop.f32.mrf.mxu0 }
 0x2ca   :  { %4056 = vst [vmem:[%s6619_s3 + $0x70] sm:$0xff] %v4024_v35  ;;  %v4026_v14 = vadd.f32 %v4025_v12, %v3973_v11  ;;  %v3975_v15 = vadd.f32 %v3974_v57, %v613_v45 }
 0x2cb   :  { %v4027_v18 = vpop.f32.mrf.mxu1  ;;  %v3976_v19 = vpop.f32.mrf.mxu0 }
 0x2cc   :  { %4057 = vst [vmem:[%s6619_s3 + $0x78] sm:$0xff] %v4026_v14  ;;  %v4028_v8 = vadd.f32 %v4027_v18, %v3975_v15  ;;  %v3977_v6 = vadd.f32 %v3976_v19, %v617_v5 }
 0x2cd   :  { %v4029_v24 = vpop.f32.mrf.mxu1  ;;  %v3980_v20 = vpop.f32.mrf.mxu0 }
 0x2ce   :  { %4072 = vst [vmem:[%s6619_s3 + $0xf0] sm:$0xff] %v4028_v8  ;;  %v4030_v22 = vadd.f32 %v4029_v24, %v3977_v6  ;;  %v3981_v41 = vadd.f32 %v3980_v20, %v613_v45 }
 0x2cf   :  { %v4033_v26 = vpop.f32.mrf.mxu1  ;;  %v3982_v27 = vpop.f32.mrf.mxu0 }
 0x2d0   :  { %4073 = vst [vmem:[%s6619_s3 + $0xf8] sm:$0xff] %v4030_v22  ;;  %v4034_v30 = vadd.f32 %v4033_v26, %v3981_v41  ;;  %v3983_v31 = vadd.f32 %v3982_v27, %v617_v5 }
 0x2d1   :  { %v4035_v32 = vpop.f32.mrf.mxu1  ;;  %v3984_v58 = vpop.f32.mrf.mxu0 }
 0x2d2   :  { %4088 = vst [vmem:[%s6619_s3 + $0x170] sm:$0xff] %v4034_v30  ;;  %v4036_v36 = vadd.f32 %v4035_v32, %v3983_v31  ;;  %v3985_v38 = vadd.f32 %v3984_v58, %v613_v45 }
 0x2d3   :  { %v4037_v17 = vpop.f32.mrf.mxu1  ;;  %v3986_v39 = vpop.f32.mrf.mxu0 }
 0x2d4   :  { %4089 = vst [vmem:[%s6619_s3 + $0x178] sm:$0xff] %v4036_v36  ;;  %v4038_v23 = vadd.f32 %v4037_v17, %v3985_v38  ;;  %v3987_v40 = vadd.f32 %v3986_v39, %v617_v5 }
 0x2d5   :  { %v4039_v21 = vpop.f32.mrf.mxu1 }
 0x2d6   :  { %4104 = vst [vmem:[%s6619_s3 + $0x1f0] sm:$0xff] %v4038_v23  ;;  %v4040_v42 = vadd.f32 %v4039_v21, %v3987_v40 }
 0x2d8   :  { %4105 = vst [vmem:[%s6619_s3 + $0x1f8] sm:$0xff] %v4040_v42 }

</bundles_post_ra>
